<compile_context>
chip_gen: v5e
topology: v5e:2x2
jax: 0.10.0
libtpu: 0.0.40
codegen_flags: <defaults>
</compile_context>

<pallas_src>
from functools import partial
from math import sqrt

import jax
import jax.numpy as jnp
from jax import lax
from jax.experimental import pallas as pl
from jax.experimental.pallas import tpu as pltpu

N_BOXES = {'conv4_3': 4, 'conv7': 6, 'conv8_2': 6,
           'conv9_2': 6, 'conv10_2': 4, 'conv11_2': 4}
CIN = {'conv4_3': 512, 'conv7': 1024, 'conv8_2': 512,
       'conv9_2': 256, 'conv10_2': 256, 'conv11_2': 256}
ORDER = ['conv4_3', 'conv7', 'conv8_2', 'conv9_2', 'conv10_2', 'conv11_2']

LANE = 128


# ----------------------------- Pallas kernel --------------------------------

def _conv3x3_kernel(x_ref, w_ref, b_ref, o_ref, acc_ref, *, m, wp):
    # x_ref : (Lflat, Cin)   bf16 padded NHWC map, (H+3, W+2) flattened
    # w_ref : (9, Cin, Coutp) bf16, tap index k = kh*3 + kw
    # b_ref : (1, Coutp)      f32
    # o_ref : (M, Coutp)      M = H*(W+2) "extended" output rows
    # acc_ref: (M, Coutp)     f32 VMEM scratch accumulator
    x = x_ref[...]                                   # aligned bf16 tile
    for k in range(9):                               # unrolled 9-tap reduction
        off = (k // 3) * wp + (k % 3)                # static row offset
        p_full = jnp.dot(x, w_ref[k],
                         preferred_element_type=jnp.float32)  # (Lflat, Coutp)
        part = p_full[off:off + m, :]                # static f32 row slice
        if k == 0:
            acc_ref[...] = part
        else:
            acc_ref[...] = acc_ref[...] + part
    o_ref[...] = (acc_ref[...] + b_ref[...]).astype(o_ref.dtype)


def conv3x3_pred(x_nchw, w_oihw, bias):
    """3x3 conv, stride 1, padding 1 -> (B, H*W, Cout), i.e. PyTorch's
    permute(0,2,3,1).contiguous().view(B, -1, Cout) layout."""
    B, Cin, H, W = x_nchw.shape
    Cout = w_oihw.shape[0]
    coutp = ((Cout + LANE - 1) // LANE) * LANE       # lane-dense output width
    Wp = W + 2
    Lflat = (H + 3) * Wp                             # 1 top / 2 bottom row pad
    M = H * Wp                                       # extended output rows

    # Glue: NCHW -> NHWC, zero pad, flatten spatial dims, cast to bf16.
    x = jnp.transpose(x_nchw, (0, 2, 3, 1))
    xp = jnp.pad(x, ((0, 0), (1, 2), (1, 1), (0, 0)))
    xflat = xp.reshape(B, Lflat, Cin).astype(jnp.bfloat16)

    # (Cout, Cin, 3, 3) -> (9, Cin, Coutp), tap index k = kh*3 + kw.
    w = jnp.transpose(w_oihw, (2, 3, 1, 0)).reshape(9, Cin, Cout)
    w = jnp.pad(w, ((0, 0), (0, 0), (0, coutp - Cout))).astype(jnp.bfloat16)
    b2 = jnp.pad(bias, (0, coutp - Cout)).reshape(1, coutp).astype(jnp.float32)

    kernel = partial(_conv3x3_kernel, m=M, wp=Wp)
    oext = pl.pallas_call(
        kernel,
        out_shape=jax.ShapeDtypeStruct((B, M, coutp), x_nchw.dtype),
        grid_spec=pltpu.PrefetchScalarGridSpec(
            num_scalar_prefetch=0,
            grid=(B,),
            in_specs=[
                pl.BlockSpec((None, Lflat, Cin), lambda b: (b, 0, 0)),
                pl.BlockSpec((9, Cin, coutp), lambda b: (0, 0, 0)),
                pl.BlockSpec((1, coutp), lambda b: (0, 0)),
            ],
            out_specs=pl.BlockSpec((None, M, coutp), lambda b: (b, 0, 0)),
            scratch_shapes=[pltpu.VMEM((M, coutp), jnp.float32)],
        ),
        compiler_params=pltpu.CompilerParams(
            dimension_semantics=("parallel",)),      # v7x: batch across 2 TCs
    )(xflat, w, b2)

    # Drop the W+2 "junk" columns and the zero-padded output channels.
    out = oext.reshape(B, H, Wp, coutp)[:, :, :W, :Cout]
    return out.reshape(B, H * W, Cout)


# --------------------------- Parameters / forward ---------------------------

def xavier_uniform(key, cout, cin):
    fan_in, fan_out = cin * 9, cout * 9
    bound = sqrt(6.0 / (fan_in + fan_out))
    return jax.random.uniform(key, (cout, cin, 3, 3), jnp.float32,
                              minval=-bound, maxval=bound)


def init_params(key, n_classes):
    params = {}
    keys = jax.random.split(key, 2 * len(ORDER))
    for i, name in enumerate(ORDER):
        cin, nb = CIN[name], N_BOXES[name]
        params[name] = dict(
            loc_w=xavier_uniform(keys[2 * i], nb * 4, cin),
            loc_b=jnp.zeros((nb * 4,), jnp.float32),
            cl_w=xavier_uniform(keys[2 * i + 1], nb * n_classes, cin),
            cl_b=jnp.zeros((nb * n_classes,), jnp.float32),
        )
    return params


def pred_layers_forward(params, feats, n_classes):
    locs, clss = [], []
    for name, x in zip(ORDER, feats):
        p = params[name]
        nb = N_BOXES[name]
        B = x.shape[0]
        # Fuse loc + class heads (same input) into one kernel call.
        w = jnp.concatenate([p['loc_w'], p['cl_w']], axis=0)
        b = jnp.concatenate([p['loc_b'], p['cl_b']], axis=0)
        out = conv3x3_pred(x, w, b)            # (B, H*W, nb*4 + nb*n_classes)
        split = nb * 4
        locs.append(out[..., :split].reshape(B, -1, 4))
        clss.append(out[..., split:].reshape(B, -1, n_classes))
    return jnp.concatenate(locs, axis=1), jnp.concatenate(clss, axis=1)


# ------------------------------- Reference ----------------------------------

def ref_forward(params, feats, n_classes):
    locs, clss = [], []
    for name, x in zip(ORDER, feats):
        p = params[name]
        B = x.shape[0]

        def conv(x, w, b):
            y = lax.conv_general_dilated(
                x, w, window_strides=(1, 1), padding=((1, 1), (1, 1)),
                dimension_numbers=('NCHW', 'OIHW', 'NCHW'),
                precision=lax.Precision.HIGHEST)
            return y + b[None, :, None, None]

        l = conv(x, p['loc_w'], p['loc_b'])
        c = conv(x, p['cl_w'], p['cl_b'])
        locs.append(jnp.transpose(l, (0, 2, 3, 1)).reshape(B, -1, 4))
        clss.append(jnp.transpose(c, (0, 2, 3, 1)).reshape(B, -1, n_classes))
    return jnp.concatenate(locs, axis=1), jnp.concatenate(clss, axis=1)


# --------------------------------- Main --------------------------------------

if __name__ == "__main__":
    n_classes = 4
    batch = 2
    spatial = {'conv4_3': 8, 'conv7': 4, 'conv8_2': 4,
               'conv9_2': 2, 'conv10_2': 2, 'conv11_2': 1}

    key = jax.random.PRNGKey(0)
    pkey, *fkeys = jax.random.split(key, 1 + len(ORDER))

    params = init_params(pkey, n_classes)
    feats = []
    for fk, name in zip(fkeys, ORDER):
        s = spatial[name]
        feats.append(jax.random.normal(fk, (batch, CIN[name], s, s),
                                       jnp.float32))

    fwd = jax.jit(lambda p, *xs: pred_layers_forward(p, xs, n_classes))
    locations, class_scores = fwd(params, *feats)
    jax.block_until_ready((locations, class_scores))

    # Sanity check against a plain-JAX (XLA conv, f32) reference.
    ref_loc, ref_cls = ref_forward(params, feats, n_classes)
    n_priors = sum(spatial[n] ** 2 * N_BOXES[n] for n in ORDER)
    assert locations.shape == (batch, n_priors, 4)
    assert class_scores.shape == (batch, n_priors, n_classes)
    assert jnp.allclose(locations, ref_loc, atol=5e-2, rtol=5e-2)
    assert jnp.allclose(class_scores, ref_cls, atol=5e-2, rtol=5e-2)

    print("KERNEL_OK")
</pallas_src>

<mosaic_0001>
module attributes {stable_mosaic.version = 11 : i64} {
  func.func @_conv3x3_kernel(%arg0: i32, %arg1: memref<1x42x1024xbf16, #tpu.memory_space<vmem>>, %arg2: memref<9x1024x128xbf16, #tpu.memory_space<vmem>>, %arg3: memref<1x128xf32, #tpu.memory_space<vmem>>, %arg4: memref<1x24x128xf32, #tpu.memory_space<vmem>>, %arg5: memref<24x128xf32, #tpu.memory_space<vmem>>) attributes {dimension_semantics = [#tpu.dimension_semantics<parallel>], iteration_bounds = array<i64: 2>, scalar_prefetch = 0 : i64, scratch_operands = 1 : i64, tpu.core_type = #tpu.core_type<tc>, window_params = [{transform_indices = @transform_0, window_bounds = array<i64: 1, 42, 1024>}, {pipeline_mode = #tpu.pipeline_mode<synchronous>, transform_indices = @transform_1, window_bounds = array<i64: 9, 1024, 128>}, {pipeline_mode = #tpu.pipeline_mode<synchronous>, transform_indices = @transform_2, window_bounds = array<i64: 1, 128>}, {transform_indices = @transform_3, window_bounds = array<i64: 1, 24, 128>}]} {
    %c0 = arith.constant 0 : index
    %c0_0 = arith.constant 0 : index
    %c0_1 = arith.constant 0 : index
    %0 = vector.load %arg1[%c0, %c0_0, %c0_1] : memref<1x42x1024xbf16, #tpu.memory_space<vmem>>, vector<1x42x1024xbf16>
    %1 = vector.shape_cast %0 : vector<1x42x1024xbf16> to vector<42x1024xbf16>
    %c0_2 = arith.constant 0 : index
    %c0_3 = arith.constant 0 : index
    %c0_4 = arith.constant 0 : index
    %2 = vector.load %arg2[%c0_2, %c0_3, %c0_4] : memref<9x1024x128xbf16, #tpu.memory_space<vmem>>, vector<1x1024x128xbf16>
    %3 = vector.shape_cast %2 : vector<1x1024x128xbf16> to vector<1024x128xbf16>
    %cst = arith.constant dense<0.000000e+00> : vector<42x128xf32>
    %4 = tpu.matmul %1, %3, %cst {dimension_numbers = #tpu.dot_dimension_numbers<[1], [0], [0], [1], [0, 0, 1, 1], [], []>} : vector<42x1024xbf16>, vector<1024x128xbf16>, vector<42x128xf32> -> vector<42x128xf32>
    %5 = vector.extract_strided_slice %4 {offsets = [0, 0], sizes = [24, 128], strides = [1, 1]} : vector<42x128xf32> to vector<24x128xf32>
    %c0_5 = arith.constant 0 : index
    %c0_6 = arith.constant 0 : index
    %6 = vector.load %arg5[%c0_5, %c0_6] : memref<24x128xf32, #tpu.memory_space<vmem>>, vector<24x128xf32>
    tpu.vector_store %arg5[%c0_5, %c0_6], %5 {strides = array<i32>} : memref<24x128xf32, #tpu.memory_space<vmem>>, vector<24x128xf32>,
    %c1 = arith.constant 1 : index
    %c0_7 = arith.constant 0 : index
    %c0_8 = arith.constant 0 : index
    %7 = vector.load %arg2[%c1, %c0_7, %c0_8] : memref<9x1024x128xbf16, #tpu.memory_space<vmem>>, vector<1x1024x128xbf16>
    %8 = vector.shape_cast %7 : vector<1x1024x128xbf16> to vector<1024x128xbf16>
    %cst_9 = arith.constant dense<0.000000e+00> : vector<42x128xf32>
    %9 = tpu.matmul %1, %8, %cst_9 {dimension_numbers = #tpu.dot_dimension_numbers<[1], [0], [0], [1], [0, 0, 1, 1], [], []>} : vector<42x1024xbf16>, vector<1024x128xbf16>, vector<42x128xf32> -> vector<42x128xf32>
    %10 = vector.extract_strided_slice %9 {offsets = [1, 0], sizes = [24, 128], strides = [1, 1]} : vector<42x128xf32> to vector<24x128xf32>
    %c0_10 = arith.constant 0 : index
    %c0_11 = arith.constant 0 : index
    %11 = vector.load %arg5[%c0_10, %c0_11] : memref<24x128xf32, #tpu.memory_space<vmem>>, vector<24x128xf32>
    %12 = arith.addf %11, %10 : vector<24x128xf32>
    %c0_12 = arith.constant 0 : index
    %c0_13 = arith.constant 0 : index
    %13 = vector.load %arg5[%c0_12, %c0_13] : memref<24x128xf32, #tpu.memory_space<vmem>>, vector<24x128xf32>
    tpu.vector_store %arg5[%c0_12, %c0_13], %12 {strides = array<i32>} : memref<24x128xf32, #tpu.memory_space<vmem>>, vector<24x128xf32>,
    %c2 = arith.constant 2 : index
    %c0_14 = arith.constant 0 : index
    %c0_15 = arith.constant 0 : index
    %14 = vector.load %arg2[%c2, %c0_14, %c0_15] : memref<9x1024x128xbf16, #tpu.memory_space<vmem>>, vector<1x1024x128xbf16>
    %15 = vector.shape_cast %14 : vector<1x1024x128xbf16> to vector<1024x128xbf16>
    %cst_16 = arith.constant dense<0.000000e+00> : vector<42x128xf32>
    %16 = tpu.matmul %1, %15, %cst_16 {dimension_numbers = #tpu.dot_dimension_numbers<[1], [0], [0], [1], [0, 0, 1, 1], [], []>} : vector<42x1024xbf16>, vector<1024x128xbf16>, vector<42x128xf32> -> vector<42x128xf32>
    %17 = vector.extract_strided_slice %16 {offsets = [2, 0], sizes = [24, 128], strides = [1, 1]} : vector<42x128xf32> to vector<24x128xf32>
    %c0_17 = arith.constant 0 : index
    %c0_18 = arith.constant 0 : index
    %18 = vector.load %arg5[%c0_17, %c0_18] : memref<24x128xf32, #tpu.memory_space<vmem>>, vector<24x128xf32>
    %19 = arith.addf %18, %17 : vector<24x128xf32>
    %c0_19 = arith.constant 0 : index
    %c0_20 = arith.constant 0 : index
    %20 = vector.load %arg5[%c0_19, %c0_20] : memref<24x128xf32, #tpu.memory_space<vmem>>, vector<24x128xf32>
    tpu.vector_store %arg5[%c0_19, %c0_20], %19 {strides = array<i32>} : memref<24x128xf32, #tpu.memory_space<vmem>>, vector<24x128xf32>,
    %c3 = arith.constant 3 : index
    %c0_21 = arith.constant 0 : index
    %c0_22 = arith.constant 0 : index
    %21 = vector.load %arg2[%c3, %c0_21, %c0_22] : memref<9x1024x128xbf16, #tpu.memory_space<vmem>>, vector<1x1024x128xbf16>
    %22 = vector.shape_cast %21 : vector<1x1024x128xbf16> to vector<1024x128xbf16>
    %cst_23 = arith.constant dense<0.000000e+00> : vector<42x128xf32>
    %23 = tpu.matmul %1, %22, %cst_23 {dimension_numbers = #tpu.dot_dimension_numbers<[1], [0], [0], [1], [0, 0, 1, 1], [], []>} : vector<42x1024xbf16>, vector<1024x128xbf16>, vector<42x128xf32> -> vector<42x128xf32>
    %24 = vector.extract_strided_slice %23 {offsets = [6, 0], sizes = [24, 128], strides = [1, 1]} : vector<42x128xf32> to vector<24x128xf32>
    %c0_24 = arith.constant 0 : index
    %c0_25 = arith.constant 0 : index
    %25 = vector.load %arg5[%c0_24, %c0_25] : memref<24x128xf32, #tpu.memory_space<vmem>>, vector<24x128xf32>
    %26 = arith.addf %25, %24 : vector<24x128xf32>
    %c0_26 = arith.constant 0 : index
    %c0_27 = arith.constant 0 : index
    %27 = vector.load %arg5[%c0_26, %c0_27] : memref<24x128xf32, #tpu.memory_space<vmem>>, vector<24x128xf32>
    tpu.vector_store %arg5[%c0_26, %c0_27], %26 {strides = array<i32>} : memref<24x128xf32, #tpu.memory_space<vmem>>, vector<24x128xf32>,
    %c4 = arith.constant 4 : index
    %c0_28 = arith.constant 0 : index
    %c0_29 = arith.constant 0 : index
    %28 = vector.load %arg2[%c4, %c0_28, %c0_29] : memref<9x1024x128xbf16, #tpu.memory_space<vmem>>, vector<1x1024x128xbf16>
    %29 = vector.shape_cast %28 : vector<1x1024x128xbf16> to vector<1024x128xbf16>
    %cst_30 = arith.constant dense<0.000000e+00> : vector<42x128xf32>
    %30 = tpu.matmul %1, %29, %cst_30 {dimension_numbers = #tpu.dot_dimension_numbers<[1], [0], [0], [1], [0, 0, 1, 1], [], []>} : vector<42x1024xbf16>, vector<1024x128xbf16>, vector<42x128xf32> -> vector<42x128xf32>
    %31 = vector.extract_strided_slice %30 {offsets = [7, 0], sizes = [24, 128], strides = [1, 1]} : vector<42x128xf32> to vector<24x128xf32>
    %c0_31 = arith.constant 0 : index
    %c0_32 = arith.constant 0 : index
    %32 = vector.load %arg5[%c0_31, %c0_32] : memref<24x128xf32, #tpu.memory_space<vmem>>, vector<24x128xf32>
    %33 = arith.addf %32, %31 : vector<24x128xf32>
    %c0_33 = arith.constant 0 : index
    %c0_34 = arith.constant 0 : index
    %34 = vector.load %arg5[%c0_33, %c0_34] : memref<24x128xf32, #tpu.memory_space<vmem>>, vector<24x128xf32>
    tpu.vector_store %arg5[%c0_33, %c0_34], %33 {strides = array<i32>} : memref<24x128xf32, #tpu.memory_space<vmem>>, vector<24x128xf32>,
    %c5 = arith.constant 5 : index
    %c0_35 = arith.constant 0 : index
    %c0_36 = arith.constant 0 : index
    %35 = vector.load %arg2[%c5, %c0_35, %c0_36] : memref<9x1024x128xbf16, #tpu.memory_space<vmem>>, vector<1x1024x128xbf16>
    %36 = vector.shape_cast %35 : vector<1x1024x128xbf16> to vector<1024x128xbf16>
    %cst_37 = arith.constant dense<0.000000e+00> : vector<42x128xf32>
    %37 = tpu.matmul %1, %36, %cst_37 {dimension_numbers = #tpu.dot_dimension_numbers<[1], [0], [0], [1], [0, 0, 1, 1], [], []>} : vector<42x1024xbf16>, vector<1024x128xbf16>, vector<42x128xf32> -> vector<42x128xf32>
    %38 = vector.extract_strided_slice %37 {offsets = [8, 0], sizes = [24, 128], strides = [1, 1]} : vector<42x128xf32> to vector<24x128xf32>
    %c0_38 = arith.constant 0 : index
    %c0_39 = arith.constant 0 : index
    %39 = vector.load %arg5[%c0_38, %c0_39] : memref<24x128xf32, #tpu.memory_space<vmem>>, vector<24x128xf32>
    %40 = arith.addf %39, %38 : vector<24x128xf32>
    %c0_40 = arith.constant 0 : index
    %c0_41 = arith.constant 0 : index
    %41 = vector.load %arg5[%c0_40, %c0_41] : memref<24x128xf32, #tpu.memory_space<vmem>>, vector<24x128xf32>
    tpu.vector_store %arg5[%c0_40, %c0_41], %40 {strides = array<i32>} : memref<24x128xf32, #tpu.memory_space<vmem>>, vector<24x128xf32>,
    %c6 = arith.constant 6 : index
    %c0_42 = arith.constant 0 : index
    %c0_43 = arith.constant 0 : index
    %42 = vector.load %arg2[%c6, %c0_42, %c0_43] : memref<9x1024x128xbf16, #tpu.memory_space<vmem>>, vector<1x1024x128xbf16>
    %43 = vector.shape_cast %42 : vector<1x1024x128xbf16> to vector<1024x128xbf16>
    %cst_44 = arith.constant dense<0.000000e+00> : vector<42x128xf32>
    %44 = tpu.matmul %1, %43, %cst_44 {dimension_numbers = #tpu.dot_dimension_numbers<[1], [0], [0], [1], [0, 0, 1, 1], [], []>} : vector<42x1024xbf16>, vector<1024x128xbf16>, vector<42x128xf32> -> vector<42x128xf32>
    %45 = vector.extract_strided_slice %44 {offsets = [12, 0], sizes = [24, 128], strides = [1, 1]} : vector<42x128xf32> to vector<24x128xf32>
    %c0_45 = arith.constant 0 : index
    %c0_46 = arith.constant 0 : index
    %46 = vector.load %arg5[%c0_45, %c0_46] : memref<24x128xf32, #tpu.memory_space<vmem>>, vector<24x128xf32>
    %47 = arith.addf %46, %45 : vector<24x128xf32>
    %c0_47 = arith.constant 0 : index
    %c0_48 = arith.constant 0 : index
    %48 = vector.load %arg5[%c0_47, %c0_48] : memref<24x128xf32, #tpu.memory_space<vmem>>, vector<24x128xf32>
    tpu.vector_store %arg5[%c0_47, %c0_48], %47 {strides = array<i32>} : memref<24x128xf32, #tpu.memory_space<vmem>>, vector<24x128xf32>,
    %c7 = arith.constant 7 : index
    %c0_49 = arith.constant 0 : index
    %c0_50 = arith.constant 0 : index
    %49 = vector.load %arg2[%c7, %c0_49, %c0_50] : memref<9x1024x128xbf16, #tpu.memory_space<vmem>>, vector<1x1024x128xbf16>
    %50 = vector.shape_cast %49 : vector<1x1024x128xbf16> to vector<1024x128xbf16>
    %cst_51 = arith.constant dense<0.000000e+00> : vector<42x128xf32>
    %51 = tpu.matmul %1, %50, %cst_51 {dimension_numbers = #tpu.dot_dimension_numbers<[1], [0], [0], [1], [0, 0, 1, 1], [], []>} : vector<42x1024xbf16>, vector<1024x128xbf16>, vector<42x128xf32> -> vector<42x128xf32>
    %52 = vector.extract_strided_slice %51 {offsets = [13, 0], sizes = [24, 128], strides = [1, 1]} : vector<42x128xf32> to vector<24x128xf32>
    %c0_52 = arith.constant 0 : index
    %c0_53 = arith.constant 0 : index
    %53 = vector.load %arg5[%c0_52, %c0_53] : memref<24x128xf32, #tpu.memory_space<vmem>>, vector<24x128xf32>
    %54 = arith.addf %53, %52 : vector<24x128xf32>
    %c0_54 = arith.constant 0 : index
    %c0_55 = arith.constant 0 : index
    %55 = vector.load %arg5[%c0_54, %c0_55] : memref<24x128xf32, #tpu.memory_space<vmem>>, vector<24x128xf32>
    tpu.vector_store %arg5[%c0_54, %c0_55], %54 {strides = array<i32>} : memref<24x128xf32, #tpu.memory_space<vmem>>, vector<24x128xf32>,
    %c8 = arith.constant 8 : index
    %c0_56 = arith.constant 0 : index
    %c0_57 = arith.constant 0 : index
    %56 = vector.load %arg2[%c8, %c0_56, %c0_57] : memref<9x1024x128xbf16, #tpu.memory_space<vmem>>, vector<1x1024x128xbf16>
    %57 = vector.shape_cast %56 : vector<1x1024x128xbf16> to vector<1024x128xbf16>
    %cst_58 = arith.constant dense<0.000000e+00> : vector<42x128xf32>
    %58 = tpu.matmul %1, %57, %cst_58 {dimension_numbers = #tpu.dot_dimension_numbers<[1], [0], [0], [1], [0, 0, 1, 1], [], []>} : vector<42x1024xbf16>, vector<1024x128xbf16>, vector<42x128xf32> -> vector<42x128xf32>
    %59 = vector.extract_strided_slice %58 {offsets = [14, 0], sizes = [24, 128], strides = [1, 1]} : vector<42x128xf32> to vector<24x128xf32>
    %c0_59 = arith.constant 0 : index
    %c0_60 = arith.constant 0 : index
    %60 = vector.load %arg5[%c0_59, %c0_60] : memref<24x128xf32, #tpu.memory_space<vmem>>, vector<24x128xf32>
    %61 = arith.addf %60, %59 : vector<24x128xf32>
    %c0_61 = arith.constant 0 : index
    %c0_62 = arith.constant 0 : index
    %62 = vector.load %arg5[%c0_61, %c0_62] : memref<24x128xf32, #tpu.memory_space<vmem>>, vector<24x128xf32>
    tpu.vector_store %arg5[%c0_61, %c0_62], %61 {strides = array<i32>} : memref<24x128xf32, #tpu.memory_space<vmem>>, vector<24x128xf32>,
    %c0_63 = arith.constant 0 : index
    %c0_64 = arith.constant 0 : index
    %63 = vector.load %arg5[%c0_63, %c0_64] : memref<24x128xf32, #tpu.memory_space<vmem>>, vector<24x128xf32>
    %c0_65 = arith.constant 0 : index
    %c0_66 = arith.constant 0 : index
    %64 = vector.load %arg3[%c0_65, %c0_66] : memref<1x128xf32, #tpu.memory_space<vmem>>, vector<1x128xf32>
    %65 = vector.broadcast %64 : vector<1x128xf32> to vector<24x128xf32>
    %66 = arith.addf %63, %65 : vector<24x128xf32>
    %c0_67 = arith.constant 0 : index
    %c0_68 = arith.constant 0 : index
    %c0_69 = arith.constant 0 : index
    %67 = vector.load %arg4[%c0_67, %c0_68, %c0_69] : memref<1x24x128xf32, #tpu.memory_space<vmem>>, vector<1x24x128xf32>
    %68 = vector.shape_cast %67 : vector<1x24x128xf32> to vector<24x128xf32>
    %69 = vector.shape_cast %66 : vector<24x128xf32> to vector<1x24x128xf32>
    tpu.vector_store %arg4[%c0_67, %c0_68, %c0_69], %69 {strides = array<i32>} : memref<1x24x128xf32, #tpu.memory_space<vmem>>, vector<1x24x128xf32>,
    return
  }
  func.func @transform_0(%arg0: i32) -> (i32, i32, i32) {
    %c0_i32 = arith.constant 0 : i32
    %c0_i32_0 = arith.constant 0 : i32
    %c0_i32_1 = arith.constant 0 : i32
    return %arg0, %c0_i32, %c0_i32_0 : i32, i32, i32
  }
  func.func @transform_1(%arg0: i32) -> (i32, i32, i32) {
    %c0_i32 = arith.constant 0 : i32
    %c0_i32_0 = arith.constant 0 : i32
    %c0_i32_1 = arith.constant 0 : i32
    %c0_i32_2 = arith.constant 0 : i32
    return %c0_i32, %c0_i32_0, %c0_i32_1 : i32, i32, i32
  }
  func.func @transform_2(%arg0: i32) -> (i32, i32) {
    %c0_i32 = arith.constant 0 : i32
    %c0_i32_0 = arith.constant 0 : i32
    %c0_i32_1 = arith.constant 0 : i32
    return %c0_i32, %c0_i32_0 : i32, i32
  }
  func.func @transform_3(%arg0: i32) -> (i32, i32, i32) {
    %c0_i32 = arith.constant 0 : i32
    %c0_i32_0 = arith.constant 0 : i32
    %c0_i32_1 = arith.constant 0 : i32
    return %arg0, %c0_i32, %c0_i32_0 : i32, i32, i32
  }
}

module attributes {stable_mosaic.version = 11 : i64} {
  func.func @_conv3x3_kernel(%arg0: i32, %arg1: memref<1x110x512xbf16, #tpu.memory_space<vmem>>, %arg2: memref<9x512x128xbf16, #tpu.memory_space<vmem>>, %arg3: memref<1x128xf32, #tpu.memory_space<vmem>>, %arg4: memref<1x80x128xf32, #tpu.memory_space<vmem>>, %arg5: memref<80x128xf32, #tpu.memory_space<vmem>>) attributes {dimension_semantics = [#tpu.dimension_semantics<parallel>], iteration_bounds = array<i64: 2>, scalar_prefetch = 0 : i64, scratch_operands = 1 : i64, tpu.core_type = #tpu.core_type<tc>, window_params = [{transform_indices = @transform_0, window_bounds = array<i64: 1, 110, 512>}, {pipeline_mode = #tpu.pipeline_mode<synchronous>, transform_indices = @transform_1, window_bounds = array<i64: 9, 512, 128>}, {pipeline_mode = #tpu.pipeline_mode<synchronous>, transform_indices = @transform_2, window_bounds = array<i64: 1, 128>}, {transform_indices = @transform_3, window_bounds = array<i64: 1, 80, 128>}]} {
    %c0 = arith.constant 0 : index
    %c0_0 = arith.constant 0 : index
    %c0_1 = arith.constant 0 : index
    %0 = vector.load %arg1[%c0, %c0_0, %c0_1] : memref<1x110x512xbf16, #tpu.memory_space<vmem>>, vector<1x110x512xbf16>
    %1 = vector.shape_cast %0 : vector<1x110x512xbf16> to vector<110x512xbf16>
    %c0_2 = arith.constant 0 : index
    %c0_3 = arith.constant 0 : index
    %c0_4 = arith.constant 0 : index
    %2 = vector.load %arg2[%c0_2, %c0_3, %c0_4] : memref<9x512x128xbf16, #tpu.memory_space<vmem>>, vector<1x512x128xbf16>
    %3 = vector.shape_cast %2 : vector<1x512x128xbf16> to vector<512x128xbf16>
    %cst = arith.constant dense<0.000000e+00> : vector<110x128xf32>
    %4 = tpu.matmul %1, %3, %cst {dimension_numbers = #tpu.dot_dimension_numbers<[1], [0], [0], [1], [0, 0, 1, 1], [], []>} : vector<110x512xbf16>, vector<512x128xbf16>, vector<110x128xf32> -> vector<110x128xf32>
    %5 = vector.extract_strided_slice %4 {offsets = [0, 0], sizes = [80, 128], strides = [1, 1]} : vector<110x128xf32> to vector<80x128xf32>
    %c0_5 = arith.constant 0 : index
    %c0_6 = arith.constant 0 : index
    %6 = vector.load %arg5[%c0_5, %c0_6] : memref<80x128xf32, #tpu.memory_space<vmem>>, vector<80x128xf32>
    tpu.vector_store %arg5[%c0_5, %c0_6], %5 {strides = array<i32>} : memref<80x128xf32, #tpu.memory_space<vmem>>, vector<80x128xf32>,
    %c1 = arith.constant 1 : index
    %c0_7 = arith.constant 0 : index
    %c0_8 = arith.constant 0 : index
    %7 = vector.load %arg2[%c1, %c0_7, %c0_8] : memref<9x512x128xbf16, #tpu.memory_space<vmem>>, vector<1x512x128xbf16>
    %8 = vector.shape_cast %7 : vector<1x512x128xbf16> to vector<512x128xbf16>
    %cst_9 = arith.constant dense<0.000000e+00> : vector<110x128xf32>
    %9 = tpu.matmul %1, %8, %cst_9 {dimension_numbers = #tpu.dot_dimension_numbers<[1], [0], [0], [1], [0, 0, 1, 1], [], []>} : vector<110x512xbf16>, vector<512x128xbf16>, vector<110x128xf32> -> vector<110x128xf32>
    %10 = vector.extract_strided_slice %9 {offsets = [1, 0], sizes = [80, 128], strides = [1, 1]} : vector<110x128xf32> to vector<80x128xf32>
    %c0_10 = arith.constant 0 : index
    %c0_11 = arith.constant 0 : index
    %11 = vector.load %arg5[%c0_10, %c0_11] : memref<80x128xf32, #tpu.memory_space<vmem>>, vector<80x128xf32>
    %12 = arith.addf %11, %10 : vector<80x128xf32>
    %c0_12 = arith.constant 0 : index
    %c0_13 = arith.constant 0 : index
    %13 = vector.load %arg5[%c0_12, %c0_13] : memref<80x128xf32, #tpu.memory_space<vmem>>, vector<80x128xf32>
    tpu.vector_store %arg5[%c0_12, %c0_13], %12 {strides = array<i32>} : memref<80x128xf32, #tpu.memory_space<vmem>>, vector<80x128xf32>,
    %c2 = arith.constant 2 : index
    %c0_14 = arith.constant 0 : index
    %c0_15 = arith.constant 0 : index
    %14 = vector.load %arg2[%c2, %c0_14, %c0_15] : memref<9x512x128xbf16, #tpu.memory_space<vmem>>, vector<1x512x128xbf16>
    %15 = vector.shape_cast %14 : vector<1x512x128xbf16> to vector<512x128xbf16>
    %cst_16 = arith.constant dense<0.000000e+00> : vector<110x128xf32>
    %16 = tpu.matmul %1, %15, %cst_16 {dimension_numbers = #tpu.dot_dimension_numbers<[1], [0], [0], [1], [0, 0, 1, 1], [], []>} : vector<110x512xbf16>, vector<512x128xbf16>, vector<110x128xf32> -> vector<110x128xf32>
    %17 = vector.extract_strided_slice %16 {offsets = [2, 0], sizes = [80, 128], strides = [1, 1]} : vector<110x128xf32> to vector<80x128xf32>
    %c0_17 = arith.constant 0 : index
    %c0_18 = arith.constant 0 : index
    %18 = vector.load %arg5[%c0_17, %c0_18] : memref<80x128xf32, #tpu.memory_space<vmem>>, vector<80x128xf32>
    %19 = arith.addf %18, %17 : vector<80x128xf32>
    %c0_19 = arith.constant 0 : index
    %c0_20 = arith.constant 0 : index
    %20 = vector.load %arg5[%c0_19, %c0_20] : memref<80x128xf32, #tpu.memory_space<vmem>>, vector<80x128xf32>
    tpu.vector_store %arg5[%c0_19, %c0_20], %19 {strides = array<i32>} : memref<80x128xf32, #tpu.memory_space<vmem>>, vector<80x128xf32>,
    %c3 = arith.constant 3 : index
    %c0_21 = arith.constant 0 : index
    %c0_22 = arith.constant 0 : index
    %21 = vector.load %arg2[%c3, %c0_21, %c0_22] : memref<9x512x128xbf16, #tpu.memory_space<vmem>>, vector<1x512x128xbf16>
    %22 = vector.shape_cast %21 : vector<1x512x128xbf16> to vector<512x128xbf16>
    %cst_23 = arith.constant dense<0.000000e+00> : vector<110x128xf32>
    %23 = tpu.matmul %1, %22, %cst_23 {dimension_numbers = #tpu.dot_dimension_numbers<[1], [0], [0], [1], [0, 0, 1, 1], [], []>} : vector<110x512xbf16>, vector<512x128xbf16>, vector<110x128xf32> -> vector<110x128xf32>
    %24 = vector.extract_strided_slice %23 {offsets = [10, 0], sizes = [80, 128], strides = [1, 1]} : vector<110x128xf32> to vector<80x128xf32>
    %c0_24 = arith.constant 0 : index
    %c0_25 = arith.constant 0 : index
    %25 = vector.load %arg5[%c0_24, %c0_25] : memref<80x128xf32, #tpu.memory_space<vmem>>, vector<80x128xf32>
    %26 = arith.addf %25, %24 : vector<80x128xf32>
    %c0_26 = arith.constant 0 : index
    %c0_27 = arith.constant 0 : index
    %27 = vector.load %arg5[%c0_26, %c0_27] : memref<80x128xf32, #tpu.memory_space<vmem>>, vector<80x128xf32>
    tpu.vector_store %arg5[%c0_26, %c0_27], %26 {strides = array<i32>} : memref<80x128xf32, #tpu.memory_space<vmem>>, vector<80x128xf32>,
    %c4 = arith.constant 4 : index
    %c0_28 = arith.constant 0 : index
    %c0_29 = arith.constant 0 : index
    %28 = vector.load %arg2[%c4, %c0_28, %c0_29] : memref<9x512x128xbf16, #tpu.memory_space<vmem>>, vector<1x512x128xbf16>
    %29 = vector.shape_cast %28 : vector<1x512x128xbf16> to vector<512x128xbf16>
    %cst_30 = arith.constant dense<0.000000e+00> : vector<110x128xf32>
    %30 = tpu.matmul %1, %29, %cst_30 {dimension_numbers = #tpu.dot_dimension_numbers<[1], [0], [0], [1], [0, 0, 1, 1], [], []>} : vector<110x512xbf16>, vector<512x128xbf16>, vector<110x128xf32> -> vector<110x128xf32>
    %31 = vector.extract_strided_slice %30 {offsets = [11, 0], sizes = [80, 128], strides = [1, 1]} : vector<110x128xf32> to vector<80x128xf32>
    %c0_31 = arith.constant 0 : index
    %c0_32 = arith.constant 0 : index
    %32 = vector.load %arg5[%c0_31, %c0_32] : memref<80x128xf32, #tpu.memory_space<vmem>>, vector<80x128xf32>
    %33 = arith.addf %32, %31 : vector<80x128xf32>
    %c0_33 = arith.constant 0 : index
    %c0_34 = arith.constant 0 : index
    %34 = vector.load %arg5[%c0_33, %c0_34] : memref<80x128xf32, #tpu.memory_space<vmem>>, vector<80x128xf32>
    tpu.vector_store %arg5[%c0_33, %c0_34], %33 {strides = array<i32>} : memref<80x128xf32, #tpu.memory_space<vmem>>, vector<80x128xf32>,
    %c5 = arith.constant 5 : index
    %c0_35 = arith.constant 0 : index
    %c0_36 = arith.constant 0 : index
    %35 = vector.load %arg2[%c5, %c0_35, %c0_36] : memref<9x512x128xbf16, #tpu.memory_space<vmem>>, vector<1x512x128xbf16>
    %36 = vector.shape_cast %35 : vector<1x512x128xbf16> to vector<512x128xbf16>
    %cst_37 = arith.constant dense<0.000000e+00> : vector<110x128xf32>
    %37 = tpu.matmul %1, %36, %cst_37 {dimension_numbers = #tpu.dot_dimension_numbers<[1], [0], [0], [1], [0, 0, 1, 1], [], []>} : vector<110x512xbf16>, vector<512x128xbf16>, vector<110x128xf32> -> vector<110x128xf32>
    %38 = vector.extract_strided_slice %37 {offsets = [12, 0], sizes = [80, 128], strides = [1, 1]} : vector<110x128xf32> to vector<80x128xf32>
    %c0_38 = arith.constant 0 : index
    %c0_39 = arith.constant 0 : index
    %39 = vector.load %arg5[%c0_38, %c0_39] : memref<80x128xf32, #tpu.memory_space<vmem>>, vector<80x128xf32>
    %40 = arith.addf %39, %38 : vector<80x128xf32>
    %c0_40 = arith.constant 0 : index
    %c0_41 = arith.constant 0 : index
    %41 = vector.load %arg5[%c0_40, %c0_41] : memref<80x128xf32, #tpu.memory_space<vmem>>, vector<80x128xf32>
    tpu.vector_store %arg5[%c0_40, %c0_41], %40 {strides = array<i32>} : memref<80x128xf32, #tpu.memory_space<vmem>>, vector<80x128xf32>,
    %c6 = arith.constant 6 : index
    %c0_42 = arith.constant 0 : index
    %c0_43 = arith.constant 0 : index
    %42 = vector.load %arg2[%c6, %c0_42, %c0_43] : memref<9x512x128xbf16, #tpu.memory_space<vmem>>, vector<1x512x128xbf16>
    %43 = vector.shape_cast %42 : vector<1x512x128xbf16> to vector<512x128xbf16>
    %cst_44 = arith.constant dense<0.000000e+00> : vector<110x128xf32>
    %44 = tpu.matmul %1, %43, %cst_44 {dimension_numbers = #tpu.dot_dimension_numbers<[1], [0], [0], [1], [0, 0, 1, 1], [], []>} : vector<110x512xbf16>, vector<512x128xbf16>, vector<110x128xf32> -> vector<110x128xf32>
    %45 = vector.extract_strided_slice %44 {offsets = [20, 0], sizes = [80, 128], strides = [1, 1]} : vector<110x128xf32> to vector<80x128xf32>
    %c0_45 = arith.constant 0 : index
    %c0_46 = arith.constant 0 : index
    %46 = vector.load %arg5[%c0_45, %c0_46] : memref<80x128xf32, #tpu.memory_space<vmem>>, vector<80x128xf32>
    %47 = arith.addf %46, %45 : vector<80x128xf32>
    %c0_47 = arith.constant 0 : index
    %c0_48 = arith.constant 0 : index
    %48 = vector.load %arg5[%c0_47, %c0_48] : memref<80x128xf32, #tpu.memory_space<vmem>>, vector<80x128xf32>
    tpu.vector_store %arg5[%c0_47, %c0_48], %47 {strides = array<i32>} : memref<80x128xf32, #tpu.memory_space<vmem>>, vector<80x128xf32>,
    %c7 = arith.constant 7 : index
    %c0_49 = arith.constant 0 : index
    %c0_50 = arith.constant 0 : index
    %49 = vector.load %arg2[%c7, %c0_49, %c0_50] : memref<9x512x128xbf16, #tpu.memory_space<vmem>>, vector<1x512x128xbf16>
    %50 = vector.shape_cast %49 : vector<1x512x128xbf16> to vector<512x128xbf16>
    %cst_51 = arith.constant dense<0.000000e+00> : vector<110x128xf32>
    %51 = tpu.matmul %1, %50, %cst_51 {dimension_numbers = #tpu.dot_dimension_numbers<[1], [0], [0], [1], [0, 0, 1, 1], [], []>} : vector<110x512xbf16>, vector<512x128xbf16>, vector<110x128xf32> -> vector<110x128xf32>
    %52 = vector.extract_strided_slice %51 {offsets = [21, 0], sizes = [80, 128], strides = [1, 1]} : vector<110x128xf32> to vector<80x128xf32>
    %c0_52 = arith.constant 0 : index
    %c0_53 = arith.constant 0 : index
    %53 = vector.load %arg5[%c0_52, %c0_53] : memref<80x128xf32, #tpu.memory_space<vmem>>, vector<80x128xf32>
    %54 = arith.addf %53, %52 : vector<80x128xf32>
    %c0_54 = arith.constant 0 : index
    %c0_55 = arith.constant 0 : index
    %55 = vector.load %arg5[%c0_54, %c0_55] : memref<80x128xf32, #tpu.memory_space<vmem>>, vector<80x128xf32>
    tpu.vector_store %arg5[%c0_54, %c0_55], %54 {strides = array<i32>} : memref<80x128xf32, #tpu.memory_space<vmem>>, vector<80x128xf32>,
    %c8 = arith.constant 8 : index
    %c0_56 = arith.constant 0 : index
    %c0_57 = arith.constant 0 : index
    %56 = vector.load %arg2[%c8, %c0_56, %c0_57] : memref<9x512x128xbf16, #tpu.memory_space<vmem>>, vector<1x512x128xbf16>
    %57 = vector.shape_cast %56 : vector<1x512x128xbf16> to vector<512x128xbf16>
    %cst_58 = arith.constant dense<0.000000e+00> : vector<110x128xf32>
    %58 = tpu.matmul %1, %57, %cst_58 {dimension_numbers = #tpu.dot_dimension_numbers<[1], [0], [0], [1], [0, 0, 1, 1], [], []>} : vector<110x512xbf16>, vector<512x128xbf16>, vector<110x128xf32> -> vector<110x128xf32>
    %59 = vector.extract_strided_slice %58 {offsets = [22, 0], sizes = [80, 128], strides = [1, 1]} : vector<110x128xf32> to vector<80x128xf32>
    %c0_59 = arith.constant 0 : index
    %c0_60 = arith.constant 0 : index
    %60 = vector.load %arg5[%c0_59, %c0_60] : memref<80x128xf32, #tpu.memory_space<vmem>>, vector<80x128xf32>
    %61 = arith.addf %60, %59 : vector<80x128xf32>
    %c0_61 = arith.constant 0 : index
    %c0_62 = arith.constant 0 : index
    %62 = vector.load %arg5[%c0_61, %c0_62] : memref<80x128xf32, #tpu.memory_space<vmem>>, vector<80x128xf32>
    tpu.vector_store %arg5[%c0_61, %c0_62], %61 {strides = array<i32>} : memref<80x128xf32, #tpu.memory_space<vmem>>, vector<80x128xf32>,
    %c0_63 = arith.constant 0 : index
    %c0_64 = arith.constant 0 : index
    %63 = vector.load %arg5[%c0_63, %c0_64] : memref<80x128xf32, #tpu.memory_space<vmem>>, vector<80x128xf32>
    %c0_65 = arith.constant 0 : index
    %c0_66 = arith.constant 0 : index
    %64 = vector.load %arg3[%c0_65, %c0_66] : memref<1x128xf32, #tpu.memory_space<vmem>>, vector<1x128xf32>
    %65 = vector.broadcast %64 : vector<1x128xf32> to vector<80x128xf32>
    %66 = arith.addf %63, %65 : vector<80x128xf32>
    %c0_67 = arith.constant 0 : index
    %c0_68 = arith.constant 0 : index
    %c0_69 = arith.constant 0 : index
    %67 = vector.load %arg4[%c0_67, %c0_68, %c0_69] : memref<1x80x128xf32, #tpu.memory_space<vmem>>, vector<1x80x128xf32>
    %68 = vector.shape_cast %67 : vector<1x80x128xf32> to vector<80x128xf32>
    %69 = vector.shape_cast %66 : vector<80x128xf32> to vector<1x80x128xf32>
    tpu.vector_store %arg4[%c0_67, %c0_68, %c0_69], %69 {strides = array<i32>} : memref<1x80x128xf32, #tpu.memory_space<vmem>>, vector<1x80x128xf32>,
    return
  }
  func.func @transform_0(%arg0: i32) -> (i32, i32, i32) {
    %c0_i32 = arith.constant 0 : i32
    %c0_i32_0 = arith.constant 0 : i32
    %c0_i32_1 = arith.constant 0 : i32
    return %arg0, %c0_i32, %c0_i32_0 : i32, i32, i32
  }
  func.func @transform_1(%arg0: i32) -> (i32, i32, i32) {
    %c0_i32 = arith.constant 0 : i32
    %c0_i32_0 = arith.constant 0 : i32
    %c0_i32_1 = arith.constant 0 : i32
    %c0_i32_2 = arith.constant 0 : i32
    return %c0_i32, %c0_i32_0, %c0_i32_1 : i32, i32, i32
  }
  func.func @transform_2(%arg0: i32) -> (i32, i32) {
    %c0_i32 = arith.constant 0 : i32
    %c0_i32_0 = arith.constant 0 : i32
    %c0_i32_1 = arith.constant 0 : i32
    return %c0_i32, %c0_i32_0 : i32, i32
  }
  func.func @transform_3(%arg0: i32) -> (i32, i32, i32) {
    %c0_i32 = arith.constant 0 : i32
    %c0_i32_0 = arith.constant 0 : i32
    %c0_i32_1 = arith.constant 0 : i32
    return %arg0, %c0_i32, %c0_i32_0 : i32, i32, i32
  }
}

module attributes {stable_mosaic.version = 11 : i64} {
  func.func @_conv3x3_kernel(%arg0: i32, %arg1: memref<1x42x512xbf16, #tpu.memory_space<vmem>>, %arg2: memref<9x512x128xbf16, #tpu.memory_space<vmem>>, %arg3: memref<1x128xf32, #tpu.memory_space<vmem>>, %arg4: memref<1x24x128xf32, #tpu.memory_space<vmem>>, %arg5: memref<24x128xf32, #tpu.memory_space<vmem>>) attributes {dimension_semantics = [#tpu.dimension_semantics<parallel>], iteration_bounds = array<i64: 2>, scalar_prefetch = 0 : i64, scratch_operands = 1 : i64, tpu.core_type = #tpu.core_type<tc>, window_params = [{transform_indices = @transform_0, window_bounds = array<i64: 1, 42, 512>}, {pipeline_mode = #tpu.pipeline_mode<synchronous>, transform_indices = @transform_1, window_bounds = array<i64: 9, 512, 128>}, {pipeline_mode = #tpu.pipeline_mode<synchronous>, transform_indices = @transform_2, window_bounds = array<i64: 1, 128>}, {transform_indices = @transform_3, window_bounds = array<i64: 1, 24, 128>}]} {
    %c0 = arith.constant 0 : index
    %c0_0 = arith.constant 0 : index
    %c0_1 = arith.constant 0 : index
    %0 = vector.load %arg1[%c0, %c0_0, %c0_1] : memref<1x42x512xbf16, #tpu.memory_space<vmem>>, vector<1x42x512xbf16>
    %1 = vector.shape_cast %0 : vector<1x42x512xbf16> to vector<42x512xbf16>
    %c0_2 = arith.constant 0 : index
    %c0_3 = arith.constant 0 : index
    %c0_4 = arith.constant 0 : index
    %2 = vector.load %arg2[%c0_2, %c0_3, %c0_4] : memref<9x512x128xbf16, #tpu.memory_space<vmem>>, vector<1x512x128xbf16>
    %3 = vector.shape_cast %2 : vector<1x512x128xbf16> to vector<512x128xbf16>
    %cst = arith.constant dense<0.000000e+00> : vector<42x128xf32>
    %4 = tpu.matmul %1, %3, %cst {dimension_numbers = #tpu.dot_dimension_numbers<[1], [0], [0], [1], [0, 0, 1, 1], [], []>} : vector<42x512xbf16>, vector<512x128xbf16>, vector<42x128xf32> -> vector<42x128xf32>
    %5 = vector.extract_strided_slice %4 {offsets = [0, 0], sizes = [24, 128], strides = [1, 1]} : vector<42x128xf32> to vector<24x128xf32>
    %c0_5 = arith.constant 0 : index
    %c0_6 = arith.constant 0 : index
    %6 = vector.load %arg5[%c0_5, %c0_6] : memref<24x128xf32, #tpu.memory_space<vmem>>, vector<24x128xf32>
    tpu.vector_store %arg5[%c0_5, %c0_6], %5 {strides = array<i32>} : memref<24x128xf32, #tpu.memory_space<vmem>>, vector<24x128xf32>,
    %c1 = arith.constant 1 : index
    %c0_7 = arith.constant 0 : index
    %c0_8 = arith.constant 0 : index
    %7 = vector.load %arg2[%c1, %c0_7, %c0_8] : memref<9x512x128xbf16, #tpu.memory_space<vmem>>, vector<1x512x128xbf16>
    %8 = vector.shape_cast %7 : vector<1x512x128xbf16> to vector<512x128xbf16>
    %cst_9 = arith.constant dense<0.000000e+00> : vector<42x128xf32>
    %9 = tpu.matmul %1, %8, %cst_9 {dimension_numbers = #tpu.dot_dimension_numbers<[1], [0], [0], [1], [0, 0, 1, 1], [], []>} : vector<42x512xbf16>, vector<512x128xbf16>, vector<42x128xf32> -> vector<42x128xf32>
    %10 = vector.extract_strided_slice %9 {offsets = [1, 0], sizes = [24, 128], strides = [1, 1]} : vector<42x128xf32> to vector<24x128xf32>
    %c0_10 = arith.constant 0 : index
    %c0_11 = arith.constant 0 : index
    %11 = vector.load %arg5[%c0_10, %c0_11] : memref<24x128xf32, #tpu.memory_space<vmem>>, vector<24x128xf32>
    %12 = arith.addf %11, %10 : vector<24x128xf32>
    %c0_12 = arith.constant 0 : index
    %c0_13 = arith.constant 0 : index
    %13 = vector.load %arg5[%c0_12, %c0_13] : memref<24x128xf32, #tpu.memory_space<vmem>>, vector<24x128xf32>
    tpu.vector_store %arg5[%c0_12, %c0_13], %12 {strides = array<i32>} : memref<24x128xf32, #tpu.memory_space<vmem>>, vector<24x128xf32>,
    %c2 = arith.constant 2 : index
    %c0_14 = arith.constant 0 : index
    %c0_15 = arith.constant 0 : index
    %14 = vector.load %arg2[%c2, %c0_14, %c0_15] : memref<9x512x128xbf16, #tpu.memory_space<vmem>>, vector<1x512x128xbf16>
    %15 = vector.shape_cast %14 : vector<1x512x128xbf16> to vector<512x128xbf16>
    %cst_16 = arith.constant dense<0.000000e+00> : vector<42x128xf32>
    %16 = tpu.matmul %1, %15, %cst_16 {dimension_numbers = #tpu.dot_dimension_numbers<[1], [0], [0], [1], [0, 0, 1, 1], [], []>} : vector<42x512xbf16>, vector<512x128xbf16>, vector<42x128xf32> -> vector<42x128xf32>
    %17 = vector.extract_strided_slice %16 {offsets = [2, 0], sizes = [24, 128], strides = [1, 1]} : vector<42x128xf32> to vector<24x128xf32>
    %c0_17 = arith.constant 0 : index
    %c0_18 = arith.constant 0 : index
    %18 = vector.load %arg5[%c0_17, %c0_18] : memref<24x128xf32, #tpu.memory_space<vmem>>, vector<24x128xf32>
    %19 = arith.addf %18, %17 : vector<24x128xf32>
    %c0_19 = arith.constant 0 : index
    %c0_20 = arith.constant 0 : index
    %20 = vector.load %arg5[%c0_19, %c0_20] : memref<24x128xf32, #tpu.memory_space<vmem>>, vector<24x128xf32>
    tpu.vector_store %arg5[%c0_19, %c0_20], %19 {strides = array<i32>} : memref<24x128xf32, #tpu.memory_space<vmem>>, vector<24x128xf32>,
    %c3 = arith.constant 3 : index
    %c0_21 = arith.constant 0 : index
    %c0_22 = arith.constant 0 : index
    %21 = vector.load %arg2[%c3, %c0_21, %c0_22] : memref<9x512x128xbf16, #tpu.memory_space<vmem>>, vector<1x512x128xbf16>
    %22 = vector.shape_cast %21 : vector<1x512x128xbf16> to vector<512x128xbf16>
    %cst_23 = arith.constant dense<0.000000e+00> : vector<42x128xf32>
    %23 = tpu.matmul %1, %22, %cst_23 {dimension_numbers = #tpu.dot_dimension_numbers<[1], [0], [0], [1], [0, 0, 1, 1], [], []>} : vector<42x512xbf16>, vector<512x128xbf16>, vector<42x128xf32> -> vector<42x128xf32>
    %24 = vector.extract_strided_slice %23 {offsets = [6, 0], sizes = [24, 128], strides = [1, 1]} : vector<42x128xf32> to vector<24x128xf32>
    %c0_24 = arith.constant 0 : index
    %c0_25 = arith.constant 0 : index
    %25 = vector.load %arg5[%c0_24, %c0_25] : memref<24x128xf32, #tpu.memory_space<vmem>>, vector<24x128xf32>
    %26 = arith.addf %25, %24 : vector<24x128xf32>
    %c0_26 = arith.constant 0 : index
    %c0_27 = arith.constant 0 : index
    %27 = vector.load %arg5[%c0_26, %c0_27] : memref<24x128xf32, #tpu.memory_space<vmem>>, vector<24x128xf32>
    tpu.vector_store %arg5[%c0_26, %c0_27], %26 {strides = array<i32>} : memref<24x128xf32, #tpu.memory_space<vmem>>, vector<24x128xf32>,
    %c4 = arith.constant 4 : index
    %c0_28 = arith.constant 0 : index
    %c0_29 = arith.constant 0 : index
    %28 = vector.load %arg2[%c4, %c0_28, %c0_29] : memref<9x512x128xbf16, #tpu.memory_space<vmem>>, vector<1x512x128xbf16>
    %29 = vector.shape_cast %28 : vector<1x512x128xbf16> to vector<512x128xbf16>
    %cst_30 = arith.constant dense<0.000000e+00> : vector<42x128xf32>
    %30 = tpu.matmul %1, %29, %cst_30 {dimension_numbers = #tpu.dot_dimension_numbers<[1], [0], [0], [1], [0, 0, 1, 1], [], []>} : vector<42x512xbf16>, vector<512x128xbf16>, vector<42x128xf32> -> vector<42x128xf32>
    %31 = vector.extract_strided_slice %30 {offsets = [7, 0], sizes = [24, 128], strides = [1, 1]} : vector<42x128xf32> to vector<24x128xf32>
    %c0_31 = arith.constant 0 : index
    %c0_32 = arith.constant 0 : index
    %32 = vector.load %arg5[%c0_31, %c0_32] : memref<24x128xf32, #tpu.memory_space<vmem>>, vector<24x128xf32>
    %33 = arith.addf %32, %31 : vector<24x128xf32>
    %c0_33 = arith.constant 0 : index
    %c0_34 = arith.constant 0 : index
    %34 = vector.load %arg5[%c0_33, %c0_34] : memref<24x128xf32, #tpu.memory_space<vmem>>, vector<24x128xf32>
    tpu.vector_store %arg5[%c0_33, %c0_34], %33 {strides = array<i32>} : memref<24x128xf32, #tpu.memory_space<vmem>>, vector<24x128xf32>,
    %c5 = arith.constant 5 : index
    %c0_35 = arith.constant 0 : index
    %c0_36 = arith.constant 0 : index
    %35 = vector.load %arg2[%c5, %c0_35, %c0_36] : memref<9x512x128xbf16, #tpu.memory_space<vmem>>, vector<1x512x128xbf16>
    %36 = vector.shape_cast %35 : vector<1x512x128xbf16> to vector<512x128xbf16>
    %cst_37 = arith.constant dense<0.000000e+00> : vector<42x128xf32>
    %37 = tpu.matmul %1, %36, %cst_37 {dimension_numbers = #tpu.dot_dimension_numbers<[1], [0], [0], [1], [0, 0, 1, 1], [], []>} : vector<42x512xbf16>, vector<512x128xbf16>, vector<42x128xf32> -> vector<42x128xf32>
    %38 = vector.extract_strided_slice %37 {offsets = [8, 0], sizes = [24, 128], strides = [1, 1]} : vector<42x128xf32> to vector<24x128xf32>
    %c0_38 = arith.constant 0 : index
    %c0_39 = arith.constant 0 : index
    %39 = vector.load %arg5[%c0_38, %c0_39] : memref<24x128xf32, #tpu.memory_space<vmem>>, vector<24x128xf32>
    %40 = arith.addf %39, %38 : vector<24x128xf32>
    %c0_40 = arith.constant 0 : index
    %c0_41 = arith.constant 0 : index
    %41 = vector.load %arg5[%c0_40, %c0_41] : memref<24x128xf32, #tpu.memory_space<vmem>>, vector<24x128xf32>
    tpu.vector_store %arg5[%c0_40, %c0_41], %40 {strides = array<i32>} : memref<24x128xf32, #tpu.memory_space<vmem>>, vector<24x128xf32>,
    %c6 = arith.constant 6 : index
    %c0_42 = arith.constant 0 : index
    %c0_43 = arith.constant 0 : index
    %42 = vector.load %arg2[%c6, %c0_42, %c0_43] : memref<9x512x128xbf16, #tpu.memory_space<vmem>>, vector<1x512x128xbf16>
    %43 = vector.shape_cast %42 : vector<1x512x128xbf16> to vector<512x128xbf16>
    %cst_44 = arith.constant dense<0.000000e+00> : vector<42x128xf32>
    %44 = tpu.matmul %1, %43, %cst_44 {dimension_numbers = #tpu.dot_dimension_numbers<[1], [0], [0], [1], [0, 0, 1, 1], [], []>} : vector<42x512xbf16>, vector<512x128xbf16>, vector<42x128xf32> -> vector<42x128xf32>
    %45 = vector.extract_strided_slice %44 {offsets = [12, 0], sizes = [24, 128], strides = [1, 1]} : vector<42x128xf32> to vector<24x128xf32>
    %c0_45 = arith.constant 0 : index
    %c0_46 = arith.constant 0 : index
    %46 = vector.load %arg5[%c0_45, %c0_46] : memref<24x128xf32, #tpu.memory_space<vmem>>, vector<24x128xf32>
    %47 = arith.addf %46, %45 : vector<24x128xf32>
    %c0_47 = arith.constant 0 : index
    %c0_48 = arith.constant 0 : index
    %48 = vector.load %arg5[%c0_47, %c0_48] : memref<24x128xf32, #tpu.memory_space<vmem>>, vector<24x128xf32>
    tpu.vector_store %arg5[%c0_47, %c0_48], %47 {strides = array<i32>} : memref<24x128xf32, #tpu.memory_space<vmem>>, vector<24x128xf32>,
    %c7 = arith.constant 7 : index
    %c0_49 = arith.constant 0 : index
    %c0_50 = arith.constant 0 : index
    %49 = vector.load %arg2[%c7, %c0_49, %c0_50] : memref<9x512x128xbf16, #tpu.memory_space<vmem>>, vector<1x512x128xbf16>
    %50 = vector.shape_cast %49 : vector<1x512x128xbf16> to vector<512x128xbf16>
    %cst_51 = arith.constant dense<0.000000e+00> : vector<42x128xf32>
    %51 = tpu.matmul %1, %50, %cst_51 {dimension_numbers = #tpu.dot_dimension_numbers<[1], [0], [0], [1], [0, 0, 1, 1], [], []>} : vector<42x512xbf16>, vector<512x128xbf16>, vector<42x128xf32> -> vector<42x128xf32>
    %52 = vector.extract_strided_slice %51 {offsets = [13, 0], sizes = [24, 128], strides = [1, 1]} : vector<42x128xf32> to vector<24x128xf32>
    %c0_52 = arith.constant 0 : index
    %c0_53 = arith.constant 0 : index
    %53 = vector.load %arg5[%c0_52, %c0_53] : memref<24x128xf32, #tpu.memory_space<vmem>>, vector<24x128xf32>
    %54 = arith.addf %53, %52 : vector<24x128xf32>
    %c0_54 = arith.constant 0 : index
    %c0_55 = arith.constant 0 : index
    %55 = vector.load %arg5[%c0_54, %c0_55] : memref<24x128xf32, #tpu.memory_space<vmem>>, vector<24x128xf32>
    tpu.vector_store %arg5[%c0_54, %c0_55], %54 {strides = array<i32>} : memref<24x128xf32, #tpu.memory_space<vmem>>, vector<24x128xf32>,
    %c8 = arith.constant 8 : index
    %c0_56 = arith.constant 0 : index
    %c0_57 = arith.constant 0 : index
    %56 = vector.load %arg2[%c8, %c0_56, %c0_57] : memref<9x512x128xbf16, #tpu.memory_space<vmem>>, vector<1x512x128xbf16>
    %57 = vector.shape_cast %56 : vector<1x512x128xbf16> to vector<512x128xbf16>
    %cst_58 = arith.constant dense<0.000000e+00> : vector<42x128xf32>
    %58 = tpu.matmul %1, %57, %cst_58 {dimension_numbers = #tpu.dot_dimension_numbers<[1], [0], [0], [1], [0, 0, 1, 1], [], []>} : vector<42x512xbf16>, vector<512x128xbf16>, vector<42x128xf32> -> vector<42x128xf32>
    %59 = vector.extract_strided_slice %58 {offsets = [14, 0], sizes = [24, 128], strides = [1, 1]} : vector<42x128xf32> to vector<24x128xf32>
    %c0_59 = arith.constant 0 : index
    %c0_60 = arith.constant 0 : index
    %60 = vector.load %arg5[%c0_59, %c0_60] : memref<24x128xf32, #tpu.memory_space<vmem>>, vector<24x128xf32>
    %61 = arith.addf %60, %59 : vector<24x128xf32>
    %c0_61 = arith.constant 0 : index
    %c0_62 = arith.constant 0 : index
    %62 = vector.load %arg5[%c0_61, %c0_62] : memref<24x128xf32, #tpu.memory_space<vmem>>, vector<24x128xf32>
    tpu.vector_store %arg5[%c0_61, %c0_62], %61 {strides = array<i32>} : memref<24x128xf32, #tpu.memory_space<vmem>>, vector<24x128xf32>,
    %c0_63 = arith.constant 0 : index
    %c0_64 = arith.constant 0 : index
    %63 = vector.load %arg5[%c0_63, %c0_64] : memref<24x128xf32, #tpu.memory_space<vmem>>, vector<24x128xf32>
    %c0_65 = arith.constant 0 : index
    %c0_66 = arith.constant 0 : index
    %64 = vector.load %arg3[%c0_65, %c0_66] : memref<1x128xf32, #tpu.memory_space<vmem>>, vector<1x128xf32>
    %65 = vector.broadcast %64 : vector<1x128xf32> to vector<24x128xf32>
    %66 = arith.addf %63, %65 : vector<24x128xf32>
    %c0_67 = arith.constant 0 : index
    %c0_68 = arith.constant 0 : index
    %c0_69 = arith.constant 0 : index
    %67 = vector.load %arg4[%c0_67, %c0_68, %c0_69] : memref<1x24x128xf32, #tpu.memory_space<vmem>>, vector<1x24x128xf32>
    %68 = vector.shape_cast %67 : vector<1x24x128xf32> to vector<24x128xf32>
    %69 = vector.shape_cast %66 : vector<24x128xf32> to vector<1x24x128xf32>
    tpu.vector_store %arg4[%c0_67, %c0_68, %c0_69], %69 {strides = array<i32>} : memref<1x24x128xf32, #tpu.memory_space<vmem>>, vector<1x24x128xf32>,
    return
  }
  func.func @transform_0(%arg0: i32) -> (i32, i32, i32) {
    %c0_i32 = arith.constant 0 : i32
    %c0_i32_0 = arith.constant 0 : i32
    %c0_i32_1 = arith.constant 0 : i32
    return %arg0, %c0_i32, %c0_i32_0 : i32, i32, i32
  }
  func.func @transform_1(%arg0: i32) -> (i32, i32, i32) {
    %c0_i32 = arith.constant 0 : i32
    %c0_i32_0 = arith.constant 0 : i32
    %c0_i32_1 = arith.constant 0 : i32
    %c0_i32_2 = arith.constant 0 : i32
    return %c0_i32, %c0_i32_0, %c0_i32_1 : i32, i32, i32
  }
  func.func @transform_2(%arg0: i32) -> (i32, i32) {
    %c0_i32 = arith.constant 0 : i32
    %c0_i32_0 = arith.constant 0 : i32
    %c0_i32_1 = arith.constant 0 : i32
    return %c0_i32, %c0_i32_0 : i32, i32
  }
  func.func @transform_3(%arg0: i32) -> (i32, i32, i32) {
    %c0_i32 = arith.constant 0 : i32
    %c0_i32_0 = arith.constant 0 : i32
    %c0_i32_1 = arith.constant 0 : i32
    return %arg0, %c0_i32, %c0_i32_0 : i32, i32, i32
  }
}

module attributes {stable_mosaic.version = 11 : i64} {
  func.func @_conv3x3_kernel(%arg0: i32, %arg1: memref<1x20x256xbf16, #tpu.memory_space<vmem>>, %arg2: memref<9x256x128xbf16, #tpu.memory_space<vmem>>, %arg3: memref<1x128xf32, #tpu.memory_space<vmem>>, %arg4: memref<1x8x128xf32, #tpu.memory_space<vmem>>, %arg5: memref<8x128xf32, #tpu.memory_space<vmem>>) attributes {dimension_semantics = [#tpu.dimension_semantics<parallel>], iteration_bounds = array<i64: 2>, scalar_prefetch = 0 : i64, scratch_operands = 1 : i64, tpu.core_type = #tpu.core_type<tc>, window_params = [{transform_indices = @transform_0, window_bounds = array<i64: 1, 20, 256>}, {pipeline_mode = #tpu.pipeline_mode<synchronous>, transform_indices = @transform_1, window_bounds = array<i64: 9, 256, 128>}, {pipeline_mode = #tpu.pipeline_mode<synchronous>, transform_indices = @transform_2, window_bounds = array<i64: 1, 128>}, {transform_indices = @transform_3, window_bounds = array<i64: 1, 8, 128>}]} {
    %c0 = arith.constant 0 : index
    %c0_0 = arith.constant 0 : index
    %c0_1 = arith.constant 0 : index
    %0 = vector.load %arg1[%c0, %c0_0, %c0_1] : memref<1x20x256xbf16, #tpu.memory_space<vmem>>, vector<1x20x256xbf16>
    %1 = vector.shape_cast %0 : vector<1x20x256xbf16> to vector<20x256xbf16>
    %c0_2 = arith.constant 0 : index
    %c0_3 = arith.constant 0 : index
    %c0_4 = arith.constant 0 : index
    %2 = vector.load %arg2[%c0_2, %c0_3, %c0_4] : memref<9x256x128xbf16, #tpu.memory_space<vmem>>, vector<1x256x128xbf16>
    %3 = vector.shape_cast %2 : vector<1x256x128xbf16> to vector<256x128xbf16>
    %cst = arith.constant dense<0.000000e+00> : vector<20x128xf32>
    %4 = tpu.matmul %1, %3, %cst {dimension_numbers = #tpu.dot_dimension_numbers<[1], [0], [0], [1], [0, 0, 1, 1], [], []>} : vector<20x256xbf16>, vector<256x128xbf16>, vector<20x128xf32> -> vector<20x128xf32>
    %5 = vector.extract_strided_slice %4 {offsets = [0, 0], sizes = [8, 128], strides = [1, 1]} : vector<20x128xf32> to vector<8x128xf32>
    %c0_5 = arith.constant 0 : index
    %c0_6 = arith.constant 0 : index
    %6 = vector.load %arg5[%c0_5, %c0_6] : memref<8x128xf32, #tpu.memory_space<vmem>>, vector<8x128xf32>
    tpu.vector_store %arg5[%c0_5, %c0_6], %5 {strides = array<i32>} : memref<8x128xf32, #tpu.memory_space<vmem>>, vector<8x128xf32>,
    %c1 = arith.constant 1 : index
    %c0_7 = arith.constant 0 : index
    %c0_8 = arith.constant 0 : index
    %7 = vector.load %arg2[%c1, %c0_7, %c0_8] : memref<9x256x128xbf16, #tpu.memory_space<vmem>>, vector<1x256x128xbf16>
    %8 = vector.shape_cast %7 : vector<1x256x128xbf16> to vector<256x128xbf16>
    %cst_9 = arith.constant dense<0.000000e+00> : vector<20x128xf32>
    %9 = tpu.matmul %1, %8, %cst_9 {dimension_numbers = #tpu.dot_dimension_numbers<[1], [0], [0], [1], [0, 0, 1, 1], [], []>} : vector<20x256xbf16>, vector<256x128xbf16>, vector<20x128xf32> -> vector<20x128xf32>
    %10 = vector.extract_strided_slice %9 {offsets = [1, 0], sizes = [8, 128], strides = [1, 1]} : vector<20x128xf32> to vector<8x128xf32>
    %c0_10 = arith.constant 0 : index
    %c0_11 = arith.constant 0 : index
    %11 = vector.load %arg5[%c0_10, %c0_11] : memref<8x128xf32, #tpu.memory_space<vmem>>, vector<8x128xf32>
    %12 = arith.addf %11, %10 : vector<8x128xf32>
    %c0_12 = arith.constant 0 : index
    %c0_13 = arith.constant 0 : index
    %13 = vector.load %arg5[%c0_12, %c0_13] : memref<8x128xf32, #tpu.memory_space<vmem>>, vector<8x128xf32>
    tpu.vector_store %arg5[%c0_12, %c0_13], %12 {strides = array<i32>} : memref<8x128xf32, #tpu.memory_space<vmem>>, vector<8x128xf32>,
    %c2 = arith.constant 2 : index
    %c0_14 = arith.constant 0 : index
    %c0_15 = arith.constant 0 : index
    %14 = vector.load %arg2[%c2, %c0_14, %c0_15] : memref<9x256x128xbf16, #tpu.memory_space<vmem>>, vector<1x256x128xbf16>
    %15 = vector.shape_cast %14 : vector<1x256x128xbf16> to vector<256x128xbf16>
    %cst_16 = arith.constant dense<0.000000e+00> : vector<20x128xf32>
    %16 = tpu.matmul %1, %15, %cst_16 {dimension_numbers = #tpu.dot_dimension_numbers<[1], [0], [0], [1], [0, 0, 1, 1], [], []>} : vector<20x256xbf16>, vector<256x128xbf16>, vector<20x128xf32> -> vector<20x128xf32>
    %17 = vector.extract_strided_slice %16 {offsets = [2, 0], sizes = [8, 128], strides = [1, 1]} : vector<20x128xf32> to vector<8x128xf32>
    %c0_17 = arith.constant 0 : index
    %c0_18 = arith.constant 0 : index
    %18 = vector.load %arg5[%c0_17, %c0_18] : memref<8x128xf32, #tpu.memory_space<vmem>>, vector<8x128xf32>
    %19 = arith.addf %18, %17 : vector<8x128xf32>
    %c0_19 = arith.constant 0 : index
    %c0_20 = arith.constant 0 : index
    %20 = vector.load %arg5[%c0_19, %c0_20] : memref<8x128xf32, #tpu.memory_space<vmem>>, vector<8x128xf32>
    tpu.vector_store %arg5[%c0_19, %c0_20], %19 {strides = array<i32>} : memref<8x128xf32, #tpu.memory_space<vmem>>, vector<8x128xf32>,
    %c3 = arith.constant 3 : index
    %c0_21 = arith.constant 0 : index
    %c0_22 = arith.constant 0 : index
    %21 = vector.load %arg2[%c3, %c0_21, %c0_22] : memref<9x256x128xbf16, #tpu.memory_space<vmem>>, vector<1x256x128xbf16>
    %22 = vector.shape_cast %21 : vector<1x256x128xbf16> to vector<256x128xbf16>
    %cst_23 = arith.constant dense<0.000000e+00> : vector<20x128xf32>
    %23 = tpu.matmul %1, %22, %cst_23 {dimension_numbers = #tpu.dot_dimension_numbers<[1], [0], [0], [1], [0, 0, 1, 1], [], []>} : vector<20x256xbf16>, vector<256x128xbf16>, vector<20x128xf32> -> vector<20x128xf32>
    %24 = vector.extract_strided_slice %23 {offsets = [4, 0], sizes = [8, 128], strides = [1, 1]} : vector<20x128xf32> to vector<8x128xf32>
    %c0_24 = arith.constant 0 : index
    %c0_25 = arith.constant 0 : index
    %25 = vector.load %arg5[%c0_24, %c0_25] : memref<8x128xf32, #tpu.memory_space<vmem>>, vector<8x128xf32>
    %26 = arith.addf %25, %24 : vector<8x128xf32>
    %c0_26 = arith.constant 0 : index
    %c0_27 = arith.constant 0 : index
    %27 = vector.load %arg5[%c0_26, %c0_27] : memref<8x128xf32, #tpu.memory_space<vmem>>, vector<8x128xf32>
    tpu.vector_store %arg5[%c0_26, %c0_27], %26 {strides = array<i32>} : memref<8x128xf32, #tpu.memory_space<vmem>>, vector<8x128xf32>,
    %c4 = arith.constant 4 : index
    %c0_28 = arith.constant 0 : index
    %c0_29 = arith.constant 0 : index
    %28 = vector.load %arg2[%c4, %c0_28, %c0_29] : memref<9x256x128xbf16, #tpu.memory_space<vmem>>, vector<1x256x128xbf16>
    %29 = vector.shape_cast %28 : vector<1x256x128xbf16> to vector<256x128xbf16>
    %cst_30 = arith.constant dense<0.000000e+00> : vector<20x128xf32>
    %30 = tpu.matmul %1, %29, %cst_30 {dimension_numbers = #tpu.dot_dimension_numbers<[1], [0], [0], [1], [0, 0, 1, 1], [], []>} : vector<20x256xbf16>, vector<256x128xbf16>, vector<20x128xf32> -> vector<20x128xf32>
    %31 = vector.extract_strided_slice %30 {offsets = [5, 0], sizes = [8, 128], strides = [1, 1]} : vector<20x128xf32> to vector<8x128xf32>
    %c0_31 = arith.constant 0 : index
    %c0_32 = arith.constant 0 : index
    %32 = vector.load %arg5[%c0_31, %c0_32] : memref<8x128xf32, #tpu.memory_space<vmem>>, vector<8x128xf32>
    %33 = arith.addf %32, %31 : vector<8x128xf32>
    %c0_33 = arith.constant 0 : index
    %c0_34 = arith.constant 0 : index
    %34 = vector.load %arg5[%c0_33, %c0_34] : memref<8x128xf32, #tpu.memory_space<vmem>>, vector<8x128xf32>
    tpu.vector_store %arg5[%c0_33, %c0_34], %33 {strides = array<i32>} : memref<8x128xf32, #tpu.memory_space<vmem>>, vector<8x128xf32>,
    %c5 = arith.constant 5 : index
    %c0_35 = arith.constant 0 : index
    %c0_36 = arith.constant 0 : index
    %35 = vector.load %arg2[%c5, %c0_35, %c0_36] : memref<9x256x128xbf16, #tpu.memory_space<vmem>>, vector<1x256x128xbf16>
    %36 = vector.shape_cast %35 : vector<1x256x128xbf16> to vector<256x128xbf16>
    %cst_37 = arith.constant dense<0.000000e+00> : vector<20x128xf32>
    %37 = tpu.matmul %1, %36, %cst_37 {dimension_numbers = #tpu.dot_dimension_numbers<[1], [0], [0], [1], [0, 0, 1, 1], [], []>} : vector<20x256xbf16>, vector<256x128xbf16>, vector<20x128xf32> -> vector<20x128xf32>
    %38 = vector.extract_strided_slice %37 {offsets = [6, 0], sizes = [8, 128], strides = [1, 1]} : vector<20x128xf32> to vector<8x128xf32>
    %c0_38 = arith.constant 0 : index
    %c0_39 = arith.constant 0 : index
    %39 = vector.load %arg5[%c0_38, %c0_39] : memref<8x128xf32, #tpu.memory_space<vmem>>, vector<8x128xf32>
    %40 = arith.addf %39, %38 : vector<8x128xf32>
    %c0_40 = arith.constant 0 : index
    %c0_41 = arith.constant 0 : index
    %41 = vector.load %arg5[%c0_40, %c0_41] : memref<8x128xf32, #tpu.memory_space<vmem>>, vector<8x128xf32>
    tpu.vector_store %arg5[%c0_40, %c0_41], %40 {strides = array<i32>} : memref<8x128xf32, #tpu.memory_space<vmem>>, vector<8x128xf32>,
    %c6 = arith.constant 6 : index
    %c0_42 = arith.constant 0 : index
    %c0_43 = arith.constant 0 : index
    %42 = vector.load %arg2[%c6, %c0_42, %c0_43] : memref<9x256x128xbf16, #tpu.memory_space<vmem>>, vector<1x256x128xbf16>
    %43 = vector.shape_cast %42 : vector<1x256x128xbf16> to vector<256x128xbf16>
    %cst_44 = arith.constant dense<0.000000e+00> : vector<20x128xf32>
    %44 = tpu.matmul %1, %43, %cst_44 {dimension_numbers = #tpu.dot_dimension_numbers<[1], [0], [0], [1], [0, 0, 1, 1], [], []>} : vector<20x256xbf16>, vector<256x128xbf16>, vector<20x128xf32> -> vector<20x128xf32>
    %45 = vector.extract_strided_slice %44 {offsets = [8, 0], sizes = [8, 128], strides = [1, 1]} : vector<20x128xf32> to vector<8x128xf32>
    %c0_45 = arith.constant 0 : index
    %c0_46 = arith.constant 0 : index
    %46 = vector.load %arg5[%c0_45, %c0_46] : memref<8x128xf32, #tpu.memory_space<vmem>>, vector<8x128xf32>
    %47 = arith.addf %46, %45 : vector<8x128xf32>
    %c0_47 = arith.constant 0 : index
    %c0_48 = arith.constant 0 : index
    %48 = vector.load %arg5[%c0_47, %c0_48] : memref<8x128xf32, #tpu.memory_space<vmem>>, vector<8x128xf32>
    tpu.vector_store %arg5[%c0_47, %c0_48], %47 {strides = array<i32>} : memref<8x128xf32, #tpu.memory_space<vmem>>, vector<8x128xf32>,
    %c7 = arith.constant 7 : index
    %c0_49 = arith.constant 0 : index
    %c0_50 = arith.constant 0 : index
    %49 = vector.load %arg2[%c7, %c0_49, %c0_50] : memref<9x256x128xbf16, #tpu.memory_space<vmem>>, vector<1x256x128xbf16>
    %50 = vector.shape_cast %49 : vector<1x256x128xbf16> to vector<256x128xbf16>
    %cst_51 = arith.constant dense<0.000000e+00> : vector<20x128xf32>
    %51 = tpu.matmul %1, %50, %cst_51 {dimension_numbers = #tpu.dot_dimension_numbers<[1], [0], [0], [1], [0, 0, 1, 1], [], []>} : vector<20x256xbf16>, vector<256x128xbf16>, vector<20x128xf32> -> vector<20x128xf32>
    %52 = vector.extract_strided_slice %51 {offsets = [9, 0], sizes = [8, 128], strides = [1, 1]} : vector<20x128xf32> to vector<8x128xf32>
    %c0_52 = arith.constant 0 : index
    %c0_53 = arith.constant 0 : index
    %53 = vector.load %arg5[%c0_52, %c0_53] : memref<8x128xf32, #tpu.memory_space<vmem>>, vector<8x128xf32>
    %54 = arith.addf %53, %52 : vector<8x128xf32>
    %c0_54 = arith.constant 0 : index
    %c0_55 = arith.constant 0 : index
    %55 = vector.load %arg5[%c0_54, %c0_55] : memref<8x128xf32, #tpu.memory_space<vmem>>, vector<8x128xf32>
    tpu.vector_store %arg5[%c0_54, %c0_55], %54 {strides = array<i32>} : memref<8x128xf32, #tpu.memory_space<vmem>>, vector<8x128xf32>,
    %c8 = arith.constant 8 : index
    %c0_56 = arith.constant 0 : index
    %c0_57 = arith.constant 0 : index
    %56 = vector.load %arg2[%c8, %c0_56, %c0_57] : memref<9x256x128xbf16, #tpu.memory_space<vmem>>, vector<1x256x128xbf16>
    %57 = vector.shape_cast %56 : vector<1x256x128xbf16> to vector<256x128xbf16>
    %cst_58 = arith.constant dense<0.000000e+00> : vector<20x128xf32>
    %58 = tpu.matmul %1, %57, %cst_58 {dimension_numbers = #tpu.dot_dimension_numbers<[1], [0], [0], [1], [0, 0, 1, 1], [], []>} : vector<20x256xbf16>, vector<256x128xbf16>, vector<20x128xf32> -> vector<20x128xf32>
    %59 = vector.extract_strided_slice %58 {offsets = [10, 0], sizes = [8, 128], strides = [1, 1]} : vector<20x128xf32> to vector<8x128xf32>
    %c0_59 = arith.constant 0 : index
    %c0_60 = arith.constant 0 : index
    %60 = vector.load %arg5[%c0_59, %c0_60] : memref<8x128xf32, #tpu.memory_space<vmem>>, vector<8x128xf32>
    %61 = arith.addf %60, %59 : vector<8x128xf32>
    %c0_61 = arith.constant 0 : index
    %c0_62 = arith.constant 0 : index
    %62 = vector.load %arg5[%c0_61, %c0_62] : memref<8x128xf32, #tpu.memory_space<vmem>>, vector<8x128xf32>
    tpu.vector_store %arg5[%c0_61, %c0_62], %61 {strides = array<i32>} : memref<8x128xf32, #tpu.memory_space<vmem>>, vector<8x128xf32>,
    %c0_63 = arith.constant 0 : index
    %c0_64 = arith.constant 0 : index
    %63 = vector.load %arg5[%c0_63, %c0_64] : memref<8x128xf32, #tpu.memory_space<vmem>>, vector<8x128xf32>
    %c0_65 = arith.constant 0 : index
    %c0_66 = arith.constant 0 : index
    %64 = vector.load %arg3[%c0_65, %c0_66] : memref<1x128xf32, #tpu.memory_space<vmem>>, vector<1x128xf32>
    %65 = vector.broadcast %64 : vector<1x128xf32> to vector<8x128xf32>
    %66 = arith.addf %63, %65 : vector<8x128xf32>
    %c0_67 = arith.constant 0 : index
    %c0_68 = arith.constant 0 : index
    %c0_69 = arith.constant 0 : index
    %67 = vector.load %arg4[%c0_67, %c0_68, %c0_69] : memref<1x8x128xf32, #tpu.memory_space<vmem>>, vector<1x8x128xf32>
    %68 = vector.shape_cast %67 : vector<1x8x128xf32> to vector<8x128xf32>
    %69 = vector.shape_cast %66 : vector<8x128xf32> to vector<1x8x128xf32>
    tpu.vector_store %arg4[%c0_67, %c0_68, %c0_69], %69 {strides = array<i32>} : memref<1x8x128xf32, #tpu.memory_space<vmem>>, vector<1x8x128xf32>,
    return
  }
  func.func @transform_0(%arg0: i32) -> (i32, i32, i32) {
    %c0_i32 = arith.constant 0 : i32
    %c0_i32_0 = arith.constant 0 : i32
    %c0_i32_1 = arith.constant 0 : i32
    return %arg0, %c0_i32, %c0_i32_0 : i32, i32, i32
  }
  func.func @transform_1(%arg0: i32) -> (i32, i32, i32) {
    %c0_i32 = arith.constant 0 : i32
    %c0_i32_0 = arith.constant 0 : i32
    %c0_i32_1 = arith.constant 0 : i32
    %c0_i32_2 = arith.constant 0 : i32
    return %c0_i32, %c0_i32_0, %c0_i32_1 : i32, i32, i32
  }
  func.func @transform_2(%arg0: i32) -> (i32, i32) {
    %c0_i32 = arith.constant 0 : i32
    %c0_i32_0 = arith.constant 0 : i32
    %c0_i32_1 = arith.constant 0 : i32
    return %c0_i32, %c0_i32_0 : i32, i32
  }
  func.func @transform_3(%arg0: i32) -> (i32, i32, i32) {
    %c0_i32 = arith.constant 0 : i32
    %c0_i32_0 = arith.constant 0 : i32
    %c0_i32_1 = arith.constant 0 : i32
    return %arg0, %c0_i32, %c0_i32_0 : i32, i32, i32
  }
}

module attributes {stable_mosaic.version = 11 : i64} {
  func.func @_conv3x3_kernel(%arg0: i32, %arg1: memref<1x12x256xbf16, #tpu.memory_space<vmem>>, %arg2: memref<9x256x128xbf16, #tpu.memory_space<vmem>>, %arg3: memref<1x128xf32, #tpu.memory_space<vmem>>, %arg4: memref<1x3x128xf32, #tpu.memory_space<vmem>>, %arg5: memref<3x128xf32, #tpu.memory_space<vmem>>) attributes {dimension_semantics = [#tpu.dimension_semantics<parallel>], iteration_bounds = array<i64: 2>, scalar_prefetch = 0 : i64, scratch_operands = 1 : i64, tpu.core_type = #tpu.core_type<tc>, window_params = [{transform_indices = @transform_0, window_bounds = array<i64: 1, 12, 256>}, {pipeline_mode = #tpu.pipeline_mode<synchronous>, transform_indices = @transform_1, window_bounds = array<i64: 9, 256, 128>}, {pipeline_mode = #tpu.pipeline_mode<synchronous>, transform_indices = @transform_2, window_bounds = array<i64: 1, 128>}, {transform_indices = @transform_3, window_bounds = array<i64: 1, 3, 128>}]} {
    %c0 = arith.constant 0 : index
    %c0_0 = arith.constant 0 : index
    %c0_1 = arith.constant 0 : index
    %0 = vector.load %arg1[%c0, %c0_0, %c0_1] : memref<1x12x256xbf16, #tpu.memory_space<vmem>>, vector<1x12x256xbf16>
    %1 = vector.shape_cast %0 : vector<1x12x256xbf16> to vector<12x256xbf16>
    %c0_2 = arith.constant 0 : index
    %c0_3 = arith.constant 0 : index
    %c0_4 = arith.constant 0 : index
    %2 = vector.load %arg2[%c0_2, %c0_3, %c0_4] : memref<9x256x128xbf16, #tpu.memory_space<vmem>>, vector<1x256x128xbf16>
    %3 = vector.shape_cast %2 : vector<1x256x128xbf16> to vector<256x128xbf16>
    %cst = arith.constant dense<0.000000e+00> : vector<12x128xf32>
    %4 = tpu.matmul %1, %3, %cst {dimension_numbers = #tpu.dot_dimension_numbers<[1], [0], [0], [1], [0, 0, 1, 1], [], []>} : vector<12x256xbf16>, vector<256x128xbf16>, vector<12x128xf32> -> vector<12x128xf32>
    %5 = vector.extract_strided_slice %4 {offsets = [0, 0], sizes = [3, 128], strides = [1, 1]} : vector<12x128xf32> to vector<3x128xf32>
    %c0_5 = arith.constant 0 : index
    %c0_6 = arith.constant 0 : index
    %6 = vector.load %arg5[%c0_5, %c0_6] : memref<3x128xf32, #tpu.memory_space<vmem>>, vector<3x128xf32>
    tpu.vector_store %arg5[%c0_5, %c0_6], %5 {strides = array<i32>} : memref<3x128xf32, #tpu.memory_space<vmem>>, vector<3x128xf32>,
    %c1 = arith.constant 1 : index
    %c0_7 = arith.constant 0 : index
    %c0_8 = arith.constant 0 : index
    %7 = vector.load %arg2[%c1, %c0_7, %c0_8] : memref<9x256x128xbf16, #tpu.memory_space<vmem>>, vector<1x256x128xbf16>
    %8 = vector.shape_cast %7 : vector<1x256x128xbf16> to vector<256x128xbf16>
    %cst_9 = arith.constant dense<0.000000e+00> : vector<12x128xf32>
    %9 = tpu.matmul %1, %8, %cst_9 {dimension_numbers = #tpu.dot_dimension_numbers<[1], [0], [0], [1], [0, 0, 1, 1], [], []>} : vector<12x256xbf16>, vector<256x128xbf16>, vector<12x128xf32> -> vector<12x128xf32>
    %10 = vector.extract_strided_slice %9 {offsets = [1, 0], sizes = [3, 128], strides = [1, 1]} : vector<12x128xf32> to vector<3x128xf32>
    %c0_10 = arith.constant 0 : index
    %c0_11 = arith.constant 0 : index
    %11 = vector.load %arg5[%c0_10, %c0_11] : memref<3x128xf32, #tpu.memory_space<vmem>>, vector<3x128xf32>
    %12 = arith.addf %11, %10 : vector<3x128xf32>
    %c0_12 = arith.constant 0 : index
    %c0_13 = arith.constant 0 : index
    %13 = vector.load %arg5[%c0_12, %c0_13] : memref<3x128xf32, #tpu.memory_space<vmem>>, vector<3x128xf32>
    tpu.vector_store %arg5[%c0_12, %c0_13], %12 {strides = array<i32>} : memref<3x128xf32, #tpu.memory_space<vmem>>, vector<3x128xf32>,
    %c2 = arith.constant 2 : index
    %c0_14 = arith.constant 0 : index
    %c0_15 = arith.constant 0 : index
    %14 = vector.load %arg2[%c2, %c0_14, %c0_15] : memref<9x256x128xbf16, #tpu.memory_space<vmem>>, vector<1x256x128xbf16>
    %15 = vector.shape_cast %14 : vector<1x256x128xbf16> to vector<256x128xbf16>
    %cst_16 = arith.constant dense<0.000000e+00> : vector<12x128xf32>
    %16 = tpu.matmul %1, %15, %cst_16 {dimension_numbers = #tpu.dot_dimension_numbers<[1], [0], [0], [1], [0, 0, 1, 1], [], []>} : vector<12x256xbf16>, vector<256x128xbf16>, vector<12x128xf32> -> vector<12x128xf32>
    %17 = vector.extract_strided_slice %16 {offsets = [2, 0], sizes = [3, 128], strides = [1, 1]} : vector<12x128xf32> to vector<3x128xf32>
    %c0_17 = arith.constant 0 : index
    %c0_18 = arith.constant 0 : index
    %18 = vector.load %arg5[%c0_17, %c0_18] : memref<3x128xf32, #tpu.memory_space<vmem>>, vector<3x128xf32>
    %19 = arith.addf %18, %17 : vector<3x128xf32>
    %c0_19 = arith.constant 0 : index
    %c0_20 = arith.constant 0 : index
    %20 = vector.load %arg5[%c0_19, %c0_20] : memref<3x128xf32, #tpu.memory_space<vmem>>, vector<3x128xf32>
    tpu.vector_store %arg5[%c0_19, %c0_20], %19 {strides = array<i32>} : memref<3x128xf32, #tpu.memory_space<vmem>>, vector<3x128xf32>,
    %c3 = arith.constant 3 : index
    %c0_21 = arith.constant 0 : index
    %c0_22 = arith.constant 0 : index
    %21 = vector.load %arg2[%c3, %c0_21, %c0_22] : memref<9x256x128xbf16, #tpu.memory_space<vmem>>, vector<1x256x128xbf16>
    %22 = vector.shape_cast %21 : vector<1x256x128xbf16> to vector<256x128xbf16>
    %cst_23 = arith.constant dense<0.000000e+00> : vector<12x128xf32>
    %23 = tpu.matmul %1, %22, %cst_23 {dimension_numbers = #tpu.dot_dimension_numbers<[1], [0], [0], [1], [0, 0, 1, 1], [], []>} : vector<12x256xbf16>, vector<256x128xbf16>, vector<12x128xf32> -> vector<12x128xf32>
    %24 = vector.extract_strided_slice %23 {offsets = [3, 0], sizes = [3, 128], strides = [1, 1]} : vector<12x128xf32> to vector<3x128xf32>
    %c0_24 = arith.constant 0 : index
    %c0_25 = arith.constant 0 : index
    %25 = vector.load %arg5[%c0_24, %c0_25] : memref<3x128xf32, #tpu.memory_space<vmem>>, vector<3x128xf32>
    %26 = arith.addf %25, %24 : vector<3x128xf32>
    %c0_26 = arith.constant 0 : index
    %c0_27 = arith.constant 0 : index
    %27 = vector.load %arg5[%c0_26, %c0_27] : memref<3x128xf32, #tpu.memory_space<vmem>>, vector<3x128xf32>
    tpu.vector_store %arg5[%c0_26, %c0_27], %26 {strides = array<i32>} : memref<3x128xf32, #tpu.memory_space<vmem>>, vector<3x128xf32>,
    %c4 = arith.constant 4 : index
    %c0_28 = arith.constant 0 : index
    %c0_29 = arith.constant 0 : index
    %28 = vector.load %arg2[%c4, %c0_28, %c0_29] : memref<9x256x128xbf16, #tpu.memory_space<vmem>>, vector<1x256x128xbf16>
    %29 = vector.shape_cast %28 : vector<1x256x128xbf16> to vector<256x128xbf16>
    %cst_30 = arith.constant dense<0.000000e+00> : vector<12x128xf32>
    %30 = tpu.matmul %1, %29, %cst_30 {dimension_numbers = #tpu.dot_dimension_numbers<[1], [0], [0], [1], [0, 0, 1, 1], [], []>} : vector<12x256xbf16>, vector<256x128xbf16>, vector<12x128xf32> -> vector<12x128xf32>
    %31 = vector.extract_strided_slice %30 {offsets = [4, 0], sizes = [3, 128], strides = [1, 1]} : vector<12x128xf32> to vector<3x128xf32>
    %c0_31 = arith.constant 0 : index
    %c0_32 = arith.constant 0 : index
    %32 = vector.load %arg5[%c0_31, %c0_32] : memref<3x128xf32, #tpu.memory_space<vmem>>, vector<3x128xf32>
    %33 = arith.addf %32, %31 : vector<3x128xf32>
    %c0_33 = arith.constant 0 : index
    %c0_34 = arith.constant 0 : index
    %34 = vector.load %arg5[%c0_33, %c0_34] : memref<3x128xf32, #tpu.memory_space<vmem>>, vector<3x128xf32>
    tpu.vector_store %arg5[%c0_33, %c0_34], %33 {strides = array<i32>} : memref<3x128xf32, #tpu.memory_space<vmem>>, vector<3x128xf32>,
    %c5 = arith.constant 5 : index
    %c0_35 = arith.constant 0 : index
    %c0_36 = arith.constant 0 : index
    %35 = vector.load %arg2[%c5, %c0_35, %c0_36] : memref<9x256x128xbf16, #tpu.memory_space<vmem>>, vector<1x256x128xbf16>
    %36 = vector.shape_cast %35 : vector<1x256x128xbf16> to vector<256x128xbf16>
    %cst_37 = arith.constant dense<0.000000e+00> : vector<12x128xf32>
    %37 = tpu.matmul %1, %36, %cst_37 {dimension_numbers = #tpu.dot_dimension_numbers<[1], [0], [0], [1], [0, 0, 1, 1], [], []>} : vector<12x256xbf16>, vector<256x128xbf16>, vector<12x128xf32> -> vector<12x128xf32>
    %38 = vector.extract_strided_slice %37 {offsets = [5, 0], sizes = [3, 128], strides = [1, 1]} : vector<12x128xf32> to vector<3x128xf32>
    %c0_38 = arith.constant 0 : index
    %c0_39 = arith.constant 0 : index
    %39 = vector.load %arg5[%c0_38, %c0_39] : memref<3x128xf32, #tpu.memory_space<vmem>>, vector<3x128xf32>
    %40 = arith.addf %39, %38 : vector<3x128xf32>
    %c0_40 = arith.constant 0 : index
    %c0_41 = arith.constant 0 : index
    %41 = vector.load %arg5[%c0_40, %c0_41] : memref<3x128xf32, #tpu.memory_space<vmem>>, vector<3x128xf32>
    tpu.vector_store %arg5[%c0_40, %c0_41], %40 {strides = array<i32>} : memref<3x128xf32, #tpu.memory_space<vmem>>, vector<3x128xf32>,
    %c6 = arith.constant 6 : index
    %c0_42 = arith.constant 0 : index
    %c0_43 = arith.constant 0 : index
    %42 = vector.load %arg2[%c6, %c0_42, %c0_43] : memref<9x256x128xbf16, #tpu.memory_space<vmem>>, vector<1x256x128xbf16>
    %43 = vector.shape_cast %42 : vector<1x256x128xbf16> to vector<256x128xbf16>
    %cst_44 = arith.constant dense<0.000000e+00> : vector<12x128xf32>
    %44 = tpu.matmul %1, %43, %cst_44 {dimension_numbers = #tpu.dot_dimension_numbers<[1], [0], [0], [1], [0, 0, 1, 1], [], []>} : vector<12x256xbf16>, vector<256x128xbf16>, vector<12x128xf32> -> vector<12x128xf32>
    %45 = vector.extract_strided_slice %44 {offsets = [6, 0], sizes = [3, 128], strides = [1, 1]} : vector<12x128xf32> to vector<3x128xf32>
    %c0_45 = arith.constant 0 : index
    %c0_46 = arith.constant 0 : index
    %46 = vector.load %arg5[%c0_45, %c0_46] : memref<3x128xf32, #tpu.memory_space<vmem>>, vector<3x128xf32>
    %47 = arith.addf %46, %45 : vector<3x128xf32>
    %c0_47 = arith.constant 0 : index
    %c0_48 = arith.constant 0 : index
    %48 = vector.load %arg5[%c0_47, %c0_48] : memref<3x128xf32, #tpu.memory_space<vmem>>, vector<3x128xf32>
    tpu.vector_store %arg5[%c0_47, %c0_48], %47 {strides = array<i32>} : memref<3x128xf32, #tpu.memory_space<vmem>>, vector<3x128xf32>,
    %c7 = arith.constant 7 : index
    %c0_49 = arith.constant 0 : index
    %c0_50 = arith.constant 0 : index
    %49 = vector.load %arg2[%c7, %c0_49, %c0_50] : memref<9x256x128xbf16, #tpu.memory_space<vmem>>, vector<1x256x128xbf16>
    %50 = vector.shape_cast %49 : vector<1x256x128xbf16> to vector<256x128xbf16>
    %cst_51 = arith.constant dense<0.000000e+00> : vector<12x128xf32>
    %51 = tpu.matmul %1, %50, %cst_51 {dimension_numbers = #tpu.dot_dimension_numbers<[1], [0], [0], [1], [0, 0, 1, 1], [], []>} : vector<12x256xbf16>, vector<256x128xbf16>, vector<12x128xf32> -> vector<12x128xf32>
    %52 = vector.extract_strided_slice %51 {offsets = [7, 0], sizes = [3, 128], strides = [1, 1]} : vector<12x128xf32> to vector<3x128xf32>
    %c0_52 = arith.constant 0 : index
    %c0_53 = arith.constant 0 : index
    %53 = vector.load %arg5[%c0_52, %c0_53] : memref<3x128xf32, #tpu.memory_space<vmem>>, vector<3x128xf32>
    %54 = arith.addf %53, %52 : vector<3x128xf32>
    %c0_54 = arith.constant 0 : index
    %c0_55 = arith.constant 0 : index
    %55 = vector.load %arg5[%c0_54, %c0_55] : memref<3x128xf32, #tpu.memory_space<vmem>>, vector<3x128xf32>
    tpu.vector_store %arg5[%c0_54, %c0_55], %54 {strides = array<i32>} : memref<3x128xf32, #tpu.memory_space<vmem>>, vector<3x128xf32>,
    %c8 = arith.constant 8 : index
    %c0_56 = arith.constant 0 : index
    %c0_57 = arith.constant 0 : index
    %56 = vector.load %arg2[%c8, %c0_56, %c0_57] : memref<9x256x128xbf16, #tpu.memory_space<vmem>>, vector<1x256x128xbf16>
    %57 = vector.shape_cast %56 : vector<1x256x128xbf16> to vector<256x128xbf16>
    %cst_58 = arith.constant dense<0.000000e+00> : vector<12x128xf32>
    %58 = tpu.matmul %1, %57, %cst_58 {dimension_numbers = #tpu.dot_dimension_numbers<[1], [0], [0], [1], [0, 0, 1, 1], [], []>} : vector<12x256xbf16>, vector<256x128xbf16>, vector<12x128xf32> -> vector<12x128xf32>
    %59 = vector.extract_strided_slice %58 {offsets = [8, 0], sizes = [3, 128], strides = [1, 1]} : vector<12x128xf32> to vector<3x128xf32>
    %c0_59 = arith.constant 0 : index
    %c0_60 = arith.constant 0 : index
    %60 = vector.load %arg5[%c0_59, %c0_60] : memref<3x128xf32, #tpu.memory_space<vmem>>, vector<3x128xf32>
    %61 = arith.addf %60, %59 : vector<3x128xf32>
    %c0_61 = arith.constant 0 : index
    %c0_62 = arith.constant 0 : index
    %62 = vector.load %arg5[%c0_61, %c0_62] : memref<3x128xf32, #tpu.memory_space<vmem>>, vector<3x128xf32>
    tpu.vector_store %arg5[%c0_61, %c0_62], %61 {strides = array<i32>} : memref<3x128xf32, #tpu.memory_space<vmem>>, vector<3x128xf32>,
    %c0_63 = arith.constant 0 : index
    %c0_64 = arith.constant 0 : index
    %63 = vector.load %arg5[%c0_63, %c0_64] : memref<3x128xf32, #tpu.memory_space<vmem>>, vector<3x128xf32>
    %c0_65 = arith.constant 0 : index
    %c0_66 = arith.constant 0 : index
    %64 = vector.load %arg3[%c0_65, %c0_66] : memref<1x128xf32, #tpu.memory_space<vmem>>, vector<1x128xf32>
    %65 = vector.broadcast %64 : vector<1x128xf32> to vector<3x128xf32>
    %66 = arith.addf %63, %65 : vector<3x128xf32>
    %c0_67 = arith.constant 0 : index
    %c0_68 = arith.constant 0 : index
    %c0_69 = arith.constant 0 : index
    %67 = vector.load %arg4[%c0_67, %c0_68, %c0_69] : memref<1x3x128xf32, #tpu.memory_space<vmem>>, vector<1x3x128xf32>
    %68 = vector.shape_cast %67 : vector<1x3x128xf32> to vector<3x128xf32>
    %69 = vector.shape_cast %66 : vector<3x128xf32> to vector<1x3x128xf32>
    tpu.vector_store %arg4[%c0_67, %c0_68, %c0_69], %69 {strides = array<i32>} : memref<1x3x128xf32, #tpu.memory_space<vmem>>, vector<1x3x128xf32>,
    return
  }
  func.func @transform_0(%arg0: i32) -> (i32, i32, i32) {
    %c0_i32 = arith.constant 0 : i32
    %c0_i32_0 = arith.constant 0 : i32
    %c0_i32_1 = arith.constant 0 : i32
    return %arg0, %c0_i32, %c0_i32_0 : i32, i32, i32
  }
  func.func @transform_1(%arg0: i32) -> (i32, i32, i32) {
    %c0_i32 = arith.constant 0 : i32
    %c0_i32_0 = arith.constant 0 : i32
    %c0_i32_1 = arith.constant 0 : i32
    %c0_i32_2 = arith.constant 0 : i32
    return %c0_i32, %c0_i32_0, %c0_i32_1 : i32, i32, i32
  }
  func.func @transform_2(%arg0: i32) -> (i32, i32) {
    %c0_i32 = arith.constant 0 : i32
    %c0_i32_0 = arith.constant 0 : i32
    %c0_i32_1 = arith.constant 0 : i32
    return %c0_i32, %c0_i32_0 : i32, i32
  }
  func.func @transform_3(%arg0: i32) -> (i32, i32, i32) {
    %c0_i32 = arith.constant 0 : i32
    %c0_i32_0 = arith.constant 0 : i32
    %c0_i32_1 = arith.constant 0 : i32
    return %arg0, %c0_i32, %c0_i32_0 : i32, i32, i32
  }
}

</mosaic_0001>

<bundles_post_ra>
// kernel: _lambda_.7
= control target key start
LH: loop header
LB: loop body
LE: loop exit
PB: predicated region body
PF: predicated region fallthrough
CT: control target
= control target key end

     0   :  { %s10818_s12 = smov 0   ;;  %s13059_s0 = inlined_call_operand.vmem [shape: bf16[2,42,1024], index: 0, kind: input, shape index: {}]   ;;  %s13060_s1 = inlined_call_operand.vmem [shape: bf16[9,1024,128], index: 1, kind: input, shape index: {}]   ;;  %s13061_s2 = inlined_call_operand.vmem [shape: f32[1,128], index: 2, kind: input, shape index: {}]   ;;  %s13062_s3 = inlined_call_operand.vmem [shape: f32[2,24,128], index: 3, kind: output, shape index: {}]  }
   0x1 LB: > { %s6746_s13 = sadd.s32 4294967295, %s10796_s12   ;;  %p6750_p0 = scmp.ge.s32.totalorder %s10796_s12, 1  ;;  %s10796_s12 = sphi %s10818_s12, %s13_s12  }
   0x2   : > { %p137_p1 = scmp.lt.s32.totalorder %s10796_s12, 3 }
   0x4   : > { %p138_p2 = pnand %p6750_p0, %p137_p1 }
   0x5   : > { %p161_p3 = scmp.lt.s32.totalorder (!%p138_p2), %s6746_s13, 1 }
   0x6   : > { %141 = sbr.rel (%p138_p2) target bundleno = 1037 (0x40d), region = 32 }
   0xb   : > { %v10210_v0 = vld [vmem:[%s13060_s1 + $0x38] sm:$0xff]  ;;  %v10209_v4 = vld [vmem:[%s13060_s1 + $0x30] sm:$0xff]  ;;  %v10208_v8 = vld [vmem:[%s13060_s1 + $0x28] sm:$0xff]  ;;  %s13064_s13 = smov (!%p161_p3, %s6746_s13), 1  ;;  %vm1694_vm0 = vcmask 1046528   ;;  %vm2407_vm1 = vcmask 1045504  }
   0xc   : > { %v10218_v1 = vld [vmem:[%s13060_s1 + $0x78] sm:$0xff]  ;;  %827 = vmatpush.bf16.msra.mxu0 %v10210_v0  ;;  %v10217_v5 = vld [vmem:[%s13060_s1 + $0x70] sm:$0xff]  ;;  %v10216_v9 = vld [vmem:[%s13060_s1 + $0x68] sm:$0xff]  ;;  %s10779_s6 = smul.u32 192, %s13064_s13  ;;  %vm3120_vm2 = vcmask 1041408   ;;  %vm3833_vm3 = vcmask 1040384  }
   0xd   : > { %v10226_v2 = vld [vmem:[%s13060_s1 + $0xb8] sm:$0xff]  ;;  %848 = vmatpush.bf16.msra.mxu1 %v10218_v1  ;;  %v10225_v6 = vld [vmem:[%s13060_s1 + $0xb0] sm:$0xff]  ;;  %v10224_v10 = vld [vmem:[%s13060_s1 + $0xa8] sm:$0xff]  ;;  %vm5236_vm4 = vcmask 1043456   ;;  %vm5949_vm5 = vcmask 1042432   ;;  %s10780_s26 = smul.u32 24, %s13064_s13 }
   0xe   : > { %v10234_v3 = vld [vmem:[%s13060_s1 + $0xf8] sm:$0xff]  ;;  %869 = vmatpush.bf16.msra.mxu2 %v10226_v2  ;;  %v10233_v7 = vld [vmem:[%s13060_s1 + $0xf0] sm:$0xff]  ;;  %v10232_v11 = vld [vmem:[%s13060_s1 + $0xe8] sm:$0xff]  ;;  %s10914_s19 = scalar_lea.vmem %s13059_s0, %s10779_s6 }
   0xf   : > { %890 = vmatpush.bf16.msra.mxu3 %v10234_v3  ;;  %v10207_v12 = vld [vmem:[%s13060_s1 + $0x20] sm:$0xff]  ;;  %v10206_v16 = vld [vmem:[%s13060_s1 + $0x18] sm:$0xff]  ;;  %v10205_v20 = vld [vmem:[%s13060_s1 + $0x10] sm:$0xff]  ;;  %s170_s4 = scalar_lea.vmem %s13062_s3, %s10780_s26 }
  0x10   : > { %828 = vmatpush.bf16.msra.mxu0 %v10209_v4  ;;  %v10215_v13 = vld [vmem:[%s13060_s1 + $0x60] sm:$0xff]  ;;  %v10214_v17 = vld [vmem:[%s13060_s1 + $0x58] sm:$0xff]  ;;  %v10213_v21 = vld [vmem:[%s13060_s1 + $0x50] sm:$0xff] }
  0x11   : > { %849 = vmatpush.bf16.msra.mxu1 %v10217_v5  ;;  %v10223_v14 = vld [vmem:[%s13060_s1 + $0xa0] sm:$0xff]  ;;  %v10222_v18 = vld [vmem:[%s13060_s1 + $0x98] sm:$0xff]  ;;  %v10221_v22 = vld [vmem:[%s13060_s1 + $0x90] sm:$0xff] }
  0x12   : > { %870 = vmatpush.bf16.msra.mxu2 %v10225_v6  ;;  %v10231_v15 = vld [vmem:[%s13060_s1 + $0xe0] sm:$0xff]  ;;  %v10230_v19 = vld [vmem:[%s13060_s1 + $0xd8] sm:$0xff]  ;;  %v10229_v23 = vld [vmem:[%s13060_s1 + $0xd0] sm:$0xff] }
  0x13   : > { %891 = vmatpush.bf16.msra.mxu3 %v10233_v7  ;;  %v10204_v24 = vld [vmem:[%s13060_s1 + $0x8] sm:$0xff]  ;;  %v10203_v28 = vld [vmem:[%s13060_s1] sm:$0xff]  ;;  %v10258_v40 = vld [vmem:[%s13060_s1 + $0x1b8] sm:$0xff] }
  0x14   : > { %829 = vmatpush.bf16.msra.mxu0 %v10208_v8  ;;  %v10212_v25 = vld [vmem:[%s13060_s1 + $0x48] sm:$0xff]  ;;  %v10211_v29 = vld [vmem:[%s13060_s1 + $0x40] sm:$0xff]  ;;  %v10242_v41 = vld [vmem:[%s13060_s1 + $0x138] sm:$0xff] }
  0x15   : > { %850 = vmatpush.bf16.msra.mxu1 %v10216_v9  ;;  %v10220_v26 = vld [vmem:[%s13060_s1 + $0x88] sm:$0xff]  ;;  %v10219_v30 = vld [vmem:[%s13060_s1 + $0x80] sm:$0xff]  ;;  %v10266_v46 = vld [vmem:[%s13060_s1 + $0x1f8] sm:$0xff] }
  0x16   : > { %871 = vmatpush.bf16.msra.mxu2 %v10224_v10  ;;  %v10228_v27 = vld [vmem:[%s13060_s1 + $0xc8] sm:$0xff]  ;;  %v10227_v31 = vld [vmem:[%s13060_s1 + $0xc0] sm:$0xff]  ;;  %v10250_v47 = vld [vmem:[%s13060_s1 + $0x178] sm:$0xff] }
  0x17   : > { %892 = vmatpush.bf16.msra.mxu3 %v10232_v11  ;;  %v6755_v32 = vld [vmem:[%s10914_s19] sm:$0xf]  ;;  %v10179_v34 = vld [vmem:[%s10914_s19 + $0x4] sm:$0xf]  ;;  %v6763_v36 = vld [vmem:[%s10914_s19 + $0x8] sm:$0xf] }
  0x18   : > { %830 = vmatpush.bf16.msra.mxu0 %v10207_v12  ;;  %v10183_v33 = vld [vmem:[%s10914_s19 + $0x1c] sm:$0xf0]  ;;  %v6757_v35 = vld [vmem:[%s10914_s19 + $0x20] sm:$0xf0]  ;;  %v10184_v37 = vld [vmem:[%s10914_s19 + $0x24] sm:$0xf0] }
  0x19   : > { %851 = vmatpush.bf16.msra.mxu1 %v10215_v13  ;;  %v10180_v38 = vld [vmem:[%s10914_s19 + $0xc] sm:$0xf]  ;;  %v10948_v42 = vor.u32 %v10183_v33, %v6755_v32  ;;  %v10950_v43 = vor.u32 %v10179_v34, %v6757_v35  ;;  %v10952_v44 = vor.u32 %v10184_v37, %v6763_v36  ;;  %v10257_v48 = vld [vmem:[%s13060_s1 + $0x1b0] sm:$0xff]  ;;  %v6787_v56 = vld [vmem:[%s10914_s19 + $0x40] sm:$0xf] }
  0x1a   : > { %872 = vmatpush.bf16.msra.mxu2 %v10223_v14  ;;  %v6765_v39 = vld [vmem:[%s10914_s19 + $0x28] sm:$0xf0]  ;;  %v10241_v49 = vld [vmem:[%s13060_s1 + $0x130] sm:$0xff]  ;;  %v10255_v57 = vld [vmem:[%s13060_s1 + $0x1a0] sm:$0xff] }
  0x1b   : > { %893 = vmatpush.bf16.msra.mxu3 %v10231_v15  ;;  %v10954_v45 = vor.u32 %v10180_v38, %v6765_v39  ;;  %v10265_v50 = vld [vmem:[%s13060_s1 + $0x1f0] sm:$0xff]  ;;  %v10256_v52 = vld [vmem:[%s13060_s1 + $0x1a8] sm:$0xff]  ;;  %v10239_v58 = vld [vmem:[%s13060_s1 + $0x120] sm:$0xff] }
  0x1c   : > { %831 = vmatpush.bf16.msra.mxu0 %v10206_v16  ;;  %v10249_v51 = vld [vmem:[%s13060_s1 + $0x170] sm:$0xff]  ;;  %v10240_v53 = vld [vmem:[%s13060_s1 + $0x128] sm:$0xff]  ;;  %v10191_v59 = vld [vmem:[%s10914_s19 + $0x5c] sm:$0xf0] }
  0x1d   : > { %852 = vmatpush.bf16.msra.mxu1 %v10214_v17  ;;  %v10264_v54 = vld [vmem:[%s13060_s1 + $0x1e8] sm:$0xff]  ;;  %v10187_v60 = vld [vmem:[%s10914_s19 + $0x44] sm:$0xf]  ;;  %v10254_v4 = vld [vmem:[%s13060_s1 + $0x198] sm:$0xff]  ;;  %v11016_v6 = vor.u32 %v10191_v59, %v6787_v56 }
  0x1e   : > { %873 = vmatpush.bf16.msra.mxu2 %v10222_v18  ;;  %v10248_v55 = vld [vmem:[%s13060_s1 + $0x168] sm:$0xff]  ;;  %v6789_v61 = vld [vmem:[%s10914_s19 + $0x60] sm:$0xf0]  ;;  %v10238_v5 = vld [vmem:[%s13060_s1 + $0x118] sm:$0xff] }
  0x1f   : > { %894 = vmatpush.bf16.msra.mxu3 %v10230_v19  ;;  %v6795_v62 = vld [vmem:[%s10914_s19 + $0x48] sm:$0xf]  ;;  %v10188_v0 = vld [vmem:[%s10914_s19 + $0x4c] sm:$0xf]  ;;  %v10263_v2 = vld [vmem:[%s13060_s1 + $0x1e0] sm:$0xff]  ;;  %v11018_v7 = vor.u32 %v10187_v60, %v6789_v61 }
  0x20   : > { %832 = vmatpush.bf16.msra.mxu0 %v10205_v20  ;;  %v10192_v63 = vld [vmem:[%s10914_s19 + $0x64] sm:$0xf0]  ;;  %v6797_v1 = vld [vmem:[%s10914_s19 + $0x68] sm:$0xf0]  ;;  %v10247_v3 = vld [vmem:[%s13060_s1 + $0x160] sm:$0xff] }
  0x21   : > { %853 = vmatpush.bf16.msra.mxu1 %v10213_v21  ;;  %v11020_v8 = vor.u32 %v10192_v63, %v6795_v62  ;;  %v11022_v9 = vor.u32 %v10188_v0, %v6797_v1  ;;  %v10262_v10 = vld [vmem:[%s13060_s1 + $0x1d8] sm:$0xff]  ;;  %v10253_v12 = vld [vmem:[%s13060_s1 + $0x190] sm:$0xff]  ;;  %v10252_v16 = vld [vmem:[%s13060_s1 + $0x188] sm:$0xff] }
  0x22   : > { %874 = vmatpush.bf16.msra.mxu2 %v10221_v22  ;;  %v10246_v11 = vld [vmem:[%s13060_s1 + $0x158] sm:$0xff]  ;;  %v10237_v13 = vld [vmem:[%s13060_s1 + $0x110] sm:$0xff]  ;;  %v10236_v17 = vld [vmem:[%s13060_s1 + $0x108] sm:$0xff] }
  0x23   : > { %895 = vmatpush.bf16.msra.mxu3 %v10229_v23  ;;  %v10261_v14 = vld [vmem:[%s13060_s1 + $0x1d0] sm:$0xff]  ;;  %v10260_v18 = vld [vmem:[%s13060_s1 + $0x1c8] sm:$0xff]  ;;  %v6819_v20 = vld [vmem:[%s10914_s19 + $0x80] sm:$0xf] }
  0x24   : > { %833 = vmatpush.bf16.msra.mxu0 %v10204_v24  ;;  %v10245_v15 = vld [vmem:[%s13060_s1 + $0x150] sm:$0xff]  ;;  %v10244_v19 = vld [vmem:[%s13060_s1 + $0x148] sm:$0xff]  ;;  %v10199_v21 = vld [vmem:[%s10914_s19 + $0x9c] sm:$0x10] }
  0x25   : > { %854 = vmatpush.bf16.msra.mxu1 %v10212_v25  ;;  %v10195_v22 = vld [vmem:[%s10914_s19 + $0x84] sm:$0xf]  ;;  %v10298_v34 = vld [vmem:[%s13060_s1 + $0x2f8] sm:$0xff]  ;;  %v11090_v36 = vor.u32 %v10199_v21, %v6819_v20  ;;  %v6773_v59 = vld [vmem:[%s10914_s19 + $0x30] sm:$0xf0] }
  0x26   : > { %875 = vmatpush.bf16.msra.mxu2 %v10220_v26  ;;  %v10251_v23 = vld [vmem:[%s13060_s1 + $0x180] sm:$0xff]  ;;  %v10290_v26 = vld [vmem:[%s13060_s1 + $0x2b8] sm:$0xff] }
  0x27   : > { %896 = vmatpush.bf16.msra.mxu3 %v10228_v27  ;;  %v10235_v24 = vld [vmem:[%s13060_s1 + $0x100] sm:$0xff]  ;;  %v10274_v27 = vld [vmem:[%s13060_s1 + $0x238] sm:$0xff] }
  0x28   : > { %834 = vmatpush.bf16.msra.mxu0 %v10203_v28  ;;  %v6821_v25 = vld [vmem:[%s10914_s19 + $0xa0] sm:$0x10]  ;;  %v6827_v28 = vld [vmem:[%s10914_s19 + $0x88] sm:$0xf]  ;;  %v10282_v35 = vld [vmem:[%s13060_s1 + $0x278] sm:$0xff] }
  0x29   : > { %855 = vmatpush.bf16.msra.mxu1 %v10211_v29  ;;  %v10200_v29 = vld [vmem:[%s10914_s19 + $0xa4] sm:$0x10]  ;;  %v10259_v32 = vld [vmem:[%s13060_s1 + $0x1c0] sm:$0xff]  ;;  %v11092_v37 = vor.u32 %v10195_v22, %v6821_v25  ;;  %v6779_v60 = vld [vmem:[%s10914_s19 + $0x18] sm:$0xf] }
  0x2a   : > { %876 = vmatpush.bf16.msra.mxu2 %v10219_v30  ;;  %v10196_v30 = vld [vmem:[%s10914_s19 + $0x8c] sm:$0xf]  ;;  %v10243_v33 = vld [vmem:[%s13060_s1 + $0x140] sm:$0xff]  ;;  %v11094_v38 = vor.u32 %v10200_v29, %v6827_v28  ;;  %v10186_v61 = vld [vmem:[%s10914_s19 + $0x34] sm:$0xf0] }
  0x2b   : > { %897 = vmatpush.bf16.msra.mxu3 %v10227_v31  ;;  %835 = vmatmul.bf16.vlgmr.msra.gmra.mxu0 %v10948_v42  ;;  %v6829_v31 = vld [vmem:[%s10914_s19 + $0xa8] sm:$0x10]  ;;  %v10279_v56 = vld [vmem:[%s13060_s1 + $0x260] sm:$0xff]  ;;  %v10182_v62 = vld [vmem:[%s10914_s19 + $0x1c] sm:$0xf] }
  0x2c   : > { %911 = vmatpush.bf16.msrb.mxu0 %v10242_v41  ;;  %856 = vmatmul.bf16.vlgmr.msra.gmra.mxu1 %v10950_v43  ;;  %v11096_v39 = vor.u32 %v10196_v30, %v6829_v31  ;;  %v10273_v41 = vld [vmem:[%s13060_s1 + $0x230] sm:$0xff]  ;;  %v6781_v63 = vld [vmem:[%s10914_s19 + $0x38] sm:$0xf0]  ;;  %v10283_v20 = vld [vmem:[%s13060_s1 + $0x280] sm:$0xff] }
  0x2d   : > { %877 = vmatmul.bf16.vlgmr.msra.gmra.mxu2 %v10952_v44  ;;  %932 = vmatpush.bf16.msrb.mxu1 %v10250_v47  ;;  %v10281_v47 = vld [vmem:[%s13060_s1 + $0x270] sm:$0xff]  ;;  %v10286_v0 = vld [vmem:[%s13060_s1 + $0x298] sm:$0xff]  ;;  %v10267_v21 = vld [vmem:[%s13060_s1 + $0x200] sm:$0xff] }
  0x2e   : > { %953 = vmatpush.bf16.msrb.mxu2 %v10258_v40  ;;  %898 = vmatmul.bf16.vlgmr.msra.gmra.mxu3 %v10954_v45  ;;  %v10289_v40 = vld [vmem:[%s13060_s1 + $0x2b0] sm:$0xff]  ;;  %v10270_v1 = vld [vmem:[%s13060_s1 + $0x218] sm:$0xff]  ;;  %v10291_v22 = vld [vmem:[%s13060_s1 + $0x2c0] sm:$0xff] }
  0x2f   : > { %974 = vmatpush.bf16.msrb.mxu3 %v10266_v46  ;;  %v10297_v46 = vld [vmem:[%s13060_s1 + $0x2f0] sm:$0xff]  ;;  %v10275_v25 = vld [vmem:[%s13060_s1 + $0x240] sm:$0xff]  ;;  %v6811_v28 = vld [vmem:[%s10914_s19 + $0x58] sm:$0xf] }
  0x30   : > { %912 = vmatpush.bf16.msrb.mxu0 %v10241_v49  ;;  %v10272_v49 = vld [vmem:[%s13060_s1 + $0x228] sm:$0xff]  ;;  %v10194_v29 = vld [vmem:[%s10914_s19 + $0x74] sm:$0xf0]  ;;  %v10190_v30 = vld [vmem:[%s10914_s19 + $0x5c] sm:$0xf] }
  0x31   : > { %933 = vmatpush.bf16.msrb.mxu1 %v10249_v51  ;;  %v10280_v51 = vld [vmem:[%s13060_s1 + $0x268] sm:$0xff]  ;;  %v6813_v31 = vld [vmem:[%s10914_s19 + $0x78] sm:$0xf0] }
  0x32   : > { %954 = vmatpush.bf16.msrb.mxu2 %v10257_v48  ;;  %v10288_v48 = vld [vmem:[%s13060_s1 + $0x2a8] sm:$0xff] }
  0x33   : > { %975 = vmatpush.bf16.msrb.mxu3 %v10265_v50  ;;  %v10296_v50 = vld [vmem:[%s13060_s1 + $0x2e8] sm:$0xff] }
  0x34   : > { %913 = vmatpush.bf16.msrb.mxu0 %v10240_v53  ;;  %v10271_v53 = vld [vmem:[%s13060_s1 + $0x220] sm:$0xff] }
  0x35   : > { %934 = vmatpush.bf16.msrb.mxu1 %v10248_v55  ;;  %v10295_v55 = vld [vmem:[%s13060_s1 + $0x2e0] sm:$0xff] }
  0x36   : > { %955 = vmatpush.bf16.msrb.mxu2 %v10256_v52  ;;  %v10287_v52 = vld [vmem:[%s13060_s1 + $0x2a0] sm:$0xff] }
  0x37   : > { %976 = vmatpush.bf16.msrb.mxu3 %v10264_v54  ;;  %v6771_v54 = vld [vmem:[%s10914_s19 + $0x10] sm:$0xf] }
  0x38   : > { %914 = vmatpush.bf16.msrb.mxu0 %v10239_v58  ;;  %v10181_v58 = vld [vmem:[%s10914_s19 + $0x14] sm:$0xf] }
  0x39   : > { %935 = vmatpush.bf16.msrb.mxu1 %v10247_v3  ;;  %v10278_v3 = vld [vmem:[%s13060_s1 + $0x258] sm:$0xff] }
  0x3a   : > { %956 = vmatpush.bf16.msrb.mxu2 %v10255_v57  ;;  %v10185_v57 = vld [vmem:[%s10914_s19 + $0x2c] sm:$0xf0] }
  0x3b   : > { %977 = vmatpush.bf16.msrb.mxu3 %v10263_v2  ;;  %840 = vmatmul.bf16.gmra.mxu0 %v11016_v6  ;;  %v10294_v2 = vld [vmem:[%s13060_s1 + $0x2d8] sm:$0xff] }
  0x3c   : > { %915 = vmatpush.bf16.msrb.mxu0 %v10238_v5  ;;  %861 = vmatmul.bf16.gmra.mxu1 %v11018_v7  ;;  %v11160_v5 = vor.u32 %v10181_v58, %v6773_v59  ;;  %v6837_v58 = vld [vmem:[%s10914_s19 + $0xb0] sm:$0x10]  ;;  %v6843_v59 = vld [vmem:[%s10914_s19 + $0x98] sm:$0xf] }
  0x3d   : > { %882 = vmatmul.bf16.gmra.mxu2 %v11020_v8  ;;  %936 = vmatpush.bf16.msrb.mxu1 %v10246_v11  ;;  %v11164_v11 = vor.u32 %v10182_v62, %v6781_v63  ;;  %v6845_v62 = vld [vmem:[%s10914_s19 + $0xb8] sm:$0x10] }
  0x3e   : > { %957 = vmatpush.bf16.msrb.mxu2 %v10254_v4  ;;  %903 = vmatmul.bf16.gmra.mxu3 %v11022_v9  ;;  %v11158_v4 = vor.u32 %v10185_v57, %v6771_v54  ;;  %v6835_v54 = vld [vmem:[%s10914_s19 + $0x90] sm:$0xf]  ;;  %v10197_v57 = vld [vmem:[%s10914_s19 + $0x94] sm:$0xf] }
  0x3f   : > { %978 = vmatpush.bf16.msrb.mxu3 %v10262_v10  ;;  %v11162_v10 = vor.u32 %v10186_v61, %v6779_v60  ;;  %v10202_v60 = vld [vmem:[%s10914_s19 + $0xb4] sm:$0x10]  ;;  %v10198_v61 = vld [vmem:[%s10914_s19 + $0x9c] sm:$0xf] }
  0x40   : > { %916 = vmatpush.bf16.msrb.mxu0 %v10237_v13  ;;  %v10269_v13 = vld [vmem:[%s13060_s1 + $0x210] sm:$0xff] }
  0x41   : > { %937 = vmatpush.bf16.msrb.mxu1 %v10245_v15  ;;  %v10277_v15 = vld [vmem:[%s13060_s1 + $0x250] sm:$0xff] }
  0x42   : > { %958 = vmatpush.bf16.msrb.mxu2 %v10253_v12  ;;  %v10285_v12 = vld [vmem:[%s13060_s1 + $0x290] sm:$0xff] }
  0x43   : > { %979 = vmatpush.bf16.msrb.mxu3 %v10261_v14  ;;  %v10293_v14 = vld [vmem:[%s13060_s1 + $0x2d0] sm:$0xff] }
  0x44   : > { %917 = vmatpush.bf16.msrb.mxu0 %v10236_v17  ;;  %v10268_v17 = vld [vmem:[%s13060_s1 + $0x208] sm:$0xff] }
  0x45   : > { %938 = vmatpush.bf16.msrb.mxu1 %v10244_v19  ;;  %v10276_v19 = vld [vmem:[%s13060_s1 + $0x248] sm:$0xff] }
  0x46   : > { %959 = vmatpush.bf16.msrb.mxu2 %v10252_v16  ;;  %v10284_v16 = vld [vmem:[%s13060_s1 + $0x288] sm:$0xff] }
  0x47   : > { %980 = vmatpush.bf16.msrb.mxu3 %v10260_v18  ;;  %v10292_v18 = vld [vmem:[%s13060_s1 + $0x2c8] sm:$0xff] }
  0x48   : > { %918 = vmatpush.bf16.msrb.mxu0 %v10235_v24  ;;  %v10193_v24 = vld [vmem:[%s10914_s19 + $0x6c] sm:$0xf0] }
  0x49   : > { %939 = vmatpush.bf16.msrb.mxu1 %v10243_v33 }
  0x4a   : > { %960 = vmatpush.bf16.msrb.mxu2 %v10251_v23  ;;  %v6803_v23 = vld [vmem:[%s10914_s19 + $0x50] sm:$0xf] }
  0x4b   : > { %981 = vmatpush.bf16.msrb.mxu3 %v10259_v32  ;;  %844 = vmatmul.bf16.gmra.mxu0 %v11090_v36  ;;  %v11214_v32 = vor.u32 %v10193_v24, %v6803_v23  ;;  %v10309_v23 = vld [vmem:[%s13060_s1 + $0x350] sm:$0xff]  ;;  %v10316_v24 = vld [vmem:[%s13060_s1 + $0x388] sm:$0xff] }
  0x4c   : > { %1511 = vmatpush.bf16.msra.mxu0 %v10274_v27  ;;  %865 = vmatmul.bf16.gmra.mxu1 %v11092_v37  ;;  %v6805_v27 = vld [vmem:[%s10914_s19 + $0x70] sm:$0xf0] }
  0x4d   : > { %1533 = vmatpush.bf16.msra.mxu1 %v10282_v35  ;;  %886 = vmatmul.bf16.gmra.mxu2 %v11094_v38  ;;  %v11220_v35 = vor.u32 %v10190_v30, %v6813_v31  ;;  %v10323_v30 = vld [vmem:[%s13060_s1 + $0x3c0] sm:$0xff] }
  0x4e   : > { %1555 = vmatpush.bf16.msra.mxu2 %v10290_v26  ;;  %907 = vmatmul.bf16.gmra.mxu3 %v11096_v39  ;;  %v10189_v26 = vld [vmem:[%s10914_s19 + $0x54] sm:$0xf]  ;;  %v10307_v31 = vld [vmem:[%s13060_s1 + $0x340] sm:$0xff] }
  0x4f   : > { %1577 = vmatpush.bf16.msra.mxu3 %v10298_v34  ;;  %v11216_v33 = vor.u32 %v10189_v26, %v6805_v27  ;;  %v11218_v34 = vor.u32 %v10194_v29, %v6811_v28  ;;  %v10324_v26 = vld [vmem:[%s13060_s1 + $0x3c8] sm:$0xff]  ;;  %v10315_v28 = vld [vmem:[%s13060_s1 + $0x380] sm:$0xff] }
  0x50   : > { %1512 = vmatpush.bf16.msra.mxu0 %v10273_v41  ;;  %v10306_v41 = vld [vmem:[%s13060_s1 + $0x338] sm:$0xff]  ;;  %v10308_v27 = vld [vmem:[%s13060_s1 + $0x348] sm:$0xff]  ;;  %v10299_v29 = vld [vmem:[%s13060_s1 + $0x300] sm:$0xff] }
  0x51   : > { %1534 = vmatpush.bf16.msra.mxu1 %v10281_v47  ;;  %v10314_v47 = vld [vmem:[%s13060_s1 + $0x378] sm:$0xff] }
  0x52   : > { %1556 = vmatpush.bf16.msra.mxu2 %v10289_v40  ;;  %v10322_v40 = vld [vmem:[%s13060_s1 + $0x3b8] sm:$0xff] }
  0x53   : > { %1578 = vmatpush.bf16.msra.mxu3 %v10297_v46  ;;  %v10330_v46 = vld [vmem:[%s13060_s1 + $0x3f8] sm:$0xff] }
  0x54   : > { %1513 = vmatpush.bf16.msra.mxu0 %v10272_v49  ;;  %v10305_v49 = vld [vmem:[%s13060_s1 + $0x330] sm:$0xff] }
  0x55   : > { %1535 = vmatpush.bf16.msra.mxu1 %v10280_v51  ;;  %v10313_v51 = vld [vmem:[%s13060_s1 + $0x370] sm:$0xff] }
  0x56   : > { %1557 = vmatpush.bf16.msra.mxu2 %v10288_v48  ;;  %v10321_v48 = vld [vmem:[%s13060_s1 + $0x3b0] sm:$0xff] }
  0x57   : > { %1579 = vmatpush.bf16.msra.mxu3 %v10296_v50  ;;  %v10329_v50 = vld [vmem:[%s13060_s1 + $0x3f0] sm:$0xff] }
  0x58   : > { %1514 = vmatpush.bf16.msra.mxu0 %v10271_v53  ;;  %v10304_v53 = vld [vmem:[%s13060_s1 + $0x328] sm:$0xff] }
  0x59   : > { %1536 = vmatpush.bf16.msra.mxu1 %v10279_v56  ;;  %v10328_v56 = vld [vmem:[%s13060_s1 + $0x3e8] sm:$0xff] }
  0x5a   : > { %1558 = vmatpush.bf16.msra.mxu2 %v10287_v52  ;;  %v10320_v52 = vld [vmem:[%s13060_s1 + $0x3a8] sm:$0xff] }
  0x5b   : > { %1580 = vmatpush.bf16.msra.mxu3 %v10295_v55  ;;  %919 = vmatmul.bf16.vlgmr.msrb.gmra.mxu0 %v11158_v4  ;;  %v10201_v55 = vld [vmem:[%s10914_s19 + $0xac] sm:$0x10] }
  0x5c   : > { %1515 = vmatpush.bf16.msra.mxu0 %v10270_v1  ;;  %940 = vmatmul.bf16.vlgmr.msrb.gmra.mxu1 %v11160_v5  ;;  %v11267_v63 = vor.u32 %v10201_v55, %v6835_v54  ;;  %v11271_v1 = vor.u32 %v10202_v60, %v6843_v59  ;;  %v10336_v55 = vld [vmem:[%s13060_s1 + $0x428] sm:$0xff]  ;;  %v10351_v59 = vld [vmem:[%s13060_s1 + $0x4a0] sm:$0xff] }
  0x5d   : > { %1537 = vmatpush.bf16.msra.mxu1 %v10278_v3  ;;  %961 = vmatmul.bf16.vlgmr.msrb.gmra.mxu2 %v11162_v10  ;;  %v10312_v3 = vld [vmem:[%s13060_s1 + $0x368] sm:$0xff] }
  0x5e   : > { %1559 = vmatpush.bf16.msra.mxu2 %v10286_v0  ;;  %982 = vmatmul.bf16.vlgmr.msrb.gmra.mxu3 %v11164_v11  ;;  %v11269_v0 = vor.u32 %v10197_v57, %v6837_v58  ;;  %v10344_v58 = vld [vmem:[%s13060_s1 + $0x468] sm:$0xff] }
  0x5f   : > { %1581 = vmatpush.bf16.msra.mxu3 %v10294_v2  ;;  %v11273_v2 = vor.u32 %v10198_v61, %v6845_v62  ;;  %v10335_v62 = vld [vmem:[%s13060_s1 + $0x420] sm:$0xff] }
  0x60   : > { %1516 = vmatpush.bf16.msra.mxu0 %v10269_v13  ;;  %v10303_v13 = vld [vmem:[%s13060_s1 + $0x320] sm:$0xff] }
  0x61   : > { %1538 = vmatpush.bf16.msra.mxu1 %v10277_v15  ;;  %v10311_v15 = vld [vmem:[%s13060_s1 + $0x360] sm:$0xff] }
  0x62   : > { %1560 = vmatpush.bf16.msra.mxu2 %v10285_v12  ;;  %v10319_v12 = vld [vmem:[%s13060_s1 + $0x3a0] sm:$0xff] }
  0x63   : > { %1582 = vmatpush.bf16.msra.mxu3 %v10293_v14  ;;  %v10327_v14 = vld [vmem:[%s13060_s1 + $0x3e0] sm:$0xff] }
  0x64   : > { %1517 = vmatpush.bf16.msra.mxu0 %v10268_v17  ;;  %v10302_v17 = vld [vmem:[%s13060_s1 + $0x318] sm:$0xff] }
  0x65   : > { %1539 = vmatpush.bf16.msra.mxu1 %v10276_v19  ;;  %v10310_v19 = vld [vmem:[%s13060_s1 + $0x358] sm:$0xff] }
  0x66   : > { %1561 = vmatpush.bf16.msra.mxu2 %v10284_v16  ;;  %v10318_v16 = vld [vmem:[%s13060_s1 + $0x398] sm:$0xff] }
  0x67   : > { %1583 = vmatpush.bf16.msra.mxu3 %v10292_v18  ;;  %v10326_v18 = vld [vmem:[%s13060_s1 + $0x3d8] sm:$0xff] }
  0x68   : > { %1518 = vmatpush.bf16.msra.mxu0 %v10267_v21  ;;  %v10301_v21 = vld [vmem:[%s13060_s1 + $0x310] sm:$0xff] }
  0x69   : > { %1540 = vmatpush.bf16.msra.mxu1 %v10275_v25  ;;  %v10300_v25 = vld [vmem:[%s13060_s1 + $0x308] sm:$0xff] }
  0x6a   : > { %1562 = vmatpush.bf16.msra.mxu2 %v10283_v20  ;;  %v10317_v20 = vld [vmem:[%s13060_s1 + $0x390] sm:$0xff] }
  0x6b   : > { %1584 = vmatpush.bf16.msra.mxu3 %v10291_v22  ;;  %924 = vmatmul.bf16.gmra.mxu0 %v11214_v32  ;;  %v10325_v22 = vld [vmem:[%s13060_s1 + $0x3d0] sm:$0xff] }
  0x6c   : > { %945 = vmatmul.bf16.gmra.mxu1 %v11216_v33  ;;  %1599 = vmatpush.bf16.msrb.mxu0 %v10306_v41  ;;  %v10338_v41 = vld [vmem:[%s13060_s1 + $0x438] sm:$0xff] }
  0x6d   : > { %966 = vmatmul.bf16.gmra.mxu2 %v11218_v34  ;;  %1621 = vmatpush.bf16.msrb.mxu1 %v10314_v47  ;;  %v10346_v47 = vld [vmem:[%s13060_s1 + $0x478] sm:$0xff] }
  0x6e   : > { %987 = vmatmul.bf16.gmra.mxu3 %v11220_v35  ;;  %1643 = vmatpush.bf16.msrb.mxu2 %v10322_v40  ;;  %v10354_v40 = vld [vmem:[%s13060_s1 + $0x4b8] sm:$0xff] }
  0x6f   : > { %1665 = vmatpush.bf16.msrb.mxu3 %v10330_v46  ;;  %v10362_v46 = vld [vmem:[%s13060_s1 + $0x4f8] sm:$0xff] }
  0x70   : > { %1600 = vmatpush.bf16.msrb.mxu0 %v10305_v49  ;;  %v10337_v49 = vld [vmem:[%s13060_s1 + $0x430] sm:$0xff] }
  0x71   : > { %1622 = vmatpush.bf16.msrb.mxu1 %v10313_v51  ;;  %v10345_v51 = vld [vmem:[%s13060_s1 + $0x470] sm:$0xff] }
  0x72   : > { %1644 = vmatpush.bf16.msrb.mxu2 %v10321_v48  ;;  %v10353_v48 = vld [vmem:[%s13060_s1 + $0x4b0] sm:$0xff] }
  0x73   : > { %1666 = vmatpush.bf16.msrb.mxu3 %v10329_v50  ;;  %v10361_v50 = vld [vmem:[%s13060_s1 + $0x4f0] sm:$0xff] }
  0x74   : > { %1601 = vmatpush.bf16.msrb.mxu0 %v10304_v53 }
  0x75   : > { %1623 = vmatpush.bf16.msrb.mxu1 %v10312_v3  ;;  %v10359_v3 = vld [vmem:[%s13060_s1 + $0x4e0] sm:$0xff] }
  0x76   : > { %1645 = vmatpush.bf16.msrb.mxu2 %v10320_v52  ;;  %v10352_v52 = vld [vmem:[%s13060_s1 + $0x4a8] sm:$0xff] }
  0x77   : > { %1667 = vmatpush.bf16.msrb.mxu3 %v10328_v56  ;;  %v10360_v56 = vld [vmem:[%s13060_s1 + $0x4e8] sm:$0xff] }
  0x78   : > { %1602 = vmatpush.bf16.msrb.mxu0 %v10303_v13 }
  0x79   : > { %1624 = vmatpush.bf16.msrb.mxu1 %v10311_v15  ;;  %v10343_v15 = vld [vmem:[%s13060_s1 + $0x460] sm:$0xff] }
  0x7a   : > { %1646 = vmatpush.bf16.msrb.mxu2 %v10319_v12 }
  0x7b   : > { %928 = vmatmul.bf16.gmra.mxu0 %v11267_v63  ;;  %1668 = vmatpush.bf16.msrb.mxu3 %v10327_v14 }
  0x7c   : > { %949 = vmatmul.bf16.gmra.mxu1 %v11269_v0  ;;  %1603 = vmatpush.bf16.msrb.mxu0 %v10302_v17 }
  0x7d   : > { %970 = vmatmul.bf16.gmra.mxu2 %v11271_v1  ;;  %1625 = vmatpush.bf16.msrb.mxu1 %v10310_v19  ;;  %v10358_v19 = vld [vmem:[%s13060_s1 + $0x4d8] sm:$0xff] }
  0x7e   : > { %991 = vmatmul.bf16.gmra.mxu3 %v11273_v2  ;;  %1647 = vmatpush.bf16.msrb.mxu2 %v10318_v16  ;;  %v10350_v16 = vld [vmem:[%s13060_s1 + $0x498] sm:$0xff] }
  0x7f   : > { %1669 = vmatpush.bf16.msrb.mxu3 %v10326_v18  ;;  %v10334_v18 = vld [vmem:[%s13060_s1 + $0x418] sm:$0xff] }
  0x80   : > { %1604 = vmatpush.bf16.msrb.mxu0 %v10301_v21 }
  0x81   : > { %1626 = vmatpush.bf16.msrb.mxu1 %v10309_v23  ;;  %v10342_v23 = vld [vmem:[%s13060_s1 + $0x458] sm:$0xff] }
  0x82   : > { %1648 = vmatpush.bf16.msrb.mxu2 %v10317_v20 }
  0x83   : > { %1670 = vmatpush.bf16.msrb.mxu3 %v10325_v22 }
  0x84   : > { %1605 = vmatpush.bf16.msrb.mxu0 %v10300_v25 }
  0x85   : > { %1627 = vmatpush.bf16.msrb.mxu1 %v10308_v27 }
  0x86   : > { %1649 = vmatpush.bf16.msrb.mxu2 %v10316_v24 }
  0x87   : > { %1671 = vmatpush.bf16.msrb.mxu3 %v10324_v26 }
  0x88   : > { %1606 = vmatpush.bf16.msrb.mxu0 %v10299_v29  ;;  %v10349_v29 = vld [vmem:[%s13060_s1 + $0x490] sm:$0xff] }
  0x89   : > { %1628 = vmatpush.bf16.msrb.mxu1 %v10307_v31  ;;  %v10357_v31 = vld [vmem:[%s13060_s1 + $0x4d0] sm:$0xff] }
  0x8a   : > { %1650 = vmatpush.bf16.msrb.mxu2 %v10315_v28 }
  0x8b   : > { %1519 = vmatmul.bf16.vlgmr.msra.gmra.mxu0 %v10948_v42  ;;  %1672 = vmatpush.bf16.msrb.mxu3 %v10323_v30  ;;  %v10333_v30 = vld [vmem:[%s13060_s1 + $0x410] sm:$0xff] }
  0x8c   : > { %1541 = vmatmul.bf16.vlgmr.msra.gmra.mxu1 %v10950_v43  ;;  %2224 = vmatpush.bf16.msra.mxu0 %v10338_v41 }
  0x8d   : > { %1563 = vmatmul.bf16.vlgmr.msra.gmra.mxu2 %v10952_v44  ;;  %2246 = vmatpush.bf16.msra.mxu1 %v10346_v47 }
  0x8e   : > { %1585 = vmatmul.bf16.vlgmr.msra.gmra.mxu3 %v10954_v45  ;;  %2268 = vmatpush.bf16.msra.mxu2 %v10354_v40  ;;  %v10341_v40 = vld [vmem:[%s13060_s1 + $0x450] sm:$0xff] }
  0x8f   : > { %2290 = vmatpush.bf16.msra.mxu3 %v10362_v46 }
  0x90   : > { %2225 = vmatpush.bf16.msra.mxu0 %v10337_v49 }
  0x91   : > { %2247 = vmatpush.bf16.msra.mxu1 %v10345_v51  ;;  %v10348_v51 = vld [vmem:[%s13060_s1 + $0x488] sm:$0xff] }
  0x92   : > { %2269 = vmatpush.bf16.msra.mxu2 %v10353_v48 }
  0x93   : > { %2291 = vmatpush.bf16.msra.mxu3 %v10361_v50 }
  0x94   : > { %2226 = vmatpush.bf16.msra.mxu0 %v10336_v55  ;;  %v10347_v55 = vld [vmem:[%s13060_s1 + $0x480] sm:$0xff] }
  0x95   : > { %2248 = vmatpush.bf16.msra.mxu1 %v10344_v58  ;;  %v10331_v58 = vld [vmem:[%s13060_s1 + $0x400] sm:$0xff] }
  0x96   : > { %2270 = vmatpush.bf16.msra.mxu2 %v10352_v52  ;;  %v10332_v52 = vld [vmem:[%s13060_s1 + $0x408] sm:$0xff] }
  0x97   : > { %2292 = vmatpush.bf16.msra.mxu3 %v10360_v56 }
  0x98   : > { %2227 = vmatpush.bf16.msra.mxu0 %v10335_v62 }
  0x99   : > { %2249 = vmatpush.bf16.msra.mxu1 %v10343_v15 }
  0x9a   : > { %2271 = vmatpush.bf16.msra.mxu2 %v10351_v59  ;;  %v10355_v59 = vld [vmem:[%s13060_s1 + $0x4c0] sm:$0xff] }
  0x9b   : > { %1524 = vmatmul.bf16.gmra.mxu0 %v11016_v6  ;;  %2293 = vmatpush.bf16.msra.mxu3 %v10359_v3  ;;  %v10386_v3 = vld [vmem:[%s13060_s1 + $0x5b8] sm:$0xff] }
  0x9c   : > { %1546 = vmatmul.bf16.gmra.mxu1 %v11018_v7  ;;  %2228 = vmatpush.bf16.msra.mxu0 %v10334_v18  ;;  %v10378_v18 = vld [vmem:[%s13060_s1 + $0x578] sm:$0xff] }
  0x9d   : > { %1568 = vmatmul.bf16.gmra.mxu2 %v11020_v8  ;;  %2250 = vmatpush.bf16.msra.mxu1 %v10342_v23  ;;  %v10377_v23 = vld [vmem:[%s13060_s1 + $0x570] sm:$0xff] }
  0x9e   : > { %1590 = vmatmul.bf16.gmra.mxu3 %v11022_v9  ;;  %2272 = vmatpush.bf16.msra.mxu2 %v10350_v16 }
  0x9f   : > { %2294 = vmatpush.bf16.msra.mxu3 %v10358_v19  ;;  %v10385_v19 = vld [vmem:[%s13060_s1 + $0x5b0] sm:$0xff] }
  0xa0   : > { %2229 = vmatpush.bf16.msra.mxu0 %v10333_v30  ;;  %v10368_v30 = vld [vmem:[%s13060_s1 + $0x528] sm:$0xff] }
  0xa1   : > { %2251 = vmatpush.bf16.msra.mxu1 %v10341_v40 }
  0xa2   : > { %2273 = vmatpush.bf16.msra.mxu2 %v10349_v29 }
  0xa3   : > { %2295 = vmatpush.bf16.msra.mxu3 %v10357_v31  ;;  %v10392_v31 = vld [vmem:[%s13060_s1 + $0x5e8] sm:$0xff] }
  0xa4   : > { %2230 = vmatpush.bf16.msra.mxu0 %v10332_v52 }
  0xa6   : > { %2274 = vmatpush.bf16.msra.mxu2 %v10348_v51  ;;  %v10391_v51 = vld [vmem:[%s13060_s1 + $0x5e0] sm:$0xff] }
  0xa8   : > { %v836_v53 = vpop.f32.mrf.mxu0  ;;  %2231 = vmatpush.bf16.msra.mxu0 %v10331_v58  ;;  %v10366_v58 = vld [vmem:[%s13060_s1 + $0x518] sm:$0xff] }
  0xa9   : > { %v857_v54 = vpop.f32.mrf.mxu1 }
  0xaa   : > { %v858_v57 = vadd.f32 %v857_v54, %v836_v53  ;;  %v10356_v53 = vld [vmem:[%s13060_s1 + $0x4c8] sm:$0xff]  ;;  %2275 = vmatpush.bf16.msra.mxu2 %v10347_v55  ;;  %v10375_v55 = vld [vmem:[%s13060_s1 + $0x560] sm:$0xff] }
  0xab   : > { %1529 = vmatmul.bf16.gmra.mxu0 %v11090_v36  ;;  %v10340_v54 = vld [vmem:[%s13060_s1 + $0x448] sm:$0xff]  ;;  %2296 = vmatpush.bf16.msra.mxu3 %v10356_v53 }
  0xac   : > { %1551 = vmatmul.bf16.gmra.mxu1 %v11092_v37 }
  0xad   : > { %1573 = vmatmul.bf16.gmra.mxu2 %v11094_v38  ;;  %2252 = vmatpush.bf16.msra.mxu1 %v10340_v54 }
  0xae   : > { %1595 = vmatmul.bf16.gmra.mxu3 %v11096_v39 }
  0xaf   : > { %2297 = vmatpush.bf16.msra.mxu3 %v10355_v59  ;;  %v10390_v59 = vld [vmem:[%s13060_s1 + $0x5d8] sm:$0xff] }
  0xb0   : > { %v878_v60 = vpop.f32.mrf.mxu2  ;;  %v838_v13 = vpop.f32.mrf.mxu0 }
  0xb1   : > { %v899_v61 = vpop.f32.mrf.mxu3  ;;  %v879_v12 = vadd.f32 %v878_v60, %v858_v57  ;;  %v859_v14 = vpop.f32.mrf.mxu1  ;;  %v10339_v60 = vld [vmem:[%s13060_s1 + $0x440] sm:$0xff] }
  0xb2   : > { %v860_v17 = vadd.f32 %v859_v14, %v838_v13  ;;  %2253 = vmatpush.bf16.msra.mxu1 %v10339_v60  ;;  %v10394_v13 = vld [vmem:[%s13060_s1 + $0x5f8] sm:$0xff] }
  0xb3   : > { %v11411_v20 = vadd.f32 %v899_v61, %v879_v12  ;;  %v10370_v12 = vld [vmem:[%s13060_s1 + $0x538] sm:$0xff] }
  0xb8   : > { %v880_v21 = vpop.f32.mrf.mxu2  ;;  %v841_v25 = vpop.f32.mrf.mxu0 }
  0xb9   : > { %v901_v22 = vpop.f32.mrf.mxu3  ;;  %v881_v24 = vadd.f32 %v880_v21, %v860_v17  ;;  %v862_v26 = vpop.f32.mrf.mxu1  ;;  %v10369_v21 = vld [vmem:[%s13060_s1 + $0x530] sm:$0xff] }
  0xba   : > { %v863_v27 = vadd.f32 %v862_v26, %v841_v25  ;;  %v10384_v26 = vld [vmem:[%s13060_s1 + $0x5a8] sm:$0xff] }
  0xbb   : > { %v11416_v28 = vadd.f32 %v901_v22, %v881_v24  ;;  %1607 = vmatmul.bf16.vlgmr.msrb.gmra.mxu0 %v11158_v4  ;;  %v10393_v22 = vld [vmem:[%s13060_s1 + $0x5f0] sm:$0xff] }
  0xbc   : > { %1629 = vmatmul.bf16.vlgmr.msrb.gmra.mxu1 %v11160_v5  ;;  %2312 = vmatpush.bf16.msrb.mxu0 %v10370_v12 }
  0xbd   : > { %1651 = vmatmul.bf16.vlgmr.msrb.gmra.mxu2 %v11162_v10  ;;  %2334 = vmatpush.bf16.msrb.mxu1 %v10378_v18 }
  0xbe   : > { %1673 = vmatmul.bf16.vlgmr.msrb.gmra.mxu3 %v11164_v11  ;;  %2356 = vmatpush.bf16.msrb.mxu2 %v10386_v3 }
  0xbf   : > { %2378 = vmatpush.bf16.msrb.mxu3 %v10394_v13 }
  0xc0   : > { %v883_v41 = vpop.f32.mrf.mxu2  ;;  %v843_v48 = vpop.f32.mrf.mxu0  ;;  %2313 = vmatpush.bf16.msrb.mxu0 %v10369_v21  ;;  %v10373_v21 = vld [vmem:[%s13060_s1 + $0x550] sm:$0xff] }
  0xc1   : > { %v904_v46 = vpop.f32.mrf.mxu3  ;;  %v884_v47 = vadd.f32 %v883_v41, %v863_v27  ;;  %v864_v49 = vpop.f32.mrf.mxu1  ;;  %2335 = vmatpush.bf16.msrb.mxu1 %v10377_v23 }
  0xc2   : > { %2357 = vmatpush.bf16.msrb.mxu2 %v10385_v19  ;;  %v10367_v49 = vld [vmem:[%s13060_s1 + $0x520] sm:$0xff]  ;;  %v10389_v19 = vld [vmem:[%s13060_s1 + $0x5d0] sm:$0xff] }
  0xc3   : > { %v11434_v50 = vadd.f32 %v904_v46, %v884_v47  ;;  %2379 = vmatpush.bf16.msrb.mxu3 %v10393_v22  ;;  %v10376_v46 = vld [vmem:[%s13060_s1 + $0x568] sm:$0xff] }
  0xc4   : > { %2314 = vmatpush.bf16.msrb.mxu0 %v10368_v30  ;;  %v10364_v30 = vld [vmem:[%s13060_s1 + $0x508] sm:$0xff] }
  0xc5   : > { %2336 = vmatpush.bf16.msrb.mxu1 %v10376_v46 }
  0xc6   : > { %2358 = vmatpush.bf16.msrb.mxu2 %v10384_v26 }
  0xc7   : > { %2380 = vmatpush.bf16.msrb.mxu3 %v10392_v31  ;;  %v10388_v31 = vld [vmem:[%s13060_s1 + $0x5c8] sm:$0xff] }
  0xc8   : > { %v885_v56 = vpop.f32.mrf.mxu2  ;;  %v845_v61 = vpop.f32.mrf.mxu0  ;;  %2315 = vmatpush.bf16.msrb.mxu0 %v10367_v49  ;;  %v10371_v49 = vld [vmem:[%s13060_s1 + $0x540] sm:$0xff] }
  0xc9   : > { %v906_v57 = vpop.f32.mrf.mxu3  ;;  %v866_v62 = vpop.f32.mrf.mxu1  ;;  %v10382_v56 = vld [vmem:[%s13060_s1 + $0x598] sm:$0xff]  ;;  %2337 = vmatpush.bf16.msrb.mxu1 %v10375_v55 }
  0xca   : > { %v10426_v55 = vld [vmem:[%s13060_s1 + $0x6f8] sm:$0xff] }
  0xcb   : > { %1612 = vmatmul.bf16.gmra.mxu0 %v11214_v32  ;;  %2381 = vmatpush.bf16.msrb.mxu3 %v10391_v51 }
  0xcc   : > { %1634 = vmatmul.bf16.gmra.mxu1 %v11216_v33  ;;  %2316 = vmatpush.bf16.msrb.mxu0 %v10366_v58 }
  0xcd   : > { %1656 = vmatmul.bf16.gmra.mxu2 %v11218_v34 }
  0xce   : > { %1678 = vmatmul.bf16.gmra.mxu3 %v11220_v35 }
  0xcf   : > { %2382 = vmatpush.bf16.msrb.mxu3 %v10390_v59 }
  0xd0   : > { %v887_v14 = vpop.f32.mrf.mxu2  ;;  %v846_v16 = vpop.f32.mrf.mxu0 }
  0xd1   : > { %v908_v15 = vpop.f32.mrf.mxu3  ;;  %v867_v17 = vpop.f32.mrf.mxu1  ;;  %v10381_v16 = vld [vmem:[%s13060_s1 + $0x590] sm:$0xff] }
  0xd3   : > { %2383 = vmatpush.bf16.msrb.mxu3 %v10389_v19  ;;  %v10400_v19 = vld [vmem:[%s13060_s1 + $0x628] sm:$0xff] }
  0xd7   : > { %2384 = vmatpush.bf16.msrb.mxu3 %v10388_v31 }
  0xd8   : > { %v888_v24 = vpop.f32.mrf.mxu2  ;;  %v920_v27 = vpop.f32.mrf.mxu0 }
  0xd9   : > { %v909_v25 = vpop.f32.mrf.mxu3  ;;  %v941_v29 = vpop.f32.mrf.mxu1  ;;  %v921_v40 = vadd.f32 %v920_v27, %v11411_v20  ;;  %v10383_v20 = vld [vmem:[%s13060_s1 + $0x5a0] sm:$0xff] }
  0xda   : > { %2359 = vmatpush.bf16.msrb.mxu2 %v10383_v20 }
  0xdb   : > { %v942_v41 = vadd.f32 %v941_v29, %v921_v40  ;;  %1617 = vmatmul.bf16.gmra.mxu0 %v11267_v63  ;;  %v10380_v29 = vld [vmem:[%s13060_s1 + $0x588] sm:$0xff] }
  0xdc   : > { %1639 = vmatmul.bf16.gmra.mxu1 %v11269_v0  ;;  %v10372_v40 = vld [vmem:[%s13060_s1 + $0x548] sm:$0xff] }
  0xdd   : > { %1661 = vmatmul.bf16.gmra.mxu2 %v11271_v1 }
  0xde   : > { %1683 = vmatmul.bf16.gmra.mxu3 %v11273_v2  ;;  %2360 = vmatpush.bf16.msrb.mxu2 %v10382_v56 }
  0xe0   : > { %v962_v47 = vpop.f32.mrf.mxu2  ;;  %v922_v53 = vpop.f32.mrf.mxu0 }
  0xe1   : > { %v983_v48 = vpop.f32.mrf.mxu3  ;;  %v963_v52 = vadd.f32 %v962_v47, %v942_v41  ;;  %v943_v54 = vpop.f32.mrf.mxu1  ;;  %v923_v57 = vadd.f32 %v922_v53, %v11416_v28  ;;  %v10374_v28 = vld [vmem:[%s13060_s1 + $0x558] sm:$0xff]  ;;  %v10379_v41 = vld [vmem:[%s13060_s1 + $0x580] sm:$0xff] }
  0xe2   : > { %2338 = vmatpush.bf16.msrb.mxu1 %v10374_v28  ;;  %2361 = vmatpush.bf16.msrb.mxu2 %v10381_v16  ;;  %v10363_v47 = vld [vmem:[%s13060_s1 + $0x500] sm:$0xff]  ;;  %v10418_v53 = vld [vmem:[%s13060_s1 + $0x6b8] sm:$0xff]  ;;  %v10425_v28 = vld [vmem:[%s13060_s1 + $0x6f0] sm:$0xff] }
  0xe3   : > { %v11527_v60 = vadd.f32 %v983_v48, %v963_v52  ;;  %v944_v61 = vadd.f32 %v943_v54, %v923_v57  ;;  %v10387_v48 = vld [vmem:[%s13060_s1 + $0x5c0] sm:$0xff]  ;;  %v10402_v54 = vld [vmem:[%s13060_s1 + $0x638] sm:$0xff] }
  0xe4   : > { %2385 = vmatpush.bf16.msrb.mxu3 %v10387_v48 }
  0xe6   : > { %2339 = vmatpush.bf16.msrb.mxu1 %v10373_v21  ;;  %2362 = vmatpush.bf16.msrb.mxu2 %v10380_v29  ;;  %v10424_v21 = vld [vmem:[%s13060_s1 + $0x6e8] sm:$0xff]  ;;  %v10423_v29 = vld [vmem:[%s13060_s1 + $0x6e0] sm:$0xff] }
  0xe8   : > { %v964_v62 = vpop.f32.mrf.mxu2  ;;  %v925_v13 = vpop.f32.mrf.mxu0 }
  0xe9   : > { %v985_v3 = vpop.f32.mrf.mxu3  ;;  %v965_v12 = vadd.f32 %v964_v62, %v944_v61  ;;  %v946_v14 = vpop.f32.mrf.mxu1  ;;  %v926_v15 = vadd.f32 %v925_v13, %v11434_v50  ;;  %v10365_v50 = vld [vmem:[%s13060_s1 + $0x510] sm:$0xff]  ;;  %v10410_v61 = vld [vmem:[%s13060_s1 + $0x678] sm:$0xff] }
  0xea   : > { %2317 = vmatpush.bf16.msrb.mxu0 %v10365_v50  ;;  %2340 = vmatpush.bf16.msrb.mxu1 %v10372_v40  ;;  %v10417_v62 = vld [vmem:[%s13060_s1 + $0x6b0] sm:$0xff]  ;;  %v10416_v50 = vld [vmem:[%s13060_s1 + $0x6a8] sm:$0xff] }
  0xeb   : > { %v11536_v17 = vadd.f32 %v985_v3, %v965_v12  ;;  %v947_v18 = vadd.f32 %v946_v14, %v926_v15  ;;  %2232 = vmatmul.bf16.vlgmr.msra.gmra.mxu0 %v10948_v42  ;;  %2363 = vmatpush.bf16.msrb.mxu2 %v10379_v41  ;;  %v10401_v3 = vld [vmem:[%s13060_s1 + $0x630] sm:$0xff]  ;;  %v10407_v41 = vld [vmem:[%s13060_s1 + $0x660] sm:$0xff] }
  0xec   : > { %2254 = vmatmul.bf16.vlgmr.msra.gmra.mxu1 %v10950_v43  ;;  %v10409_v12 = vld [vmem:[%s13060_s1 + $0x670] sm:$0xff] }
  0xed   : > { %2276 = vmatmul.bf16.vlgmr.msra.gmra.mxu2 %v10952_v44 }
  0xee   : > { %2298 = vmatmul.bf16.vlgmr.msra.gmra.mxu3 %v10954_v45  ;;  %2318 = vmatpush.bf16.msrb.mxu0 %v10364_v30 }
  0xef   : > { %2341 = vmatpush.bf16.msrb.mxu1 %v10371_v49  ;;  %2981 = vmatpush.bf16.msra.mxu2 %v10418_v53  ;;  %v10422_v49 = vld [vmem:[%s13060_s1 + $0x6d8] sm:$0xff] }
  0xf0   : > { %v967_v22 = vpop.f32.mrf.mxu2  ;;  %v927_v25 = vpop.f32.mrf.mxu0  ;;  %3003 = vmatpush.bf16.msra.mxu3 %v10426_v55  ;;  %v10406_v53 = vld [vmem:[%s13060_s1 + $0x658] sm:$0xff] }
  0xf1   : > { %v988_v23 = vpop.f32.mrf.mxu3  ;;  %v968_v24 = vadd.f32 %v967_v22, %v947_v18  ;;  %v948_v26 = vpop.f32.mrf.mxu1  ;;  %v10408_v22 = vld [vmem:[%s13060_s1 + $0x668] sm:$0xff] }
  0xf2   : > { %2319 = vmatpush.bf16.msrb.mxu0 %v10363_v47  ;;  %v10399_v26 = vld [vmem:[%s13060_s1 + $0x620] sm:$0xff]  ;;  %v10398_v47 = vld [vmem:[%s13060_s1 + $0x618] sm:$0xff] }
  0xf3   : > { %v11551_v27 = vadd.f32 %v988_v23, %v968_v24  ;;  %2959 = vmatpush.bf16.msra.mxu1 %v10410_v61  ;;  %2982 = vmatpush.bf16.msra.mxu2 %v10417_v62  ;;  %v10415_v23 = vld [vmem:[%s13060_s1 + $0x6a0] sm:$0xff]  ;;  %v10397_v61 = vld [vmem:[%s13060_s1 + $0x610] sm:$0xff] }
  0xf4   : > { %3004 = vmatpush.bf16.msra.mxu3 %v10425_v28  ;;  %v10421_v62 = vld [vmem:[%s13060_s1 + $0x6d0] sm:$0xff] }
  0xf6   : > { %2937 = vmatpush.bf16.msra.mxu0 %v10402_v54 }
  0xf7   : > { %2960 = vmatpush.bf16.msra.mxu1 %v10409_v12  ;;  %2983 = vmatpush.bf16.msra.mxu2 %v10416_v50  ;;  %v10412_v50 = vld [vmem:[%s13060_s1 + $0x688] sm:$0xff] }
  0xf8   : > { %v969_v46 = vpop.f32.mrf.mxu2  ;;  %v929_v51 = vpop.f32.mrf.mxu0  ;;  %3005 = vmatpush.bf16.msra.mxu3 %v10424_v21  ;;  %v10420_v21 = vld [vmem:[%s13060_s1 + $0x6c8] sm:$0xff] }
  0xf9   : > { %v990_v20 = vpop.f32.mrf.mxu3  ;;  %v950_v52 = vpop.f32.mrf.mxu1 }
  0xfa   : > { %2938 = vmatpush.bf16.msra.mxu0 %v10401_v3  ;;  %v10414_v20 = vld [vmem:[%s13060_s1 + $0x698] sm:$0xff]  ;;  %v10405_v3 = vld [vmem:[%s13060_s1 + $0x650] sm:$0xff] }
  0xfb   : > { %2237 = vmatmul.bf16.gmra.mxu0 %v11016_v6  ;;  %2961 = vmatpush.bf16.msra.mxu1 %v10408_v22  ;;  %v10404_v22 = vld [vmem:[%s13060_s1 + $0x648] sm:$0xff] }
  0xfc   : > { %2259 = vmatmul.bf16.gmra.mxu1 %v11018_v7  ;;  %2984 = vmatpush.bf16.msra.mxu2 %v10415_v23  ;;  %v10411_v23 = vld [vmem:[%s13060_s1 + $0x680] sm:$0xff] }
  0xfd   : > { %2281 = vmatmul.bf16.gmra.mxu2 %v11020_v8  ;;  %3006 = vmatpush.bf16.msra.mxu3 %v10423_v29  ;;  %v10419_v29 = vld [vmem:[%s13060_s1 + $0x6c0] sm:$0xff] }
  0xfe   : > { %2303 = vmatmul.bf16.gmra.mxu3 %v11022_v9  ;;  %2939 = vmatpush.bf16.msra.mxu0 %v10400_v19  ;;  %v10396_v19 = vld [vmem:[%s13060_s1 + $0x608] sm:$0xff] }
  0xff   : > { %2962 = vmatpush.bf16.msra.mxu1 %v10407_v41 }
 0x100   : > { %v971_v56 = vpop.f32.mrf.mxu2  ;;  %v930_v58 = vpop.f32.mrf.mxu0  ;;  %2985 = vmatpush.bf16.msra.mxu2 %v10414_v20 }
 0x101   : > { %v992_v57 = vpop.f32.mrf.mxu3  ;;  %v951_v59 = vpop.f32.mrf.mxu1  ;;  %3007 = vmatpush.bf16.msra.mxu3 %v10422_v49  ;;  %v10450_v49 = vld [vmem:[%s13060_s1 + $0x7b8] sm:$0xff] }
 0x102   : > { %2940 = vmatpush.bf16.msra.mxu0 %v10399_v26  ;;  %v10413_v59 = vld [vmem:[%s13060_s1 + $0x690] sm:$0xff]  ;;  %v10395_v26 = vld [vmem:[%s13060_s1 + $0x600] sm:$0xff] }
 0x103   : > { %2963 = vmatpush.bf16.msra.mxu1 %v10406_v53 }
 0x104   : > { %2986 = vmatpush.bf16.msra.mxu2 %v10413_v59  ;;  %v10449_v59 = vld [vmem:[%s13060_s1 + $0x7b0] sm:$0xff] }
 0x105   : > { %3008 = vmatpush.bf16.msra.mxu3 %v10421_v62 }
 0x106   : > { %2941 = vmatpush.bf16.msra.mxu0 %v10398_v47 }
 0x107   : > { %2964 = vmatpush.bf16.msra.mxu1 %v10405_v3 }
 0x108   : > { %v972_v13 = vpop.f32.mrf.mxu2  ;;  %v1520_v15 = vpop.f32.mrf.mxu0  ;;  %2987 = vmatpush.bf16.msra.mxu2 %v10412_v50  ;;  %v10432_v50 = vld [vmem:[%s13060_s1 + $0x728] sm:$0xff] }
 0x109   : > { %v993_v14 = vpop.f32.mrf.mxu3  ;;  %v1542_v16 = vpop.f32.mrf.mxu1  ;;  %3009 = vmatpush.bf16.msra.mxu3 %v10420_v21 }
 0x10a   : > { %v1543_v18 = vadd.f32 %v1542_v16, %v1520_v15  ;;  %2942 = vmatpush.bf16.msra.mxu0 %v10397_v61  ;;  %v10433_v61 = vld [vmem:[%s13060_s1 + $0x730] sm:$0xff] }
 0x10b   : > { %2242 = vmatmul.bf16.gmra.mxu0 %v11090_v36  ;;  %2965 = vmatpush.bf16.msra.mxu1 %v10404_v22 }
 0x10c   : > { %2264 = vmatmul.bf16.gmra.mxu1 %v11092_v37  ;;  %2988 = vmatpush.bf16.msra.mxu2 %v10411_v23 }
 0x10d   : > { %2286 = vmatmul.bf16.gmra.mxu2 %v11094_v38  ;;  %3010 = vmatpush.bf16.msra.mxu3 %v10419_v29  ;;  %v10431_v29 = vld [vmem:[%s13060_s1 + $0x720] sm:$0xff] }
 0x10e   : > { %2308 = vmatmul.bf16.gmra.mxu3 %v11096_v39  ;;  %2943 = vmatpush.bf16.msra.mxu0 %v10396_v19  ;;  %v10456_v19 = vld [vmem:[%s13060_s1 + $0x7e8] sm:$0xff] }
 0x110   : > { %v1564_v24 = vpop.f32.mrf.mxu2  ;;  %v1522_v31 = vpop.f32.mrf.mxu0 }
 0x111   : > { %v1586_v25 = vpop.f32.mrf.mxu3  ;;  %v1565_v30 = vadd.f32 %v1564_v24, %v1543_v18  ;;  %v1544_v40 = vpop.f32.mrf.mxu1 }
 0x112   : > { %v1545_v46 = vadd.f32 %v1544_v40, %v1522_v31  ;;  %2944 = vmatpush.bf16.msra.mxu0 %v10395_v26  ;;  %v10447_v26 = vld [vmem:[%s13060_s1 + $0x7a0] sm:$0xff] }
 0x113   : > { %v11639_v48 = vadd.f32 %v1586_v25, %v1565_v30  ;;  %v10403_v30 = vld [vmem:[%s13060_s1 + $0x640] sm:$0xff] }
 0x114   : > { %2966 = vmatpush.bf16.msra.mxu1 %v10403_v30 }
 0x118   : > { %v1566_v51 = vpop.f32.mrf.mxu2  ;;  %v1525_v55 = vpop.f32.mrf.mxu0 }
 0x119   : > { %v1588_v52 = vpop.f32.mrf.mxu3  ;;  %v1567_v54 = vadd.f32 %v1566_v51, %v1545_v46  ;;  %v1547_v56 = vpop.f32.mrf.mxu1  ;;  %v10434_v51 = vld [vmem:[%s13060_s1 + $0x738] sm:$0xff] }
 0x11a   : > { %v1548_v57 = vadd.f32 %v1547_v56, %v1525_v55 }
 0x11b   : > { %v11647_v58 = vadd.f32 %v1588_v52, %v1567_v54  ;;  %2320 = vmatmul.bf16.vlgmr.msrb.gmra.mxu0 %v11158_v4  ;;  %v10458_v52 = vld [vmem:[%s13060_s1 + $0x7f8] sm:$0xff] }
 0x11c   : > { %2342 = vmatmul.bf16.vlgmr.msrb.gmra.mxu1 %v11160_v5  ;;  %3025 = vmatpush.bf16.msrb.mxu0 %v10434_v51 }
 0x11d   : > { %2364 = vmatmul.bf16.vlgmr.msrb.gmra.mxu2 %v11162_v10 }
 0x11e   : > { %2386 = vmatmul.bf16.vlgmr.msrb.gmra.mxu3 %v11164_v11  ;;  %3069 = vmatpush.bf16.msrb.mxu2 %v10450_v49 }
 0x11f   : > { %3091 = vmatpush.bf16.msrb.mxu3 %v10458_v52  ;;  %v10438_v52 = vld [vmem:[%s13060_s1 + $0x758] sm:$0xff] }
 0x120   : > { %v1569_v28 = vpop.f32.mrf.mxu2  ;;  %v1527_v14 = vpop.f32.mrf.mxu0  ;;  %3026 = vmatpush.bf16.msrb.mxu0 %v10433_v61 }
 0x121   : > { %v1591_v12 = vpop.f32.mrf.mxu3  ;;  %v1570_v13 = vadd.f32 %v1569_v28, %v1548_v57  ;;  %v1549_v15 = vpop.f32.mrf.mxu1  ;;  %v10442_v57 = vld [vmem:[%s13060_s1 + $0x778] sm:$0xff]  ;;  %v10457_v28 = vld [vmem:[%s13060_s1 + $0x7f0] sm:$0xff] }
 0x122   : > { %v1550_v16 = vadd.f32 %v1549_v15, %v1527_v14  ;;  %3047 = vmatpush.bf16.msrb.mxu1 %v10442_v57  ;;  %3070 = vmatpush.bf16.msrb.mxu2 %v10449_v59  ;;  %v10445_v57 = vld [vmem:[%s13060_s1 + $0x790] sm:$0xff] }
 0x123   : > { %v11665_v18 = vadd.f32 %v1591_v12, %v1570_v13  ;;  %v10441_v13 = vld [vmem:[%s13060_s1 + $0x770] sm:$0xff]  ;;  %3092 = vmatpush.bf16.msrb.mxu3 %v10457_v28 }
 0x124   : > { %3027 = vmatpush.bf16.msrb.mxu0 %v10432_v50  ;;  %v10453_v28 = vld [vmem:[%s13060_s1 + $0x7d0] sm:$0xff] }
 0x126   : > { %3048 = vmatpush.bf16.msrb.mxu1 %v10441_v13 }
 0x127   : > { %3093 = vmatpush.bf16.msrb.mxu3 %v10456_v19 }
 0x128   : > { %v1571_v24 = vpop.f32.mrf.mxu2  ;;  %v1530_v40 = vpop.f32.mrf.mxu0  ;;  %3028 = vmatpush.bf16.msrb.mxu0 %v10431_v29 }
 0x129   : > { %v1593_v25 = vpop.f32.mrf.mxu3  ;;  %v1572_v31 = vadd.f32 %v1571_v24, %v1550_v16  ;;  %v1552_v41 = vpop.f32.mrf.mxu1  ;;  %v10448_v16 = vld [vmem:[%s13060_s1 + $0x7a8] sm:$0xff] }
 0x12a   : > { %v10440_v24 = vld [vmem:[%s13060_s1 + $0x768] sm:$0xff]  ;;  %3071 = vmatpush.bf16.msrb.mxu2 %v10448_v16  ;;  %v10446_v41 = vld [vmem:[%s13060_s1 + $0x798] sm:$0xff] }
 0x12b   : > { %v11691_v46 = vadd.f32 %v1593_v25, %v1572_v31  ;;  %2325 = vmatmul.bf16.gmra.mxu0 %v11214_v32  ;;  %3049 = vmatpush.bf16.msrb.mxu1 %v10440_v24  ;;  %v10455_v31 = vld [vmem:[%s13060_s1 + $0x7e0] sm:$0xff]  ;;  %v10428_v24 = vld [vmem:[%s13060_s1 + $0x708] sm:$0xff] }
 0x12c   : > { %2347 = vmatmul.bf16.gmra.mxu1 %v11216_v33  ;;  %3094 = vmatpush.bf16.msrb.mxu3 %v10455_v31 }
 0x12d   : > { %2369 = vmatmul.bf16.gmra.mxu2 %v11218_v34 }
 0x12e   : > { %2391 = vmatmul.bf16.gmra.mxu3 %v11220_v35  ;;  %3072 = vmatpush.bf16.msrb.mxu2 %v10447_v26  ;;  %v10436_v26 = vld [vmem:[%s13060_s1 + $0x748] sm:$0xff] }
 0x130   : > { %v1574_v20 = vpop.f32.mrf.mxu2  ;;  %v1531_v53 = vpop.f32.mrf.mxu0 }
 0x131   : > { %v1596_v47 = vpop.f32.mrf.mxu3  ;;  %v1553_v54 = vpop.f32.mrf.mxu1  ;;  %v10430_v20 = vld [vmem:[%s13060_s1 + $0x718] sm:$0xff] }
 0x132   : > { %v10454_v47 = vld [vmem:[%s13060_s1 + $0x7d8] sm:$0xff]  ;;  %3073 = vmatpush.bf16.msrb.mxu2 %v10446_v41  ;;  %3029 = vmatpush.bf16.msrb.mxu0 %v10430_v20  ;;  %v10427_v41 = vld [vmem:[%s13060_s1 + $0x700] sm:$0xff] }
 0x133   : > { %3095 = vmatpush.bf16.msrb.mxu3 %v10454_v47  ;;  %v10451_v20 = vld [vmem:[%s13060_s1 + $0x7c0] sm:$0xff] }
 0x134   : > { %v10435_v47 = vld [vmem:[%s13060_s1 + $0x740] sm:$0xff] }
 0x136   : > { %3074 = vmatpush.bf16.msrb.mxu2 %v10445_v57 }
 0x137   : > { %3096 = vmatpush.bf16.msrb.mxu3 %v10453_v28  ;;  %v10474_v28 = vld [vmem:[%s13060_s1 + $0x878] sm:$0xff] }
 0x138   : > { %v1575_v55 = vpop.f32.mrf.mxu2  ;;  %v1608_v62 = vpop.f32.mrf.mxu0 }
 0x139   : > { %v1597_v56 = vpop.f32.mrf.mxu3  ;;  %v1630_v3 = vpop.f32.mrf.mxu1  ;;  %v1609_v12 = vadd.f32 %v1608_v62, %v11639_v48 }
 0x13b   : > { %v1631_v14 = vadd.f32 %v1630_v3, %v1609_v12  ;;  %2330 = vmatmul.bf16.gmra.mxu0 %v11267_v63  ;;  %v10437_v12 = vld [vmem:[%s13060_s1 + $0x750] sm:$0xff] }
 0x13c   : > { %2352 = vmatmul.bf16.gmra.mxu1 %v11269_v0 }
 0x13d   : > { %2374 = vmatmul.bf16.gmra.mxu2 %v11271_v1 }
 0x13e   : > { %2396 = vmatmul.bf16.gmra.mxu3 %v11273_v2 }
 0x140   : > { %v1652_v15 = vpop.f32.mrf.mxu2  ;;  %v1610_v22 = vpop.f32.mrf.mxu0 }
 0x141   : > { %v1674_v48 = vpop.f32.mrf.mxu3  ;;  %v1653_v21 = vadd.f32 %v1652_v15, %v1631_v14  ;;  %v1632_v23 = vpop.f32.mrf.mxu1  ;;  %v1611_v25 = vadd.f32 %v1610_v22, %v11647_v58  ;;  %v10439_v58 = vld [vmem:[%s13060_s1 + $0x760] sm:$0xff] }
 0x142   : > { %3050 = vmatpush.bf16.msrb.mxu1 %v10439_v58 }
 0x143   : > { %v1675_v30 = vadd.f32 %v1674_v48, %v1653_v21  ;;  %v1633_v40 = vadd.f32 %v1632_v23, %v1611_v25  ;;  %v10444_v23 = vld [vmem:[%s13060_s1 + $0x788] sm:$0xff] }
 0x144   : > { %3075 = vmatpush.bf16.msrb.mxu2 %v10444_v23  ;;  %v10464_v23 = vld [vmem:[%s13060_s1 + $0x828] sm:$0xff] }
 0x145   : > { %v1695_v62 = vrot.slane %v1675_v30, 1 }
 0x146   : > { %3051 = vmatpush.bf16.msrb.mxu1 %v10438_v52 }
 0x148   : > { %v1654_v49 = vpop.f32.mrf.mxu2  ;;  %v1613_v54 = vpop.f32.mrf.mxu0 }
 0x149   : > { %v1676_v51 = vpop.f32.mrf.mxu3  ;;  %v1655_v53 = vadd.f32 %v1654_v49, %v1633_v40  ;;  %v1635_v55 = vpop.f32.mrf.mxu1  ;;  %v1614_v56 = vadd.f32 %v1613_v54, %v11665_v18  ;;  %v10429_v18 = vld [vmem:[%s13060_s1 + $0x710] sm:$0xff]  ;;  %v10482_v54 = vld [vmem:[%s13060_s1 + $0x8b8] sm:$0xff] }
 0x14a   : > { %3030 = vmatpush.bf16.msrb.mxu0 %v10429_v18  ;;  %3052 = vmatpush.bf16.msrb.mxu1 %v10437_v12  ;;  %v10481_v12 = vld [vmem:[%s13060_s1 + $0x8b0] sm:$0xff] }
 0x14b   : > { %v1677_v59 = vadd.f32 %v1676_v51, %v1655_v53  ;;  %v1636_v61 = vadd.f32 %v1635_v55, %v1614_v56  ;;  %2945 = vmatmul.bf16.vlgmr.msra.gmra.mxu0 %v10948_v42  ;;  %v10466_v55 = vld [vmem:[%s13060_s1 + $0x838] sm:$0xff] }
 0x14c   : > { %2967 = vmatmul.bf16.vlgmr.msra.gmra.mxu1 %v10950_v43  ;;  %v10490_v56 = vld [vmem:[%s13060_s1 + $0x8f8] sm:$0xff] }
 0x14d   : > { %v1696_v3 = vrot.slane %v1677_v59, 1  ;;  %2989 = vmatmul.bf16.vlgmr.msra.gmra.mxu2 %v10952_v44 }
 0x14e   : > { %3011 = vmatmul.bf16.vlgmr.msra.gmra.mxu3 %v10954_v45  ;;  %3031 = vmatpush.bf16.msrb.mxu0 %v10428_v24  ;;  %v10488_v24 = vld [vmem:[%s13060_s1 + $0x8e8] sm:$0xff] }
 0x14f   : > { %v1697_v13 = vsel %vm1694_vm0, %v1695_v62, %v1696_v3  ;;  %3053 = vmatpush.bf16.msrb.mxu1 %v10436_v26 }
 0x150   : > { %v11782_v14 = vadd.f32 %v1697_v13, %v11527_v60  ;;  %v1657_v15 = vpop.f32.mrf.mxu2  ;;  %v1615_v50 = vpop.f32.mrf.mxu0  ;;  %v10452_v60 = vld [vmem:[%s13060_s1 + $0x7c8] sm:$0xff]  ;;  %v10465_v13 = vld [vmem:[%s13060_s1 + $0x830] sm:$0xff] }
 0x151   : > { %v1679_v48 = vpop.f32.mrf.mxu3  ;;  %v1658_v16 = vadd.f32 %v1657_v15, %v1636_v61  ;;  %v1637_v19 = vpop.f32.mrf.mxu1  ;;  %v1616_v21 = vadd.f32 %v1615_v50, %v11691_v46  ;;  %v10443_v46 = vld [vmem:[%s13060_s1 + $0x780] sm:$0xff]  ;;  %3097 = vmatpush.bf16.msrb.mxu3 %v10452_v60  ;;  %v10473_v15 = vld [vmem:[%s13060_s1 + $0x870] sm:$0xff]  ;;  %v10472_v60 = vld [vmem:[%s13060_s1 + $0x868] sm:$0xff] }
 0x152   : > { %3076 = vmatpush.bf16.msrb.mxu2 %v10443_v46  ;;  %3032 = vmatpush.bf16.msrb.mxu0 %v10427_v41  ;;  %v10463_v46 = vld [vmem:[%s13060_s1 + $0x820] sm:$0xff] }
 0x153   : > { %v1680_v22 = vadd.f32 %v1679_v48, %v1658_v16  ;;  %v1638_v25 = vadd.f32 %v1637_v19, %v1616_v21  ;;  %3054 = vmatpush.bf16.msrb.mxu1 %v10435_v47 }
 0x155   : > { %v1698_v29 = vrot.slane %v1680_v22, 1  ;;  %3098 = vmatpush.bf16.msrb.mxu3 %v10451_v20  ;;  %v10480_v22 = vld [vmem:[%s13060_s1 + $0x8a8] sm:$0xff]  ;;  %v10471_v20 = vld [vmem:[%s13060_s1 + $0x860] sm:$0xff] }
 0x156   : > { %3694 = vmatpush.bf16.msra.mxu2 %v10482_v54  ;;  %3650 = vmatpush.bf16.msra.mxu0 %v10466_v55  ;;  %v10470_v55 = vld [vmem:[%s13060_s1 + $0x858] sm:$0xff] }
 0x157   : > { %v1699_v30 = vsel %vm1694_vm0, %v1696_v3, %v1698_v29  ;;  %3672 = vmatpush.bf16.msra.mxu1 %v10474_v28  ;;  %v10461_v28 = vld [vmem:[%s13060_s1 + $0x810] sm:$0xff] }
 0x158   : > { %v11802_v31 = vadd.f32 %v1699_v30, %v11536_v17  ;;  %v1659_v58 = vpop.f32.mrf.mxu2  ;;  %v1618_v51 = vpop.f32.mrf.mxu0  ;;  %v10487_v30 = vld [vmem:[%s13060_s1 + $0x8e0] sm:$0xff] }
 0x159   : > { %v1681_v40 = vpop.f32.mrf.mxu3  ;;  %v1660_v49 = vadd.f32 %v1659_v58, %v1638_v25  ;;  %v1640_v52 = vpop.f32.mrf.mxu1  ;;  %3716 = vmatpush.bf16.msra.mxu3 %v10490_v56  ;;  %v10479_v25 = vld [vmem:[%s13060_s1 + $0x8a0] sm:$0xff]  ;;  %v10462_v51 = vld [vmem:[%s13060_s1 + $0x818] sm:$0xff] }
 0x15a   : > { %3695 = vmatpush.bf16.msra.mxu2 %v10481_v12  ;;  %3651 = vmatpush.bf16.msra.mxu0 %v10465_v13  ;;  %v10485_v12 = vld [vmem:[%s13060_s1 + $0x8d0] sm:$0xff] }
 0x15b   : > { %v1682_v17 = vadd.f32 %v1681_v40, %v1660_v49  ;;  %2950 = vmatmul.bf16.gmra.mxu0 %v11016_v6  ;;  %3673 = vmatpush.bf16.msra.mxu1 %v10473_v15  ;;  %v10478_v49 = vld [vmem:[%s13060_s1 + $0x898] sm:$0xff]  ;;  %v10469_v13 = vld [vmem:[%s13060_s1 + $0x850] sm:$0xff] }
 0x15c   : > { %2972 = vmatmul.bf16.gmra.mxu1 %v11018_v7 }
 0x15d   : > { %v1700_v53 = vrot.slane %v1682_v17, 1  ;;  %2994 = vmatmul.bf16.gmra.mxu2 %v11020_v8  ;;  %v10486_v17 = vld [vmem:[%s13060_s1 + $0x8d8] sm:$0xff] }
 0x15e   : > { %3016 = vmatmul.bf16.gmra.mxu3 %v11022_v9  ;;  %3696 = vmatpush.bf16.msra.mxu2 %v10480_v22  ;;  %v10476_v22 = vld [vmem:[%s13060_s1 + $0x888] sm:$0xff] }
 0x15f   : > { %v1701_v57 = vsel %vm1694_vm0, %v1698_v29, %v1700_v53  ;;  %3652 = vmatpush.bf16.msra.mxu0 %v10464_v23  ;;  %3674 = vmatpush.bf16.msra.mxu1 %v10472_v60  ;;  %v10460_v23 = vld [vmem:[%s13060_s1 + $0x808] sm:$0xff] }
 0x160   : > { %v11828_v59 = vadd.f32 %v1701_v57, %v11551_v27  ;;  %v1662_v61 = vpop.f32.mrf.mxu2  ;;  %v1619_v3 = vpop.f32.mrf.mxu0  ;;  %v10489_v27 = vld [vmem:[%s13060_s1 + $0x8f0] sm:$0xff]  ;;  %v10468_v60 = vld [vmem:[%s13060_s1 + $0x848] sm:$0xff] }
 0x161   : > { %v1684_v62 = vpop.f32.mrf.mxu3  ;;  %v1641_v18 = vpop.f32.mrf.mxu1  ;;  %3717 = vmatpush.bf16.msra.mxu3 %v10489_v27 }
 0x162   : > { %3697 = vmatpush.bf16.msra.mxu2 %v10479_v25  ;;  %v10477_v18 = vld [vmem:[%s13060_s1 + $0x890] sm:$0xff]  ;;  %v10475_v25 = vld [vmem:[%s13060_s1 + $0x880] sm:$0xff] }
 0x163   : > { %3653 = vmatpush.bf16.msra.mxu0 %v10463_v46  ;;  %3675 = vmatpush.bf16.msra.mxu1 %v10471_v20  ;;  %v10459_v46 = vld [vmem:[%s13060_s1 + $0x800] sm:$0xff] }
 0x165   : > { %3718 = vmatpush.bf16.msra.mxu3 %v10488_v24  ;;  %v10484_v24 = vld [vmem:[%s13060_s1 + $0x8c8] sm:$0xff] }
 0x166   : > { %3698 = vmatpush.bf16.msra.mxu2 %v10478_v49 }
 0x167   : > { %3654 = vmatpush.bf16.msra.mxu0 %v10462_v51  ;;  %3676 = vmatpush.bf16.msra.mxu1 %v10470_v55 }
 0x168   : > { %v1663_v48 = vpop.f32.mrf.mxu2  ;;  %v2233_v50 = vpop.f32.mrf.mxu0 }
 0x169   : > { %v1685_v16 = vpop.f32.mrf.mxu3  ;;  %v2255_v19 = vpop.f32.mrf.mxu1  ;;  %3719 = vmatpush.bf16.msra.mxu3 %v10487_v30  ;;  %v10483_v30 = vld [vmem:[%s13060_s1 + $0x8c0] sm:$0xff] }
 0x16a   : > { %v2256_v21 = vadd.f32 %v2255_v19, %v2233_v50  ;;  %3699 = vmatpush.bf16.msra.mxu2 %v10477_v18  ;;  %v10513_v18 = vld [vmem:[%s13060_s1 + $0x9b0] sm:$0xff] }
 0x16b   : > { %2955 = vmatmul.bf16.gmra.mxu0 %v11090_v36  ;;  %3677 = vmatpush.bf16.msra.mxu1 %v10469_v13 }
 0x16c   : > { %2977 = vmatmul.bf16.gmra.mxu1 %v11092_v37  ;;  %3655 = vmatpush.bf16.msra.mxu0 %v10461_v28  ;;  %v10497_v28 = vld [vmem:[%s13060_s1 + $0x930] sm:$0xff] }
 0x16d   : > { %2999 = vmatmul.bf16.gmra.mxu2 %v11094_v38  ;;  %3720 = vmatpush.bf16.msra.mxu3 %v10486_v17  ;;  %v10514_v17 = vld [vmem:[%s13060_s1 + $0x9b8] sm:$0xff] }
 0x16e   : > { %3021 = vmatmul.bf16.gmra.mxu3 %v11096_v39  ;;  %3700 = vmatpush.bf16.msra.mxu2 %v10476_v22  ;;  %v10496_v22 = vld [vmem:[%s13060_s1 + $0x928] sm:$0xff] }
 0x16f   : > { %3678 = vmatpush.bf16.msra.mxu1 %v10468_v60 }
 0x170   : > { %v2277_v26 = vpop.f32.mrf.mxu2  ;;  %v2235_v40 = vpop.f32.mrf.mxu0  ;;  %3656 = vmatpush.bf16.msra.mxu0 %v10460_v23  ;;  %v10520_v23 = vld [vmem:[%s13060_s1 + $0x9e8] sm:$0xff] }
 0x171   : > { %v2299_v29 = vpop.f32.mrf.mxu3  ;;  %v2278_v58 = vadd.f32 %v2277_v26, %v2256_v21  ;;  %v2257_v41 = vpop.f32.mrf.mxu1  ;;  %3721 = vmatpush.bf16.msra.mxu3 %v10485_v12 }
 0x172   : > { %v2258_v47 = vadd.f32 %v2257_v41, %v2235_v40  ;;  %3701 = vmatpush.bf16.msra.mxu2 %v10475_v25 }
 0x173   : > { %v11879_v52 = vadd.f32 %v2299_v29, %v2278_v58  ;;  %v10467_v58 = vld [vmem:[%s13060_s1 + $0x840] sm:$0xff] }
 0x174   : > { %3657 = vmatpush.bf16.msra.mxu0 %v10459_v46  ;;  %3679 = vmatpush.bf16.msra.mxu1 %v10467_v58  ;;  %v10511_v46 = vld [vmem:[%s13060_s1 + $0x9a0] sm:$0xff] }
 0x175   : > { %3722 = vmatpush.bf16.msra.mxu3 %v10484_v24 }
 0x178   : > { %v2279_v53 = vpop.f32.mrf.mxu2  ;;  %v2238_v57 = vpop.f32.mrf.mxu0 }
 0x179   : > { %v2301_v54 = vpop.f32.mrf.mxu3  ;;  %v2280_v56 = vadd.f32 %v2279_v53, %v2258_v47  ;;  %v2260_v61 = vpop.f32.mrf.mxu1  ;;  %3723 = vmatpush.bf16.msra.mxu3 %v10483_v30  ;;  %v10498_v53 = vld [vmem:[%s13060_s1 + $0x938] sm:$0xff]  ;;  %v10495_v30 = vld [vmem:[%s13060_s1 + $0x920] sm:$0xff] }
 0x17a   : > { %v2261_v62 = vadd.f32 %v2260_v61, %v2238_v57 }
 0x17b   : > { %v11887_v3 = vadd.f32 %v2301_v54, %v2280_v56  ;;  %3033 = vmatmul.bf16.vlgmr.msrb.gmra.mxu0 %v11158_v4  ;;  %v10522_v54 = vld [vmem:[%s13060_s1 + $0x9f8] sm:$0xff] }
 0x17c   : > { %3055 = vmatmul.bf16.vlgmr.msrb.gmra.mxu1 %v11160_v5  ;;  %3738 = vmatpush.bf16.msrb.mxu0 %v10498_v53 }
 0x17d   : > { %3077 = vmatmul.bf16.vlgmr.msrb.gmra.mxu2 %v11162_v10 }
 0x17e   : > { %3099 = vmatmul.bf16.vlgmr.msrb.gmra.mxu3 %v11164_v11  ;;  %3782 = vmatpush.bf16.msrb.mxu2 %v10514_v17 }
 0x17f   : > { %3804 = vmatpush.bf16.msrb.mxu3 %v10522_v54  ;;  %v10502_v54 = vld [vmem:[%s13060_s1 + $0x958] sm:$0xff] }
 0x180   : > { %v2282_v27 = vpop.f32.mrf.mxu2  ;;  %v2240_v16 = vpop.f32.mrf.mxu0  ;;  %3739 = vmatpush.bf16.msrb.mxu0 %v10497_v28 }
 0x181   : > { %v2304_v15 = vpop.f32.mrf.mxu3  ;;  %v2283_v48 = vadd.f32 %v2282_v27, %v2261_v62  ;;  %v2262_v50 = vpop.f32.mrf.mxu1  ;;  %v10506_v62 = vld [vmem:[%s13060_s1 + $0x978] sm:$0xff]  ;;  %v10521_v27 = vld [vmem:[%s13060_s1 + $0x9f0] sm:$0xff] }
 0x182   : > { %v2263_v19 = vadd.f32 %v2262_v50, %v2240_v16  ;;  %3760 = vmatpush.bf16.msrb.mxu1 %v10506_v62  ;;  %3783 = vmatpush.bf16.msrb.mxu2 %v10513_v18  ;;  %v10509_v62 = vld [vmem:[%s13060_s1 + $0x990] sm:$0xff] }
 0x183   : > { %v11905_v21 = vadd.f32 %v2304_v15, %v2283_v48  ;;  %v10505_v48 = vld [vmem:[%s13060_s1 + $0x970] sm:$0xff]  ;;  %3805 = vmatpush.bf16.msrb.mxu3 %v10521_v27 }
 0x184   : > { %3740 = vmatpush.bf16.msrb.mxu0 %v10496_v22  ;;  %v10517_v27 = vld [vmem:[%s13060_s1 + $0x9d0] sm:$0xff] }
 0x186   : > { %3761 = vmatpush.bf16.msrb.mxu1 %v10505_v48 }
 0x187   : > { %3806 = vmatpush.bf16.msrb.mxu3 %v10520_v23 }
 0x188   : > { %v2284_v26 = vpop.f32.mrf.mxu2  ;;  %v2243_v41 = vpop.f32.mrf.mxu0  ;;  %3741 = vmatpush.bf16.msrb.mxu0 %v10495_v30 }
 0x189   : > { %v2306_v29 = vpop.f32.mrf.mxu3  ;;  %v2285_v40 = vadd.f32 %v2284_v26, %v2263_v19  ;;  %v2265_v20 = vpop.f32.mrf.mxu1  ;;  %v10512_v19 = vld [vmem:[%s13060_s1 + $0x9a8] sm:$0xff] }
 0x18a   : > { %v10504_v26 = vld [vmem:[%s13060_s1 + $0x968] sm:$0xff]  ;;  %3784 = vmatpush.bf16.msrb.mxu2 %v10512_v19  ;;  %v10510_v20 = vld [vmem:[%s13060_s1 + $0x998] sm:$0xff] }
 0x18b   : > { %v11931_v47 = vadd.f32 %v2306_v29, %v2285_v40  ;;  %3038 = vmatmul.bf16.gmra.mxu0 %v11214_v32  ;;  %3762 = vmatpush.bf16.msrb.mxu1 %v10504_v26  ;;  %v10519_v40 = vld [vmem:[%s13060_s1 + $0x9e0] sm:$0xff]  ;;  %v10492_v26 = vld [vmem:[%s13060_s1 + $0x908] sm:$0xff] }
 0x18c   : > { %3060 = vmatmul.bf16.gmra.mxu1 %v11216_v33  ;;  %3807 = vmatpush.bf16.msrb.mxu3 %v10519_v40 }
 0x18d   : > { %3082 = vmatmul.bf16.gmra.mxu2 %v11218_v34 }
 0x18e   : > { %3104 = vmatmul.bf16.gmra.mxu3 %v11220_v35  ;;  %3785 = vmatpush.bf16.msrb.mxu2 %v10511_v46  ;;  %v10500_v46 = vld [vmem:[%s13060_s1 + $0x948] sm:$0xff] }
 0x190   : > { %v2287_v49 = vpop.f32.mrf.mxu2  ;;  %v2244_v55 = vpop.f32.mrf.mxu0 }
 0x191   : > { %v2309_v51 = vpop.f32.mrf.mxu3  ;;  %v2266_v56 = vpop.f32.mrf.mxu1  ;;  %v10494_v49 = vld [vmem:[%s13060_s1 + $0x918] sm:$0xff] }
 0x192   : > { %v10518_v51 = vld [vmem:[%s13060_s1 + $0x9d8] sm:$0xff]  ;;  %3786 = vmatpush.bf16.msrb.mxu2 %v10510_v20  ;;  %3742 = vmatpush.bf16.msrb.mxu0 %v10494_v49  ;;  %v10491_v20 = vld [vmem:[%s13060_s1 + $0x900] sm:$0xff] }
 0x193   : > { %3808 = vmatpush.bf16.msrb.mxu3 %v10518_v51  ;;  %v10515_v49 = vld [vmem:[%s13060_s1 + $0x9c0] sm:$0xff] }
 0x194   : > { %v10499_v51 = vld [vmem:[%s13060_s1 + $0x940] sm:$0xff] }
 0x196   : > { %3787 = vmatpush.bf16.msrb.mxu2 %v10509_v62 }
 0x197   : > { %3809 = vmatpush.bf16.msrb.mxu3 %v10517_v27  ;;  %v10538_v27 = vld [vmem:[%s13060_s1 + $0xa78] sm:$0xff] }
 0x198   : > { %v2288_v57 = vpop.f32.mrf.mxu2  ;;  %v2321_v12 = vpop.f32.mrf.mxu0 }
 0x199   : > { %v2310_v61 = vpop.f32.mrf.mxu3  ;;  %v2343_v13 = vpop.f32.mrf.mxu1  ;;  %v2322_v15 = vadd.f32 %v2321_v12, %v11879_v52 }
 0x19b   : > { %v2344_v16 = vadd.f32 %v2343_v13, %v2322_v15  ;;  %3043 = vmatmul.bf16.gmra.mxu0 %v11267_v63  ;;  %v10501_v15 = vld [vmem:[%s13060_s1 + $0x950] sm:$0xff] }
 0x19c   : > { %3065 = vmatmul.bf16.gmra.mxu1 %v11269_v0 }
 0x19d   : > { %3087 = vmatmul.bf16.gmra.mxu2 %v11271_v1 }
 0x19e   : > { %3109 = vmatmul.bf16.gmra.mxu3 %v11273_v2 }
 0x1a0   : > { %v2365_v50 = vpop.f32.mrf.mxu2  ;;  %v2323_v60 = vpop.f32.mrf.mxu0 }
 0x1a1   : > { %v2387_v52 = vpop.f32.mrf.mxu3  ;;  %v2366_v24 = vadd.f32 %v2365_v50, %v2344_v16  ;;  %v2345_v25 = vpop.f32.mrf.mxu1  ;;  %v2324_v29 = vadd.f32 %v2323_v60, %v11887_v3  ;;  %v10503_v3 = vld [vmem:[%s13060_s1 + $0x960] sm:$0xff] }
 0x1a2   : > { %3763 = vmatpush.bf16.msrb.mxu1 %v10503_v3 }
 0x1a3   : > { %v2388_v58 = vadd.f32 %v2387_v52, %v2366_v24  ;;  %v2346_v41 = vadd.f32 %v2345_v25, %v2324_v29  ;;  %v10508_v25 = vld [vmem:[%s13060_s1 + $0x988] sm:$0xff] }
 0x1a4   : > { %3788 = vmatpush.bf16.msrb.mxu2 %v10508_v25  ;;  %v10528_v25 = vld [vmem:[%s13060_s1 + $0xa28] sm:$0xff] }
 0x1a5   : > { %v2408_v12 = vrot.slane %v2388_v58, 2 }
 0x1a6   : > { %3764 = vmatpush.bf16.msrb.mxu1 %v10502_v54 }
 0x1a8   : > { %v2367_v17 = vpop.f32.mrf.mxu2  ;;  %v2326_v56 = vpop.f32.mrf.mxu0 }
 0x1a9   : > { %v2389_v53 = vpop.f32.mrf.mxu3  ;;  %v2368_v55 = vadd.f32 %v2367_v17, %v2346_v41  ;;  %v2348_v57 = vpop.f32.mrf.mxu1  ;;  %v2327_v61 = vadd.f32 %v2326_v56, %v11905_v21  ;;  %v10493_v21 = vld [vmem:[%s13060_s1 + $0x910] sm:$0xff]  ;;  %v10546_v56 = vld [vmem:[%s13060_s1 + $0xab8] sm:$0xff] }
 0x1aa   : > { %3743 = vmatpush.bf16.msrb.mxu0 %v10493_v21  ;;  %3765 = vmatpush.bf16.msrb.mxu1 %v10501_v15  ;;  %v10545_v15 = vld [vmem:[%s13060_s1 + $0xab0] sm:$0xff] }
 0x1ab   : > { %v2390_v18 = vadd.f32 %v2389_v53, %v2368_v55  ;;  %v2349_v28 = vadd.f32 %v2348_v57, %v2327_v61  ;;  %3658 = vmatmul.bf16.vlgmr.msra.gmra.mxu0 %v10948_v42  ;;  %v10530_v57 = vld [vmem:[%s13060_s1 + $0xa38] sm:$0xff] }
 0x1ac   : > { %3680 = vmatmul.bf16.vlgmr.msra.gmra.mxu1 %v10950_v43  ;;  %v10554_v61 = vld [vmem:[%s13060_s1 + $0xaf8] sm:$0xff] }
 0x1ad   : > { %v2409_v13 = vrot.slane %v2390_v18, 2  ;;  %3702 = vmatmul.bf16.vlgmr.msra.gmra.mxu2 %v10952_v44 }
 0x1ae   : > { %3724 = vmatmul.bf16.vlgmr.msra.gmra.mxu3 %v10954_v45  ;;  %3744 = vmatpush.bf16.msrb.mxu0 %v10492_v26  ;;  %v10552_v26 = vld [vmem:[%s13060_s1 + $0xae8] sm:$0xff] }
 0x1af   : > { %v2410_v48 = vsel %vm2407_vm1, %v2408_v12, %v2409_v13  ;;  %3766 = vmatpush.bf16.msrb.mxu1 %v10500_v46 }
 0x1b0   : > { %v12022_v16 = vadd.f32 %v2410_v48, %v11782_v14  ;;  %v2370_v50 = vpop.f32.mrf.mxu2  ;;  %v2328_v22 = vpop.f32.mrf.mxu0  ;;  %v10516_v14 = vld [vmem:[%s13060_s1 + $0x9c8] sm:$0xff]  ;;  %v10529_v48 = vld [vmem:[%s13060_s1 + $0xa30] sm:$0xff] }
 0x1b1   : > { %v2392_v52 = vpop.f32.mrf.mxu3  ;;  %v2371_v19 = vadd.f32 %v2370_v50, %v2349_v28  ;;  %v2350_v23 = vpop.f32.mrf.mxu1  ;;  %v2329_v24 = vadd.f32 %v2328_v22, %v11931_v47  ;;  %v10507_v47 = vld [vmem:[%s13060_s1 + $0x980] sm:$0xff]  ;;  %3810 = vmatpush.bf16.msrb.mxu3 %v10516_v14  ;;  %v10537_v50 = vld [vmem:[%s13060_s1 + $0xa70] sm:$0xff]  ;;  %v10536_v14 = vld [vmem:[%s13060_s1 + $0xa68] sm:$0xff] }
 0x1b2   : > { %3789 = vmatpush.bf16.msrb.mxu2 %v10507_v47  ;;  %3745 = vmatpush.bf16.msrb.mxu0 %v10491_v20  ;;  %v10527_v47 = vld [vmem:[%s13060_s1 + $0xa20] sm:$0xff] }
 0x1b3   : > { %v2393_v60 = vadd.f32 %v2392_v52, %v2371_v19  ;;  %v2351_v29 = vadd.f32 %v2350_v23, %v2329_v24  ;;  %3767 = vmatpush.bf16.msrb.mxu1 %v10499_v51 }
 0x1b5   : > { %v2411_v30 = vrot.slane %v2393_v60, 2  ;;  %3811 = vmatpush.bf16.msrb.mxu3 %v10515_v49  ;;  %v10544_v60 = vld [vmem:[%s13060_s1 + $0xaa8] sm:$0xff]  ;;  %v10535_v49 = vld [vmem:[%s13060_s1 + $0xa60] sm:$0xff] }
 0x1b6   : > { %4405 = vmatpush.bf16.msra.mxu2 %v10546_v56  ;;  %4363 = vmatpush.bf16.msra.mxu0 %v10530_v57  ;;  %v10534_v57 = vld [vmem:[%s13060_s1 + $0xa58] sm:$0xff] }
 0x1b7   : > { %v2412_v58 = vsel %vm2407_vm1, %v2409_v13, %v2411_v30  ;;  %4384 = vmatpush.bf16.msra.mxu1 %v10538_v27  ;;  %v10525_v27 = vld [vmem:[%s13060_s1 + $0xa10] sm:$0xff] }
 0x1b8   : > { %v12042_v40 = vadd.f32 %v2412_v58, %v11802_v31  ;;  %v2372_v3 = vpop.f32.mrf.mxu2  ;;  %v2331_v53 = vpop.f32.mrf.mxu0  ;;  %v10551_v58 = vld [vmem:[%s13060_s1 + $0xae0] sm:$0xff] }
 0x1b9   : > { %v2394_v41 = vpop.f32.mrf.mxu3  ;;  %v2373_v17 = vadd.f32 %v2372_v3, %v2351_v29  ;;  %v2353_v54 = vpop.f32.mrf.mxu1  ;;  %4426 = vmatpush.bf16.msra.mxu3 %v10554_v61  ;;  %v10543_v29 = vld [vmem:[%s13060_s1 + $0xaa0] sm:$0xff]  ;;  %v10526_v53 = vld [vmem:[%s13060_s1 + $0xa18] sm:$0xff] }
 0x1ba   : > { %4406 = vmatpush.bf16.msra.mxu2 %v10545_v15  ;;  %4364 = vmatpush.bf16.msra.mxu0 %v10529_v48  ;;  %v10549_v15 = vld [vmem:[%s13060_s1 + $0xad0] sm:$0xff] }
 0x1bb   : > { %v2395_v31 = vadd.f32 %v2394_v41, %v2373_v17  ;;  %3663 = vmatmul.bf16.gmra.mxu0 %v11016_v6  ;;  %4385 = vmatpush.bf16.msra.mxu1 %v10537_v50  ;;  %v10542_v17 = vld [vmem:[%s13060_s1 + $0xa98] sm:$0xff]  ;;  %v10533_v48 = vld [vmem:[%s13060_s1 + $0xa50] sm:$0xff] }
 0x1bc   : > { %3685 = vmatmul.bf16.gmra.mxu1 %v11018_v7 }
 0x1bd   : > { %v2413_v55 = vrot.slane %v2395_v31, 2  ;;  %3707 = vmatmul.bf16.gmra.mxu2 %v11020_v8  ;;  %v10550_v31 = vld [vmem:[%s13060_s1 + $0xad8] sm:$0xff] }
 0x1be   : > { %3729 = vmatmul.bf16.gmra.mxu3 %v11022_v9  ;;  %4407 = vmatpush.bf16.msra.mxu2 %v10544_v60  ;;  %v10540_v60 = vld [vmem:[%s13060_s1 + $0xa88] sm:$0xff] }
 0x1bf   : > { %v2414_v62 = vsel %vm2407_vm1, %v2411_v30, %v2413_v55  ;;  %4365 = vmatpush.bf16.msra.mxu0 %v10528_v25  ;;  %4386 = vmatpush.bf16.msra.mxu1 %v10536_v14  ;;  %v10524_v25 = vld [vmem:[%s13060_s1 + $0xa08] sm:$0xff] }
 0x1c0   : > { %v12068_v18 = vadd.f32 %v2414_v62, %v11828_v59  ;;  %v2375_v28 = vpop.f32.mrf.mxu2  ;;  %v2332_v13 = vpop.f32.mrf.mxu0  ;;  %v10553_v59 = vld [vmem:[%s13060_s1 + $0xaf0] sm:$0xff]  ;;  %v10532_v14 = vld [vmem:[%s13060_s1 + $0xa48] sm:$0xff] }
 0x1c1   : > { %v2397_v12 = vpop.f32.mrf.mxu3  ;;  %v2354_v21 = vpop.f32.mrf.mxu1  ;;  %4427 = vmatpush.bf16.msra.mxu3 %v10553_v59 }
 0x1c2   : > { %4408 = vmatpush.bf16.msra.mxu2 %v10543_v29  ;;  %v10541_v21 = vld [vmem:[%s13060_s1 + $0xa90] sm:$0xff]  ;;  %v10539_v29 = vld [vmem:[%s13060_s1 + $0xa80] sm:$0xff] }
 0x1c3   : > { %4366 = vmatpush.bf16.msra.mxu0 %v10527_v47  ;;  %4387 = vmatpush.bf16.msra.mxu1 %v10535_v49  ;;  %v10523_v47 = vld [vmem:[%s13060_s1 + $0xa00] sm:$0xff] }
 0x1c5   : > { %4428 = vmatpush.bf16.msra.mxu3 %v10552_v26  ;;  %v10548_v26 = vld [vmem:[%s13060_s1 + $0xac8] sm:$0xff] }
 0x1c6   : > { %4409 = vmatpush.bf16.msra.mxu2 %v10542_v17  ;;  %v10578_v17 = vld [vmem:[%s13060_s1 + $0xbb8] sm:$0xff] }
 0x1c7   : > { %4367 = vmatpush.bf16.msra.mxu0 %v10526_v53  ;;  %4388 = vmatpush.bf16.msra.mxu1 %v10534_v57  ;;  %v10562_v53 = vld [vmem:[%s13060_s1 + $0xb38] sm:$0xff] }
 0x1c8   : > { %v2376_v52 = vpop.f32.mrf.mxu2  ;;  %v2946_v22 = vpop.f32.mrf.mxu0 }
 0x1c9   : > { %v2398_v19 = vpop.f32.mrf.mxu3  ;;  %v2968_v23 = vpop.f32.mrf.mxu1  ;;  %4429 = vmatpush.bf16.msra.mxu3 %v10551_v58  ;;  %v10547_v58 = vld [vmem:[%s13060_s1 + $0xac0] sm:$0xff] }
 0x1ca   : > { %v2969_v24 = vadd.f32 %v2968_v23, %v2946_v22  ;;  %4410 = vmatpush.bf16.msra.mxu2 %v10541_v21 }
 0x1cb   : > { %3668 = vmatmul.bf16.gmra.mxu0 %v11090_v36  ;;  %4389 = vmatpush.bf16.msra.mxu1 %v10533_v48 }
 0x1cc   : > { %3690 = vmatmul.bf16.gmra.mxu1 %v11092_v37  ;;  %4368 = vmatpush.bf16.msra.mxu0 %v10525_v27 }
 0x1cd   : > { %3712 = vmatmul.bf16.gmra.mxu2 %v11094_v38  ;;  %4430 = vmatpush.bf16.msra.mxu3 %v10550_v31  ;;  %v10586_v31 = vld [vmem:[%s13060_s1 + $0xbf8] sm:$0xff] }
 0x1ce   : > { %3734 = vmatmul.bf16.gmra.mxu3 %v11096_v39  ;;  %4411 = vmatpush.bf16.msra.mxu2 %v10540_v60 }
 0x1cf   : > { %4390 = vmatpush.bf16.msra.mxu1 %v10532_v14 }
 0x1d0   : > { %v2990_v46 = vpop.f32.mrf.mxu2  ;;  %v2948_v41 = vpop.f32.mrf.mxu0  ;;  %4369 = vmatpush.bf16.msra.mxu0 %v10524_v25 }
 0x1d1   : > { %v3012_v30 = vpop.f32.mrf.mxu3  ;;  %v2991_v3 = vadd.f32 %v2990_v46, %v2969_v24  ;;  %v2970_v20 = vpop.f32.mrf.mxu1  ;;  %4431 = vmatpush.bf16.msra.mxu3 %v10549_v15  ;;  %v10585_v15 = vld [vmem:[%s13060_s1 + $0xbf0] sm:$0xff] }
 0x1d2   : > { %v2971_v51 = vadd.f32 %v2970_v20, %v2948_v41  ;;  %4412 = vmatpush.bf16.msra.mxu2 %v10539_v29 }
 0x1d3   : > { %v12119_v54 = vadd.f32 %v3012_v30, %v2991_v3  ;;  %v10531_v3 = vld [vmem:[%s13060_s1 + $0xa40] sm:$0xff] }
 0x1d4   : > { %4370 = vmatpush.bf16.msra.mxu0 %v10523_v47  ;;  %4391 = vmatpush.bf16.msra.mxu1 %v10531_v3  ;;  %v10559_v47 = vld [vmem:[%s13060_s1 + $0xb20] sm:$0xff] }
 0x1d5   : > { %4432 = vmatpush.bf16.msra.mxu3 %v10548_v26  ;;  %v10568_v26 = vld [vmem:[%s13060_s1 + $0xb68] sm:$0xff]  ;;  %v10583_v3 = vld [vmem:[%s13060_s1 + $0xbe0] sm:$0xff] }
 0x1d8   : > { %v2992_v55 = vpop.f32.mrf.mxu2  ;;  %v2951_v62 = vpop.f32.mrf.mxu0 }
 0x1d9   : > { %v3014_v56 = vpop.f32.mrf.mxu3  ;;  %v2993_v61 = vadd.f32 %v2992_v55, %v2971_v51  ;;  %v2973_v28 = vpop.f32.mrf.mxu1  ;;  %4433 = vmatpush.bf16.msra.mxu3 %v10547_v58 }
 0x1da   : > { %v2974_v12 = vadd.f32 %v2973_v28, %v2951_v62  ;;  %v10570_v62 = vld [vmem:[%s13060_s1 + $0xb78] sm:$0xff]  ;;  %v10577_v28 = vld [vmem:[%s13060_s1 + $0xbb0] sm:$0xff] }
 0x1db   : > { %v12127_v13 = vadd.f32 %v3014_v56, %v2993_v61  ;;  %3746 = vmatmul.bf16.vlgmr.msrb.gmra.mxu0 %v11158_v4 }
 0x1dc   : > { %3768 = vmatmul.bf16.vlgmr.msrb.gmra.mxu1 %v11160_v5  ;;  %4447 = vmatpush.bf16.msrb.mxu0 %v10562_v53  ;;  %v10582_v53 = vld [vmem:[%s13060_s1 + $0xbd8] sm:$0xff] }
 0x1dd   : > { %3790 = vmatmul.bf16.vlgmr.msrb.gmra.mxu2 %v11162_v10  ;;  %4468 = vmatpush.bf16.msrb.mxu1 %v10570_v62 }
 0x1de   : > { %3812 = vmatmul.bf16.vlgmr.msrb.gmra.mxu3 %v11164_v11  ;;  %4489 = vmatpush.bf16.msrb.mxu2 %v10578_v17  ;;  %v10574_v17 = vld [vmem:[%s13060_s1 + $0xb98] sm:$0xff] }
 0x1df   : > { %4510 = vmatpush.bf16.msrb.mxu3 %v10586_v31 }
 0x1e0   : > { %v2995_v59 = vpop.f32.mrf.mxu2  ;;  %v2953_v19 = vpop.f32.mrf.mxu0 }
 0x1e1   : > { %v3017_v50 = vpop.f32.mrf.mxu3  ;;  %v2996_v52 = vadd.f32 %v2995_v59, %v2974_v12  ;;  %v2975_v22 = vpop.f32.mrf.mxu1  ;;  %v10561_v12 = vld [vmem:[%s13060_s1 + $0xb30] sm:$0xff] }
 0x1e2   : > { %v2976_v23 = vadd.f32 %v2975_v22, %v2953_v19  ;;  %4490 = vmatpush.bf16.msrb.mxu2 %v10577_v28  ;;  %4448 = vmatpush.bf16.msrb.mxu0 %v10561_v12  ;;  %v10560_v22 = vld [vmem:[%s13060_s1 + $0xb28] sm:$0xff]  ;;  %v10573_v12 = vld [vmem:[%s13060_s1 + $0xb90] sm:$0xff] }
 0x1e3   : > { %v12145_v24 = vadd.f32 %v3017_v50, %v2996_v52  ;;  %4511 = vmatpush.bf16.msrb.mxu3 %v10585_v15  ;;  %v10569_v52 = vld [vmem:[%s13060_s1 + $0xb70] sm:$0xff] }
 0x1e4   : > { %4469 = vmatpush.bf16.msrb.mxu1 %v10569_v52 }
 0x1e6   : > { %4449 = vmatpush.bf16.msrb.mxu0 %v10560_v22 }
 0x1e8   : > { %v2997_v46 = vpop.f32.mrf.mxu2  ;;  %v2956_v20 = vpop.f32.mrf.mxu0  ;;  %4470 = vmatpush.bf16.msrb.mxu1 %v10568_v26 }
 0x1e9   : > { %v3019_v30 = vpop.f32.mrf.mxu3  ;;  %v2998_v41 = vadd.f32 %v2997_v46, %v2976_v23  ;;  %v2978_v49 = vpop.f32.mrf.mxu1  ;;  %v10584_v23 = vld [vmem:[%s13060_s1 + $0xbe8] sm:$0xff] }
 0x1ea   : > { %4512 = vmatpush.bf16.msrb.mxu3 %v10584_v23  ;;  %4450 = vmatpush.bf16.msrb.mxu0 %v10559_v47  ;;  %v10564_v47 = vld [vmem:[%s13060_s1 + $0xb48] sm:$0xff] }
 0x1eb   : > { %v12171_v51 = vadd.f32 %v3019_v30, %v2998_v41  ;;  %3751 = vmatmul.bf16.gmra.mxu0 %v11214_v32  ;;  %v10575_v30 = vld [vmem:[%s13060_s1 + $0xba0] sm:$0xff] }
 0x1ec   : > { %3773 = vmatmul.bf16.gmra.mxu1 %v11216_v33  ;;  %v10567_v41 = vld [vmem:[%s13060_s1 + $0xb60] sm:$0xff] }
 0x1ed   : > { %3795 = vmatmul.bf16.gmra.mxu2 %v11218_v34  ;;  %4471 = vmatpush.bf16.msrb.mxu1 %v10567_v41 }
 0x1ee   : > { %3817 = vmatmul.bf16.gmra.mxu3 %v11220_v35 }
 0x1ef   : > { %4513 = vmatpush.bf16.msrb.mxu3 %v10583_v3 }
 0x1f0   : > { %v3000_v55 = vpop.f32.mrf.mxu2  ;;  %v2957_v57 = vpop.f32.mrf.mxu0 }
 0x1f1   : > { %v3022_v56 = vpop.f32.mrf.mxu3  ;;  %v2979_v61 = vpop.f32.mrf.mxu1 }
 0x1f2   : > { %v10566_v56 = vld [vmem:[%s13060_s1 + $0xb58] sm:$0xff] }
 0x1f3   : > { %4514 = vmatpush.bf16.msrb.mxu3 %v10582_v53  ;;  %4472 = vmatpush.bf16.msrb.mxu1 %v10566_v56 }
 0x1f8   : > { %v3001_v21 = vpop.f32.mrf.mxu2  ;;  %v3034_v48 = vpop.f32.mrf.mxu0 }
 0x1f9   : > { %v3023_v27 = vpop.f32.mrf.mxu3  ;;  %v3056_v59 = vpop.f32.mrf.mxu1  ;;  %v3035_v50 = vadd.f32 %v3034_v48, %v12119_v54  ;;  %v10576_v54 = vld [vmem:[%s13060_s1 + $0xba8] sm:$0xff] }
 0x1fa   : > { %4491 = vmatpush.bf16.msrb.mxu2 %v10576_v54 }
 0x1fb   : > { %v3057_v19 = vadd.f32 %v3056_v59, %v3035_v50  ;;  %3756 = vmatmul.bf16.gmra.mxu0 %v11267_v63  ;;  %v10581_v59 = vld [vmem:[%s13060_s1 + $0xbd0] sm:$0xff] }
 0x1fc   : > { %3778 = vmatmul.bf16.gmra.mxu1 %v11269_v0  ;;  %v10565_v50 = vld [vmem:[%s13060_s1 + $0xb50] sm:$0xff]  ;;  %4515 = vmatpush.bf16.msrb.mxu3 %v10581_v59  ;;  %v10602_v59 = vld [vmem:[%s13060_s1 + $0xc78] sm:$0xff] }
 0x1fd   : > { %3800 = vmatmul.bf16.gmra.mxu2 %v11271_v1  ;;  %4473 = vmatpush.bf16.msrb.mxu1 %v10565_v50  ;;  %v10609_v50 = vld [vmem:[%s13060_s1 + $0xcb0] sm:$0xff] }
 0x1fe   : > { %3822 = vmatmul.bf16.gmra.mxu3 %v11273_v2  ;;  %4492 = vmatpush.bf16.msrb.mxu2 %v10575_v30  ;;  %v10580_v30 = vld [vmem:[%s13060_s1 + $0xbc8] sm:$0xff] }
 0x200   : > { %v3078_v60 = vpop.f32.mrf.mxu2  ;;  %v3036_v29 = vpop.f32.mrf.mxu0  ;;  %4516 = vmatpush.bf16.msrb.mxu3 %v10580_v30  ;;  %v10600_v30 = vld [vmem:[%s13060_s1 + $0xc68] sm:$0xff] }
 0x201   : > { %v3100_v25 = vpop.f32.mrf.mxu3  ;;  %v3079_v14 = vadd.f32 %v3078_v60, %v3057_v19  ;;  %v3058_v46 = vpop.f32.mrf.mxu1  ;;  %v3037_v58 = vadd.f32 %v3036_v29, %v12127_v13  ;;  %v10558_v13 = vld [vmem:[%s13060_s1 + $0xb18] sm:$0xff]  ;;  %v10572_v29 = vld [vmem:[%s13060_s1 + $0xb88] sm:$0xff]  ;;  %4474 = vmatpush.bf16.msrb.mxu1 %v10564_v47 }
 0x202   : > { %4493 = vmatpush.bf16.msrb.mxu2 %v10574_v17  ;;  %4451 = vmatpush.bf16.msrb.mxu0 %v10558_v13  ;;  %v10579_v17 = vld [vmem:[%s13060_s1 + $0xbc0] sm:$0xff] }
 0x203   : > { %v3101_v20 = vadd.f32 %v3100_v25, %v3079_v14  ;;  %v3059_v49 = vadd.f32 %v3058_v46, %v3037_v58  ;;  %v10556_v46 = vld [vmem:[%s13060_s1 + $0xb08] sm:$0xff]  ;;  %v10563_v13 = vld [vmem:[%s13060_s1 + $0xb40] sm:$0xff] }
 0x204   : > { %4517 = vmatpush.bf16.msrb.mxu3 %v10579_v17  ;;  %v10599_v17 = vld [vmem:[%s13060_s1 + $0xc60] sm:$0xff] }
 0x205   : > { %v3121_v15 = vrot.slane %v3101_v20, 6  ;;  %4475 = vmatpush.bf16.msrb.mxu1 %v10563_v13 }
 0x206   : > { %4494 = vmatpush.bf16.msrb.mxu2 %v10573_v12 }
 0x208   : > { %v3080_v31 = vpop.f32.mrf.mxu2  ;;  %v3039_v61 = vpop.f32.mrf.mxu0 }
 0x209   : > { %v3102_v55 = vpop.f32.mrf.mxu3  ;;  %v3081_v57 = vadd.f32 %v3080_v31, %v3059_v49  ;;  %v3061_v62 = vpop.f32.mrf.mxu1  ;;  %v3040_v28 = vadd.f32 %v3039_v61, %v12145_v24  ;;  %v10557_v24 = vld [vmem:[%s13060_s1 + $0xb10] sm:$0xff]  ;;  %v10555_v49 = vld [vmem:[%s13060_s1 + $0xb00] sm:$0xff] }
 0x20a   : > { %4452 = vmatpush.bf16.msrb.mxu0 %v10557_v24  ;;  %4495 = vmatpush.bf16.msrb.mxu2 %v10572_v29  ;;  %v10592_v29 = vld [vmem:[%s13060_s1 + $0xc28] sm:$0xff] }
 0x20b   : > { %v3103_v21 = vadd.f32 %v3102_v55, %v3081_v57  ;;  %v3062_v27 = vadd.f32 %v3061_v62, %v3040_v28  ;;  %4371 = vmatmul.bf16.vlgmr.msra.gmra.mxu0 %v10948_v42  ;;  %v10594_v62 = vld [vmem:[%s13060_s1 + $0xc38] sm:$0xff] }
 0x20c   : > { %4392 = vmatmul.bf16.vlgmr.msra.gmra.mxu1 %v10950_v43  ;;  %v10618_v28 = vld [vmem:[%s13060_s1 + $0xcf8] sm:$0xff] }
 0x20d   : > { %v3122_v48 = vrot.slane %v3103_v21, 6  ;;  %4413 = vmatmul.bf16.vlgmr.msra.gmra.mxu2 %v10952_v44  ;;  %5075 = vmatpush.bf16.msra.mxu1 %v10602_v59  ;;  %v10589_v59 = vld [vmem:[%s13060_s1 + $0xc10] sm:$0xff] }
 0x20e   : > { %4434 = vmatmul.bf16.vlgmr.msra.gmra.mxu3 %v10954_v45  ;;  %4453 = vmatpush.bf16.msrb.mxu0 %v10556_v46  ;;  %v10616_v46 = vld [vmem:[%s13060_s1 + $0xce8] sm:$0xff] }
 0x20f   : > { %v3123_v52 = vsel %vm3120_vm2, %v3121_v15, %v3122_v48  ;;  %5119 = vmatpush.bf16.msra.mxu3 %v10618_v28 }
 0x210   : > { %v3083_v19 = vpop.f32.mrf.mxu2  ;;  %v12262_v22 = vadd.f32 %v3123_v52, %v12022_v16  ;;  %v3041_v60 = vpop.f32.mrf.mxu0  ;;  %v10593_v52 = vld [vmem:[%s13060_s1 + $0xc30] sm:$0xff] }
 0x211   : > { %v3105_v54 = vpop.f32.mrf.mxu3  ;;  %v3084_v23 = vadd.f32 %v3083_v19, %v3062_v27  ;;  %v3063_v25 = vpop.f32.mrf.mxu1  ;;  %v3042_v26 = vadd.f32 %v3041_v60, %v12171_v51  ;;  %v10571_v51 = vld [vmem:[%s13060_s1 + $0xb80] sm:$0xff]  ;;  %v10617_v19 = vld [vmem:[%s13060_s1 + $0xcf0] sm:$0xff] }
 0x212   : > { %4496 = vmatpush.bf16.msrb.mxu2 %v10571_v51  ;;  %4454 = vmatpush.bf16.msrb.mxu0 %v10555_v49  ;;  %v10591_v51 = vld [vmem:[%s13060_s1 + $0xc20] sm:$0xff] }
 0x213   : > { %v3106_v14 = vadd.f32 %v3105_v54, %v3084_v23  ;;  %v3064_v16 = vadd.f32 %v3063_v25, %v3042_v26  ;;  %5120 = vmatpush.bf16.msra.mxu3 %v10617_v19 }
 0x215   : > { %v3124_v58 = vrot.slane %v3106_v14, 6  ;;  %v10608_v14 = vld [vmem:[%s13060_s1 + $0xca8] sm:$0xff] }
 0x216   : > { %5053 = vmatpush.bf16.msra.mxu0 %v10594_v62  ;;  %v10598_v62 = vld [vmem:[%s13060_s1 + $0xc58] sm:$0xff] }
 0x217   : > { %v3125_v3 = vsel %vm3120_vm2, %v3122_v48, %v3124_v58  ;;  %5121 = vmatpush.bf16.msra.mxu3 %v10616_v46  ;;  %v10612_v46 = vld [vmem:[%s13060_s1 + $0xcc8] sm:$0xff] }
 0x218   : > { %v3085_v41 = vpop.f32.mrf.mxu2  ;;  %v12291_v53 = vadd.f32 %v3125_v3, %v12042_v40  ;;  %v3044_v55 = vpop.f32.mrf.mxu0  ;;  %v10610_v40 = vld [vmem:[%s13060_s1 + $0xcb8] sm:$0xff]  ;;  %v10615_v3 = vld [vmem:[%s13060_s1 + $0xce0] sm:$0xff] }
 0x219   : > { %v3107_v20 = vpop.f32.mrf.mxu3  ;;  %v3086_v31 = vadd.f32 %v3085_v41, %v3064_v16  ;;  %v3066_v56 = vpop.f32.mrf.mxu1  ;;  %5097 = vmatpush.bf16.msra.mxu2 %v10610_v40  ;;  %v10607_v16 = vld [vmem:[%s13060_s1 + $0xca0] sm:$0xff]  ;;  %v10590_v55 = vld [vmem:[%s13060_s1 + $0xc18] sm:$0xff] }
 0x21a   : > { %5054 = vmatpush.bf16.msra.mxu0 %v10593_v52  ;;  %v10597_v52 = vld [vmem:[%s13060_s1 + $0xc50] sm:$0xff] }
 0x21b   : > { %v3108_v57 = vadd.f32 %v3107_v20, %v3086_v31  ;;  %4375 = vmatmul.bf16.gmra.mxu0 %v11016_v6  ;;  %v10606_v31 = vld [vmem:[%s13060_s1 + $0xc98] sm:$0xff]  ;;  %5122 = vmatpush.bf16.msra.mxu3 %v10615_v3  ;;  %v10611_v3 = vld [vmem:[%s13060_s1 + $0xcc0] sm:$0xff] }
 0x21c   : > { %4396 = vmatmul.bf16.gmra.mxu1 %v11018_v7 }
 0x21d   : > { %v3126_v61 = vrot.slane %v3108_v57, 6  ;;  %4417 = vmatmul.bf16.gmra.mxu2 %v11020_v8  ;;  %v10614_v57 = vld [vmem:[%s13060_s1 + $0xcd8] sm:$0xff] }
 0x21e   : > { %4438 = vmatmul.bf16.gmra.mxu3 %v11022_v9  ;;  %5098 = vmatpush.bf16.msra.mxu2 %v10609_v50  ;;  %v10613_v50 = vld [vmem:[%s13060_s1 + $0xcd0] sm:$0xff] }
 0x21f   : > { %v3127_v12 = vsel %vm3120_vm2, %v3124_v58, %v3126_v61  ;;  %5055 = vmatpush.bf16.msra.mxu0 %v10592_v29  ;;  %5123 = vmatpush.bf16.msra.mxu3 %v10614_v57  ;;  %v10588_v29 = vld [vmem:[%s13060_s1 + $0xc08] sm:$0xff]  ;;  %v10650_v57 = vld [vmem:[%s13060_s1 + $0xdf8] sm:$0xff] }
 0x220   : > { %v3088_v21 = vpop.f32.mrf.mxu2  ;;  %v12308_v15 = vadd.f32 %v3127_v12, %v12068_v18  ;;  %v3045_v48 = vpop.f32.mrf.mxu0  ;;  %v10601_v18 = vld [vmem:[%s13060_s1 + $0xc70] sm:$0xff] }
 0x221   : > { %v3110_v27 = vpop.f32.mrf.mxu3  ;;  %v3067_v24 = vpop.f32.mrf.mxu1  ;;  %5076 = vmatpush.bf16.msra.mxu1 %v10601_v18 }
 0x222   : > { %5099 = vmatpush.bf16.msra.mxu2 %v10608_v14  ;;  %v10605_v24 = vld [vmem:[%s13060_s1 + $0xc90] sm:$0xff]  ;;  %v10604_v14 = vld [vmem:[%s13060_s1 + $0xc88] sm:$0xff] }
 0x223   : > { %5056 = vmatpush.bf16.msra.mxu0 %v10591_v51  ;;  %5124 = vmatpush.bf16.msra.mxu3 %v10613_v50  ;;  %v10587_v51 = vld [vmem:[%s13060_s1 + $0xc00] sm:$0xff] }
 0x225   : > { %5077 = vmatpush.bf16.msra.mxu1 %v10600_v30  ;;  %v10596_v30 = vld [vmem:[%s13060_s1 + $0xc48] sm:$0xff] }
 0x226   : > { %5100 = vmatpush.bf16.msra.mxu2 %v10607_v16  ;;  %v10603_v16 = vld [vmem:[%s13060_s1 + $0xc80] sm:$0xff] }
 0x227   : > { %5057 = vmatpush.bf16.msra.mxu0 %v10590_v55  ;;  %5125 = vmatpush.bf16.msra.mxu3 %v10612_v46  ;;  %v10626_v55 = vld [vmem:[%s13060_s1 + $0xd38] sm:$0xff] }
 0x228   : > { %v3089_v54 = vpop.f32.mrf.mxu2  ;;  %v3659_v60 = vpop.f32.mrf.mxu0 }
 0x229   : > { %v3111_v23 = vpop.f32.mrf.mxu3  ;;  %v3681_v25 = vpop.f32.mrf.mxu1  ;;  %5078 = vmatpush.bf16.msra.mxu1 %v10599_v17 }
 0x22a   : > { %v3682_v26 = vadd.f32 %v3681_v25, %v3659_v60  ;;  %5101 = vmatpush.bf16.msra.mxu2 %v10606_v31  ;;  %v10642_v31 = vld [vmem:[%s13060_s1 + $0xdb8] sm:$0xff] }
 0x22b   : > { %4380 = vmatmul.bf16.gmra.mxu0 %v11090_v36  ;;  %5126 = vmatpush.bf16.msra.mxu3 %v10611_v3 }
 0x22c   : > { %4401 = vmatmul.bf16.gmra.mxu1 %v11092_v37  ;;  %5058 = vmatpush.bf16.msra.mxu0 %v10589_v59  ;;  %v10633_v59 = vld [vmem:[%s13060_s1 + $0xd70] sm:$0xff] }
 0x22d   : > { %4422 = vmatmul.bf16.gmra.mxu2 %v11094_v38  ;;  %5079 = vmatpush.bf16.msra.mxu1 %v10598_v62 }
 0x22e   : > { %4443 = vmatmul.bf16.gmra.mxu3 %v11096_v39  ;;  %5102 = vmatpush.bf16.msra.mxu2 %v10605_v24  ;;  %v10649_v24 = vld [vmem:[%s13060_s1 + $0xdf0] sm:$0xff] }
 0x230   : > { %v3703_v47 = vpop.f32.mrf.mxu2  ;;  %v3661_v20 = vpop.f32.mrf.mxu0  ;;  %5059 = vmatpush.bf16.msra.mxu0 %v10588_v29  ;;  %v10639_v29 = vld [vmem:[%s13060_s1 + $0xda0] sm:$0xff] }
 0x231   : > { %v3725_v58 = vpop.f32.mrf.mxu3  ;;  %v3704_v41 = vadd.f32 %v3703_v47, %v3682_v26  ;;  %v3683_v49 = vpop.f32.mrf.mxu1  ;;  %5080 = vmatpush.bf16.msra.mxu1 %v10597_v52 }
 0x232   : > { %v3684_v13 = vadd.f32 %v3683_v49, %v3661_v20  ;;  %5103 = vmatpush.bf16.msra.mxu2 %v10604_v14  ;;  %v10632_v14 = vld [vmem:[%s13060_s1 + $0xd68] sm:$0xff] }
 0x233   : > { %v12359_v56 = vadd.f32 %v3725_v58, %v3704_v41  ;;  %v10595_v41 = vld [vmem:[%s13060_s1 + $0xc40] sm:$0xff] }
 0x234   : > { %5060 = vmatpush.bf16.msra.mxu0 %v10587_v51 }
 0x235   : > { %5081 = vmatpush.bf16.msra.mxu1 %v10596_v30 }
 0x236   : > { %5104 = vmatpush.bf16.msra.mxu2 %v10603_v16  ;;  %v10623_v16 = vld [vmem:[%s13060_s1 + $0xd20] sm:$0xff] }
 0x238   : > { %v3705_v61 = vpop.f32.mrf.mxu2  ;;  %v3664_v12 = vpop.f32.mrf.mxu0 }
 0x239   : > { %v3727_v40 = vpop.f32.mrf.mxu3  ;;  %v3706_v28 = vadd.f32 %v3705_v61, %v3684_v13  ;;  %v3686_v21 = vpop.f32.mrf.mxu1  ;;  %5082 = vmatpush.bf16.msra.mxu1 %v10595_v41  ;;  %v10631_v41 = vld [vmem:[%s13060_s1 + $0xd60] sm:$0xff] }
 0x23a   : > { %v3687_v27 = vadd.f32 %v3686_v21, %v3664_v12  ;;  %v10634_v12 = vld [vmem:[%s13060_s1 + $0xd78] sm:$0xff]  ;;  %v10641_v21 = vld [vmem:[%s13060_s1 + $0xdb0] sm:$0xff] }
 0x23b   : > { %v12367_v48 = vadd.f32 %v3727_v40, %v3706_v28  ;;  %4455 = vmatmul.bf16.vlgmr.msrb.gmra.mxu0 %v11158_v4 }
 0x23c   : > { %4476 = vmatmul.bf16.vlgmr.msrb.gmra.mxu1 %v11160_v5  ;;  %5141 = vmatpush.bf16.msrb.mxu0 %v10626_v55 }
 0x23d   : > { %4497 = vmatmul.bf16.vlgmr.msrb.gmra.mxu2 %v11162_v10  ;;  %5163 = vmatpush.bf16.msrb.mxu1 %v10634_v12 }
 0x23e   : > { %4518 = vmatmul.bf16.vlgmr.msrb.gmra.mxu3 %v11164_v11  ;;  %5185 = vmatpush.bf16.msrb.mxu2 %v10642_v31  ;;  %v10622_v31 = vld [vmem:[%s13060_s1 + $0xd18] sm:$0xff] }
 0x23f   : > { %5207 = vmatpush.bf16.msrb.mxu3 %v10650_v57  ;;  %v10646_v57 = vld [vmem:[%s13060_s1 + $0xdd8] sm:$0xff] }
 0x240   : > { %v3708_v19 = vpop.f32.mrf.mxu2  ;;  %v3666_v23 = vpop.f32.mrf.mxu0 }
 0x241   : > { %v3730_v18 = vpop.f32.mrf.mxu3  ;;  %v3709_v54 = vadd.f32 %v3708_v19, %v3687_v27  ;;  %v3688_v60 = vpop.f32.mrf.mxu1  ;;  %v10625_v27 = vld [vmem:[%s13060_s1 + $0xd30] sm:$0xff]  ;;  %5164 = vmatpush.bf16.msrb.mxu1 %v10633_v59 }
 0x242   : > { %v3689_v25 = vadd.f32 %v3688_v60, %v3666_v23  ;;  %5186 = vmatpush.bf16.msrb.mxu2 %v10641_v21  ;;  %5142 = vmatpush.bf16.msrb.mxu0 %v10625_v27  ;;  %v10640_v60 = vld [vmem:[%s13060_s1 + $0xda8] sm:$0xff]  ;;  %v10637_v21 = vld [vmem:[%s13060_s1 + $0xd90] sm:$0xff] }
 0x243   : > { %v12385_v26 = vadd.f32 %v3730_v18, %v3709_v54  ;;  %5208 = vmatpush.bf16.msrb.mxu3 %v10649_v24 }
 0x245   : > { %5165 = vmatpush.bf16.msrb.mxu1 %v10632_v14 }
 0x246   : > { %5187 = vmatpush.bf16.msrb.mxu2 %v10640_v60 }
 0x248   : > { %v3710_v47 = vpop.f32.mrf.mxu2  ;;  %v3669_v49 = vpop.f32.mrf.mxu0 }
 0x249   : > { %v3732_v58 = vpop.f32.mrf.mxu3  ;;  %v3711_v20 = vadd.f32 %v3710_v47, %v3689_v25  ;;  %v3691_v17 = vpop.f32.mrf.mxu1  ;;  %v10624_v25 = vld [vmem:[%s13060_s1 + $0xd28] sm:$0xff]  ;;  %v10647_v47 = vld [vmem:[%s13060_s1 + $0xde0] sm:$0xff]  ;;  %5166 = vmatpush.bf16.msrb.mxu1 %v10631_v41 }
 0x24a   : > { %5143 = vmatpush.bf16.msrb.mxu0 %v10624_v25  ;;  %5188 = vmatpush.bf16.msrb.mxu2 %v10639_v29  ;;  %v10638_v17 = vld [vmem:[%s13060_s1 + $0xd98] sm:$0xff]  ;;  %v10636_v25 = vld [vmem:[%s13060_s1 + $0xd88] sm:$0xff] }
 0x24b   : > { %v12411_v13 = vadd.f32 %v3732_v58, %v3711_v20  ;;  %4459 = vmatmul.bf16.gmra.mxu0 %v11214_v32 }
 0x24c   : > { %4480 = vmatmul.bf16.gmra.mxu1 %v11216_v33 }
 0x24d   : > { %4501 = vmatmul.bf16.gmra.mxu2 %v11218_v34 }
 0x24e   : > { %4522 = vmatmul.bf16.gmra.mxu3 %v11220_v35  ;;  %5144 = vmatpush.bf16.msrb.mxu0 %v10623_v16  ;;  %v10620_v16 = vld [vmem:[%s13060_s1 + $0xd08] sm:$0xff] }
 0x24f   : > { %5189 = vmatpush.bf16.msrb.mxu2 %v10638_v17  ;;  %v10619_v17 = vld [vmem:[%s13060_s1 + $0xd00] sm:$0xff] }
 0x250   : > { %v3713_v61 = vpop.f32.mrf.mxu2  ;;  %v3670_v62 = vpop.f32.mrf.mxu0 }
 0x251   : > { %v3735_v40 = vpop.f32.mrf.mxu3  ;;  %v3692_v28 = vpop.f32.mrf.mxu1 }
 0x252   : > { %5145 = vmatpush.bf16.msrb.mxu0 %v10622_v31  ;;  %v10630_v40 = vld [vmem:[%s13060_s1 + $0xd58] sm:$0xff]  ;;  %v10643_v31 = vld [vmem:[%s13060_s1 + $0xdc0] sm:$0xff] }
 0x253   : > { %5167 = vmatpush.bf16.msrb.mxu1 %v10630_v40  ;;  %5190 = vmatpush.bf16.msrb.mxu2 %v10637_v21  ;;  %v10682_v21 = vld [vmem:[%s13060_s1 + $0xef8] sm:$0xff] }
 0x257   : > { %5191 = vmatpush.bf16.msrb.mxu2 %v10636_v25 }
 0x258   : > { %v3714_v50 = vpop.f32.mrf.mxu2  ;;  %v3747_v19 = vpop.f32.mrf.mxu0 }
 0x259   : > { %v3736_v52 = vpop.f32.mrf.mxu3  ;;  %v3769_v18 = vpop.f32.mrf.mxu1  ;;  %v3748_v54 = vadd.f32 %v3747_v19, %v12359_v56  ;;  %v10648_v56 = vld [vmem:[%s13060_s1 + $0xde8] sm:$0xff]  ;;  %v10621_v19 = vld [vmem:[%s13060_s1 + $0xd10] sm:$0xff] }
 0x25a   : > { %5209 = vmatpush.bf16.msrb.mxu3 %v10648_v56  ;;  %5146 = vmatpush.bf16.msrb.mxu0 %v10621_v19 }
 0x25b   : > { %v3770_v23 = vadd.f32 %v3769_v18, %v3748_v54  ;;  %4464 = vmatmul.bf16.gmra.mxu0 %v11267_v63  ;;  %v10629_v18 = vld [vmem:[%s13060_s1 + $0xd50] sm:$0xff] }
 0x25c   : > { %4485 = vmatmul.bf16.gmra.mxu1 %v11269_v0 }
 0x25d   : > { %4506 = vmatmul.bf16.gmra.mxu2 %v11271_v1  ;;  %5168 = vmatpush.bf16.msrb.mxu1 %v10629_v18  ;;  %v10673_v18 = vld [vmem:[%s13060_s1 + $0xeb0] sm:$0xff] }
 0x25e   : > { %4527 = vmatmul.bf16.gmra.mxu3 %v11273_v2  ;;  %5147 = vmatpush.bf16.msrb.mxu0 %v10620_v16  ;;  %v10680_v16 = vld [vmem:[%s13060_s1 + $0xee8] sm:$0xff] }
 0x25f   : > { %5210 = vmatpush.bf16.msrb.mxu3 %v10647_v47  ;;  %v10644_v47 = vld [vmem:[%s13060_s1 + $0xdc8] sm:$0xff] }
 0x260   : > { %v3791_v46 = vpop.f32.mrf.mxu2  ;;  %v3749_v51 = vpop.f32.mrf.mxu0 }
 0x261   : > { %v3813_v30 = vpop.f32.mrf.mxu3  ;;  %v3792_v58 = vadd.f32 %v3791_v46, %v3770_v23  ;;  %v3771_v3 = vpop.f32.mrf.mxu1  ;;  %v3750_v20 = vadd.f32 %v3749_v51, %v12367_v48  ;;  %v10635_v51 = vld [vmem:[%s13060_s1 + $0xd80] sm:$0xff] }
 0x262   : > { %5192 = vmatpush.bf16.msrb.mxu2 %v10635_v51  ;;  %5148 = vmatpush.bf16.msrb.mxu0 %v10619_v17 }
 0x263   : > { %v3814_v49 = vadd.f32 %v3813_v30, %v3792_v58  ;;  %v3772_v55 = vadd.f32 %v3771_v3, %v3750_v20  ;;  %5211 = vmatpush.bf16.msrb.mxu3 %v10646_v57  ;;  %v10628_v58 = vld [vmem:[%s13060_s1 + $0xd48] sm:$0xff] }
 0x264   : > { %5169 = vmatpush.bf16.msrb.mxu1 %v10628_v58  ;;  %v10671_v58 = vld [vmem:[%s13060_s1 + $0xea0] sm:$0xff] }
 0x265   : > { %v3834_v50 = vrot.slane %v3814_v49, 7 }
 0x268   : > { %v3793_v48 = vpop.f32.mrf.mxu2  ;;  %v3752_v28 = vpop.f32.mrf.mxu0 }
 0x269   : > { %v3815_v61 = vpop.f32.mrf.mxu3  ;;  %v3794_v62 = vadd.f32 %v3793_v48, %v3772_v55  ;;  %v3774_v12 = vpop.f32.mrf.mxu1  ;;  %v3753_v27 = vadd.f32 %v3752_v28, %v12385_v26  ;;  %v10645_v26 = vld [vmem:[%s13060_s1 + $0xdd0] sm:$0xff]  ;;  %v10627_v55 = vld [vmem:[%s13060_s1 + $0xd40] sm:$0xff] }
 0x26a   : > { %5212 = vmatpush.bf16.msrb.mxu3 %v10645_v26  ;;  %5170 = vmatpush.bf16.msrb.mxu1 %v10627_v55  ;;  %v10666_v26 = vld [vmem:[%s13060_s1 + $0xe78] sm:$0xff] }
 0x26b   : > { %v3816_v24 = vadd.f32 %v3815_v61, %v3794_v62  ;;  %v3775_v59 = vadd.f32 %v3774_v12, %v3753_v27  ;;  %5061 = vmatmul.bf16.vlgmr.msra.gmra.mxu0 %v10948_v42  ;;  %v10658_v12 = vld [vmem:[%s13060_s1 + $0xe38] sm:$0xff] }
 0x26c   : > { %5083 = vmatmul.bf16.vlgmr.msra.gmra.mxu1 %v10950_v43  ;;  %5766 = vmatpush.bf16.msra.mxu0 %v10658_v12  ;;  %v10654_v55 = vld [vmem:[%s13060_s1 + $0xe18] sm:$0xff] }
 0x26d   : > { %v3835_v52 = vrot.slane %v3816_v24, 7  ;;  %5105 = vmatmul.bf16.vlgmr.msra.gmra.mxu2 %v10952_v44 }
 0x26e   : > { %5127 = vmatmul.bf16.vlgmr.msra.gmra.mxu3 %v10954_v45  ;;  %5788 = vmatpush.bf16.msra.mxu1 %v10666_v26 }
 0x26f   : > { %v3836_v54 = vsel %vm3833_vm3, %v3834_v50, %v3835_v52  ;;  %5213 = vmatpush.bf16.msrb.mxu3 %v10644_v47  ;;  %v10664_v47 = vld [vmem:[%s13060_s1 + $0xe68] sm:$0xff] }
 0x270   : > { %v3796_v23 = vpop.f32.mrf.mxu2  ;;  %v12505_v56 = vadd.f32 %v3836_v54, %v12262_v22  ;;  %v3754_v29 = vpop.f32.mrf.mxu0  ;;  %v10657_v54 = vld [vmem:[%s13060_s1 + $0xe30] sm:$0xff] }
 0x271   : > { %v3818_v60 = vpop.f32.mrf.mxu3  ;;  %v3797_v14 = vadd.f32 %v3796_v23, %v3775_v59  ;;  %v3776_v46 = vpop.f32.mrf.mxu1  ;;  %v3755_v30 = vadd.f32 %v3754_v29, %v12411_v13  ;;  %v10681_v23 = vld [vmem:[%s13060_s1 + $0xef0] sm:$0xff]  ;;  %5767 = vmatpush.bf16.msra.mxu0 %v10657_v54  ;;  %v10668_v54 = vld [vmem:[%s13060_s1 + $0xe88] sm:$0xff] }
 0x273   : > { %v3819_v22 = vadd.f32 %v3818_v60, %v3797_v14  ;;  %v3777_v3 = vadd.f32 %v3776_v46, %v3755_v30  ;;  %5214 = vmatpush.bf16.msrb.mxu3 %v10643_v31  ;;  %v10672_v46 = vld [vmem:[%s13060_s1 + $0xea8] sm:$0xff]  ;;  %v10670_v31 = vld [vmem:[%s13060_s1 + $0xe98] sm:$0xff] }
 0x274   : > { %v10656_v30 = vld [vmem:[%s13060_s1 + $0xe28] sm:$0xff] }
 0x275   : > { %v3837_v13 = vrot.slane %v3819_v22, 7  ;;  %5768 = vmatpush.bf16.msra.mxu0 %v10656_v30  ;;  %v10660_v30 = vld [vmem:[%s13060_s1 + $0xe48] sm:$0xff] }
 0x277   : > { %v3838_v41 = vsel %vm3833_vm3, %v3835_v52, %v3837_v13  ;;  %5832 = vmatpush.bf16.msra.mxu3 %v10682_v21  ;;  %v10669_v21 = vld [vmem:[%s13060_s1 + $0xe90] sm:$0xff] }
 0x278   : > { %v3798_v20 = vpop.f32.mrf.mxu2  ;;  %v12531_v57 = vadd.f32 %v3838_v41, %v12291_v53  ;;  %v3757_v61 = vpop.f32.mrf.mxu0  ;;  %v10674_v53 = vld [vmem:[%s13060_s1 + $0xeb8] sm:$0xff] }
 0x279   : > { %v3820_v49 = vpop.f32.mrf.mxu3  ;;  %v3799_v48 = vadd.f32 %v3798_v20, %v3777_v3  ;;  %v3779_v40 = vpop.f32.mrf.mxu1  ;;  %5810 = vmatpush.bf16.msra.mxu2 %v10674_v53  ;;  %v10655_v3 = vld [vmem:[%s13060_s1 + $0xe20] sm:$0xff] }
 0x27a   : > { %5769 = vmatpush.bf16.msra.mxu0 %v10655_v3  ;;  %v10659_v3 = vld [vmem:[%s13060_s1 + $0xe40] sm:$0xff] }
 0x27b   : > { %v3821_v62 = vadd.f32 %v3820_v49, %v3799_v48  ;;  %5065 = vmatmul.bf16.gmra.mxu0 %v11016_v6  ;;  %5833 = vmatpush.bf16.msra.mxu3 %v10681_v23  ;;  %v10663_v49 = vld [vmem:[%s13060_s1 + $0xe60] sm:$0xff]  ;;  %v10678_v48 = vld [vmem:[%s13060_s1 + $0xed8] sm:$0xff] }
 0x27c   : > { %5087 = vmatmul.bf16.gmra.mxu1 %v11018_v7 }
 0x27d   : > { %v3839_v28 = vrot.slane %v3821_v62, 7  ;;  %5109 = vmatmul.bf16.gmra.mxu2 %v11020_v8  ;;  %v10662_v62 = vld [vmem:[%s13060_s1 + $0xe58] sm:$0xff] }
 0x27e   : > { %5131 = vmatmul.bf16.gmra.mxu3 %v11022_v9  ;;  %5811 = vmatpush.bf16.msra.mxu2 %v10673_v18 }
 0x27f   : > { %v3840_v27 = vsel %vm3833_vm3, %v3837_v13, %v3839_v28  ;;  %5834 = vmatpush.bf16.msra.mxu3 %v10680_v16  ;;  %v10679_v13 = vld [vmem:[%s13060_s1 + $0xee0] sm:$0xff]  ;;  %5770 = vmatpush.bf16.msra.mxu0 %v10654_v55  ;;  %v10714_v55 = vld [vmem:[%s13060_s1 + $0xff8] sm:$0xff] }
 0x280   : > { %v3801_v24 = vpop.f32.mrf.mxu2  ;;  %v12548_v50 = vadd.f32 %v3840_v27, %v12308_v15  ;;  %v3758_v52 = vpop.f32.mrf.mxu0  ;;  %v10665_v15 = vld [vmem:[%s13060_s1 + $0xe70] sm:$0xff]  ;;  %v10667_v16 = vld [vmem:[%s13060_s1 + $0xe80] sm:$0xff] }
 0x281   : > { %v3823_v59 = vpop.f32.mrf.mxu3  ;;  %v3780_v19 = vpop.f32.mrf.mxu1  ;;  %5789 = vmatpush.bf16.msra.mxu1 %v10665_v15  ;;  %v10677_v52 = vld [vmem:[%s13060_s1 + $0xed0] sm:$0xff] }
 0x282   : > { %5812 = vmatpush.bf16.msra.mxu2 %v10672_v46  ;;  %v10653_v59 = vld [vmem:[%s13060_s1 + $0xe10] sm:$0xff]  ;;  %v10676_v46 = vld [vmem:[%s13060_s1 + $0xec8] sm:$0xff] }
 0x283   : > { %5835 = vmatpush.bf16.msra.mxu3 %v10679_v13  ;;  %v10661_v19 = vld [vmem:[%s13060_s1 + $0xe50] sm:$0xff]  ;;  %5771 = vmatpush.bf16.msra.mxu0 %v10653_v59 }
 0x285   : > { %5790 = vmatpush.bf16.msra.mxu1 %v10664_v47 }
 0x286   : > { %5813 = vmatpush.bf16.msra.mxu2 %v10671_v58 }
 0x287   : > { %5836 = vmatpush.bf16.msra.mxu3 %v10678_v48 }
 0x288   : > { %v3802_v60 = vpop.f32.mrf.mxu2  ;;  %v4372_v14 = vpop.f32.mrf.mxu0 }
 0x289   : > { %v3824_v25 = vpop.f32.mrf.mxu3  ;;  %v4393_v29 = vpop.f32.mrf.mxu1  ;;  %5791 = vmatpush.bf16.msra.mxu1 %v10663_v49 }
 0x28a   : > { %5814 = vmatpush.bf16.msra.mxu2 %v10670_v31  ;;  %v10652_v29 = vld [vmem:[%s13060_s1 + $0xe08] sm:$0xff]  ;;  %v10690_v31 = vld [vmem:[%s13060_s1 + $0xf38] sm:$0xff] }
 0x28b   : > { %5070 = vmatmul.bf16.gmra.mxu0 %v11090_v36  ;;  %5837 = vmatpush.bf16.msra.mxu3 %v10677_v52 }
 0x28c   : > { %5092 = vmatmul.bf16.gmra.mxu1 %v11092_v37  ;;  %5772 = vmatpush.bf16.msra.mxu0 %v10652_v29 }
 0x28d   : > { %5114 = vmatmul.bf16.gmra.mxu2 %v11094_v38  ;;  %5792 = vmatpush.bf16.msra.mxu1 %v10662_v62 }
 0x28e   : > { %5136 = vmatmul.bf16.gmra.mxu3 %v11096_v39  ;;  %5815 = vmatpush.bf16.msra.mxu2 %v10669_v21  ;;  %v10713_v21 = vld [vmem:[%s13060_s1 + $0xff0] sm:$0xff] }
 0x28f   : > { %5838 = vmatpush.bf16.msra.mxu3 %v10676_v46  ;;  %v10687_v46 = vld [vmem:[%s13060_s1 + $0xf20] sm:$0xff] }
 0x290   : > { %v4414_v22 = vpop.f32.mrf.mxu2  ;;  %v4373_v41 = vpop.f32.mrf.mxu0 }
 0x291   : > { %v4435_v51 = vpop.f32.mrf.mxu3  ;;  %v4394_v20 = vpop.f32.mrf.mxu1  ;;  %5793 = vmatpush.bf16.msra.mxu1 %v10661_v19  ;;  %v10651_v22 = vld [vmem:[%s13060_s1 + $0xe00] sm:$0xff] }
 0x292   : > { %v4395_v17 = vadd.f32 %v4394_v20, %v4373_v41  ;;  %5816 = vmatpush.bf16.msra.mxu2 %v10668_v54  ;;  %v10675_v51 = vld [vmem:[%s13060_s1 + $0xec0] sm:$0xff]  ;;  %5773 = vmatpush.bf16.msra.mxu0 %v10651_v22  ;;  %v10688_v54 = vld [vmem:[%s13060_s1 + $0xf28] sm:$0xff] }
 0x293   : > { %5839 = vmatpush.bf16.msra.mxu3 %v10675_v51  ;;  %v10702_v51 = vld [vmem:[%s13060_s1 + $0xf98] sm:$0xff] }
 0x295   : > { %5794 = vmatpush.bf16.msra.mxu1 %v10660_v30  ;;  %v10711_v30 = vld [vmem:[%s13060_s1 + $0xfe0] sm:$0xff] }
 0x296   : > { %5817 = vmatpush.bf16.msra.mxu2 %v10667_v16 }
 0x298   : > { %v4415_v61 = vpop.f32.mrf.mxu2  ;;  %v4376_v53 = vpop.f32.mrf.mxu0 }
 0x299   : > { %v4436_v40 = vpop.f32.mrf.mxu3  ;;  %v4416_v28 = vadd.f32 %v4415_v61, %v4395_v17  ;;  %v4397_v12 = vpop.f32.mrf.mxu1  ;;  %5795 = vmatpush.bf16.msra.mxu1 %v10659_v3  ;;  %v10706_v17 = vld [vmem:[%s13060_s1 + $0xfb8] sm:$0xff] }
 0x29a   : > { %v4398_v27 = vadd.f32 %v4397_v12, %v4376_v53  ;;  %v10705_v53 = vld [vmem:[%s13060_s1 + $0xfb0] sm:$0xff]  ;;  %v10686_v3 = vld [vmem:[%s13060_s1 + $0xf18] sm:$0xff] }
 0x29b   : > { %v12608_v24 = vadd.f32 %v4436_v40, %v4416_v28  ;;  %5149 = vmatmul.bf16.vlgmr.msrb.gmra.mxu0 %v11158_v4  ;;  %v10698_v28 = vld [vmem:[%s13060_s1 + $0xf78] sm:$0xff]  ;;  %v10689_v12 = vld [vmem:[%s13060_s1 + $0xf30] sm:$0xff] }
 0x29c   : > { %5171 = vmatmul.bf16.vlgmr.msrb.gmra.mxu1 %v11160_v5  ;;  %5854 = vmatpush.bf16.msrb.mxu0 %v10690_v31 }
 0x29d   : > { %5193 = vmatmul.bf16.vlgmr.msrb.gmra.mxu2 %v11162_v10  ;;  %5876 = vmatpush.bf16.msrb.mxu1 %v10698_v28 }
 0x29e   : > { %5215 = vmatmul.bf16.vlgmr.msrb.gmra.mxu3 %v11164_v11  ;;  %5898 = vmatpush.bf16.msrb.mxu2 %v10706_v17  ;;  %v10694_v17 = vld [vmem:[%s13060_s1 + $0xf58] sm:$0xff] }
 0x29f   : > { %5920 = vmatpush.bf16.msrb.mxu3 %v10714_v55 }
 0x2a0   : > { %v4418_v26 = vpop.f32.mrf.mxu2  ;;  %v4378_v15 = vpop.f32.mrf.mxu0  ;;  %5855 = vmatpush.bf16.msrb.mxu0 %v10689_v12  ;;  %v10685_v12 = vld [vmem:[%s13060_s1 + $0xf10] sm:$0xff] }
 0x2a1   : > { %v4439_v18 = vpop.f32.mrf.mxu3  ;;  %v4419_v23 = vadd.f32 %v4418_v26, %v4398_v27  ;;  %v4399_v60 = vpop.f32.mrf.mxu1  ;;  %v10697_v27 = vld [vmem:[%s13060_s1 + $0xf70] sm:$0xff] }
 0x2a2   : > { %v4400_v25 = vadd.f32 %v4399_v60, %v4378_v15  ;;  %5899 = vmatpush.bf16.msrb.mxu2 %v10705_v53  ;;  %5877 = vmatpush.bf16.msrb.mxu1 %v10697_v27  ;;  %v10696_v15 = vld [vmem:[%s13060_s1 + $0xf68] sm:$0xff]  ;;  %v10703_v60 = vld [vmem:[%s13060_s1 + $0xfa0] sm:$0xff] }
 0x2a3   : > { %v12626_v14 = vadd.f32 %v4439_v18, %v4419_v23  ;;  %5921 = vmatpush.bf16.msrb.mxu3 %v10713_v21  ;;  %v10704_v18 = vld [vmem:[%s13060_s1 + $0xfa8] sm:$0xff]  ;;  %v10693_v21 = vld [vmem:[%s13060_s1 + $0xf50] sm:$0xff] }
 0x2a4   : > { %v10712_v23 = vld [vmem:[%s13060_s1 + $0xfe8] sm:$0xff]  ;;  %5856 = vmatpush.bf16.msrb.mxu0 %v10688_v54 }
 0x2a5   : > { %v10684_v54 = vld [vmem:[%s13060_s1 + $0xf08] sm:$0xff] }
 0x2a6   : > { %5900 = vmatpush.bf16.msrb.mxu2 %v10704_v18  ;;  %5878 = vmatpush.bf16.msrb.mxu1 %v10696_v15  ;;  %v10692_v15 = vld [vmem:[%s13060_s1 + $0xf48] sm:$0xff] }
 0x2a7   : > { %5922 = vmatpush.bf16.msrb.mxu3 %v10712_v23  ;;  %v10708_v23 = vld [vmem:[%s13060_s1 + $0xfc8] sm:$0xff] }
 0x2a8   : > { %v4420_v47 = vpop.f32.mrf.mxu2  ;;  %v4381_v41 = vpop.f32.mrf.mxu0  ;;  %5857 = vmatpush.bf16.msrb.mxu0 %v10687_v46 }
 0x2a9   : > { %v4441_v58 = vpop.f32.mrf.mxu3  ;;  %v4421_v13 = vadd.f32 %v4420_v47, %v4400_v25  ;;  %v4402_v20 = vpop.f32.mrf.mxu1  ;;  %v10710_v41 = vld [vmem:[%s13060_s1 + $0xfd8] sm:$0xff] }
 0x2aa   : > { %5901 = vmatpush.bf16.msrb.mxu2 %v10703_v60 }
 0x2ab   : > { %v12649_v49 = vadd.f32 %v4441_v58, %v4421_v13  ;;  %5153 = vmatmul.bf16.gmra.mxu0 %v11214_v32  ;;  %v10695_v58 = vld [vmem:[%s13060_s1 + $0xf60] sm:$0xff]  ;;  %5923 = vmatpush.bf16.msrb.mxu3 %v10711_v30 }
 0x2ac   : > { %5175 = vmatmul.bf16.gmra.mxu1 %v11216_v33  ;;  %5858 = vmatpush.bf16.msrb.mxu0 %v10686_v3 }
 0x2ad   : > { %5197 = vmatmul.bf16.gmra.mxu2 %v11218_v34  ;;  %5879 = vmatpush.bf16.msrb.mxu1 %v10695_v58  ;;  %v10691_v58 = vld [vmem:[%s13060_s1 + $0xf40] sm:$0xff] }
 0x2ae   : > { %5219 = vmatmul.bf16.gmra.mxu3 %v11220_v35  ;;  %5902 = vmatpush.bf16.msrb.mxu2 %v10702_v51 }
 0x2af   : > { %5924 = vmatpush.bf16.msrb.mxu3 %v10710_v41  ;;  %v10738_v41 = vld [vmem:[%s13060_s1 + $0x10b8] sm:$0xff] }
 0x2b0   : > { %v4423_v48 = vpop.f32.mrf.mxu2  ;;  %v4382_v40 = vpop.f32.mrf.mxu0  ;;  %5859 = vmatpush.bf16.msrb.mxu0 %v10685_v12 }
 0x2b1   : > { %v4444_v61 = vpop.f32.mrf.mxu3  ;;  %v4403_v62 = vpop.f32.mrf.mxu1  ;;  %5880 = vmatpush.bf16.msrb.mxu1 %v10694_v17 }
 0x2b2   : > { %v10701_v61 = vld [vmem:[%s13060_s1 + $0xf90] sm:$0xff] }
 0x2b3   : > { %5903 = vmatpush.bf16.msrb.mxu2 %v10701_v61  ;;  %v10737_v61 = vld [vmem:[%s13060_s1 + $0x10b0] sm:$0xff] }
 0x2b4   : > { %5860 = vmatpush.bf16.msrb.mxu0 %v10684_v54 }
 0x2b5   : > { %5881 = vmatpush.bf16.msrb.mxu1 %v10693_v21 }
 0x2b8   : > { %v4424_v59 = vpop.f32.mrf.mxu2  ;;  %v4456_v19 = vpop.f32.mrf.mxu0 }
 0x2b9   : > { %v4445_v52 = vpop.f32.mrf.mxu3  ;;  %v4477_v26 = vpop.f32.mrf.mxu1  ;;  %v10700_v59 = vld [vmem:[%s13060_s1 + $0xf88] sm:$0xff]  ;;  %5882 = vmatpush.bf16.msrb.mxu1 %v10692_v15 }
 0x2ba   : > { %5904 = vmatpush.bf16.msrb.mxu2 %v10700_v59  ;;  %v10720_v59 = vld [vmem:[%s13060_s1 + $0x1028] sm:$0xff] }
 0x2bb   : > { %5158 = vmatmul.bf16.gmra.mxu0 %v11267_v63 }
 0x2bc   : > { %5180 = vmatmul.bf16.gmra.mxu1 %v11269_v0 }
 0x2bd   : > { %5202 = vmatmul.bf16.gmra.mxu2 %v11271_v1  ;;  %5883 = vmatpush.bf16.msrb.mxu1 %v10691_v58 }
 0x2be   : > { %5224 = vmatmul.bf16.gmra.mxu3 %v11273_v2 }
 0x2c0   : > { %v4498_v25 = vpop.f32.mrf.mxu2  ;;  %v4457_v16 = vpop.f32.mrf.mxu0 }
 0x2c1   : > { %v4519_v29 = vpop.f32.mrf.mxu3  ;;  %v4478_v47 = vpop.f32.mrf.mxu1  ;;  %v4458_v22 = vadd.f32 %v4457_v16, %v12608_v24  ;;  %v10699_v25 = vld [vmem:[%s13060_s1 + $0xf80] sm:$0xff] }
 0x2c2   : > { %5905 = vmatpush.bf16.msrb.mxu2 %v10699_v25  ;;  %v10683_v16 = vld [vmem:[%s13060_s1 + $0xf00] sm:$0xff] }
 0x2c3   : > { %v4479_v13 = vadd.f32 %v4478_v47, %v4458_v22  ;;  %v10707_v47 = vld [vmem:[%s13060_s1 + $0xfc0] sm:$0xff]  ;;  %5861 = vmatpush.bf16.msrb.mxu0 %v10683_v16  ;;  %v10718_v16 = vld [vmem:[%s13060_s1 + $0x1018] sm:$0xff] }
 0x2c4   : > { %v10719_v25 = vld [vmem:[%s13060_s1 + $0x1020] sm:$0xff] }
 0x2c8   : > { %v4499_v24 = vpop.f32.mrf.mxu2  ;;  %v4460_v55 = vpop.f32.mrf.mxu0 }
 0x2c9   : > { %v4520_v20 = vpop.f32.mrf.mxu3  ;;  %v4500_v31 = vadd.f32 %v4499_v24, %v4479_v13  ;;  %v4481_v48 = vpop.f32.mrf.mxu1  ;;  %v4461_v40 = vadd.f32 %v4460_v55, %v12626_v14  ;;  %v10709_v14 = vld [vmem:[%s13060_s1 + $0xfd0] sm:$0xff]  ;;  %v10722_v24 = vld [vmem:[%s13060_s1 + $0x1038] sm:$0xff] }
 0x2ca   : > { %5925 = vmatpush.bf16.msrb.mxu3 %v10709_v14 }
 0x2cb   : > { %v4521_v62 = vadd.f32 %v4520_v20, %v4500_v31  ;;  %v4482_v28 = vadd.f32 %v4481_v48, %v4461_v40  ;;  %5774 = vmatmul.bf16.vlgmr.msra.gmra.mxu0 %v10948_v42  ;;  %v10746_v20 = vld [vmem:[%s13060_s1 + $0x10f8] sm:$0xff]  ;;  %v10721_v40 = vld [vmem:[%s13060_s1 + $0x1030] sm:$0xff] }
 0x2cc   : > { %5796 = vmatmul.bf16.vlgmr.msra.gmra.mxu1 %v10950_v43  ;;  %6479 = vmatpush.bf16.msra.mxu0 %v10722_v24  ;;  %v10730_v48 = vld [vmem:[%s13060_s1 + $0x1078] sm:$0xff]  ;;  %v10733_v24 = vld [vmem:[%s13060_s1 + $0x1090] sm:$0xff] }
 0x2cd   : > { %v12727_v53 = vadd.f32 %v4521_v62, %v12505_v56  ;;  %5818 = vmatmul.bf16.vlgmr.msra.gmra.mxu2 %v10952_v44  ;;  %v10745_v62 = vld [vmem:[%s13060_s1 + $0x10f0] sm:$0xff]  ;;  %6501 = vmatpush.bf16.msra.mxu1 %v10730_v48 }
 0x2ce   : > { %5840 = vmatmul.bf16.vlgmr.msra.gmra.mxu3 %v10954_v45  ;;  %6523 = vmatpush.bf16.msra.mxu2 %v10738_v41 }
 0x2cf   : > { %5926 = vmatpush.bf16.msrb.mxu3 %v10708_v23 }
 0x2d0   : > { %v4502_v56 = vpop.f32.mrf.mxu2  ;;  %v4462_v19 = vpop.f32.mrf.mxu0  ;;  %6480 = vmatpush.bf16.msra.mxu0 %v10721_v40  ;;  %v10732_v40 = vld [vmem:[%s13060_s1 + $0x1088] sm:$0xff] }
 0x2d1   : > { %v4523_v27 = vpop.f32.mrf.mxu3  ;;  %v4503_v52 = vadd.f32 %v4502_v56, %v4482_v28  ;;  %v4483_v26 = vpop.f32.mrf.mxu1  ;;  %v4463_v18 = vadd.f32 %v4462_v19, %v12649_v49  ;;  %v10729_v28 = vld [vmem:[%s13060_s1 + $0x1070] sm:$0xff]  ;;  %v10728_v19 = vld [vmem:[%s13060_s1 + $0x1068] sm:$0xff] }
 0x2d2   : > { %6524 = vmatpush.bf16.msra.mxu2 %v10737_v61  ;;  %6502 = vmatpush.bf16.msra.mxu1 %v10729_v28 }
 0x2d3   : > { %v4524_v60 = vadd.f32 %v4523_v27, %v4503_v52  ;;  %v4484_v29 = vadd.f32 %v4483_v26, %v4463_v18  ;;  %5927 = vmatpush.bf16.msrb.mxu3 %v10707_v47  ;;  %v10736_v27 = vld [vmem:[%s13060_s1 + $0x10a8] sm:$0xff]  ;;  %v10735_v26 = vld [vmem:[%s13060_s1 + $0x10a0] sm:$0xff]  ;;  %v10742_v47 = vld [vmem:[%s13060_s1 + $0x10d8] sm:$0xff] }
 0x2d4   : > { %v10744_v52 = vld [vmem:[%s13060_s1 + $0x10e8] sm:$0xff]  ;;  %6481 = vmatpush.bf16.msra.mxu0 %v10720_v59 }
 0x2d5   : > { %v12757_v49 = vadd.f32 %v4524_v60, %v12531_v57  ;;  %v10724_v59 = vld [vmem:[%s13060_s1 + $0x1048] sm:$0xff] }
 0x2d6   : > { %6525 = vmatpush.bf16.msra.mxu2 %v10736_v27  ;;  %6503 = vmatpush.bf16.msra.mxu1 %v10728_v19  ;;  %v10740_v27 = vld [vmem:[%s13060_s1 + $0x10c8] sm:$0xff] }
 0x2d7   : > { %6545 = vmatpush.bf16.msra.mxu3 %v10746_v20 }
 0x2d8   : > { %v4504_v46 = vpop.f32.mrf.mxu2  ;;  %v4465_v51 = vpop.f32.mrf.mxu0  ;;  %6482 = vmatpush.bf16.msra.mxu0 %v10719_v25 }
 0x2d9   : > { %v4525_v30 = vpop.f32.mrf.mxu3  ;;  %v4505_v22 = vadd.f32 %v4504_v46, %v4484_v29  ;;  %v4486_v57 = vpop.f32.mrf.mxu1  ;;  %v10743_v29 = vld [vmem:[%s13060_s1 + $0x10e0] sm:$0xff]  ;;  %v10726_v51 = vld [vmem:[%s13060_s1 + $0x1058] sm:$0xff] }
 0x2da   : > { %6526 = vmatpush.bf16.msra.mxu2 %v10735_v26  ;;  %v10727_v46 = vld [vmem:[%s13060_s1 + $0x1060] sm:$0xff] }
 0x2db   : > { %v4526_v3 = vadd.f32 %v4525_v30, %v4505_v22  ;;  %5778 = vmatmul.bf16.gmra.mxu0 %v11016_v6  ;;  %6546 = vmatpush.bf16.msra.mxu3 %v10745_v62  ;;  %v10734_v30 = vld [vmem:[%s13060_s1 + $0x1098] sm:$0xff] }
 0x2dc   : > { %5800 = vmatmul.bf16.gmra.mxu1 %v11018_v7  ;;  %6483 = vmatpush.bf16.msra.mxu0 %v10718_v16  ;;  %v10754_v16 = vld [vmem:[%s13060_s1 + $0x1138] sm:$0xff] }
 0x2dd   : > { %v12771_v13 = vadd.f32 %v4526_v3, %v12548_v50  ;;  %5822 = vmatmul.bf16.gmra.mxu2 %v11020_v8  ;;  %6504 = vmatpush.bf16.msra.mxu1 %v10727_v46 }
 0x2de   : > { %5844 = vmatmul.bf16.gmra.mxu3 %v11022_v9  ;;  %6527 = vmatpush.bf16.msra.mxu2 %v10734_v30  ;;  %v10770_v30 = vld [vmem:[%s13060_s1 + $0x11b8] sm:$0xff] }
 0x2df   : > { %6547 = vmatpush.bf16.msra.mxu3 %v10744_v52  ;;  %v10731_v52 = vld [vmem:[%s13060_s1 + $0x1080] sm:$0xff] }
 0x2e0   : > { %v4507_v50 = vpop.f32.mrf.mxu2  ;;  %v4466_v31 = vpop.f32.mrf.mxu0 }
 0x2e1   : > { %v4528_v17 = vpop.f32.mrf.mxu3  ;;  %v4487_v55 = vpop.f32.mrf.mxu1  ;;  %6505 = vmatpush.bf16.msra.mxu1 %v10726_v51  ;;  %v10741_v31 = vld [vmem:[%s13060_s1 + $0x10d0] sm:$0xff] }
 0x2e2   : > { %6528 = vmatpush.bf16.msra.mxu2 %v10733_v24  ;;  %v10717_v17 = vld [vmem:[%s13060_s1 + $0x1010] sm:$0xff] }
 0x2e3   : > { %6548 = vmatpush.bf16.msra.mxu3 %v10743_v29  ;;  %v10725_v55 = vld [vmem:[%s13060_s1 + $0x1050] sm:$0xff]  ;;  %6484 = vmatpush.bf16.msra.mxu0 %v10717_v17  ;;  %v10762_v17 = vld [vmem:[%s13060_s1 + $0x1178] sm:$0xff] }
 0x2e5   : > { %6506 = vmatpush.bf16.msra.mxu1 %v10725_v55  ;;  %v10753_v55 = vld [vmem:[%s13060_s1 + $0x1130] sm:$0xff] }
 0x2e6   : > { %6529 = vmatpush.bf16.msra.mxu2 %v10732_v40  ;;  %v10777_v40 = vld [vmem:[%s13060_s1 + $0x11f0] sm:$0xff] }
 0x2e7   : > { %6549 = vmatpush.bf16.msra.mxu3 %v10742_v47  ;;  %v10778_v47 = vld [vmem:[%s13060_s1 + $0x11f8] sm:$0xff] }
 0x2e8   : > { %v4508_v12 = vpop.f32.mrf.mxu2  ;;  %v5062_v21 = vpop.f32.mrf.mxu0 }
 0x2e9   : > { %v4529_v14 = vpop.f32.mrf.mxu3  ;;  %v5084_v56 = vpop.f32.mrf.mxu1  ;;  %6507 = vmatpush.bf16.msra.mxu1 %v10724_v59 }
 0x2ea   : > { %v10716_v56 = vld [vmem:[%s13060_s1 + $0x1008] sm:$0xff]  ;;  %6530 = vmatpush.bf16.msra.mxu2 %v10731_v52 }
 0x2eb   : > { %5783 = vmatmul.bf16.gmra.mxu0 %v11090_v36  ;;  %6550 = vmatpush.bf16.msra.mxu3 %v10741_v31  ;;  %v10769_v31 = vld [vmem:[%s13060_s1 + $0x11b0] sm:$0xff] }
 0x2ec   : > { %5805 = vmatmul.bf16.gmra.mxu1 %v11092_v37  ;;  %6485 = vmatpush.bf16.msra.mxu0 %v10716_v56  ;;  %v10752_v56 = vld [vmem:[%s13060_s1 + $0x1128] sm:$0xff] }
 0x2ed   : > { %5827 = vmatmul.bf16.gmra.mxu2 %v11094_v38 }
 0x2ee   : > { %5849 = vmatmul.bf16.gmra.mxu3 %v11096_v39 }
 0x2ef   : > { %6551 = vmatpush.bf16.msra.mxu3 %v10740_v27  ;;  %v10776_v27 = vld [vmem:[%s13060_s1 + $0x11e8] sm:$0xff] }
 0x2f0   : > { %v5106_v18 = vpop.f32.mrf.mxu2  ;;  %v5063_v23 = vpop.f32.mrf.mxu0 }
 0x2f1   : > { %v5128_v54 = vpop.f32.mrf.mxu3  ;;  %v5085_v15 = vpop.f32.mrf.mxu1  ;;  %v10715_v18 = vld [vmem:[%s13060_s1 + $0x1000] sm:$0xff] }
 0x2f2   : > { %v5086_v60 = vadd.f32 %v5085_v15, %v5063_v23  ;;  %v10739_v54 = vld [vmem:[%s13060_s1 + $0x10c0] sm:$0xff]  ;;  %6486 = vmatpush.bf16.msra.mxu0 %v10715_v18 }
 0x2f3   : > { %v10723_v23 = vld [vmem:[%s13060_s1 + $0x1040] sm:$0xff]  ;;  %6552 = vmatpush.bf16.msra.mxu3 %v10739_v54 }
 0x2f4   : > { %6508 = vmatpush.bf16.msra.mxu1 %v10723_v23  ;;  %v10767_v18 = vld [vmem:[%s13060_s1 + $0x11a0] sm:$0xff] }
 0x2f8   : > { %v5107_v58 = vpop.f32.mrf.mxu2  ;;  %v5066_v3 = vpop.f32.mrf.mxu0 }
 0x2f9   : > { %v5129_v22 = vpop.f32.mrf.mxu3  ;;  %v5108_v57 = vadd.f32 %v5107_v58, %v5086_v60  ;;  %v5088_v41 = vpop.f32.mrf.mxu1 }
 0x2fa   : > { %v5089_v20 = vadd.f32 %v5088_v41, %v5066_v3 }
 0x2fb   : > { %v12842_v50 = vadd.f32 %v5129_v22, %v5108_v57  ;;  %5862 = vmatmul.bf16.vlgmr.msrb.gmra.mxu0 %v11158_v4 }
 0x2fc   : > { %5884 = vmatmul.bf16.vlgmr.msrb.gmra.mxu1 %v11160_v5  ;;  %6567 = vmatpush.bf16.msrb.mxu0 %v10754_v16 }
 0x2fd   : > { %5906 = vmatmul.bf16.vlgmr.msrb.gmra.mxu2 %v11162_v10  ;;  %6589 = vmatpush.bf16.msrb.mxu1 %v10762_v17  ;;  %v10773_v17 = vld [vmem:[%s13060_s1 + $0x11d0] sm:$0xff] }
 0x2fe   : > { %5928 = vmatmul.bf16.vlgmr.msrb.gmra.mxu3 %v11164_v11  ;;  %6611 = vmatpush.bf16.msrb.mxu2 %v10770_v30 }
 0x2ff   : > { %6633 = vmatpush.bf16.msrb.mxu3 %v10778_v47  ;;  %v10766_v47 = vld [vmem:[%s13060_s1 + $0x1198] sm:$0xff] }
 0x300   : > { %v5110_v48 = vpop.f32.mrf.mxu2  ;;  %v5068_v28 = vpop.f32.mrf.mxu0  ;;  %6568 = vmatpush.bf16.msrb.mxu0 %v10753_v55 }
 0x301   : > { %v5132_v61 = vpop.f32.mrf.mxu3  ;;  %v5111_v62 = vadd.f32 %v5110_v48, %v5089_v20  ;;  %v5090_v12 = vpop.f32.mrf.mxu1 }
 0x302   : > { %v5091_v14 = vadd.f32 %v5090_v12, %v5068_v28  ;;  %6612 = vmatpush.bf16.msrb.mxu2 %v10769_v31 }
 0x303   : > { %v12860_v21 = vadd.f32 %v5132_v61, %v5111_v62  ;;  %v10761_v62 = vld [vmem:[%s13060_s1 + $0x1170] sm:$0xff]  ;;  %6634 = vmatpush.bf16.msrb.mxu3 %v10777_v40  ;;  %v10748_v40 = vld [vmem:[%s13060_s1 + $0x1108] sm:$0xff] }
 0x304   : > { %6590 = vmatpush.bf16.msrb.mxu1 %v10761_v62  ;;  %6569 = vmatpush.bf16.msrb.mxu0 %v10752_v56  ;;  %v10772_v62 = vld [vmem:[%s13060_s1 + $0x11c8] sm:$0xff] }
 0x307   : > { %6635 = vmatpush.bf16.msrb.mxu3 %v10776_v27 }
 0x308   : > { %v5112_v19 = vpop.f32.mrf.mxu2  ;;  %v5071_v60 = vpop.f32.mrf.mxu0 }
 0x309   : > { %v5134_v26 = vpop.f32.mrf.mxu3  ;;  %v5113_v15 = vadd.f32 %v5112_v19, %v5091_v14  ;;  %v5093_v25 = vpop.f32.mrf.mxu1  ;;  %v10768_v14 = vld [vmem:[%s13060_s1 + $0x11a8] sm:$0xff] }
 0x30a   : > { %v5094_v29 = vadd.f32 %v5093_v25, %v5071_v60  ;;  %v10760_v19 = vld [vmem:[%s13060_s1 + $0x1168] sm:$0xff]  ;;  %6613 = vmatpush.bf16.msrb.mxu2 %v10768_v14  ;;  %v10751_v60 = vld [vmem:[%s13060_s1 + $0x1120] sm:$0xff] }
 0x30b   : > { %v12883_v46 = vadd.f32 %v5134_v26, %v5113_v15  ;;  %5866 = vmatmul.bf16.gmra.mxu0 %v11214_v32  ;;  %6591 = vmatpush.bf16.msrb.mxu1 %v10760_v19  ;;  %v10759_v25 = vld [vmem:[%s13060_s1 + $0x1160] sm:$0xff] }
 0x30c   : > { %5888 = vmatmul.bf16.gmra.mxu1 %v11216_v33  ;;  %6570 = vmatpush.bf16.msrb.mxu0 %v10751_v60 }
 0x30d   : > { %5910 = vmatmul.bf16.gmra.mxu2 %v11218_v34 }
 0x30e   : > { %5932 = vmatmul.bf16.gmra.mxu3 %v11220_v35  ;;  %6614 = vmatpush.bf16.msrb.mxu2 %v10767_v18  ;;  %v10747_v18 = vld [vmem:[%s13060_s1 + $0x1100] sm:$0xff] }
 0x30f   : > { %6592 = vmatpush.bf16.msrb.mxu1 %v10759_v25 }
 0x310   : > { %v5115_v58 = vpop.f32.mrf.mxu2  ;;  %v5073_v57 = vpop.f32.mrf.mxu0 }
 0x311   : > { %v5137_v22 = vpop.f32.mrf.mxu3  ;;  %v5116_v51 = vadd.f32 %v5115_v58, %v5094_v29  ;;  %v5095_v3 = vpop.f32.mrf.mxu1 }
 0x312   : > { %6615 = vmatpush.bf16.msrb.mxu2 %v10766_v47  ;;  %v10758_v3 = vld [vmem:[%s13060_s1 + $0x1158] sm:$0xff] }
 0x313   : > { %v12898_v41 = vadd.f32 %v5137_v22, %v5116_v51  ;;  %v10750_v22 = vld [vmem:[%s13060_s1 + $0x1118] sm:$0xff]  ;;  %6593 = vmatpush.bf16.msrb.mxu1 %v10758_v3 }
 0x314   : > { %v10774_v51 = vld [vmem:[%s13060_s1 + $0x11d8] sm:$0xff]  ;;  %6571 = vmatpush.bf16.msrb.mxu0 %v10750_v22 }
 0x318   : > { %v5117_v24 = vpop.f32.mrf.mxu2  ;;  %v5150_v48 = vpop.f32.mrf.mxu0 }
 0x319   : > { %v5139_v20 = vpop.f32.mrf.mxu3  ;;  %v5172_v61 = vpop.f32.mrf.mxu1 }
 0x31a   : > { %v10749_v20 = vld [vmem:[%s13060_s1 + $0x1110] sm:$0xff] }
 0x31b   : > { %5871 = vmatmul.bf16.gmra.mxu0 %v11267_v63 }
 0x31c   : > { %5893 = vmatmul.bf16.gmra.mxu1 %v11269_v0  ;;  %6572 = vmatpush.bf16.msrb.mxu0 %v10749_v20 }
 0x31d   : > { %5915 = vmatmul.bf16.gmra.mxu2 %v11271_v1 }
 0x31e   : > { %5937 = vmatmul.bf16.gmra.mxu3 %v11273_v2 }
 0x320   : > { %v5194_v28 = vpop.f32.mrf.mxu2  ;;  %v5151_v59 = vpop.f32.mrf.mxu0  ;;  %6573 = vmatpush.bf16.msrb.mxu0 %v10748_v40 }
 0x321   : > { %v5216_v12 = vpop.f32.mrf.mxu3  ;;  %v5173_v52 = vpop.f32.mrf.mxu1  ;;  %v5152_v26 = vadd.f32 %v5151_v59, %v12842_v50  ;;  %v10775_v50 = vld [vmem:[%s13060_s1 + $0x11e0] sm:$0xff] }
 0x322   : > { %6636 = vmatpush.bf16.msrb.mxu3 %v10775_v50  ;;  %v10756_v12 = vld [vmem:[%s13060_s1 + $0x1148] sm:$0xff] }
 0x323   : > { %v5174_v54 = vadd.f32 %v5173_v52, %v5152_v26 }
 0x324   : > { %6574 = vmatpush.bf16.msrb.mxu0 %v10747_v18 }
 0x326   : > { %6637 = vmatpush.bf16.msrb.mxu3 %v10774_v51 }
 0x328   : > { %v5195_v23 = vpop.f32.mrf.mxu2  ;;  %v5154_v30 = vpop.f32.mrf.mxu0 }
 0x329   : > { %v5217_v15 = vpop.f32.mrf.mxu3  ;;  %v5196_v29 = vadd.f32 %v5195_v23, %v5174_v54  ;;  %v5176_v16 = vpop.f32.mrf.mxu1  ;;  %v5155_v58 = vadd.f32 %v5154_v30, %v12860_v21  ;;  %v10765_v21 = vld [vmem:[%s13060_s1 + $0x1190] sm:$0xff]  ;;  %v10771_v54 = vld [vmem:[%s13060_s1 + $0x11c0] sm:$0xff] }
 0x32a   : > { %6616 = vmatpush.bf16.msrb.mxu2 %v10765_v21  ;;  %6638 = vmatpush.bf16.msrb.mxu3 %v10773_v17  ;;  %v10755_v23 = vld [vmem:[%s13060_s1 + $0x1140] sm:$0xff] }
 0x32b   : > { %v5218_v57 = vadd.f32 %v5217_v15, %v5196_v29  ;;  %v5177_v24 = vadd.f32 %v5176_v16, %v5155_v58  ;;  %6487 = vmatmul.bf16.vlgmr.msra.gmra.mxu0 %v10948_v42  ;;  %v10757_v42 = vld [vmem:[%s13060_s1 + $0x1150] sm:$0xff] }
 0x32c   : > { %6509 = vmatmul.bf16.vlgmr.msra.gmra.mxu1 %v10950_v43 }
 0x32d   : > { %6531 = vmatmul.bf16.vlgmr.msra.gmra.mxu2 %v10952_v44  ;;  %6594 = vmatpush.bf16.msrb.mxu1 %v10757_v42  ;;  %v5237_v56 = vrot.slane %v5218_v57, 4 }
 0x32e   : > { %6553 = vmatmul.bf16.vlgmr.msra.gmra.mxu3 %v10954_v45  ;;  %v10764_v45 = vld [vmem:[%s13060_s1 + $0x1188] sm:$0xff] }
 0x32f   : > { %6617 = vmatpush.bf16.msrb.mxu2 %v10764_v45  ;;  %6639 = vmatpush.bf16.msrb.mxu3 %v10772_v62 }
 0x330   : > { %v5198_v43 = vpop.f32.mrf.mxu2  ;;  %v5156_v55 = vpop.f32.mrf.mxu0 }
 0x331   : > { %v5220_v44 = vpop.f32.mrf.mxu3  ;;  %v5199_v31 = vadd.f32 %v5198_v43, %v5177_v24  ;;  %v5178_v48 = vpop.f32.mrf.mxu1  ;;  %v5157_v61 = vadd.f32 %v5156_v55, %v12883_v46  ;;  %v10763_v46 = vld [vmem:[%s13060_s1 + $0x1180] sm:$0xff]  ;;  %6595 = vmatpush.bf16.msrb.mxu1 %v10756_v12 }
 0x333   : > { %v5221_v28 = vadd.f32 %v5220_v44, %v5199_v31  ;;  %v5179_v14 = vadd.f32 %v5178_v48, %v5157_v61  ;;  %6618 = vmatpush.bf16.msrb.mxu2 %v10763_v46  ;;  %6640 = vmatpush.bf16.msrb.mxu3 %v10771_v54 }
 0x335   : > { %v5238_v27 = vrot.slane %v5221_v28, 4  ;;  %6596 = vmatpush.bf16.msrb.mxu1 %v10755_v23 }
 0x337   : > { %v5239_v59 = vsel %vm5236_vm4, %v5237_v56, %v5238_v27 }
 0x338   : > { %v12991_v52 = vadd.f32 %v5239_v59, %v12727_v53  ;;  %v5200_v19 = vpop.f32.mrf.mxu2  ;;  %v5159_v60 = vpop.f32.mrf.mxu0 }
 0x339   : > { %v5222_v26 = vpop.f32.mrf.mxu3  ;;  %v5201_v15 = vadd.f32 %v5200_v19, %v5179_v14  ;;  %v5181_v50 = vpop.f32.mrf.mxu1  ;;  %v5160_v53 = vadd.f32 %v5159_v60, %v12898_v41 }
 0x33b   : > { %v5223_v25 = vadd.f32 %v5222_v26, %v5201_v15  ;;  %v5182_v29 = vadd.f32 %v5181_v50, %v5160_v53  ;;  %6491 = vmatmul.bf16.gmra.mxu0 %v11016_v6 }
 0x33c   : > { %6513 = vmatmul.bf16.gmra.mxu1 %v11018_v7 }
 0x33d   : > { %v5240_v30 = vrot.slane %v5223_v25, 4  ;;  %6535 = vmatmul.bf16.gmra.mxu2 %v11020_v8 }
 0x33e   : > { %6557 = vmatmul.bf16.gmra.mxu3 %v11022_v9 }
 0x33f   : > { %v5241_v16 = vsel %vm5236_vm4, %v5238_v27, %v5240_v30 }
 0x340   : > { %v13009_v47 = vadd.f32 %v5241_v16, %v12757_v49  ;;  %v5203_v41 = vpop.f32.mrf.mxu2  ;;  %v5161_v51 = vpop.f32.mrf.mxu0 }
 0x341   : > { %v5225_v58 = vpop.f32.mrf.mxu3  ;;  %v5204_v22 = vadd.f32 %v5203_v41, %v5182_v29  ;;  %v5183_v57 = vpop.f32.mrf.mxu1 }
 0x343   : > { %v5226_v3 = vadd.f32 %v5225_v58, %v5204_v22 }
 0x345   : > { %v5242_v21 = vrot.slane %v5226_v3, 4 }
 0x347   : > { %v5243_v6 = vsel %vm5236_vm4, %v5240_v30, %v5242_v21 }
 0x348   : > { %v13013_v7 = vadd.f32 %v5243_v6, %v12771_v13  ;;  %v5205_v8 = vpop.f32.mrf.mxu2  ;;  %v5775_v9 = vpop.f32.mrf.mxu0 }
 0x349   : > { %v5227_v24 = vpop.f32.mrf.mxu3  ;;  %v5797_v20 = vpop.f32.mrf.mxu1 }
 0x34b   : > { %6496 = vmatmul.bf16.gmra.mxu0 %v11090_v36 }
 0x34c   : > { %6518 = vmatmul.bf16.gmra.mxu1 %v11092_v37 }
 0x34d   : > { %6540 = vmatmul.bf16.gmra.mxu2 %v11094_v38 }
 0x34e   : > { %6562 = vmatmul.bf16.gmra.mxu3 %v11096_v39 }
 0x350   : > { %v5819_v49 = vpop.f32.mrf.mxu2  ;;  %v5776_v42 = vpop.f32.mrf.mxu0 }
 0x351   : > { %v5841_v17 = vpop.f32.mrf.mxu3  ;;  %v5798_v43 = vpop.f32.mrf.mxu1 }
 0x352   : > { %v5799_v44 = vadd.f32 %v5798_v43, %v5776_v42 }
 0x358   : > { %v5820_v45 = vpop.f32.mrf.mxu2  ;;  %v5779_v55 = vpop.f32.mrf.mxu0 }
 0x359   : > { %v5842_v13 = vpop.f32.mrf.mxu3  ;;  %v5821_v31 = vadd.f32 %v5820_v45, %v5799_v44  ;;  %v5801_v48 = vpop.f32.mrf.mxu1 }
 0x35a   : > { %v5802_v61 = vadd.f32 %v5801_v48, %v5779_v55 }
 0x35b   : > { %v5843_v40 = vadd.f32 %v5842_v13, %v5821_v31  ;;  %6575 = vmatmul.bf16.vlgmr.msrb.gmra.mxu0 %v11158_v4 }
 0x35c   : > { %6597 = vmatmul.bf16.vlgmr.msrb.gmra.mxu1 %v11160_v5 }
 0x35d   : > { %6619 = vmatmul.bf16.vlgmr.msrb.gmra.mxu2 %v11162_v10 }
 0x35e   : > { %6641 = vmatmul.bf16.vlgmr.msrb.gmra.mxu3 %v11164_v11 }
 0x360   : > { %v5823_v36 = vpop.f32.mrf.mxu2  ;;  %v5781_v39 = vpop.f32.mrf.mxu0 }
 0x361   : > { %v5845_v37 = vpop.f32.mrf.mxu3  ;;  %v5824_v38 = vadd.f32 %v5823_v36, %v5802_v61  ;;  %v5803_v62 = vpop.f32.mrf.mxu1 }
 0x362   : > { %v5804_v28 = vadd.f32 %v5803_v62, %v5781_v39 }
 0x363   : > { %v5846_v12 = vadd.f32 %v5845_v37, %v5824_v38 }
 0x368   : > { %v5825_v46 = vpop.f32.mrf.mxu2  ;;  %v5784_v27 = vpop.f32.mrf.mxu0 }
 0x369   : > { %v5847_v14 = vpop.f32.mrf.mxu3  ;;  %v5826_v56 = vadd.f32 %v5825_v46, %v5804_v28  ;;  %v5806_v59 = vpop.f32.mrf.mxu1 }
 0x36a   : > { %v5807_v19 = vadd.f32 %v5806_v59, %v5784_v27 }
 0x36b   : > { %v5848_v4 = vadd.f32 %v5847_v14, %v5826_v56  ;;  %6579 = vmatmul.bf16.gmra.mxu0 %v11214_v32 }
 0x36c   : > { %6601 = vmatmul.bf16.gmra.mxu1 %v11216_v33 }
 0x36d   : > { %6623 = vmatmul.bf16.gmra.mxu2 %v11218_v34 }
 0x36e   : > { %6645 = vmatmul.bf16.gmra.mxu3 %v11220_v35 }
 0x370   : > { %v5828_v5 = vpop.f32.mrf.mxu2  ;;  %v5786_v26 = vpop.f32.mrf.mxu0 }
 0x371   : > { %v5850_v10 = vpop.f32.mrf.mxu3  ;;  %v5829_v11 = vadd.f32 %v5828_v5, %v5807_v19  ;;  %v5808_v18 = vpop.f32.mrf.mxu1 }
 0x373   : > { %v5851_v54 = vadd.f32 %v5850_v10, %v5829_v11 }
 0x378   : > { %v5830_v23 = vpop.f32.mrf.mxu2  ;;  %v5863_v60 = vpop.f32.mrf.mxu0 }
 0x379   : > { %v5852_v15 = vpop.f32.mrf.mxu3  ;;  %v5885_v50 = vpop.f32.mrf.mxu1 }
 0x37b   : > { %6584 = vmatmul.bf16.gmra.mxu0 %v11267_v63 }
 0x37c   : > { %6606 = vmatmul.bf16.gmra.mxu1 %v11269_v0 }
 0x37d   : > { %6628 = vmatmul.bf16.gmra.mxu2 %v11271_v1 }
 0x37e   : > { %6650 = vmatmul.bf16.gmra.mxu3 %v11273_v2 }
 0x380   : > { %v5907_v32 = vpop.f32.mrf.mxu2  ;;  %v5864_v34 = vpop.f32.mrf.mxu0 }
 0x381   : > { %v5929_v33 = vpop.f32.mrf.mxu3  ;;  %v5886_v35 = vpop.f32.mrf.mxu1  ;;  %v5865_v53 = vadd.f32 %v5864_v34, %v5843_v40 }
 0x383   : > { %v5887_v25 = vadd.f32 %v5886_v35, %v5865_v53 }
 0x388   : > { %v5908_v29 = vpop.f32.mrf.mxu2  ;;  %v5867_v41 = vpop.f32.mrf.mxu0 }
 0x389   : > { %v5930_v30 = vpop.f32.mrf.mxu3  ;;  %v5909_v16 = vadd.f32 %v5908_v29, %v5887_v25  ;;  %v5889_v58 = vpop.f32.mrf.mxu1  ;;  %v5868_v22 = vadd.f32 %v5867_v41, %v5846_v12 }
 0x38b   : > { %v5931_v51 = vadd.f32 %v5930_v30, %v5909_v16  ;;  %v5890_v63 = vadd.f32 %v5889_v58, %v5868_v22 }
 0x38d   : > { %v5950_v24 = vrot.slane %v5931_v51, 5 }
 0x390   : > { %v5911_v57 = vpop.f32.mrf.mxu2  ;;  %v5869_v1 = vpop.f32.mrf.mxu0 }
 0x391   : > { %v5933_v0 = vpop.f32.mrf.mxu3  ;;  %v5912_v3 = vadd.f32 %v5911_v57, %v5890_v63  ;;  %v5891_v21 = vpop.f32.mrf.mxu1  ;;  %v5870_v2 = vadd.f32 %v5869_v1, %v5848_v4 }
 0x393   : > { %v5934_v6 = vadd.f32 %v5933_v0, %v5912_v3  ;;  %v5892_v8 = vadd.f32 %v5891_v21, %v5870_v2 }
 0x395   : > { %v5951_v9 = vrot.slane %v5934_v6, 5 }
 0x397   : > { %v5952_v20 = vsel %vm5949_vm5, %v5950_v24, %v5951_v9 }
 0x398   : > { %v13033_v49 = vadd.f32 %v5952_v20, %v12991_v52  ;;  %v5913_v17 = vpop.f32.mrf.mxu2  ;;  %v5872_v44 = vpop.f32.mrf.mxu0 }
 0x399   : > { %v5935_v42 = vpop.f32.mrf.mxu3  ;;  %v5914_v43 = vadd.f32 %v5913_v17, %v5892_v8  ;;  %v5894_v45 = vpop.f32.mrf.mxu1  ;;  %v5873_v13 = vadd.f32 %v5872_v44, %v5851_v54 }
 0x39b   : > { %v5936_v31 = vadd.f32 %v5935_v42, %v5914_v43  ;;  %v5895_v55 = vadd.f32 %v5894_v45, %v5873_v13 }
 0x39d   : > { %v5953_v48 = vrot.slane %v5936_v31, 5 }
 0x39f   : > { %v5954_v61 = vsel %vm5949_vm5, %v5951_v9, %v5953_v48 }
 0x3a0   : > { %v13037_v40 = vadd.f32 %v5954_v61, %v13009_v47  ;;  %v5916_v36 = vpop.f32.mrf.mxu2  ;;  %v5874_v39 = vpop.f32.mrf.mxu0 }
 0x3a1   : > { %v5938_v37 = vpop.f32.mrf.mxu3  ;;  %v5917_v38 = vadd.f32 %v5916_v36, %v5895_v55  ;;  %v5896_v52 = vpop.f32.mrf.mxu1 }
 0x3a3   : > { %v5939_v62 = vadd.f32 %v5938_v37, %v5917_v38 }
 0x3a5   : > { %v5955_v28 = vrot.slane %v5939_v62, 5 }
 0x3a7   : > { %v5956_v12 = vsel %vm5949_vm5, %v5953_v48, %v5955_v28 }
 0x3a8   : > { %v13041_v46 = vadd.f32 %v5956_v12, %v13013_v7  ;;  %v5918_v14 = vpop.f32.mrf.mxu2  ;;  %v6488_v27 = vpop.f32.mrf.mxu0 }
 0x3a9   : > { %v5940_v56 = vpop.f32.mrf.mxu3  ;;  %v6510_v59 = vpop.f32.mrf.mxu1 }
 0x3aa   : > { %v10789_v56 = vld [vmem:[%s13061_s2] ss:$0 sm:$0xff] }
 0x3b0   : > { %v6532_v19 = vpop.f32.mrf.mxu2  ;;  %v6489_v47 = vpop.f32.mrf.mxu0 }
 0x3b1   : > { %v6554_v4 = vpop.f32.mrf.mxu3  ;;  %v6511_v5 = vpop.f32.mrf.mxu1 }
 0x3b2   : > { %v6512_v58 = vadd.f32 %v6511_v5, %v6489_v47 }
 0x3b8   : > { %v6533_v10 = vpop.f32.mrf.mxu2  ;;  %v6492_v26 = vpop.f32.mrf.mxu0 }
 0x3b9   : > { %v6555_v11 = vpop.f32.mrf.mxu3  ;;  %v6514_v18 = vpop.f32.mrf.mxu1  ;;  %v6534_v63 = vadd.f32 %v6533_v10, %v6512_v58 }
 0x3ba   : > { %v6515_v3 = vadd.f32 %v6514_v18, %v6492_v26 }
 0x3bb   : > { %v6556_v1 = vadd.f32 %v6555_v11, %v6534_v63 }
 0x3c0   : > { %v6536_v54 = vpop.f32.mrf.mxu2  ;;  %v6494_v15 = vpop.f32.mrf.mxu0 }
 0x3c1   : > { %v6558_v23 = vpop.f32.mrf.mxu3  ;;  %v6516_v60 = vpop.f32.mrf.mxu1  ;;  %v6537_v21 = vadd.f32 %v6536_v54, %v6515_v3 }
 0x3c2   : > { %v6517_v17 = vadd.f32 %v6516_v60, %v6494_v15 }
 0x3c3   : > { %v6559_v24 = vadd.f32 %v6558_v23, %v6537_v21 }
 0x3c8   : > { %v6538_v50 = vpop.f32.mrf.mxu2  ;;  %v6497_v7 = vpop.f32.mrf.mxu0 }
 0x3c9   : > { %v6560_v32 = vpop.f32.mrf.mxu3  ;;  %v6519_v33 = vpop.f32.mrf.mxu1  ;;  %v6539_v44 = vadd.f32 %v6538_v50, %v6517_v17 }
 0x3ca   : > { %v6520_v39 = vadd.f32 %v6519_v33, %v6497_v7 }
 0x3cb   : > { %v6561_v48 = vadd.f32 %v6560_v32, %v6539_v44 }
 0x3d0   : > { %v6541_v34 = vpop.f32.mrf.mxu2  ;;  %v6499_v53 = vpop.f32.mrf.mxu0 }
 0x3d1   : > { %v6563_v35 = vpop.f32.mrf.mxu3  ;;  %v6521_v25 = vpop.f32.mrf.mxu1  ;;  %v6542_v28 = vadd.f32 %v6541_v34, %v6520_v39 }
 0x3d3   : > { %v6564_v5 = vadd.f32 %v6563_v35, %v6542_v28 }
 0x3d8   : > { %v6543_v29 = vpop.f32.mrf.mxu2  ;;  %v6576_v16 = vpop.f32.mrf.mxu0 }
 0x3d9   : > { %v6565_v30 = vpop.f32.mrf.mxu3  ;;  %v6598_v41 = vpop.f32.mrf.mxu1 }
 0x3e0   : > { %v6620_v22 = vpop.f32.mrf.mxu2  ;;  %v6577_v57 = vpop.f32.mrf.mxu0 }
 0x3e1   : > { %v6642_v51 = vpop.f32.mrf.mxu3  ;;  %v6599_v0 = vpop.f32.mrf.mxu1  ;;  %v6578_v2 = vadd.f32 %v6577_v57, %v6556_v1 }
 0x3e3   : > { %v6600_v42 = vadd.f32 %v6599_v0, %v6578_v2 }
 0x3e8   : > { %v6621_v6 = vpop.f32.mrf.mxu2  ;;  %v6580_v9 = vpop.f32.mrf.mxu0 }
 0x3e9   : > { %v6643_v8 = vpop.f32.mrf.mxu3  ;;  %v6602_v20 = vpop.f32.mrf.mxu1  ;;  %v6581_v43 = vadd.f32 %v6580_v9, %v6559_v24  ;;  %v6622_v45 = vadd.f32 %v6621_v6, %v6600_v42 }
 0x3eb   : > { %v6603_v13 = vadd.f32 %v6602_v20, %v6581_v43  ;;  %v6644_v61 = vadd.f32 %v6643_v8, %v6622_v45 }
 0x3ed   : > { %v6662_v12 = vrot.slane %v6644_v61, 6 }
 0x3f0   : > { %v6624_v31 = vpop.f32.mrf.mxu2  ;;  %v6582_v37 = vpop.f32.mrf.mxu0 }
 0x3f1   : > { %v6646_v55 = vpop.f32.mrf.mxu3  ;;  %v6625_v36 = vadd.f32 %v6624_v31, %v6603_v13  ;;  %v6604_v38 = vpop.f32.mrf.mxu1  ;;  %v6583_v62 = vadd.f32 %v6582_v37, %v6561_v48 }
 0x3f3   : > { %v6647_v52 = vadd.f32 %v6646_v55, %v6625_v36  ;;  %v6605_v59 = vadd.f32 %v6604_v38, %v6583_v62 }
 0x3f5   : > { %v6663_v14 = vrot.slane %v6647_v52, 6 }
 0x3f7   : > { %v6664_v27 = vsel %vm3120_vm2, %v6662_v12, %v6663_v14 }
 0x3f8   : > { %v6672_v19 = vadd.f32 %v6664_v27, %v13033_v49  ;;  %v6626_v4 = vpop.f32.mrf.mxu2  ;;  %v6585_v11 = vpop.f32.mrf.mxu0 }
 0x3f9   : > { %v6648_v47 = vpop.f32.mrf.mxu3  ;;  %v6627_v10 = vadd.f32 %v6626_v4, %v6605_v59  ;;  %v6607_v26 = vpop.f32.mrf.mxu1  ;;  %v6586_v23 = vadd.f32 %v6585_v11, %v6564_v5 }
 0x3fa   : > { %v6685_v18 = vadd.f32 %v10789_v56, %v6672_v19 }
 0x3fb   : > { %v6649_v54 = vadd.f32 %v6648_v47, %v6627_v10  ;;  %v6608_v50 = vadd.f32 %v6607_v26, %v6586_v23 }
 0x3fc   : > { %6688 = vst [vmem:[%s170_s4] sm:$0xff] %v6685_v18 }
 0x3fd   : > { %v6665_v15 = vrot.slane %v6649_v54, 6 }
 0x3ff   : > { %v6666_v60 = vsel %vm3120_vm2, %v6663_v14, %v6665_v15 }
 0x400   : > { %v6673_v49 = vadd.f32 %v6666_v60, %v13037_v40  ;;  %v6629_v32 = vpop.f32.mrf.mxu2  ;;  %v6587_v34 = vpop.f32.mrf.mxu0 }
 0x401   : > { %v6651_v7 = vpop.f32.mrf.mxu3  ;;  %v6630_v33 = vadd.f32 %v6629_v32, %v6608_v50  ;;  %v6609_v35 = vpop.f32.mrf.mxu1 }
 0x402   : > { %v6686_v53 = vadd.f32 %v10789_v56, %v6673_v49 }
 0x403   : > { %v6652_v25 = vadd.f32 %v6651_v7, %v6630_v33 }
 0x404   : > { %6689 = vst [vmem:[%s170_s4 + $0x8] sm:$0xff] %v6686_v53 }
 0x405   : > { %v6667_v29 = vrot.slane %v6652_v25, 6 }
 0x407   : > { %v6668_v30 = vsel %vm3120_vm2, %v6665_v15, %v6667_v29 }
 0x408   : > { %v6674_v16 = vadd.f32 %v6668_v30, %v13041_v46  ;;  %v6631_v41 = vpop.f32.mrf.mxu2 }
 0x409   : > { %v6653_v58 = vpop.f32.mrf.mxu3 }
 0x40a   : > { %v6687_v22 = vadd.f32 %v10789_v56, %v6674_v16 }
 0x40c   : > { %6690 = vst [vmem:[%s170_s4 + $0x10] sm:$0xff] %v6687_v22 }
 0x40d PF: > { %s13_s12 = sadd.s32 1, %s10796_s12  }
 0x40e   : > { %p10_p4 = scmp.ge.s32.totalorder %s13_s12, 4  }
 0x410   :  { %12 = sbr.rel (!%p10_p4) target bundleno = 1 (0x1), region = 70 }

// kernel: _lambda_.6
= control target key start
LH: loop header
LB: loop body
LE: loop exit
PB: predicated region body
PF: predicated region fallthrough
CT: control target
= control target key end

     0   :  { %s6944_s12 = smov 0   ;;  %s8546_s0 = inlined_call_operand.vmem [shape: bf16[2,110,512], index: 0, kind: input, shape index: {}]   ;;  %s8547_s1 = inlined_call_operand.vmem [shape: bf16[9,512,128], index: 1, kind: input, shape index: {}]   ;;  %s8548_s2 = inlined_call_operand.vmem [shape: f32[1,128], index: 2, kind: input, shape index: {}]   ;;  %s8549_s3 = inlined_call_operand.vmem [shape: f32[2,80,128], index: 3, kind: output, shape index: {}]  }
   0x1 LB: > { %s4804_s13 = sadd.s32 4294967295, %s6922_s12   ;;  %p4808_p0 = scmp.ge.s32.totalorder %s6922_s12, 1  ;;  %s6922_s12 = sphi %s6944_s12, %s13_s12  }
   0x2   : > { %p137_p1 = scmp.lt.s32.totalorder %s6922_s12, 3 }
   0x4   : > { %p138_p2 = pnand %p4808_p0, %p137_p1 }
   0x5   : > { %p161_p3 = scmp.lt.s32.totalorder (!%p138_p2), %s4804_s13, 1 }
   0x6   : > { %141 = sbr.rel (%p138_p2) target bundleno = 1181 (0x49d), region = 32 }
   0xb   : > { %v6624_v0 = vld [vmem:[%s8547_s1 + $0x38] sm:$0xff]  ;;  %v6623_v4 = vld [vmem:[%s8547_s1 + $0x30] sm:$0xff]  ;;  %v6622_v8 = vld [vmem:[%s8547_s1 + $0x28] sm:$0xff]  ;;  %s8551_s13 = smov (!%p161_p3, %s4804_s13), 1  ;;  %vm1207_vm0 = vcmask 1046528   ;;  %vm1701_vm1 = vcmask 1045504  }
   0xc   : > { %v6632_v1 = vld [vmem:[%s8547_s1 + $0x78] sm:$0xff]  ;;  %595 = vmatpush.bf16.msra.mxu0 %v6624_v0  ;;  %v6631_v5 = vld [vmem:[%s8547_s1 + $0x70] sm:$0xff]  ;;  %v6630_v9 = vld [vmem:[%s8547_s1 + $0x68] sm:$0xff]  ;;  %s6905_s6 = smul.u32 224, %s8551_s13  ;;  %vm2688_vm2 = vcmask 1044480   ;;  %vm3182_vm3 = vcmask 1043456  }
   0xd   : > { %v6640_v2 = vld [vmem:[%s8547_s1 + $0xb8] sm:$0xff]  ;;  %635 = vmatpush.bf16.msra.mxu1 %v6632_v1  ;;  %v6639_v6 = vld [vmem:[%s8547_s1 + $0xb0] sm:$0xff]  ;;  %v6638_v10 = vld [vmem:[%s8547_s1 + $0xa8] sm:$0xff]  ;;  %vm4169_vm4 = vcmask 1042432   ;;  %vm4663_vm5 = vcmask 1041408   ;;  %s6906_s22 = smul.u32 80, %s8551_s13 }
   0xe   : > { %v6648_v3 = vld [vmem:[%s8547_s1 + $0xf8] sm:$0xff]  ;;  %675 = vmatpush.bf16.msra.mxu2 %v6640_v2  ;;  %v6647_v7 = vld [vmem:[%s8547_s1 + $0xf0] sm:$0xff]  ;;  %v6646_v11 = vld [vmem:[%s8547_s1 + $0xe8] sm:$0xff]  ;;  %s7040_s19 = scalar_lea.vmem %s8546_s0, %s6905_s6 }
   0xf   : > { %715 = vmatpush.bf16.msra.mxu3 %v6648_v3  ;;  %v6621_v12 = vld [vmem:[%s8547_s1 + $0x20] sm:$0xff]  ;;  %v6620_v16 = vld [vmem:[%s8547_s1 + $0x18] sm:$0xff]  ;;  %v6619_v20 = vld [vmem:[%s8547_s1 + $0x10] sm:$0xff]  ;;  %s8503_s27 = scalar_lea.vmem %s8549_s3, %s6906_s22 }
  0x10   : > { %596 = vmatpush.bf16.msra.mxu0 %v6623_v4  ;;  %v6629_v13 = vld [vmem:[%s8547_s1 + $0x60] sm:$0xff]  ;;  %v6628_v17 = vld [vmem:[%s8547_s1 + $0x58] sm:$0xff]  ;;  %v6627_v21 = vld [vmem:[%s8547_s1 + $0x50] sm:$0xff] }
  0x11   : > { %636 = vmatpush.bf16.msra.mxu1 %v6631_v5  ;;  %v6637_v14 = vld [vmem:[%s8547_s1 + $0xa0] sm:$0xff]  ;;  %v6636_v18 = vld [vmem:[%s8547_s1 + $0x98] sm:$0xff]  ;;  %v6635_v22 = vld [vmem:[%s8547_s1 + $0x90] sm:$0xff] }
  0x12   : > { %676 = vmatpush.bf16.msra.mxu2 %v6639_v6  ;;  %v6645_v15 = vld [vmem:[%s8547_s1 + $0xe0] sm:$0xff]  ;;  %v6644_v19 = vld [vmem:[%s8547_s1 + $0xd8] sm:$0xff]  ;;  %v6643_v23 = vld [vmem:[%s8547_s1 + $0xd0] sm:$0xff] }
  0x13   : > { %716 = vmatpush.bf16.msra.mxu3 %v6647_v7  ;;  %v6618_v24 = vld [vmem:[%s8547_s1 + $0x8] sm:$0xff]  ;;  %v6617_v28 = vld [vmem:[%s8547_s1] sm:$0xff]  ;;  %v6591_v33 = vld [vmem:[%s7040_s19 + $0xc] sm:$0xf0] }
  0x14   : > { %597 = vmatpush.bf16.msra.mxu0 %v6622_v8  ;;  %v6626_v25 = vld [vmem:[%s8547_s1 + $0x48] sm:$0xff]  ;;  %v6625_v29 = vld [vmem:[%s8547_s1 + $0x40] sm:$0xff]  ;;  %v4815_v35 = vld [vmem:[%s7040_s19 + $0x10] sm:$0xf0] }
  0x15   : > { %637 = vmatpush.bf16.msra.mxu1 %v6630_v9  ;;  %v6634_v26 = vld [vmem:[%s8547_s1 + $0x88] sm:$0xff]  ;;  %v6633_v30 = vld [vmem:[%s8547_s1 + $0x80] sm:$0xff]  ;;  %v6592_v37 = vld [vmem:[%s7040_s19 + $0x14] sm:$0xf0] }
  0x16   : > { %677 = vmatpush.bf16.msra.mxu2 %v6638_v10  ;;  %v6642_v27 = vld [vmem:[%s8547_s1 + $0xc8] sm:$0xff]  ;;  %v6641_v31 = vld [vmem:[%s8547_s1 + $0xc0] sm:$0xff]  ;;  %v4823_v39 = vld [vmem:[%s7040_s19 + $0x18] sm:$0xf0] }
  0x17   : > { %717 = vmatpush.bf16.msra.mxu3 %v6646_v11  ;;  %v4813_v32 = vld [vmem:[%s7040_s19] sm:$0xf]  ;;  %v6589_v34 = vld [vmem:[%s7040_s19 + $0x4] sm:$0xf]  ;;  %v4821_v36 = vld [vmem:[%s7040_s19 + $0x8] sm:$0xf] }
  0x18   : > { %598 = vmatpush.bf16.msra.mxu0 %v6621_v12  ;;  %v6590_v38 = vld [vmem:[%s7040_s19 + $0xc] sm:$0xf]  ;;  %v6672_v40 = vld [vmem:[%s8547_s1 + $0x1b8] sm:$0xff]  ;;  %v7074_v42 = vor.u32 %v6591_v33, %v4813_v32  ;;  %v7076_v43 = vor.u32 %v6589_v34, %v4815_v35  ;;  %v7078_v44 = vor.u32 %v6592_v37, %v4821_v36  ;;  %v6671_v48 = vld [vmem:[%s8547_s1 + $0x1b0] sm:$0xff] }
  0x19   : > { %638 = vmatpush.bf16.msra.mxu1 %v6629_v13  ;;  %v6680_v41 = vld [vmem:[%s8547_s1 + $0x1f8] sm:$0xff]  ;;  %v7080_v45 = vor.u32 %v6590_v38, %v4823_v39  ;;  %v6679_v49 = vld [vmem:[%s8547_s1 + $0x1f0] sm:$0xff]  ;;  %v6670_v52 = vld [vmem:[%s8547_s1 + $0x1a8] sm:$0xff] }
  0x1a   : > { %678 = vmatpush.bf16.msra.mxu2 %v6637_v14  ;;  %v6656_v46 = vld [vmem:[%s8547_s1 + $0x138] sm:$0xff]  ;;  %v6655_v50 = vld [vmem:[%s8547_s1 + $0x130] sm:$0xff]  ;;  %v6678_v53 = vld [vmem:[%s8547_s1 + $0x1e8] sm:$0xff] }
  0x1b   : > { %718 = vmatpush.bf16.msra.mxu3 %v6645_v15  ;;  %v6664_v47 = vld [vmem:[%s8547_s1 + $0x178] sm:$0xff]  ;;  %v6663_v51 = vld [vmem:[%s8547_s1 + $0x170] sm:$0xff]  ;;  %v6654_v54 = vld [vmem:[%s8547_s1 + $0x128] sm:$0xff] }
  0x1c   : > { %599 = vmatpush.bf16.msra.mxu0 %v6620_v16  ;;  %v6662_v55 = vld [vmem:[%s8547_s1 + $0x168] sm:$0xff]  ;;  %v4829_v56 = vld [vmem:[%s7040_s19 + $0x20] sm:$0xf]  ;;  %v6595_v59 = vld [vmem:[%s7040_s19 + $0x2c] sm:$0xf0] }
  0x1d   : > { %639 = vmatpush.bf16.msra.mxu1 %v6628_v17  ;;  %v6669_v57 = vld [vmem:[%s8547_s1 + $0x1a0] sm:$0xff]  ;;  %v4831_v61 = vld [vmem:[%s7040_s19 + $0x30] sm:$0xf0]  ;;  %v4837_v62 = vld [vmem:[%s7040_s19 + $0x28] sm:$0xf]  ;;  %v7136_v4 = vor.u32 %v6595_v59, %v4829_v56 }
  0x1e   : > { %679 = vmatpush.bf16.msra.mxu2 %v6636_v18  ;;  %v6677_v58 = vld [vmem:[%s8547_s1 + $0x1e0] sm:$0xff]  ;;  %v6596_v63 = vld [vmem:[%s7040_s19 + $0x34] sm:$0xf0]  ;;  %v6594_v0 = vld [vmem:[%s7040_s19 + $0x2c] sm:$0xf] }
  0x1f   : > { %719 = vmatpush.bf16.msra.mxu3 %v6644_v19  ;;  %v6593_v60 = vld [vmem:[%s7040_s19 + $0x24] sm:$0xf]  ;;  %v4839_v1 = vld [vmem:[%s7040_s19 + $0x38] sm:$0xf0]  ;;  %v7140_v6 = vor.u32 %v6596_v63, %v4837_v62  ;;  %v4845_v12 = vld [vmem:[%s7040_s19 + $0x40] sm:$0xf] }
  0x20   : > { %600 = vmatpush.bf16.msra.mxu0 %v6619_v20  ;;  %v6653_v2 = vld [vmem:[%s8547_s1 + $0x120] sm:$0xff]  ;;  %v7138_v5 = vor.u32 %v6593_v60, %v4831_v61  ;;  %v7142_v7 = vor.u32 %v6594_v0, %v4839_v1  ;;  %v6668_v8 = vld [vmem:[%s8547_s1 + $0x198] sm:$0xff]  ;;  %v6599_v13 = vld [vmem:[%s7040_s19 + $0x4c] sm:$0xf0] }
  0x21   : > { %640 = vmatpush.bf16.msra.mxu1 %v6627_v21  ;;  %v6661_v3 = vld [vmem:[%s8547_s1 + $0x160] sm:$0xff]  ;;  %v6676_v9 = vld [vmem:[%s8547_s1 + $0x1d8] sm:$0xff]  ;;  %v4847_v15 = vld [vmem:[%s7040_s19 + $0x50] sm:$0xf0]  ;;  %v7168_v20 = vor.u32 %v6599_v13, %v4845_v12 }
  0x22   : > { %680 = vmatpush.bf16.msra.mxu2 %v6635_v22  ;;  %v6652_v10 = vld [vmem:[%s8547_s1 + $0x118] sm:$0xff]  ;;  %v6597_v14 = vld [vmem:[%s7040_s19 + $0x44] sm:$0xf]  ;;  %v4853_v16 = vld [vmem:[%s7040_s19 + $0x48] sm:$0xf] }
  0x23   : > { %720 = vmatpush.bf16.msra.mxu3 %v6643_v23  ;;  %v6660_v11 = vld [vmem:[%s8547_s1 + $0x158] sm:$0xff]  ;;  %v6598_v18 = vld [vmem:[%s7040_s19 + $0x4c] sm:$0xf]  ;;  %v7170_v21 = vor.u32 %v6597_v14, %v4847_v15  ;;  %v4869_v32 = vld [vmem:[%s7040_s19 + $0x68] sm:$0xf] }
  0x24   : > { %601 = vmatpush.bf16.msra.mxu0 %v6618_v24  ;;  %v6600_v17 = vld [vmem:[%s7040_s19 + $0x54] sm:$0xf0]  ;;  %v4855_v19 = vld [vmem:[%s7040_s19 + $0x58] sm:$0xf0]  ;;  %v6667_v24 = vld [vmem:[%s8547_s1 + $0x190] sm:$0xff] }
  0x25   : > { %641 = vmatpush.bf16.msra.mxu1 %v6626_v25  ;;  %v7172_v22 = vor.u32 %v6600_v17, %v4853_v16  ;;  %v7174_v23 = vor.u32 %v6598_v18, %v4855_v19  ;;  %v6675_v25 = vld [vmem:[%s8547_s1 + $0x1d0] sm:$0xff]  ;;  %v6604_v33 = vld [vmem:[%s7040_s19 + $0x74] sm:$0xf0]  ;;  %v6602_v34 = vld [vmem:[%s7040_s19 + $0x6c] sm:$0xf] }
  0x26   : > { %681 = vmatpush.bf16.msra.mxu2 %v6634_v26  ;;  %v6651_v26 = vld [vmem:[%s8547_s1 + $0x110] sm:$0xff]  ;;  %v4871_v35 = vld [vmem:[%s7040_s19 + $0x78] sm:$0xf0]  ;;  %v7204_v38 = vor.u32 %v6604_v33, %v4869_v32  ;;  %v6665_v60 = vld [vmem:[%s8547_s1 + $0x180] sm:$0xff] }
  0x27   : > { %721 = vmatpush.bf16.msra.mxu3 %v6642_v27  ;;  %v6659_v27 = vld [vmem:[%s8547_s1 + $0x150] sm:$0xff]  ;;  %v7206_v39 = vor.u32 %v6602_v34, %v4871_v35  ;;  %v6673_v61 = vld [vmem:[%s8547_s1 + $0x1c0] sm:$0xff]  ;;  %v6704_v16 = vld [vmem:[%s8547_s1 + $0x2b8] sm:$0xff] }
  0x28   : > { %602 = vmatpush.bf16.msra.mxu0 %v6617_v28  ;;  %v4861_v28 = vld [vmem:[%s7040_s19 + $0x60] sm:$0xf]  ;;  %v6611_v1 = vld [vmem:[%s7040_s19 + $0xac] sm:$0xf0]  ;;  %v6712_v17 = vld [vmem:[%s8547_s1 + $0x2f8] sm:$0xff] }
  0x29   : > { %642 = vmatpush.bf16.msra.mxu1 %v6625_v29  ;;  %v6603_v29 = vld [vmem:[%s7040_s19 + $0x6c] sm:$0xf0]  ;;  %v6649_v62 = vld [vmem:[%s8547_s1 + $0x100] sm:$0xff]  ;;  %v6688_v18 = vld [vmem:[%s8547_s1 + $0x238] sm:$0xff] }
  0x2a   : > { %682 = vmatpush.bf16.msra.mxu2 %v6633_v30  ;;  %v6601_v30 = vld [vmem:[%s7040_s19 + $0x64] sm:$0xf]  ;;  %v7200_v36 = vor.u32 %v6603_v29, %v4861_v28  ;;  %v4893_v0 = vld [vmem:[%s7040_s19 + $0xa0] sm:$0xf]  ;;  %v6696_v19 = vld [vmem:[%s8547_s1 + $0x278] sm:$0xff] }
  0x2b   : > { %722 = vmatpush.bf16.msra.mxu3 %v6641_v31  ;;  %603 = vmatmul.bf16.vlgmr.msra.gmra.mxu0 %v7074_v42  ;;  %v4863_v31 = vld [vmem:[%s7040_s19 + $0x70] sm:$0xf0]  ;;  %v6657_v63 = vld [vmem:[%s8547_s1 + $0x140] sm:$0xff]  ;;  %v7264_v12 = vor.u32 %v6611_v1, %v4893_v0  ;;  %v4917_v28 = vld [vmem:[%s7040_s19 + $0xc8] sm:$0xf] }
  0x2c   : > { %643 = vmatmul.bf16.vlgmr.msra.gmra.mxu1 %v7076_v43  ;;  %1022 = vmatpush.bf16.msrb.mxu0 %v6656_v46  ;;  %v7202_v37 = vor.u32 %v6601_v30, %v4863_v31  ;;  %v6650_v46 = vld [vmem:[%s8547_s1 + $0x108] sm:$0xff]  ;;  %v6616_v29 = vld [vmem:[%s7040_s19 + $0xd4] sm:$0x70]  ;;  %v4919_v31 = vld [vmem:[%s7040_s19 + $0xd8] sm:$0x70] }
  0x2d   : > { %683 = vmatmul.bf16.vlgmr.msra.gmra.mxu2 %v7078_v44  ;;  %1063 = vmatpush.bf16.msrb.mxu1 %v6664_v47  ;;  %v6658_v47 = vld [vmem:[%s8547_s1 + $0x148] sm:$0xff]  ;;  %v7300_v34 = vor.u32 %v6616_v29, %v4917_v28  ;;  %v6692_v28 = vld [vmem:[%s8547_s1 + $0x258] sm:$0xff] }
  0x2e   : > { %1104 = vmatpush.bf16.msrb.mxu2 %v6672_v40  ;;  %723 = vmatmul.bf16.vlgmr.msra.gmra.mxu3 %v7080_v45  ;;  %v6666_v40 = vld [vmem:[%s8547_s1 + $0x188] sm:$0xff] }
  0x2f   : > { %1145 = vmatpush.bf16.msrb.mxu3 %v6680_v41  ;;  %v6674_v41 = vld [vmem:[%s8547_s1 + $0x1c8] sm:$0xff] }
  0x30   : > { %1023 = vmatpush.bf16.msrb.mxu0 %v6655_v50  ;;  %v6605_v50 = vld [vmem:[%s7040_s19 + $0x84] sm:$0xf]  ;;  %v6614_v30 = vld [vmem:[%s7040_s19 + $0xcc] sm:$0xf] }
  0x31   : > { %1064 = vmatpush.bf16.msrb.mxu1 %v6663_v51  ;;  %v4879_v51 = vld [vmem:[%s7040_s19 + $0x90] sm:$0xf0]  ;;  %v7302_v35 = vor.u32 %v6614_v30, %v4919_v31 }
  0x32   : > { %1105 = vmatpush.bf16.msrb.mxu2 %v6671_v48  ;;  %v4877_v48 = vld [vmem:[%s7040_s19 + $0x80] sm:$0xf] }
  0x33   : > { %1146 = vmatpush.bf16.msrb.mxu3 %v6679_v49  ;;  %v6607_v49 = vld [vmem:[%s7040_s19 + $0x8c] sm:$0xf0] }
  0x34   : > { %1024 = vmatpush.bf16.msrb.mxu0 %v6654_v54  ;;  %v6606_v54 = vld [vmem:[%s7040_s19 + $0x8c] sm:$0xf]  ;;  %v7232_v56 = vor.u32 %v6607_v49, %v4877_v48 }
  0x35   : > { %1065 = vmatpush.bf16.msrb.mxu1 %v6662_v55  ;;  %v4887_v55 = vld [vmem:[%s7040_s19 + $0x98] sm:$0xf0]  ;;  %v6702_v48 = vld [vmem:[%s8547_s1 + $0x2a8] sm:$0xff] }
  0x36   : > { %1106 = vmatpush.bf16.msrb.mxu2 %v6670_v52  ;;  %v4885_v52 = vld [vmem:[%s7040_s19 + $0x88] sm:$0xf]  ;;  %v7238_v59 = vor.u32 %v6606_v54, %v4887_v55 }
  0x37   : > { %1147 = vmatpush.bf16.msrb.mxu3 %v6678_v53  ;;  %v6608_v53 = vld [vmem:[%s7040_s19 + $0x94] sm:$0xf0]  ;;  %v6710_v49 = vld [vmem:[%s8547_s1 + $0x2e8] sm:$0xff] }
  0x38   : > { %1025 = vmatpush.bf16.msrb.mxu0 %v6653_v2  ;;  %v6609_v2 = vld [vmem:[%s7040_s19 + $0xa4] sm:$0xf] }
  0x39   : > { %1066 = vmatpush.bf16.msrb.mxu1 %v6661_v3  ;;  %v4895_v3 = vld [vmem:[%s7040_s19 + $0xb0] sm:$0xf0] }
  0x3a   : > { %1107 = vmatpush.bf16.msrb.mxu2 %v6669_v57  ;;  %v7234_v57 = vor.u32 %v6605_v50, %v4879_v51  ;;  %v7266_v13 = vor.u32 %v6609_v2, %v4895_v3  ;;  %v6686_v50 = vld [vmem:[%s8547_s1 + $0x228] sm:$0xff] }
  0x3b   : > { %1148 = vmatpush.bf16.msrb.mxu3 %v6677_v58  ;;  %608 = vmatmul.bf16.gmra.mxu0 %v7136_v4  ;;  %v7236_v58 = vor.u32 %v6608_v53, %v4885_v52  ;;  %v6694_v51 = vld [vmem:[%s8547_s1 + $0x268] sm:$0xff]  ;;  %v6701_v52 = vld [vmem:[%s8547_s1 + $0x2a0] sm:$0xff] }
  0x3c   : > { %648 = vmatmul.bf16.gmra.mxu1 %v7138_v5  ;;  %1026 = vmatpush.bf16.msrb.mxu0 %v6652_v10  ;;  %v6610_v10 = vld [vmem:[%s7040_s19 + $0xac] sm:$0xf] }
  0x3d   : > { %688 = vmatmul.bf16.gmra.mxu2 %v7140_v6  ;;  %1067 = vmatpush.bf16.msrb.mxu1 %v6660_v11  ;;  %v4903_v11 = vld [vmem:[%s7040_s19 + $0xb8] sm:$0xf0] }
  0x3e   : > { %728 = vmatmul.bf16.gmra.mxu3 %v7142_v7  ;;  %1108 = vmatpush.bf16.msrb.mxu2 %v6668_v8  ;;  %v4901_v8 = vld [vmem:[%s7040_s19 + $0xa8] sm:$0xf]  ;;  %v7270_v15 = vor.u32 %v6610_v10, %v4903_v11  ;;  %v6700_v10 = vld [vmem:[%s8547_s1 + $0x298] sm:$0xff] }
  0x3f   : > { %1149 = vmatpush.bf16.msrb.mxu3 %v6676_v9  ;;  %v6612_v9 = vld [vmem:[%s7040_s19 + $0xb4] sm:$0xf0] }
  0x40   : > { %1027 = vmatpush.bf16.msrb.mxu0 %v6651_v26  ;;  %v7268_v14 = vor.u32 %v6612_v9, %v4901_v8  ;;  %v6613_v26 = vld [vmem:[%s7040_s19 + $0xc4] sm:$0xf]  ;;  %v6708_v11 = vld [vmem:[%s8547_s1 + $0x2d8] sm:$0xff] }
  0x41   : > { %1068 = vmatpush.bf16.msrb.mxu1 %v6659_v27  ;;  %v4911_v27 = vld [vmem:[%s7040_s19 + $0xd0] sm:$0x70] }
  0x42   : > { %1109 = vmatpush.bf16.msrb.mxu2 %v6667_v24  ;;  %v4909_v24 = vld [vmem:[%s7040_s19 + $0xc0] sm:$0xf]  ;;  %v7298_v33 = vor.u32 %v6613_v26, %v4911_v27  ;;  %v6684_v27 = vld [vmem:[%s8547_s1 + $0x218] sm:$0xff] }
  0x43   : > { %1150 = vmatpush.bf16.msrb.mxu3 %v6675_v25  ;;  %v6615_v25 = vld [vmem:[%s7040_s19 + $0xcc] sm:$0x70] }
  0x44   : > { %1028 = vmatpush.bf16.msrb.mxu0 %v6650_v46  ;;  %v7296_v32 = vor.u32 %v6615_v25, %v4909_v24  ;;  %v6687_v46 = vld [vmem:[%s8547_s1 + $0x230] sm:$0xff] }
  0x45   : > { %1069 = vmatpush.bf16.msrb.mxu1 %v6658_v47  ;;  %v6695_v47 = vld [vmem:[%s8547_s1 + $0x270] sm:$0xff] }
  0x46   : > { %1110 = vmatpush.bf16.msrb.mxu2 %v6666_v40  ;;  %v6703_v40 = vld [vmem:[%s8547_s1 + $0x2b0] sm:$0xff] }
  0x47   : > { %1151 = vmatpush.bf16.msrb.mxu3 %v6674_v41  ;;  %v6711_v41 = vld [vmem:[%s8547_s1 + $0x2f0] sm:$0xff] }
  0x48   : > { %1029 = vmatpush.bf16.msrb.mxu0 %v6649_v62  ;;  %v6693_v62 = vld [vmem:[%s8547_s1 + $0x260] sm:$0xff] }
  0x49   : > { %1070 = vmatpush.bf16.msrb.mxu1 %v6657_v63 }
  0x4a   : > { %1111 = vmatpush.bf16.msrb.mxu2 %v6665_v60  ;;  %v6709_v60 = vld [vmem:[%s8547_s1 + $0x2e0] sm:$0xff] }
  0x4b   : > { %613 = vmatmul.bf16.gmra.mxu0 %v7168_v20  ;;  %1152 = vmatpush.bf16.msrb.mxu3 %v6673_v61  ;;  %v6685_v61 = vld [vmem:[%s8547_s1 + $0x220] sm:$0xff] }
  0x4c   : > { %653 = vmatmul.bf16.gmra.mxu1 %v7170_v21  ;;  %1516 = vmatpush.bf16.msra.mxu0 %v6688_v18 }
  0x4d   : > { %693 = vmatmul.bf16.gmra.mxu2 %v7172_v22  ;;  %1557 = vmatpush.bf16.msra.mxu1 %v6696_v19 }
  0x4e   : > { %733 = vmatmul.bf16.gmra.mxu3 %v7174_v23  ;;  %1598 = vmatpush.bf16.msra.mxu2 %v6704_v16 }
  0x4f   : > { %1639 = vmatpush.bf16.msra.mxu3 %v6712_v17 }
  0x50   : > { %1517 = vmatpush.bf16.msra.mxu0 %v6687_v46 }
  0x51   : > { %1558 = vmatpush.bf16.msra.mxu1 %v6695_v47 }
  0x52   : > { %1599 = vmatpush.bf16.msra.mxu2 %v6703_v40 }
  0x53   : > { %1640 = vmatpush.bf16.msra.mxu3 %v6711_v41 }
  0x54   : > { %1518 = vmatpush.bf16.msra.mxu0 %v6686_v50  ;;  %v6683_v50 = vld [vmem:[%s8547_s1 + $0x210] sm:$0xff] }
  0x55   : > { %1559 = vmatpush.bf16.msra.mxu1 %v6694_v51  ;;  %v6691_v51 = vld [vmem:[%s8547_s1 + $0x250] sm:$0xff] }
  0x56   : > { %1600 = vmatpush.bf16.msra.mxu2 %v6702_v48  ;;  %v6699_v48 = vld [vmem:[%s8547_s1 + $0x290] sm:$0xff] }
  0x57   : > { %1641 = vmatpush.bf16.msra.mxu3 %v6710_v49  ;;  %v6707_v49 = vld [vmem:[%s8547_s1 + $0x2d0] sm:$0xff] }
  0x58   : > { %1519 = vmatpush.bf16.msra.mxu0 %v6685_v61 }
  0x59   : > { %1560 = vmatpush.bf16.msra.mxu1 %v6693_v62 }
  0x5a   : > { %1601 = vmatpush.bf16.msra.mxu2 %v6701_v52 }
  0x5b   : > { %618 = vmatmul.bf16.gmra.mxu0 %v7200_v36  ;;  %1642 = vmatpush.bf16.msra.mxu3 %v6709_v60 }
  0x5c   : > { %658 = vmatmul.bf16.gmra.mxu1 %v7202_v37  ;;  %1520 = vmatpush.bf16.msra.mxu0 %v6684_v27 }
  0x5d   : > { %698 = vmatmul.bf16.gmra.mxu2 %v7204_v38  ;;  %1561 = vmatpush.bf16.msra.mxu1 %v6692_v28 }
  0x5e   : > { %738 = vmatmul.bf16.gmra.mxu3 %v7206_v39  ;;  %1602 = vmatpush.bf16.msra.mxu2 %v6700_v10 }
  0x5f   : > { %1643 = vmatpush.bf16.msra.mxu3 %v6708_v11  ;;  %v6698_v11 = vld [vmem:[%s8547_s1 + $0x288] sm:$0xff] }
  0x60   : > { %1521 = vmatpush.bf16.msra.mxu0 %v6683_v50 }
  0x61   : > { %1562 = vmatpush.bf16.msra.mxu1 %v6691_v51  ;;  %v6681_v51 = vld [vmem:[%s8547_s1 + $0x200] sm:$0xff] }
  0x62   : > { %1603 = vmatpush.bf16.msra.mxu2 %v6699_v48 }
  0x63   : > { %1644 = vmatpush.bf16.msra.mxu3 %v6707_v49 }
  0x66   : > { %1604 = vmatpush.bf16.msra.mxu2 %v6698_v11 }
  0x6b   : > { %623 = vmatmul.bf16.gmra.mxu0 %v7232_v56 }
  0x6c   : > { %663 = vmatmul.bf16.gmra.mxu1 %v7234_v57 }
  0x6d   : > { %703 = vmatmul.bf16.gmra.mxu2 %v7236_v58 }
  0x6e   : > { %743 = vmatmul.bf16.gmra.mxu3 %v7238_v59 }
  0x7b   : > { %628 = vmatmul.bf16.gmra.mxu0 %v7264_v12 }
  0x7c   : > { %668 = vmatmul.bf16.gmra.mxu1 %v7266_v13 }
  0x7d   : > { %708 = vmatmul.bf16.gmra.mxu2 %v7268_v14 }
  0x7e   : > { %748 = vmatmul.bf16.gmra.mxu3 %v7270_v15 }
  0x8b   : > { %631 = vmatmul.bf16.gmra.mxu0 %v7296_v32 }
  0x8c   : > { %671 = vmatmul.bf16.gmra.mxu1 %v7298_v33 }
  0x8d   : > { %711 = vmatmul.bf16.gmra.mxu2 %v7300_v34 }
  0x8e   : > { %751 = vmatmul.bf16.gmra.mxu3 %v7302_v35 }
  0x9b   : > { %1030 = vmatmul.bf16.vlgmr.msrb.gmra.mxu0 %v7074_v42 }
  0x9c   : > { %1071 = vmatmul.bf16.vlgmr.msrb.gmra.mxu1 %v7076_v43 }
  0x9d   : > { %1112 = vmatmul.bf16.vlgmr.msrb.gmra.mxu2 %v7078_v44 }
  0x9e   : > { %1153 = vmatmul.bf16.vlgmr.msrb.gmra.mxu3 %v7080_v45 }
  0xa8   : > { %v604_v53 = vpop.f32.mrf.mxu0 }
  0xa9   : > { %v644_v54 = vpop.f32.mrf.mxu1 }
  0xaa   : > { %v645_v55 = vadd.f32 %v644_v54, %v604_v53 }
  0xab   : > { %1035 = vmatmul.bf16.gmra.mxu0 %v7136_v4 }
  0xac   : > { %1076 = vmatmul.bf16.gmra.mxu1 %v7138_v5 }
  0xad   : > { %1117 = vmatmul.bf16.gmra.mxu2 %v7140_v6 }
  0xae   : > { %1158 = vmatmul.bf16.gmra.mxu3 %v7142_v7 }
  0xb0   : > { %v684_v63 = vpop.f32.mrf.mxu2  ;;  %v606_v2 = vpop.f32.mrf.mxu0 }
  0xb1   : > { %v724_v0 = vpop.f32.mrf.mxu3  ;;  %v685_v1 = vadd.f32 %v684_v63, %v645_v55  ;;  %v646_v3 = vpop.f32.mrf.mxu1 }
  0xb2   : > { %v647_v8 = vadd.f32 %v646_v3, %v606_v2 }
  0xb3   : > { %v7352_v9 = vadd.f32 %v724_v0, %v685_v1 }
  0xb8   : > { %v686_v16 = vpop.f32.mrf.mxu2  ;;  %v609_v19 = vpop.f32.mrf.mxu0 }
  0xb9   : > { %v726_v17 = vpop.f32.mrf.mxu3  ;;  %v687_v18 = vadd.f32 %v686_v16, %v647_v8  ;;  %v649_v24 = vpop.f32.mrf.mxu1  ;;  %v6706_v16 = vld [vmem:[%s8547_s1 + $0x2c8] sm:$0xff] }
  0xba   : > { %v650_v25 = vadd.f32 %v649_v24, %v609_v19  ;;  %1645 = vmatpush.bf16.msra.mxu3 %v6706_v16 }
  0xbb   : > { %v7360_v26 = vadd.f32 %v726_v17, %v687_v18  ;;  %1040 = vmatmul.bf16.gmra.mxu0 %v7168_v20  ;;  %v6682_v17 = vld [vmem:[%s8547_s1 + $0x208] sm:$0xff] }
  0xbc   : > { %1081 = vmatmul.bf16.gmra.mxu1 %v7170_v21  ;;  %v6690_v18 = vld [vmem:[%s8547_s1 + $0x248] sm:$0xff]  ;;  %1522 = vmatpush.bf16.msra.mxu0 %v6682_v17  ;;  %v6720_v17 = vld [vmem:[%s8547_s1 + $0x338] sm:$0xff] }
  0xbd   : > { %1122 = vmatmul.bf16.gmra.mxu2 %v7172_v22  ;;  %1563 = vmatpush.bf16.msra.mxu1 %v6690_v18  ;;  %v6728_v18 = vld [vmem:[%s8547_s1 + $0x378] sm:$0xff] }
  0xbe   : > { %1163 = vmatmul.bf16.gmra.mxu3 %v7174_v23 }
  0xc0   : > { %v689_v29 = vpop.f32.mrf.mxu2  ;;  %v611_v40 = vpop.f32.mrf.mxu0  ;;  %1523 = vmatpush.bf16.msra.mxu0 %v6681_v51  ;;  %v6719_v51 = vld [vmem:[%s8547_s1 + $0x330] sm:$0xff] }
  0xc1   : > { %v729_v30 = vpop.f32.mrf.mxu3  ;;  %v690_v31 = vadd.f32 %v689_v29, %v650_v25  ;;  %v651_v41 = vpop.f32.mrf.mxu1 }
  0xc2   : > { %v652_v46 = vadd.f32 %v651_v41, %v611_v40 }
  0xc3   : > { %v7372_v47 = vadd.f32 %v729_v30, %v690_v31  ;;  %v6697_v31 = vld [vmem:[%s8547_s1 + $0x280] sm:$0xff] }
  0xc4   : > { %1605 = vmatpush.bf16.msra.mxu2 %v6697_v31  ;;  %2010 = vmatpush.bf16.msrb.mxu0 %v6720_v17  ;;  %v6742_v17 = vld [vmem:[%s8547_s1 + $0x3e8] sm:$0xff] }
  0xc8   : > { %v691_v52 = vpop.f32.mrf.mxu2  ;;  %v614_v55 = vpop.f32.mrf.mxu0  ;;  %2011 = vmatpush.bf16.msrb.mxu0 %v6719_v51  ;;  %v6741_v51 = vld [vmem:[%s8547_s1 + $0x3e0] sm:$0xff] }
  0xc9   : > { %v731_v53 = vpop.f32.mrf.mxu3  ;;  %v692_v54 = vadd.f32 %v691_v52, %v652_v46  ;;  %v654_v60 = vpop.f32.mrf.mxu1  ;;  %v6705_v46 = vld [vmem:[%s8547_s1 + $0x2c0] sm:$0xff] }
  0xca   : > { %v655_v61 = vadd.f32 %v654_v60, %v614_v55  ;;  %v6689_v52 = vld [vmem:[%s8547_s1 + $0x240] sm:$0xff]  ;;  %1646 = vmatpush.bf16.msra.mxu3 %v6705_v46 }
  0xcb   : > { %v7386_v62 = vadd.f32 %v731_v53, %v692_v54  ;;  %1045 = vmatmul.bf16.gmra.mxu0 %v7200_v36  ;;  %1564 = vmatpush.bf16.msra.mxu1 %v6689_v52  ;;  %v6727_v52 = vld [vmem:[%s8547_s1 + $0x370] sm:$0xff] }
  0xcc   : > { %1086 = vmatmul.bf16.gmra.mxu1 %v7202_v37 }
  0xcd   : > { %1127 = vmatmul.bf16.gmra.mxu2 %v7204_v38 }
  0xce   : > { %1168 = vmatmul.bf16.gmra.mxu3 %v7206_v39 }
  0xcf   : > { %2051 = vmatpush.bf16.msrb.mxu1 %v6728_v18  ;;  %v6718_v18 = vld [vmem:[%s8547_s1 + $0x328] sm:$0xff] }
  0xd0   : > { %v694_v63 = vpop.f32.mrf.mxu2  ;;  %v616_v2 = vpop.f32.mrf.mxu0  ;;  %2012 = vmatpush.bf16.msrb.mxu0 %v6718_v18 }
  0xd1   : > { %v734_v0 = vpop.f32.mrf.mxu3  ;;  %v695_v1 = vadd.f32 %v694_v63, %v655_v61  ;;  %v656_v3 = vpop.f32.mrf.mxu1 }
  0xd2   : > { %v657_v8 = vadd.f32 %v656_v3, %v616_v2  ;;  %v6736_v3 = vld [vmem:[%s8547_s1 + $0x3b8] sm:$0xff] }
  0xd3   : > { %v7392_v10 = vadd.f32 %v734_v0, %v695_v1  ;;  %2092 = vmatpush.bf16.msrb.mxu2 %v6736_v3  ;;  %2052 = vmatpush.bf16.msrb.mxu1 %v6727_v52  ;;  %v6717_v52 = vld [vmem:[%s8547_s1 + $0x320] sm:$0xff] }
  0xd4   : > { %2013 = vmatpush.bf16.msrb.mxu0 %v6717_v52 }
  0xd8   : > { %v696_v19 = vpop.f32.mrf.mxu2  ;;  %v619_v27 = vpop.f32.mrf.mxu0 }
  0xd9   : > { %v736_v24 = vpop.f32.mrf.mxu3  ;;  %v697_v25 = vadd.f32 %v696_v19, %v657_v8  ;;  %v659_v28 = vpop.f32.mrf.mxu1  ;;  %v6744_v8 = vld [vmem:[%s8547_s1 + $0x3f8] sm:$0xff] }
  0xda   : > { %v660_v29 = vadd.f32 %v659_v28, %v619_v27  ;;  %2133 = vmatpush.bf16.msrb.mxu3 %v6744_v8 }
  0xdb   : > { %v7406_v30 = vadd.f32 %v736_v24, %v697_v25  ;;  %1050 = vmatmul.bf16.gmra.mxu0 %v7232_v56 }
  0xdc   : > { %1091 = vmatmul.bf16.gmra.mxu1 %v7234_v57 }
  0xdd   : > { %1132 = vmatmul.bf16.gmra.mxu2 %v7236_v58 }
  0xde   : > { %1173 = vmatmul.bf16.gmra.mxu3 %v7238_v59 }
  0xe0   : > { %v699_v40 = vpop.f32.mrf.mxu2  ;;  %v621_v49 = vpop.f32.mrf.mxu0 }
  0xe1   : > { %v739_v41 = vpop.f32.mrf.mxu3  ;;  %v700_v48 = vadd.f32 %v699_v40, %v660_v29  ;;  %v661_v50 = vpop.f32.mrf.mxu1 }
  0xe2   : > { %v662_v53 = vadd.f32 %v661_v50, %v621_v49  ;;  %v6743_v50 = vld [vmem:[%s8547_s1 + $0x3f0] sm:$0xff] }
  0xe3   : > { %v7424_v54 = vadd.f32 %v739_v41, %v700_v48  ;;  %v6735_v48 = vld [vmem:[%s8547_s1 + $0x3b0] sm:$0xff]  ;;  %2134 = vmatpush.bf16.msrb.mxu3 %v6743_v50 }
  0xe4   : > { %2093 = vmatpush.bf16.msrb.mxu2 %v6735_v48 }
  0xe7   : > { %2135 = vmatpush.bf16.msrb.mxu3 %v6742_v17 }
  0xe8   : > { %v701_v55 = vpop.f32.mrf.mxu2  ;;  %v624_v63 = vpop.f32.mrf.mxu0 }
  0xe9   : > { %v741_v60 = vpop.f32.mrf.mxu3  ;;  %v702_v61 = vadd.f32 %v701_v55, %v662_v53  ;;  %v664_v0 = vpop.f32.mrf.mxu1 }
  0xea   : > { %v665_v1 = vadd.f32 %v664_v0, %v624_v63 }
  0xeb   : > { %v7426_v2 = vadd.f32 %v741_v60, %v702_v61  ;;  %1055 = vmatmul.bf16.gmra.mxu0 %v7264_v12  ;;  %2136 = vmatpush.bf16.msrb.mxu3 %v6741_v51 }
  0xec   : > { %1096 = vmatmul.bf16.gmra.mxu1 %v7266_v13 }
  0xed   : > { %1137 = vmatmul.bf16.gmra.mxu2 %v7268_v14 }
  0xee   : > { %1178 = vmatmul.bf16.gmra.mxu3 %v7270_v15 }
  0xf0   : > { %v704_v11 = vpop.f32.mrf.mxu2  ;;  %v626_v24 = vpop.f32.mrf.mxu0 }
  0xf1   : > { %v744_v16 = vpop.f32.mrf.mxu3  ;;  %v705_v19 = vadd.f32 %v704_v11, %v665_v1  ;;  %v666_v25 = vpop.f32.mrf.mxu1 }
  0xf2   : > { %v667_v27 = vadd.f32 %v666_v25, %v626_v24  ;;  %v6726_v25 = vld [vmem:[%s8547_s1 + $0x368] sm:$0xff] }
  0xf3   : > { %v7444_v28 = vadd.f32 %v744_v16, %v705_v19  ;;  %v6734_v16 = vld [vmem:[%s8547_s1 + $0x3a8] sm:$0xff]  ;;  %2053 = vmatpush.bf16.msrb.mxu1 %v6726_v25 }
  0xf4   : > { %2094 = vmatpush.bf16.msrb.mxu2 %v6734_v16 }
  0xf8   : > { %v706_v29 = vpop.f32.mrf.mxu2  ;;  %v629_v41 = vpop.f32.mrf.mxu0 }
  0xf9   : > { %v746_v31 = vpop.f32.mrf.mxu3  ;;  %v707_v40 = vadd.f32 %v706_v29, %v667_v27  ;;  %v669_v46 = vpop.f32.mrf.mxu1 }
  0xfb   : > { %v7449_v49 = vadd.f32 %v746_v31, %v707_v40  ;;  %1059 = vmatmul.bf16.gmra.mxu0 %v7296_v32  ;;  %v6733_v31 = vld [vmem:[%s8547_s1 + $0x3a0] sm:$0xff] }
  0xfc   : > { %1100 = vmatmul.bf16.gmra.mxu1 %v7298_v33  ;;  %2095 = vmatpush.bf16.msrb.mxu2 %v6733_v31 }
  0xfd   : > { %1141 = vmatmul.bf16.gmra.mxu2 %v7300_v34 }
  0xfe   : > { %1182 = vmatmul.bf16.gmra.mxu3 %v7302_v35 }
 0x100   : > { %v709_v53 = vpop.f32.mrf.mxu2  ;;  %v630_v60 = vpop.f32.mrf.mxu0 }
 0x101   : > { %v749_v55 = vpop.f32.mrf.mxu3  ;;  %v670_v61 = vpop.f32.mrf.mxu1  ;;  %v6725_v53 = vld [vmem:[%s8547_s1 + $0x360] sm:$0xff] }
 0x102   : > { %2054 = vmatpush.bf16.msrb.mxu1 %v6725_v53 }
 0x108   : > { %v710_v63 = vpop.f32.mrf.mxu2  ;;  %v632_v1 = vpop.f32.mrf.mxu0 }
 0x109   : > { %v750_v0 = vpop.f32.mrf.mxu3  ;;  %v672_v3 = vpop.f32.mrf.mxu1 }
 0x10b   : > { %1524 = vmatmul.bf16.vlgmr.msra.gmra.mxu0 %v7074_v42 }
 0x10c   : > { %1565 = vmatmul.bf16.vlgmr.msra.gmra.mxu1 %v7076_v43 }
 0x10d   : > { %1606 = vmatmul.bf16.vlgmr.msra.gmra.mxu2 %v7078_v44 }
 0x10e   : > { %1647 = vmatmul.bf16.vlgmr.msra.gmra.mxu3 %v7080_v45 }
 0x110   : > { %v712_v8 = vpop.f32.mrf.mxu2  ;;  %v633_v19 = vpop.f32.mrf.mxu0 }
 0x111   : > { %v752_v11 = vpop.f32.mrf.mxu3  ;;  %v673_v24 = vpop.f32.mrf.mxu1  ;;  %v6732_v8 = vld [vmem:[%s8547_s1 + $0x398] sm:$0xff] }
 0x112   : > { %v6740_v11 = vld [vmem:[%s8547_s1 + $0x3d8] sm:$0xff]  ;;  %2096 = vmatpush.bf16.msrb.mxu2 %v6732_v8  ;;  %v6715_v8 = vld [vmem:[%s8547_s1 + $0x310] sm:$0xff] }
 0x113   : > { %2137 = vmatpush.bf16.msrb.mxu3 %v6740_v11 }
 0x118   : > { %v713_v27 = vpop.f32.mrf.mxu2  ;;  %v1031_v40 = vpop.f32.mrf.mxu0 }
 0x119   : > { %v753_v29 = vpop.f32.mrf.mxu3  ;;  %v1072_v41 = vpop.f32.mrf.mxu1 }
 0x11a   : > { %v1073_v46 = vadd.f32 %v1072_v41, %v1031_v40 }
 0x11b   : > { %1529 = vmatmul.bf16.gmra.mxu0 %v7136_v4 }
 0x11c   : > { %1570 = vmatmul.bf16.gmra.mxu1 %v7138_v5 }
 0x11d   : > { %1611 = vmatmul.bf16.gmra.mxu2 %v7140_v6 }
 0x11e   : > { %1652 = vmatmul.bf16.gmra.mxu3 %v7142_v7 }
 0x120   : > { %v1113_v48 = vpop.f32.mrf.mxu2  ;;  %v1033_v60 = vpop.f32.mrf.mxu0 }
 0x121   : > { %v1154_v50 = vpop.f32.mrf.mxu3  ;;  %v1114_v55 = vadd.f32 %v1113_v48, %v1073_v46  ;;  %v1074_v61 = vpop.f32.mrf.mxu1  ;;  %v6716_v46 = vld [vmem:[%s8547_s1 + $0x318] sm:$0xff] }
 0x122   : > { %v1075_v63 = vadd.f32 %v1074_v61, %v1033_v60  ;;  %v6724_v48 = vld [vmem:[%s8547_s1 + $0x358] sm:$0xff]  ;;  %2014 = vmatpush.bf16.msrb.mxu0 %v6716_v46 }
 0x123   : > { %v1155_v0 = vadd.f32 %v1154_v50, %v1114_v55  ;;  %2055 = vmatpush.bf16.msrb.mxu1 %v6724_v48 }
 0x125   : > { %v1208_v25 = vrot.slane %v1155_v0, 1 }
 0x126   : > { %2015 = vmatpush.bf16.msrb.mxu0 %v6715_v8 }
 0x128   : > { %v1115_v1 = vpop.f32.mrf.mxu2  ;;  %v1036_v17 = vpop.f32.mrf.mxu0 }
 0x129   : > { %v1156_v3 = vpop.f32.mrf.mxu3  ;;  %v1116_v16 = vadd.f32 %v1115_v1, %v1075_v63  ;;  %v1077_v18 = vpop.f32.mrf.mxu1  ;;  %v6731_v1 = vld [vmem:[%s8547_s1 + $0x390] sm:$0xff] }
 0x12a   : > { %v1078_v19 = vadd.f32 %v1077_v18, %v1036_v17  ;;  %2097 = vmatpush.bf16.msrb.mxu2 %v6731_v1 }
 0x12b   : > { %v1157_v24 = vadd.f32 %v1156_v3, %v1116_v16  ;;  %1534 = vmatmul.bf16.gmra.mxu0 %v7168_v20  ;;  %v6739_v3 = vld [vmem:[%s8547_s1 + $0x3d0] sm:$0xff] }
 0x12c   : > { %1575 = vmatmul.bf16.gmra.mxu1 %v7170_v21  ;;  %2138 = vmatpush.bf16.msrb.mxu3 %v6739_v3 }
 0x12d   : > { %v1209_v27 = vrot.slane %v1157_v24, 1  ;;  %1616 = vmatmul.bf16.gmra.mxu2 %v7172_v22 }
 0x12e   : > { %1657 = vmatmul.bf16.gmra.mxu3 %v7174_v23 }
 0x12f   : > { %v1210_v29 = vsel %vm1207_vm0, %v1208_v25, %v1209_v27 }
 0x130   : > { %v7508_v31 = vadd.f32 %v1210_v29, %v7352_v9  ;;  %v1118_v40 = vpop.f32.mrf.mxu2  ;;  %v1038_v51 = vpop.f32.mrf.mxu0 }
 0x131   : > { %v1159_v41 = vpop.f32.mrf.mxu3  ;;  %v1119_v50 = vadd.f32 %v1118_v40, %v1078_v19  ;;  %v1079_v52 = vpop.f32.mrf.mxu1 }
 0x132   : > { %v1080_v53 = vadd.f32 %v1079_v52, %v1038_v51 }
 0x133   : > { %v1160_v55 = vadd.f32 %v1159_v41, %v1119_v50 }
 0x135   : > { %v1211_v60 = vrot.slane %v1160_v55, 1 }
 0x137   : > { %v1212_v9 = vsel %vm1207_vm0, %v1209_v27, %v1211_v60 }
 0x138   : > { %v7518_v61 = vadd.f32 %v1212_v9, %v7360_v26  ;;  %v1120_v63 = vpop.f32.mrf.mxu2  ;;  %v1041_v16 = vpop.f32.mrf.mxu0  ;;  %v6723_v26 = vld [vmem:[%s8547_s1 + $0x350] sm:$0xff] }
 0x139   : > { %v1161_v0 = vpop.f32.mrf.mxu3  ;;  %v1121_v11 = vadd.f32 %v1120_v63, %v1080_v53  ;;  %v1082_v17 = vpop.f32.mrf.mxu1  ;;  %2056 = vmatpush.bf16.msrb.mxu1 %v6723_v26 }
 0x13a   : > { %v1083_v18 = vadd.f32 %v1082_v17, %v1041_v16 }
 0x13b   : > { %v1162_v19 = vadd.f32 %v1161_v0, %v1121_v11  ;;  %1539 = vmatmul.bf16.gmra.mxu0 %v7200_v36  ;;  %v6714_v0 = vld [vmem:[%s8547_s1 + $0x308] sm:$0xff] }
 0x13c   : > { %1580 = vmatmul.bf16.gmra.mxu1 %v7202_v37  ;;  %2016 = vmatpush.bf16.msrb.mxu0 %v6714_v0 }
 0x13d   : > { %v1213_v24 = vrot.slane %v1162_v19, 1  ;;  %1621 = vmatmul.bf16.gmra.mxu2 %v7204_v38 }
 0x13e   : > { %1662 = vmatmul.bf16.gmra.mxu3 %v7206_v39 }
 0x13f   : > { %v1214_v25 = vsel %vm1207_vm0, %v1211_v60, %v1213_v24  ;;  %v6738_v60 = vld [vmem:[%s8547_s1 + $0x3c8] sm:$0xff] }
 0x140   : > { %v7538_v27 = vadd.f32 %v1214_v25, %v7372_v47  ;;  %v1123_v29 = vpop.f32.mrf.mxu2  ;;  %v1043_v46 = vpop.f32.mrf.mxu0  ;;  %v6730_v47 = vld [vmem:[%s8547_s1 + $0x388] sm:$0xff]  ;;  %2139 = vmatpush.bf16.msrb.mxu3 %v6738_v60  ;;  %v6729_v25 = vld [vmem:[%s8547_s1 + $0x380] sm:$0xff] }
 0x141   : > { %v1164_v40 = vpop.f32.mrf.mxu3  ;;  %v1124_v41 = vadd.f32 %v1123_v29, %v1083_v18  ;;  %v1084_v48 = vpop.f32.mrf.mxu1  ;;  %2098 = vmatpush.bf16.msrb.mxu2 %v6730_v47  ;;  %v6721_v47 = vld [vmem:[%s8547_s1 + $0x340] sm:$0xff] }
 0x142   : > { %v1085_v50 = vadd.f32 %v1084_v48, %v1043_v46 }
 0x143   : > { %v1165_v51 = vadd.f32 %v1164_v40, %v1124_v41 }
 0x145   : > { %v1215_v52 = vrot.slane %v1165_v51, 1  ;;  %2099 = vmatpush.bf16.msrb.mxu2 %v6729_v25  ;;  %v6760_v25 = vld [vmem:[%s8547_s1 + $0x478] sm:$0xff] }
 0x147   : > { %v1216_v53 = vsel %vm1207_vm0, %v1213_v24, %v1215_v52 }
 0x148   : > { %v7542_v55 = vadd.f32 %v1216_v53, %v7386_v62  ;;  %v1125_v9 = vpop.f32.mrf.mxu2  ;;  %v1046_v3 = vpop.f32.mrf.mxu0  ;;  %v6722_v62 = vld [vmem:[%s8547_s1 + $0x348] sm:$0xff] }
 0x149   : > { %v1166_v63 = vpop.f32.mrf.mxu3  ;;  %v1126_v1 = vadd.f32 %v1125_v9, %v1085_v50  ;;  %v1087_v8 = vpop.f32.mrf.mxu1  ;;  %2057 = vmatpush.bf16.msrb.mxu1 %v6722_v62  ;;  %v6737_v9 = vld [vmem:[%s8547_s1 + $0x3c0] sm:$0xff]  ;;  %v6768_v62 = vld [vmem:[%s8547_s1 + $0x4b8] sm:$0xff] }
 0x14a   : > { %v1088_v11 = vadd.f32 %v1087_v8, %v1046_v3  ;;  %2140 = vmatpush.bf16.msrb.mxu3 %v6737_v9  ;;  %2585 = vmatpush.bf16.msra.mxu2 %v6768_v62 }
 0x14b   : > { %v1167_v16 = vadd.f32 %v1166_v63, %v1126_v1  ;;  %1544 = vmatmul.bf16.gmra.mxu0 %v7232_v56  ;;  %v6713_v63 = vld [vmem:[%s8547_s1 + $0x300] sm:$0xff] }
 0x14c   : > { %1585 = vmatmul.bf16.gmra.mxu1 %v7234_v57  ;;  %2017 = vmatpush.bf16.msrb.mxu0 %v6713_v63 }
 0x14d   : > { %v1217_v17 = vrot.slane %v1167_v16, 1  ;;  %1626 = vmatmul.bf16.gmra.mxu2 %v7236_v58  ;;  %2058 = vmatpush.bf16.msrb.mxu1 %v6721_v47 }
 0x14e   : > { %1667 = vmatmul.bf16.gmra.mxu3 %v7238_v59 }
 0x14f   : > { %v1218_v26 = vsel %vm1207_vm0, %v1215_v52, %v1217_v17 }
 0x150   : > { %v7562_v18 = vadd.f32 %v1218_v26, %v7392_v10  ;;  %v1128_v19 = vpop.f32.mrf.mxu2  ;;  %v1048_v40 = vpop.f32.mrf.mxu0 }
 0x151   : > { %v1169_v24 = vpop.f32.mrf.mxu3  ;;  %v1129_v29 = vadd.f32 %v1128_v19, %v1088_v11  ;;  %v1089_v41 = vpop.f32.mrf.mxu1  ;;  %v6776_v11 = vld [vmem:[%s8547_s1 + $0x4f8] sm:$0xff]  ;;  %2544 = vmatpush.bf16.msra.mxu1 %v6760_v25 }
 0x152   : > { %v1090_v46 = vadd.f32 %v1089_v41, %v1048_v40  ;;  %2626 = vmatpush.bf16.msra.mxu3 %v6776_v11 }
 0x153   : > { %v1170_v48 = vadd.f32 %v1169_v24, %v1129_v29  ;;  %v6752_v24 = vld [vmem:[%s8547_s1 + $0x438] sm:$0xff] }
 0x154   : > { %2503 = vmatpush.bf16.msra.mxu0 %v6752_v24 }
 0x155   : > { %v1219_v50 = vrot.slane %v1170_v48, 1 }
 0x157   : > { %v1220_v51 = vsel %vm1207_vm0, %v1217_v17, %v1219_v50 }
 0x158   : > { %v7569_v52 = vadd.f32 %v1220_v51, %v7406_v30  ;;  %v1130_v10 = vpop.f32.mrf.mxu2  ;;  %v1051_v0 = vpop.f32.mrf.mxu0 }
 0x159   : > { %v1171_v53 = vpop.f32.mrf.mxu3  ;;  %v1131_v60 = vadd.f32 %v1130_v10, %v1090_v46  ;;  %v1092_v1 = vpop.f32.mrf.mxu1 }
 0x15a   : > { %v1093_v3 = vadd.f32 %v1092_v1, %v1051_v0  ;;  %v6767_v0 = vld [vmem:[%s8547_s1 + $0x4b0] sm:$0xff] }
 0x15b   : > { %v1172_v30 = vadd.f32 %v1171_v53, %v1131_v60  ;;  %1549 = vmatmul.bf16.gmra.mxu0 %v7264_v12  ;;  %2586 = vmatpush.bf16.msra.mxu2 %v6767_v0  ;;  %v6758_v0 = vld [vmem:[%s8547_s1 + $0x468] sm:$0xff] }
 0x15c   : > { %1590 = vmatmul.bf16.gmra.mxu1 %v7266_v13 }
 0x15d   : > { %v1221_v8 = vrot.slane %v1172_v30, 1  ;;  %1631 = vmatmul.bf16.gmra.mxu2 %v7268_v14  ;;  %v6751_v30 = vld [vmem:[%s8547_s1 + $0x430] sm:$0xff] }
 0x15e   : > { %1672 = vmatmul.bf16.gmra.mxu3 %v7270_v15  ;;  %2504 = vmatpush.bf16.msra.mxu0 %v6751_v30 }
 0x15f   : > { %v1222_v16 = vsel %vm1207_vm0, %v1219_v50, %v1221_v8 }
 0x160   : > { %v7592_v17 = vadd.f32 %v1222_v16, %v7424_v54  ;;  %v1133_v26 = vpop.f32.mrf.mxu2  ;;  %v1053_v40 = vpop.f32.mrf.mxu0 }
 0x161   : > { %v1174_v19 = vpop.f32.mrf.mxu3  ;;  %v1134_v29 = vadd.f32 %v1133_v26, %v1093_v3  ;;  %v1094_v41 = vpop.f32.mrf.mxu1 }
 0x162   : > { %v1095_v46 = vadd.f32 %v1094_v41, %v1053_v40 }
 0x163   : > { %v1175_v48 = vadd.f32 %v1174_v19, %v1134_v29 }
 0x165   : > { %v1223_v50 = vrot.slane %v1175_v48, 1 }
 0x167   : > { %v1224_v54 = vsel %vm1207_vm0, %v1221_v8, %v1223_v50  ;;  %v6759_v8 = vld [vmem:[%s8547_s1 + $0x470] sm:$0xff] }
 0x168   : > { %v7602_v51 = vadd.f32 %v1224_v54, %v7426_v2  ;;  %v1135_v10 = vpop.f32.mrf.mxu2  ;;  %v1056_v63 = vpop.f32.mrf.mxu0  ;;  %v6775_v2 = vld [vmem:[%s8547_s1 + $0x4f0] sm:$0xff]  ;;  %2545 = vmatpush.bf16.msra.mxu1 %v6759_v8 }
 0x169   : > { %v1176_v53 = vpop.f32.mrf.mxu3  ;;  %v1136_v9 = vadd.f32 %v1135_v10, %v1095_v46  ;;  %v1097_v47 = vpop.f32.mrf.mxu1  ;;  %2627 = vmatpush.bf16.msra.mxu3 %v6775_v2  ;;  %v6765_v2 = vld [vmem:[%s8547_s1 + $0x4a0] sm:$0xff] }
 0x16a   : > { %v1098_v60 = vadd.f32 %v1097_v47, %v1056_v63  ;;  %v6750_v63 = vld [vmem:[%s8547_s1 + $0x428] sm:$0xff] }
 0x16b   : > { %v1177_v1 = vadd.f32 %v1176_v53, %v1136_v9  ;;  %1553 = vmatmul.bf16.gmra.mxu0 %v7296_v32  ;;  %v6766_v9 = vld [vmem:[%s8547_s1 + $0x4a8] sm:$0xff] }
 0x16c   : > { %1594 = vmatmul.bf16.gmra.mxu1 %v7298_v33  ;;  %2587 = vmatpush.bf16.msra.mxu2 %v6766_v9 }
 0x16d   : > { %v1225_v3 = vrot.slane %v1177_v1, 1  ;;  %1635 = vmatmul.bf16.gmra.mxu2 %v7300_v34  ;;  %2505 = vmatpush.bf16.msra.mxu0 %v6750_v63 }
 0x16e   : > { %1676 = vmatmul.bf16.gmra.mxu3 %v7302_v35  ;;  %2546 = vmatpush.bf16.msra.mxu1 %v6758_v0 }
 0x16f   : > { %v1226_v62 = vsel %vm1207_vm0, %v1223_v50, %v1225_v3 }
 0x170   : > { %v7622_v11 = vadd.f32 %v1226_v62, %v7444_v28  ;;  %v1138_v16 = vpop.f32.mrf.mxu2  ;;  %v1058_v24 = vpop.f32.mrf.mxu0  ;;  %2588 = vmatpush.bf16.msra.mxu2 %v6765_v2 }
 0x171   : > { %v1179_v26 = vpop.f32.mrf.mxu3  ;;  %v1139_v19 = vadd.f32 %v1138_v16, %v1098_v60  ;;  %v1099_v25 = vpop.f32.mrf.mxu1  ;;  %v6749_v24 = vld [vmem:[%s8547_s1 + $0x420] sm:$0xff] }
 0x172   : > { %v6757_v25 = vld [vmem:[%s8547_s1 + $0x460] sm:$0xff]  ;;  %2506 = vmatpush.bf16.msra.mxu0 %v6749_v24 }
 0x173   : > { %v1180_v29 = vadd.f32 %v1179_v26, %v1139_v19  ;;  %v6773_v19 = vld [vmem:[%s8547_s1 + $0x4e0] sm:$0xff]  ;;  %2547 = vmatpush.bf16.msra.mxu1 %v6757_v25 }
 0x175   : > { %v1227_v40 = vrot.slane %v1180_v29, 1 }
 0x177   : > { %v1228_v41 = vsel %vm1207_vm0, %v1225_v3, %v1227_v40 }
 0x178   : > { %v7626_v46 = vadd.f32 %v1228_v41, %v7449_v49  ;;  %v1140_v48 = vpop.f32.mrf.mxu2  ;;  %v1060_v54 = vpop.f32.mrf.mxu0  ;;  %v6774_v49 = vld [vmem:[%s8547_s1 + $0x4e8] sm:$0xff] }
 0x179   : > { %v1181_v50 = vpop.f32.mrf.mxu3  ;;  %v1101_v10 = vpop.f32.mrf.mxu1  ;;  %2628 = vmatpush.bf16.msra.mxu3 %v6774_v49 }
 0x17b   : > { %2018 = vmatmul.bf16.vlgmr.msrb.gmra.mxu0 %v7074_v42 }
 0x17c   : > { %2059 = vmatmul.bf16.vlgmr.msrb.gmra.mxu1 %v7076_v43 }
 0x17d   : > { %2100 = vmatmul.bf16.vlgmr.msrb.gmra.mxu2 %v7078_v44  ;;  %2629 = vmatpush.bf16.msra.mxu3 %v6773_v19 }
 0x17e   : > { %2141 = vmatmul.bf16.vlgmr.msrb.gmra.mxu3 %v7080_v45 }
 0x180   : > { %v1142_v28 = vpop.f32.mrf.mxu2  ;;  %v1061_v47 = vpop.f32.mrf.mxu0 }
 0x181   : > { %v1183_v53 = vpop.f32.mrf.mxu3  ;;  %v1102_v60 = vpop.f32.mrf.mxu1  ;;  %v6764_v28 = vld [vmem:[%s8547_s1 + $0x498] sm:$0xff] }
 0x182   : > { %v6772_v53 = vld [vmem:[%s8547_s1 + $0x4d8] sm:$0xff]  ;;  %2589 = vmatpush.bf16.msra.mxu2 %v6764_v28  ;;  %v6747_v28 = vld [vmem:[%s8547_s1 + $0x410] sm:$0xff] }
 0x183   : > { %2630 = vmatpush.bf16.msra.mxu3 %v6772_v53 }
 0x188   : > { %v1143_v1 = vpop.f32.mrf.mxu2  ;;  %v1525_v30 = vpop.f32.mrf.mxu0 }
 0x189   : > { %v1184_v3 = vpop.f32.mrf.mxu3  ;;  %v1566_v8 = vpop.f32.mrf.mxu1 }
 0x18a   : > { %v1567_v62 = vadd.f32 %v1566_v8, %v1525_v30 }
 0x18b   : > { %2022 = vmatmul.bf16.gmra.mxu0 %v7136_v4 }
 0x18c   : > { %2063 = vmatmul.bf16.gmra.mxu1 %v7138_v5 }
 0x18d   : > { %2104 = vmatmul.bf16.gmra.mxu2 %v7140_v6 }
 0x18e   : > { %2145 = vmatmul.bf16.gmra.mxu3 %v7142_v7 }
 0x190   : > { %v1607_v16 = vpop.f32.mrf.mxu2  ;;  %v1527_v40 = vpop.f32.mrf.mxu0 }
 0x191   : > { %v1648_v26 = vpop.f32.mrf.mxu3  ;;  %v1608_v29 = vadd.f32 %v1607_v16, %v1567_v62  ;;  %v1568_v41 = vpop.f32.mrf.mxu1  ;;  %v6748_v62 = vld [vmem:[%s8547_s1 + $0x418] sm:$0xff] }
 0x192   : > { %v1569_v48 = vadd.f32 %v1568_v41, %v1527_v40  ;;  %v6756_v16 = vld [vmem:[%s8547_s1 + $0x458] sm:$0xff]  ;;  %2507 = vmatpush.bf16.msra.mxu0 %v6748_v62 }
 0x193   : > { %v1649_v50 = vadd.f32 %v1648_v26, %v1608_v29  ;;  %2548 = vmatpush.bf16.msra.mxu1 %v6756_v16 }
 0x195   : > { %v1702_v0 = vrot.slane %v1649_v50, 2 }
 0x196   : > { %2508 = vmatpush.bf16.msra.mxu0 %v6747_v28 }
 0x198   : > { %v1609_v54 = vpop.f32.mrf.mxu2  ;;  %v1530_v49 = vpop.f32.mrf.mxu0 }
 0x199   : > { %v1650_v10 = vpop.f32.mrf.mxu3  ;;  %v1610_v9 = vadd.f32 %v1609_v54, %v1569_v48  ;;  %v1571_v63 = vpop.f32.mrf.mxu1  ;;  %v6763_v54 = vld [vmem:[%s8547_s1 + $0x490] sm:$0xff] }
 0x19a   : > { %v1572_v47 = vadd.f32 %v1571_v63, %v1530_v49  ;;  %2590 = vmatpush.bf16.msra.mxu2 %v6763_v54 }
 0x19b   : > { %v1651_v60 = vadd.f32 %v1650_v10, %v1610_v9  ;;  %2027 = vmatmul.bf16.gmra.mxu0 %v7168_v20  ;;  %v6771_v10 = vld [vmem:[%s8547_s1 + $0x4d0] sm:$0xff] }
 0x19c   : > { %2068 = vmatmul.bf16.gmra.mxu1 %v7170_v21  ;;  %2631 = vmatpush.bf16.msra.mxu3 %v6771_v10 }
 0x19d   : > { %v1703_v1 = vrot.slane %v1651_v60, 2  ;;  %2109 = vmatmul.bf16.gmra.mxu2 %v7172_v22 }
 0x19e   : > { %2150 = vmatmul.bf16.gmra.mxu3 %v7174_v23 }
 0x19f   : > { %v1704_v3 = vsel %vm1701_vm1, %v1702_v0, %v1703_v1 }
 0x1a0   : > { %v7672_v2 = vadd.f32 %v1704_v3, %v7508_v31  ;;  %v1612_v30 = vpop.f32.mrf.mxu2  ;;  %v1532_v19 = vpop.f32.mrf.mxu0 }
 0x1a1   : > { %v1653_v8 = vpop.f32.mrf.mxu3  ;;  %v1613_v26 = vadd.f32 %v1612_v30, %v1572_v47  ;;  %v1573_v24 = vpop.f32.mrf.mxu1 }
 0x1a2   : > { %v1574_v25 = vadd.f32 %v1573_v24, %v1532_v19 }
 0x1a3   : > { %v1654_v29 = vadd.f32 %v1653_v8, %v1613_v26 }
 0x1a5   : > { %v1705_v40 = vrot.slane %v1654_v29, 2 }
 0x1a7   : > { %v1706_v31 = vsel %vm1701_vm1, %v1703_v1, %v1705_v40 }
 0x1a8   : > { %v7682_v41 = vadd.f32 %v1706_v31, %v7518_v61  ;;  %v1614_v48 = vpop.f32.mrf.mxu2  ;;  %v1535_v9 = vpop.f32.mrf.mxu0  ;;  %v6755_v61 = vld [vmem:[%s8547_s1 + $0x450] sm:$0xff] }
 0x1a9   : > { %v1655_v50 = vpop.f32.mrf.mxu3  ;;  %v1615_v53 = vadd.f32 %v1614_v48, %v1574_v25  ;;  %v1576_v49 = vpop.f32.mrf.mxu1  ;;  %2549 = vmatpush.bf16.msra.mxu1 %v6755_v61 }
 0x1aa   : > { %v1577_v63 = vadd.f32 %v1576_v49, %v1535_v9 }
 0x1ab   : > { %v1656_v47 = vadd.f32 %v1655_v50, %v1615_v53  ;;  %2032 = vmatmul.bf16.gmra.mxu0 %v7200_v36  ;;  %v6746_v50 = vld [vmem:[%s8547_s1 + $0x408] sm:$0xff] }
 0x1ac   : > { %2073 = vmatmul.bf16.gmra.mxu1 %v7202_v37  ;;  %2509 = vmatpush.bf16.msra.mxu0 %v6746_v50 }
 0x1ad   : > { %v1707_v60 = vrot.slane %v1656_v47, 2  ;;  %2114 = vmatmul.bf16.gmra.mxu2 %v7204_v38 }
 0x1ae   : > { %2155 = vmatmul.bf16.gmra.mxu3 %v7206_v39 }
 0x1af   : > { %v1708_v0 = vsel %vm1701_vm1, %v1705_v40, %v1707_v60  ;;  %v6770_v40 = vld [vmem:[%s8547_s1 + $0x4c8] sm:$0xff] }
 0x1b0   : > { %v7702_v1 = vadd.f32 %v1708_v0, %v7538_v27  ;;  %v1617_v3 = vpop.f32.mrf.mxu2  ;;  %v1537_v62 = vpop.f32.mrf.mxu0  ;;  %v6762_v27 = vld [vmem:[%s8547_s1 + $0x488] sm:$0xff]  ;;  %2632 = vmatpush.bf16.msra.mxu3 %v6770_v40  ;;  %v6761_v0 = vld [vmem:[%s8547_s1 + $0x480] sm:$0xff] }
 0x1b1   : > { %v1658_v30 = vpop.f32.mrf.mxu3  ;;  %v1618_v8 = vadd.f32 %v1617_v3, %v1577_v63  ;;  %v1578_v16 = vpop.f32.mrf.mxu1  ;;  %2591 = vmatpush.bf16.msra.mxu2 %v6762_v27  ;;  %v6753_v27 = vld [vmem:[%s8547_s1 + $0x440] sm:$0xff] }
 0x1b2   : > { %v1579_v26 = vadd.f32 %v1578_v16, %v1537_v62 }
 0x1b3   : > { %v1659_v19 = vadd.f32 %v1658_v30, %v1618_v8 }
 0x1b5   : > { %v1709_v24 = vrot.slane %v1659_v19, 2  ;;  %2592 = vmatpush.bf16.msra.mxu2 %v6761_v0  ;;  %v6792_v0 = vld [vmem:[%s8547_s1 + $0x578] sm:$0xff] }
 0x1b7   : > { %v1710_v25 = vsel %vm1701_vm1, %v1707_v60, %v1709_v24 }
 0x1b8   : > { %v7706_v29 = vadd.f32 %v1710_v25, %v7542_v55  ;;  %v1619_v31 = vpop.f32.mrf.mxu2  ;;  %v1540_v10 = vpop.f32.mrf.mxu0  ;;  %v6754_v55 = vld [vmem:[%s8547_s1 + $0x448] sm:$0xff] }
 0x1b9   : > { %v1660_v48 = vpop.f32.mrf.mxu3  ;;  %v1620_v54 = vadd.f32 %v1619_v31, %v1579_v26  ;;  %v1581_v28 = vpop.f32.mrf.mxu1  ;;  %2550 = vmatpush.bf16.msra.mxu1 %v6754_v55  ;;  %v6769_v31 = vld [vmem:[%s8547_s1 + $0x4c0] sm:$0xff]  ;;  %v6800_v55 = vld [vmem:[%s8547_s1 + $0x5b8] sm:$0xff] }
 0x1ba   : > { %v1582_v53 = vadd.f32 %v1581_v28, %v1540_v10  ;;  %2633 = vmatpush.bf16.msra.mxu3 %v6769_v31  ;;  %3079 = vmatpush.bf16.msrb.mxu2 %v6800_v55 }
 0x1bb   : > { %v1661_v9 = vadd.f32 %v1660_v48, %v1620_v54  ;;  %2037 = vmatmul.bf16.gmra.mxu0 %v7232_v56  ;;  %v6745_v48 = vld [vmem:[%s8547_s1 + $0x400] sm:$0xff] }
 0x1bc   : > { %2078 = vmatmul.bf16.gmra.mxu1 %v7234_v57  ;;  %2510 = vmatpush.bf16.msra.mxu0 %v6745_v48 }
 0x1bd   : > { %v1711_v49 = vrot.slane %v1661_v9, 2  ;;  %2119 = vmatmul.bf16.gmra.mxu2 %v7236_v58  ;;  %2551 = vmatpush.bf16.msra.mxu1 %v6753_v27 }
 0x1be   : > { %2160 = vmatmul.bf16.gmra.mxu3 %v7238_v59 }
 0x1bf   : > { %v1712_v61 = vsel %vm1701_vm1, %v1709_v24, %v1711_v49 }
 0x1c0   : > { %v7726_v63 = vadd.f32 %v1712_v61, %v7562_v18  ;;  %v1622_v47 = vpop.f32.mrf.mxu2  ;;  %v1542_v30 = vpop.f32.mrf.mxu0 }
 0x1c1   : > { %v1663_v60 = vpop.f32.mrf.mxu3  ;;  %v1623_v3 = vadd.f32 %v1622_v47, %v1582_v53  ;;  %v1583_v8 = vpop.f32.mrf.mxu1  ;;  %v6808_v53 = vld [vmem:[%s8547_s1 + $0x5f8] sm:$0xff]  ;;  %3038 = vmatpush.bf16.msrb.mxu1 %v6792_v0 }
 0x1c2   : > { %v1584_v62 = vadd.f32 %v1583_v8, %v1542_v30  ;;  %3120 = vmatpush.bf16.msrb.mxu3 %v6808_v53 }
 0x1c3   : > { %v1664_v16 = vadd.f32 %v1663_v60, %v1623_v3  ;;  %v6784_v60 = vld [vmem:[%s8547_s1 + $0x538] sm:$0xff] }
 0x1c4   : > { %2997 = vmatpush.bf16.msrb.mxu0 %v6784_v60 }
 0x1c5   : > { %v1713_v26 = vrot.slane %v1664_v16, 2 }
 0x1c7   : > { %v1714_v19 = vsel %vm1701_vm1, %v1711_v49, %v1713_v26 }
 0x1c8   : > { %v7733_v24 = vadd.f32 %v1714_v19, %v7569_v52  ;;  %v1624_v18 = vpop.f32.mrf.mxu2  ;;  %v1545_v50 = vpop.f32.mrf.mxu0 }
 0x1c9   : > { %v1665_v25 = vpop.f32.mrf.mxu3  ;;  %v1625_v40 = vadd.f32 %v1624_v18, %v1584_v62  ;;  %v1586_v54 = vpop.f32.mrf.mxu1 }
 0x1ca   : > { %v1587_v10 = vadd.f32 %v1586_v54, %v1545_v50 }
 0x1cb   : > { %v1666_v52 = vadd.f32 %v1665_v25, %v1625_v40  ;;  %2042 = vmatmul.bf16.gmra.mxu0 %v7264_v12  ;;  %v6799_v40 = vld [vmem:[%s8547_s1 + $0x5b0] sm:$0xff] }
 0x1cc   : > { %2083 = vmatmul.bf16.gmra.mxu1 %v7266_v13  ;;  %3080 = vmatpush.bf16.msrb.mxu2 %v6799_v40 }
 0x1cd   : > { %v1715_v28 = vrot.slane %v1666_v52, 2  ;;  %2124 = vmatmul.bf16.gmra.mxu2 %v7268_v14  ;;  %v6783_v52 = vld [vmem:[%s8547_s1 + $0x530] sm:$0xff] }
 0x1ce   : > { %2165 = vmatmul.bf16.gmra.mxu3 %v7270_v15  ;;  %2998 = vmatpush.bf16.msrb.mxu0 %v6783_v52 }
 0x1cf   : > { %v1716_v9 = vsel %vm1701_vm1, %v1713_v26, %v1715_v28 }
 0x1d0   : > { %v7756_v49 = vadd.f32 %v1716_v9, %v7592_v17  ;;  %v1627_v61 = vpop.f32.mrf.mxu2  ;;  %v1547_v30 = vpop.f32.mrf.mxu0 }
 0x1d1   : > { %v1668_v47 = vpop.f32.mrf.mxu3  ;;  %v1628_v3 = vadd.f32 %v1627_v61, %v1587_v10  ;;  %v1588_v8 = vpop.f32.mrf.mxu1 }
 0x1d2   : > { %v1589_v62 = vadd.f32 %v1588_v8, %v1547_v30 }
 0x1d3   : > { %v1669_v16 = vadd.f32 %v1668_v47, %v1628_v3 }
 0x1d5   : > { %v1717_v26 = vrot.slane %v1669_v16, 2 }
 0x1d7   : > { %v1718_v17 = vsel %vm1701_vm1, %v1715_v28, %v1717_v26  ;;  %v6791_v28 = vld [vmem:[%s8547_s1 + $0x570] sm:$0xff] }
 0x1d8   : > { %v7766_v19 = vadd.f32 %v1718_v17, %v7602_v51  ;;  %v1629_v18 = vpop.f32.mrf.mxu2  ;;  %v1550_v48 = vpop.f32.mrf.mxu0  ;;  %v6807_v51 = vld [vmem:[%s8547_s1 + $0x5f0] sm:$0xff]  ;;  %3039 = vmatpush.bf16.msrb.mxu1 %v6791_v28 }
 0x1d9   : > { %v1670_v25 = vpop.f32.mrf.mxu3  ;;  %v1630_v31 = vadd.f32 %v1629_v18, %v1589_v62  ;;  %v1591_v27 = vpop.f32.mrf.mxu1  ;;  %3121 = vmatpush.bf16.msrb.mxu3 %v6807_v51  ;;  %v6797_v51 = vld [vmem:[%s8547_s1 + $0x5a0] sm:$0xff] }
 0x1da   : > { %v1592_v50 = vadd.f32 %v1591_v27, %v1550_v48 }
 0x1db   : > { %v1671_v54 = vadd.f32 %v1670_v25, %v1630_v31  ;;  %2047 = vmatmul.bf16.gmra.mxu0 %v7296_v32  ;;  %v6782_v25 = vld [vmem:[%s8547_s1 + $0x528] sm:$0xff] }
 0x1dc   : > { %2088 = vmatmul.bf16.gmra.mxu1 %v7298_v33  ;;  %v6790_v31 = vld [vmem:[%s8547_s1 + $0x568] sm:$0xff]  ;;  %2999 = vmatpush.bf16.msrb.mxu0 %v6782_v25 }
 0x1dd   : > { %v1719_v10 = vrot.slane %v1671_v54, 2  ;;  %2129 = vmatmul.bf16.gmra.mxu2 %v7300_v34  ;;  %3040 = vmatpush.bf16.msrb.mxu1 %v6790_v31 }
 0x1de   : > { %2170 = vmatmul.bf16.gmra.mxu3 %v7302_v35 }
 0x1df   : > { %v1720_v55 = vsel %vm1701_vm1, %v1717_v26, %v1719_v10 }
 0x1e0   : > { %v7786_v53 = vadd.f32 %v1720_v55, %v7622_v11  ;;  %v1632_v9 = vpop.f32.mrf.mxu2  ;;  %v1552_v60 = vpop.f32.mrf.mxu0  ;;  %v6798_v11 = vld [vmem:[%s8547_s1 + $0x5a8] sm:$0xff] }
 0x1e1   : > { %v1673_v61 = vpop.f32.mrf.mxu3  ;;  %v1633_v47 = vadd.f32 %v1632_v9, %v1592_v50  ;;  %v1593_v0 = vpop.f32.mrf.mxu1  ;;  %3081 = vmatpush.bf16.msrb.mxu2 %v6798_v11  ;;  %v6789_v60 = vld [vmem:[%s8547_s1 + $0x560] sm:$0xff] }
 0x1e2   : > { %3041 = vmatpush.bf16.msrb.mxu1 %v6789_v60 }
 0x1e3   : > { %v1674_v3 = vadd.f32 %v1673_v61, %v1633_v47  ;;  %v6805_v61 = vld [vmem:[%s8547_s1 + $0x5e0] sm:$0xff] }
 0x1e4   : > { %v6781_v47 = vld [vmem:[%s8547_s1 + $0x520] sm:$0xff] }
 0x1e5   : > { %v1721_v30 = vrot.slane %v1674_v3, 2  ;;  %3082 = vmatpush.bf16.msrb.mxu2 %v6797_v51  ;;  %3000 = vmatpush.bf16.msrb.mxu0 %v6781_v47 }
 0x1e7   : > { %v1722_v8 = vsel %vm1701_vm1, %v1719_v10, %v1721_v30 }
 0x1e8   : > { %v7790_v62 = vadd.f32 %v1722_v8, %v7626_v46  ;;  %v1634_v16 = vpop.f32.mrf.mxu2  ;;  %v1554_v17 = vpop.f32.mrf.mxu0  ;;  %v6806_v46 = vld [vmem:[%s8547_s1 + $0x5e8] sm:$0xff] }
 0x1e9   : > { %v1675_v26 = vpop.f32.mrf.mxu3  ;;  %v1595_v18 = vpop.f32.mrf.mxu1  ;;  %3122 = vmatpush.bf16.msrb.mxu3 %v6806_v46  ;;  %v6804_v17 = vld [vmem:[%s8547_s1 + $0x5d8] sm:$0xff] }
 0x1ea   : > { %v6796_v26 = vld [vmem:[%s8547_s1 + $0x598] sm:$0xff] }
 0x1eb   : > { %2511 = vmatmul.bf16.vlgmr.msra.gmra.mxu0 %v7074_v42  ;;  %3083 = vmatpush.bf16.msrb.mxu2 %v6796_v26 }
 0x1ec   : > { %2552 = vmatmul.bf16.vlgmr.msra.gmra.mxu1 %v7076_v43 }
 0x1ed   : > { %2593 = vmatmul.bf16.vlgmr.msra.gmra.mxu2 %v7078_v44  ;;  %3123 = vmatpush.bf16.msrb.mxu3 %v6805_v61 }
 0x1ee   : > { %2634 = vmatmul.bf16.vlgmr.msra.gmra.mxu3 %v7080_v45 }
 0x1f0   : > { %v1636_v48 = vpop.f32.mrf.mxu2  ;;  %v1555_v40 = vpop.f32.mrf.mxu0 }
 0x1f1   : > { %v1677_v27 = vpop.f32.mrf.mxu3  ;;  %v1596_v50 = vpop.f32.mrf.mxu1  ;;  %3124 = vmatpush.bf16.msrb.mxu3 %v6804_v17  ;;  %v6780_v40 = vld [vmem:[%s8547_s1 + $0x518] sm:$0xff] }
 0x1f2   : > { %v6788_v50 = vld [vmem:[%s8547_s1 + $0x558] sm:$0xff]  ;;  %3001 = vmatpush.bf16.msrb.mxu0 %v6780_v40 }
 0x1f3   : > { %3042 = vmatpush.bf16.msrb.mxu1 %v6788_v50 }
 0x1f8   : > { %v1637_v54 = vpop.f32.mrf.mxu2  ;;  %v2019_v52 = vpop.f32.mrf.mxu0 }
 0x1f9   : > { %v1678_v10 = vpop.f32.mrf.mxu3  ;;  %v2060_v28 = vpop.f32.mrf.mxu1 }
 0x1fb   : > { %2515 = vmatmul.bf16.gmra.mxu0 %v7136_v4 }
 0x1fc   : > { %2556 = vmatmul.bf16.gmra.mxu1 %v7138_v5 }
 0x1fd   : > { %2597 = vmatmul.bf16.gmra.mxu2 %v7140_v6 }
 0x1fe   : > { %2638 = vmatmul.bf16.gmra.mxu3 %v7142_v7 }
 0x200   : > { %v2101_v55 = vpop.f32.mrf.mxu2  ;;  %v2020_v0 = vpop.f32.mrf.mxu0 }
 0x201   : > { %v2142_v9 = vpop.f32.mrf.mxu3  ;;  %v2061_v3 = vpop.f32.mrf.mxu1 }
 0x202   : > { %v2062_v30 = vadd.f32 %v2061_v3, %v2020_v0  ;;  %v6795_v3 = vld [vmem:[%s8547_s1 + $0x590] sm:$0xff] }
 0x203   : > { %3084 = vmatpush.bf16.msrb.mxu2 %v6795_v3 }
 0x208   : > { %v2102_v8 = vpop.f32.mrf.mxu2  ;;  %v2023_v11 = vpop.f32.mrf.mxu0 }
 0x209   : > { %v2143_v16 = vpop.f32.mrf.mxu3  ;;  %v2103_v18 = vadd.f32 %v2102_v8, %v2062_v30  ;;  %v2064_v46 = vpop.f32.mrf.mxu1  ;;  %v6803_v30 = vld [vmem:[%s8547_s1 + $0x5d0] sm:$0xff] }
 0x20a   : > { %v2065_v25 = vadd.f32 %v2064_v46, %v2023_v11  ;;  %v6779_v8 = vld [vmem:[%s8547_s1 + $0x510] sm:$0xff]  ;;  %3125 = vmatpush.bf16.msrb.mxu3 %v6803_v30 }
 0x20b   : > { %v2144_v31 = vadd.f32 %v2143_v16, %v2103_v18  ;;  %2520 = vmatmul.bf16.gmra.mxu0 %v7168_v20 }
 0x20c   : > { %2561 = vmatmul.bf16.gmra.mxu1 %v7170_v21  ;;  %3002 = vmatpush.bf16.msrb.mxu0 %v6779_v8 }
 0x20d   : > { %2602 = vmatmul.bf16.gmra.mxu2 %v7172_v22  ;;  %v2195_v55 = vrot.slane %v2144_v31, 2 }
 0x20e   : > { %2643 = vmatmul.bf16.gmra.mxu3 %v7174_v23 }
 0x210   : > { %v2105_v48 = vpop.f32.mrf.mxu2  ;;  %v2025_v10 = vpop.f32.mrf.mxu0 }
 0x211   : > { %v2146_v27 = vpop.f32.mrf.mxu3  ;;  %v2106_v54 = vadd.f32 %v2105_v48, %v2065_v25  ;;  %v2066_v51 = vpop.f32.mrf.mxu1 }
 0x212   : > { %v2067_v52 = vadd.f32 %v2066_v51, %v2025_v10 }
 0x213   : > { %v2147_v28 = vadd.f32 %v2146_v27, %v2106_v54 }
 0x215   : > { %v2196_v9 = vrot.slane %v2147_v28, 2 }
 0x217   : > { %v2197_v61 = vsel %vm1701_vm1, %v2195_v55, %v2196_v9 }
 0x218   : > { %v7842_v47 = vadd.f32 %v2197_v61, %v7672_v2  ;;  %v2107_v60 = vpop.f32.mrf.mxu2  ;;  %v2028_v26 = vpop.f32.mrf.mxu0  ;;  %v6787_v2 = vld [vmem:[%s8547_s1 + $0x550] sm:$0xff] }
 0x219   : > { %v2148_v0 = vpop.f32.mrf.mxu3  ;;  %v2108_v16 = vadd.f32 %v2107_v60, %v2067_v52  ;;  %v2069_v17 = vpop.f32.mrf.mxu1  ;;  %3043 = vmatpush.bf16.msrb.mxu1 %v6787_v2 }
 0x21a   : > { %v2070_v18 = vadd.f32 %v2069_v17, %v2028_v26 }
 0x21b   : > { %v2149_v11 = vadd.f32 %v2148_v0, %v2108_v16  ;;  %2525 = vmatmul.bf16.gmra.mxu0 %v7200_v36  ;;  %v6778_v0 = vld [vmem:[%s8547_s1 + $0x508] sm:$0xff] }
 0x21c   : > { %2566 = vmatmul.bf16.gmra.mxu1 %v7202_v37  ;;  %3003 = vmatpush.bf16.msrb.mxu0 %v6778_v0 }
 0x21d   : > { %v2198_v46 = vrot.slane %v2149_v11, 2  ;;  %2607 = vmatmul.bf16.gmra.mxu2 %v7204_v38 }
 0x21e   : > { %2648 = vmatmul.bf16.gmra.mxu3 %v7206_v39 }
 0x21f   : > { %v2199_v25 = vsel %vm1701_vm1, %v2196_v9, %v2198_v46  ;;  %v6802_v9 = vld [vmem:[%s8547_s1 + $0x5c8] sm:$0xff] }
 0x220   : > { %v7862_v31 = vadd.f32 %v2199_v25, %v7682_v41  ;;  %v2110_v48 = vpop.f32.mrf.mxu2  ;;  %v2030_v50 = vpop.f32.mrf.mxu0  ;;  %v6794_v41 = vld [vmem:[%s8547_s1 + $0x588] sm:$0xff]  ;;  %3126 = vmatpush.bf16.msrb.mxu3 %v6802_v9  ;;  %v6793_v25 = vld [vmem:[%s8547_s1 + $0x580] sm:$0xff] }
 0x221   : > { %v2151_v27 = vpop.f32.mrf.mxu3  ;;  %v2111_v40 = vadd.f32 %v2110_v48, %v2070_v18  ;;  %v2071_v54 = vpop.f32.mrf.mxu1  ;;  %3085 = vmatpush.bf16.msrb.mxu2 %v6794_v41  ;;  %v6785_v41 = vld [vmem:[%s8547_s1 + $0x540] sm:$0xff] }
 0x222   : > { %v2072_v10 = vadd.f32 %v2071_v54, %v2030_v50 }
 0x223   : > { %v2152_v51 = vadd.f32 %v2151_v27, %v2111_v40 }
 0x225   : > { %v2200_v52 = vrot.slane %v2152_v51, 2  ;;  %3086 = vmatpush.bf16.msrb.mxu2 %v6793_v25 }
 0x227   : > { %v2201_v28 = vsel %vm1701_vm1, %v2198_v46, %v2200_v52 }
 0x228   : > { %v7866_v55 = vadd.f32 %v2201_v28, %v7702_v1  ;;  %v2112_v61 = vpop.f32.mrf.mxu2  ;;  %v2033_v30 = vpop.f32.mrf.mxu0  ;;  %v6786_v1 = vld [vmem:[%s8547_s1 + $0x548] sm:$0xff] }
 0x229   : > { %v2153_v60 = vpop.f32.mrf.mxu3  ;;  %v2113_v3 = vadd.f32 %v2112_v61, %v2072_v10  ;;  %v2074_v8 = vpop.f32.mrf.mxu1  ;;  %3044 = vmatpush.bf16.msrb.mxu1 %v6786_v1  ;;  %v6801_v61 = vld [vmem:[%s8547_s1 + $0x5c0] sm:$0xff] }
 0x22a   : > { %v2075_v16 = vadd.f32 %v2074_v8, %v2033_v30  ;;  %3127 = vmatpush.bf16.msrb.mxu3 %v6801_v61 }
 0x22b   : > { %v2154_v26 = vadd.f32 %v2153_v60, %v2113_v3  ;;  %2530 = vmatmul.bf16.gmra.mxu0 %v7232_v56  ;;  %v6777_v60 = vld [vmem:[%s8547_s1 + $0x500] sm:$0xff] }
 0x22c   : > { %2571 = vmatmul.bf16.gmra.mxu1 %v7234_v57  ;;  %3004 = vmatpush.bf16.msrb.mxu0 %v6777_v60 }
 0x22d   : > { %v2202_v17 = vrot.slane %v2154_v26, 2  ;;  %2612 = vmatmul.bf16.gmra.mxu2 %v7236_v58  ;;  %3045 = vmatpush.bf16.msrb.mxu1 %v6785_v41 }
 0x22e   : > { %2653 = vmatmul.bf16.gmra.mxu3 %v7238_v59 }
 0x22f   : > { %v2203_v2 = vsel %vm1701_vm1, %v2200_v52, %v2202_v17 }
 0x230   : > { %v7886_v18 = vadd.f32 %v2203_v2, %v7706_v29  ;;  %v2115_v11 = vpop.f32.mrf.mxu2  ;;  %v2035_v27 = vpop.f32.mrf.mxu0  ;;  %v6832_v2 = vld [vmem:[%s8547_s1 + $0x6b8] sm:$0xff] }
 0x231   : > { %v2156_v46 = vpop.f32.mrf.mxu3  ;;  %v2116_v48 = vadd.f32 %v2115_v11, %v2075_v16  ;;  %v2076_v40 = vpop.f32.mrf.mxu1  ;;  %v6840_v11 = vld [vmem:[%s8547_s1 + $0x6f8] sm:$0xff]  ;;  %3573 = vmatpush.bf16.msra.mxu2 %v6832_v2 }
 0x232   : > { %v2077_v50 = vadd.f32 %v2076_v40, %v2035_v27  ;;  %3614 = vmatpush.bf16.msra.mxu3 %v6840_v11 }
 0x233   : > { %v2157_v54 = vadd.f32 %v2156_v46, %v2116_v48  ;;  %v6816_v46 = vld [vmem:[%s8547_s1 + $0x638] sm:$0xff] }
 0x234   : > { %3491 = vmatpush.bf16.msra.mxu0 %v6816_v46 }
 0x235   : > { %v2204_v10 = vrot.slane %v2157_v54, 2 }
 0x237   : > { %v2205_v51 = vsel %vm1701_vm1, %v2202_v17, %v2204_v10 }
 0x238   : > { %v7893_v52 = vadd.f32 %v2205_v51, %v7726_v63  ;;  %v2117_v29 = vpop.f32.mrf.mxu2  ;;  %v2038_v0 = vpop.f32.mrf.mxu0 }
 0x239   : > { %v2158_v28 = vpop.f32.mrf.mxu3  ;;  %v2118_v9 = vadd.f32 %v2117_v29, %v2077_v50  ;;  %v2079_v3 = vpop.f32.mrf.mxu1 }
 0x23a   : > { %v2080_v30 = vadd.f32 %v2079_v3, %v2038_v0 }
 0x23b   : > { %v2159_v63 = vadd.f32 %v2158_v28, %v2118_v9  ;;  %2535 = vmatmul.bf16.gmra.mxu0 %v7264_v12  ;;  %v6831_v9 = vld [vmem:[%s8547_s1 + $0x6b0] sm:$0xff] }
 0x23c   : > { %2576 = vmatmul.bf16.gmra.mxu1 %v7266_v13  ;;  %3574 = vmatpush.bf16.msra.mxu2 %v6831_v9  ;;  %v6814_v9 = vld [vmem:[%s8547_s1 + $0x628] sm:$0xff] }
 0x23d   : > { %v2206_v8 = vrot.slane %v2159_v63, 2  ;;  %2617 = vmatmul.bf16.gmra.mxu2 %v7268_v14  ;;  %v6815_v63 = vld [vmem:[%s8547_s1 + $0x630] sm:$0xff] }
 0x23e   : > { %2658 = vmatmul.bf16.gmra.mxu3 %v7270_v15  ;;  %3492 = vmatpush.bf16.msra.mxu0 %v6815_v63 }
 0x23f   : > { %v2207_v1 = vsel %vm1701_vm1, %v2204_v10, %v2206_v8 }
 0x240   : > { %v7910_v16 = vadd.f32 %v2207_v1, %v7733_v24  ;;  %v2120_v26 = vpop.f32.mrf.mxu2  ;;  %v2040_v48 = vpop.f32.mrf.mxu0  ;;  %v6824_v24 = vld [vmem:[%s8547_s1 + $0x678] sm:$0xff] }
 0x241   : > { %v2161_v17 = vpop.f32.mrf.mxu3  ;;  %v2121_v25 = vadd.f32 %v2120_v26, %v2080_v30  ;;  %v2081_v27 = vpop.f32.mrf.mxu1  ;;  %3532 = vmatpush.bf16.msra.mxu1 %v6824_v24 }
 0x242   : > { %v2082_v40 = vadd.f32 %v2081_v27, %v2040_v48  ;;  %3493 = vmatpush.bf16.msra.mxu0 %v6814_v9 }
 0x243   : > { %v2162_v50 = vadd.f32 %v2161_v17, %v2121_v25 }
 0x245   : > { %v2208_v54 = vrot.slane %v2162_v50, 2 }
 0x247   : > { %v2209_v10 = vsel %vm1701_vm1, %v2206_v8, %v2208_v54  ;;  %v6823_v8 = vld [vmem:[%s8547_s1 + $0x670] sm:$0xff] }
 0x248   : > { %v7926_v51 = vadd.f32 %v2209_v10, %v7756_v49  ;;  %v2122_v29 = vpop.f32.mrf.mxu2  ;;  %v2043_v60 = vpop.f32.mrf.mxu0  ;;  %v6839_v49 = vld [vmem:[%s8547_s1 + $0x6f0] sm:$0xff]  ;;  %3533 = vmatpush.bf16.msra.mxu1 %v6823_v8 }
 0x249   : > { %v2163_v28 = vpop.f32.mrf.mxu3  ;;  %v2123_v61 = vadd.f32 %v2122_v29, %v2082_v40  ;;  %v2084_v41 = vpop.f32.mrf.mxu1  ;;  %3615 = vmatpush.bf16.msra.mxu3 %v6839_v49 }
 0x24a   : > { %v2085_v0 = vadd.f32 %v2084_v41, %v2043_v60  ;;  %v6838_v41 = vld [vmem:[%s8547_s1 + $0x6e8] sm:$0xff] }
 0x24b   : > { %v2164_v3 = vadd.f32 %v2163_v28, %v2123_v61  ;;  %2540 = vmatmul.bf16.gmra.mxu0 %v7296_v32 }
 0x24c   : > { %2581 = vmatmul.bf16.gmra.mxu1 %v7298_v33 }
 0x24d   : > { %v2210_v30 = vrot.slane %v2164_v3, 2  ;;  %2622 = vmatmul.bf16.gmra.mxu2 %v7300_v34  ;;  %3616 = vmatpush.bf16.msra.mxu3 %v6838_v41 }
 0x24e   : > { %2663 = vmatmul.bf16.gmra.mxu3 %v7302_v35 }
 0x24f   : > { %v2211_v1 = vsel %vm1701_vm1, %v2208_v54, %v2210_v30 }
 0x250   : > { %v7946_v26 = vadd.f32 %v2211_v1, %v7766_v19  ;;  %v2125_v17 = vpop.f32.mrf.mxu2  ;;  %v2045_v46 = vpop.f32.mrf.mxu0 }
 0x251   : > { %v2166_v2 = vpop.f32.mrf.mxu3  ;;  %v2126_v11 = vadd.f32 %v2125_v17, %v2085_v0  ;;  %v2086_v25 = vpop.f32.mrf.mxu1  ;;  %v6822_v0 = vld [vmem:[%s8547_s1 + $0x668] sm:$0xff] }
 0x252   : > { %v2087_v48 = vadd.f32 %v2086_v25, %v2045_v46  ;;  %3534 = vmatpush.bf16.msra.mxu1 %v6822_v0 }
 0x253   : > { %v2167_v27 = vadd.f32 %v2166_v2, %v2126_v11  ;;  %v6829_v11 = vld [vmem:[%s8547_s1 + $0x6a0] sm:$0xff] }
 0x255   : > { %v2212_v24 = vrot.slane %v2167_v27, 2  ;;  %v6837_v27 = vld [vmem:[%s8547_s1 + $0x6e0] sm:$0xff] }
 0x256   : > { %3617 = vmatpush.bf16.msra.mxu3 %v6837_v27 }
 0x257   : > { %v2213_v40 = vsel %vm1701_vm1, %v2210_v30, %v2212_v24 }
 0x258   : > { %v7950_v50 = vadd.f32 %v2213_v40, %v7786_v53  ;;  %v2127_v54 = vpop.f32.mrf.mxu2  ;;  %v2048_v28 = vpop.f32.mrf.mxu0  ;;  %v6830_v53 = vld [vmem:[%s8547_s1 + $0x6a8] sm:$0xff]  ;;  %v6821_v40 = vld [vmem:[%s8547_s1 + $0x660] sm:$0xff] }
 0x259   : > { %v2168_v10 = vpop.f32.mrf.mxu3  ;;  %v2128_v29 = vadd.f32 %v2127_v54, %v2087_v48  ;;  %v2089_v19 = vpop.f32.mrf.mxu1  ;;  %3575 = vmatpush.bf16.msra.mxu2 %v6830_v53  ;;  %3535 = vmatpush.bf16.msra.mxu1 %v6821_v40 }
 0x25b   : > { %v2169_v61 = vadd.f32 %v2168_v10, %v2128_v29  ;;  %3005 = vmatmul.bf16.vlgmr.msrb.gmra.mxu0 %v7074_v42 }
 0x25c   : > { %3046 = vmatmul.bf16.vlgmr.msrb.gmra.mxu1 %v7076_v43 }
 0x25d   : > { %v2214_v60 = vrot.slane %v2169_v61, 2  ;;  %3087 = vmatmul.bf16.vlgmr.msrb.gmra.mxu2 %v7078_v44  ;;  %v6828_v61 = vld [vmem:[%s8547_s1 + $0x698] sm:$0xff] }
 0x25e   : > { %3128 = vmatmul.bf16.vlgmr.msrb.gmra.mxu3 %v7080_v45  ;;  %3576 = vmatpush.bf16.msra.mxu2 %v6829_v11 }
 0x25f   : > { %v2215_v3 = vsel %vm1701_vm1, %v2212_v24, %v2214_v60  ;;  %v6813_v24 = vld [vmem:[%s8547_s1 + $0x620] sm:$0xff]  ;;  %v6836_v60 = vld [vmem:[%s8547_s1 + $0x6d8] sm:$0xff] }
 0x260   : > { %v7970_v30 = vadd.f32 %v2215_v3, %v7790_v62  ;;  %v2130_v49 = vpop.f32.mrf.mxu2  ;;  %v2049_v8 = vpop.f32.mrf.mxu0  ;;  %3494 = vmatpush.bf16.msra.mxu0 %v6813_v24  ;;  %3618 = vmatpush.bf16.msra.mxu3 %v6836_v60 }
 0x261   : > { %v2171_v63 = vpop.f32.mrf.mxu3  ;;  %v2090_v1 = vpop.f32.mrf.mxu1  ;;  %v6812_v8 = vld [vmem:[%s8547_s1 + $0x618] sm:$0xff] }
 0x262   : > { %3577 = vmatpush.bf16.msra.mxu2 %v6828_v61  ;;  %v6820_v1 = vld [vmem:[%s8547_s1 + $0x658] sm:$0xff] }
 0x263   : > { %3536 = vmatpush.bf16.msra.mxu1 %v6820_v1 }
 0x264   : > { %3495 = vmatpush.bf16.msra.mxu0 %v6812_v8 }
 0x268   : > { %v2131_v17 = vpop.f32.mrf.mxu2  ;;  %v2512_v46 = vpop.f32.mrf.mxu0 }
 0x269   : > { %v2172_v2 = vpop.f32.mrf.mxu3  ;;  %v2553_v25 = vpop.f32.mrf.mxu1 }
 0x26b   : > { %3009 = vmatmul.bf16.gmra.mxu0 %v7136_v4 }
 0x26c   : > { %3050 = vmatmul.bf16.gmra.mxu1 %v7138_v5 }
 0x26d   : > { %3091 = vmatmul.bf16.gmra.mxu2 %v7140_v6 }
 0x26e   : > { %3132 = vmatmul.bf16.gmra.mxu3 %v7142_v7 }
 0x270   : > { %v2594_v62 = vpop.f32.mrf.mxu2  ;;  %v2513_v54 = vpop.f32.mrf.mxu0 }
 0x271   : > { %v2635_v48 = vpop.f32.mrf.mxu3  ;;  %v2554_v10 = vpop.f32.mrf.mxu1 }
 0x272   : > { %v2555_v29 = vadd.f32 %v2554_v10, %v2513_v54  ;;  %v6827_v10 = vld [vmem:[%s8547_s1 + $0x690] sm:$0xff] }
 0x273   : > { %3578 = vmatpush.bf16.msra.mxu2 %v6827_v10 }
 0x278   : > { %v2595_v28 = vpop.f32.mrf.mxu2  ;;  %v2516_v41 = vpop.f32.mrf.mxu0 }
 0x279   : > { %v2636_v19 = vpop.f32.mrf.mxu3  ;;  %v2596_v53 = vadd.f32 %v2595_v28, %v2555_v29  ;;  %v2557_v9 = vpop.f32.mrf.mxu1  ;;  %v6835_v29 = vld [vmem:[%s8547_s1 + $0x6d0] sm:$0xff] }
 0x27a   : > { %v2558_v0 = vadd.f32 %v2557_v9, %v2516_v41  ;;  %v6811_v28 = vld [vmem:[%s8547_s1 + $0x610] sm:$0xff]  ;;  %3619 = vmatpush.bf16.msra.mxu3 %v6835_v29 }
 0x27b   : > { %v2637_v3 = vadd.f32 %v2636_v19, %v2596_v53  ;;  %3014 = vmatmul.bf16.gmra.mxu0 %v7168_v20 }
 0x27c   : > { %3055 = vmatmul.bf16.gmra.mxu1 %v7170_v21  ;;  %3496 = vmatpush.bf16.msra.mxu0 %v6811_v28 }
 0x27d   : > { %3096 = vmatmul.bf16.gmra.mxu2 %v7172_v22  ;;  %v2689_v62 = vrot.slane %v2637_v3, 3 }
 0x27e   : > { %3137 = vmatmul.bf16.gmra.mxu3 %v7174_v23 }
 0x280   : > { %v2598_v49 = vpop.f32.mrf.mxu2  ;;  %v2518_v2 = vpop.f32.mrf.mxu0 }
 0x281   : > { %v2639_v63 = vpop.f32.mrf.mxu3  ;;  %v2599_v17 = vadd.f32 %v2598_v49, %v2558_v0  ;;  %v2559_v11 = vpop.f32.mrf.mxu1 }
 0x282   : > { %v2560_v46 = vadd.f32 %v2559_v11, %v2518_v2 }
 0x283   : > { %v2640_v25 = vadd.f32 %v2639_v63, %v2599_v17 }
 0x285   : > { %v2690_v48 = vrot.slane %v2640_v25, 3 }
 0x287   : > { %v2691_v27 = vsel %vm2688_vm2, %v2689_v62, %v2690_v48 }
 0x288   : > { %v8006_v24 = vadd.f32 %v2691_v27, %v7842_v47  ;;  %v2600_v40 = vpop.f32.mrf.mxu2  ;;  %v2521_v61 = vpop.f32.mrf.mxu0  ;;  %v6819_v47 = vld [vmem:[%s8547_s1 + $0x650] sm:$0xff] }
 0x289   : > { %v2641_v54 = vpop.f32.mrf.mxu3  ;;  %v2601_v19 = vadd.f32 %v2600_v40, %v2560_v46  ;;  %v2562_v60 = vpop.f32.mrf.mxu1  ;;  %3537 = vmatpush.bf16.msra.mxu1 %v6819_v47 }
 0x28a   : > { %v2563_v53 = vadd.f32 %v2562_v60, %v2521_v61 }
 0x28b   : > { %v2642_v41 = vadd.f32 %v2641_v54, %v2601_v19  ;;  %3019 = vmatmul.bf16.gmra.mxu0 %v7200_v36  ;;  %v6810_v54 = vld [vmem:[%s8547_s1 + $0x608] sm:$0xff] }
 0x28c   : > { %3060 = vmatmul.bf16.gmra.mxu1 %v7202_v37  ;;  %3497 = vmatpush.bf16.msra.mxu0 %v6810_v54 }
 0x28d   : > { %v2692_v9 = vrot.slane %v2642_v41, 3  ;;  %3101 = vmatmul.bf16.gmra.mxu2 %v7204_v38 }
 0x28e   : > { %3142 = vmatmul.bf16.gmra.mxu3 %v7206_v39 }
 0x28f   : > { %v2693_v0 = vsel %vm2688_vm2, %v2690_v48, %v2692_v9  ;;  %v6834_v48 = vld [vmem:[%s8547_s1 + $0x6c8] sm:$0xff] }
 0x290   : > { %v8026_v3 = vadd.f32 %v2693_v0, %v7862_v31  ;;  %v2603_v49 = vpop.f32.mrf.mxu2  ;;  %v2523_v1 = vpop.f32.mrf.mxu0  ;;  %v6826_v31 = vld [vmem:[%s8547_s1 + $0x688] sm:$0xff]  ;;  %3620 = vmatpush.bf16.msra.mxu3 %v6834_v48  ;;  %v6825_v0 = vld [vmem:[%s8547_s1 + $0x680] sm:$0xff] }
 0x291   : > { %v2644_v63 = vpop.f32.mrf.mxu3  ;;  %v2604_v8 = vadd.f32 %v2603_v49, %v2563_v53  ;;  %v2564_v17 = vpop.f32.mrf.mxu1  ;;  %3579 = vmatpush.bf16.msra.mxu2 %v6826_v31  ;;  %v6817_v31 = vld [vmem:[%s8547_s1 + $0x640] sm:$0xff] }
 0x292   : > { %v2565_v2 = vadd.f32 %v2564_v17, %v2523_v1 }
 0x293   : > { %v2645_v11 = vadd.f32 %v2644_v63, %v2604_v8 }
 0x295   : > { %v2694_v46 = vrot.slane %v2645_v11, 3  ;;  %3580 = vmatpush.bf16.msra.mxu2 %v6825_v0 }
 0x297   : > { %v2695_v25 = vsel %vm2688_vm2, %v2692_v9, %v2694_v46 }
 0x298   : > { %v8030_v62 = vadd.f32 %v2695_v25, %v7866_v55  ;;  %v2605_v27 = vpop.f32.mrf.mxu2  ;;  %v2526_v29 = vpop.f32.mrf.mxu0  ;;  %v6818_v55 = vld [vmem:[%s8547_s1 + $0x648] sm:$0xff] }
 0x299   : > { %v2646_v40 = vpop.f32.mrf.mxu3  ;;  %v2606_v10 = vadd.f32 %v2605_v27, %v2565_v2  ;;  %v2567_v28 = vpop.f32.mrf.mxu1  ;;  %3538 = vmatpush.bf16.msra.mxu1 %v6818_v55  ;;  %v6833_v27 = vld [vmem:[%s8547_s1 + $0x6c0] sm:$0xff] }
 0x29a   : > { %v2568_v19 = vadd.f32 %v2567_v28, %v2526_v29  ;;  %3621 = vmatpush.bf16.msra.mxu3 %v6833_v27 }
 0x29b   : > { %v2647_v61 = vadd.f32 %v2646_v40, %v2606_v10  ;;  %3024 = vmatmul.bf16.gmra.mxu0 %v7232_v56  ;;  %v6809_v40 = vld [vmem:[%s8547_s1 + $0x600] sm:$0xff] }
 0x29c   : > { %3065 = vmatmul.bf16.gmra.mxu1 %v7234_v57  ;;  %3498 = vmatpush.bf16.msra.mxu0 %v6809_v40 }
 0x29d   : > { %v2696_v60 = vrot.slane %v2647_v61, 3  ;;  %3106 = vmatmul.bf16.gmra.mxu2 %v7236_v58  ;;  %3539 = vmatpush.bf16.msra.mxu1 %v6817_v31 }
 0x29e   : > { %3147 = vmatmul.bf16.gmra.mxu3 %v7238_v59 }
 0x29f   : > { %v2697_v47 = vsel %vm2688_vm2, %v2694_v46, %v2696_v60 }
 0x2a0   : > { %v8050_v53 = vadd.f32 %v2697_v47, %v7886_v18  ;;  %v2608_v41 = vpop.f32.mrf.mxu2  ;;  %v2528_v63 = vpop.f32.mrf.mxu0  ;;  %v6864_v47 = vld [vmem:[%s8547_s1 + $0x7b8] sm:$0xff] }
 0x2a1   : > { %v2649_v9 = vpop.f32.mrf.mxu3  ;;  %v2609_v49 = vadd.f32 %v2608_v41, %v2568_v19  ;;  %v2569_v8 = vpop.f32.mrf.mxu1  ;;  %v6872_v41 = vld [vmem:[%s8547_s1 + $0x7f8] sm:$0xff]  ;;  %4066 = vmatpush.bf16.msrb.mxu2 %v6864_v47 }
 0x2a2   : > { %v2570_v1 = vadd.f32 %v2569_v8, %v2528_v63  ;;  %4107 = vmatpush.bf16.msrb.mxu3 %v6872_v41 }
 0x2a3   : > { %v2650_v17 = vadd.f32 %v2649_v9, %v2609_v49  ;;  %v6848_v9 = vld [vmem:[%s8547_s1 + $0x738] sm:$0xff] }
 0x2a4   : > { %3984 = vmatpush.bf16.msrb.mxu0 %v6848_v9 }
 0x2a5   : > { %v2698_v2 = vrot.slane %v2650_v17, 3 }
 0x2a7   : > { %v2699_v11 = vsel %vm2688_vm2, %v2696_v60, %v2698_v2 }
 0x2a8   : > { %v8057_v46 = vadd.f32 %v2699_v11, %v7893_v52  ;;  %v2610_v18 = vpop.f32.mrf.mxu2  ;;  %v2531_v54 = vpop.f32.mrf.mxu0 }
 0x2a9   : > { %v2651_v25 = vpop.f32.mrf.mxu3  ;;  %v2611_v48 = vadd.f32 %v2610_v18, %v2570_v1  ;;  %v2572_v10 = vpop.f32.mrf.mxu1 }
 0x2aa   : > { %v2573_v29 = vadd.f32 %v2572_v10, %v2531_v54 }
 0x2ab   : > { %v2652_v52 = vadd.f32 %v2651_v25, %v2611_v48  ;;  %3029 = vmatmul.bf16.gmra.mxu0 %v7264_v12  ;;  %v6863_v48 = vld [vmem:[%s8547_s1 + $0x7b0] sm:$0xff] }
 0x2ac   : > { %3070 = vmatmul.bf16.gmra.mxu1 %v7266_v13  ;;  %4067 = vmatpush.bf16.msrb.mxu2 %v6863_v48  ;;  %v6846_v48 = vld [vmem:[%s8547_s1 + $0x728] sm:$0xff] }
 0x2ad   : > { %v2700_v28 = vrot.slane %v2652_v52, 3  ;;  %3111 = vmatmul.bf16.gmra.mxu2 %v7268_v14  ;;  %v6847_v52 = vld [vmem:[%s8547_s1 + $0x730] sm:$0xff] }
 0x2ae   : > { %3152 = vmatmul.bf16.gmra.mxu3 %v7270_v15  ;;  %3985 = vmatpush.bf16.msrb.mxu0 %v6847_v52 }
 0x2af   : > { %v2701_v55 = vsel %vm2688_vm2, %v2698_v2, %v2700_v28 }
 0x2b0   : > { %v8074_v19 = vadd.f32 %v2701_v55, %v7910_v16  ;;  %v2613_v61 = vpop.f32.mrf.mxu2  ;;  %v2533_v49 = vpop.f32.mrf.mxu0  ;;  %v6856_v16 = vld [vmem:[%s8547_s1 + $0x778] sm:$0xff] }
 0x2b1   : > { %v2654_v60 = vpop.f32.mrf.mxu3  ;;  %v2614_v0 = vadd.f32 %v2613_v61, %v2573_v29  ;;  %v2574_v63 = vpop.f32.mrf.mxu1  ;;  %4025 = vmatpush.bf16.msrb.mxu1 %v6856_v16 }
 0x2b2   : > { %v2575_v8 = vadd.f32 %v2574_v63, %v2533_v49  ;;  %3986 = vmatpush.bf16.msrb.mxu0 %v6846_v48 }
 0x2b3   : > { %v2655_v1 = vadd.f32 %v2654_v60, %v2614_v0 }
 0x2b5   : > { %v2702_v17 = vrot.slane %v2655_v1, 3 }
 0x2b7   : > { %v2703_v2 = vsel %vm2688_vm2, %v2700_v28, %v2702_v17  ;;  %v6855_v28 = vld [vmem:[%s8547_s1 + $0x770] sm:$0xff] }
 0x2b8   : > { %v8090_v11 = vadd.f32 %v2703_v2, %v7926_v51  ;;  %v2615_v18 = vpop.f32.mrf.mxu2  ;;  %v2536_v40 = vpop.f32.mrf.mxu0  ;;  %v6871_v51 = vld [vmem:[%s8547_s1 + $0x7f0] sm:$0xff]  ;;  %4026 = vmatpush.bf16.msrb.mxu1 %v6855_v28 }
 0x2b9   : > { %v2656_v25 = vpop.f32.mrf.mxu3  ;;  %v2616_v27 = vadd.f32 %v2615_v18, %v2575_v8  ;;  %v2577_v31 = vpop.f32.mrf.mxu1  ;;  %4108 = vmatpush.bf16.msrb.mxu3 %v6871_v51 }
 0x2ba   : > { %v2578_v54 = vadd.f32 %v2577_v31, %v2536_v40  ;;  %v6870_v31 = vld [vmem:[%s8547_s1 + $0x7e8] sm:$0xff] }
 0x2bb   : > { %v2657_v10 = vadd.f32 %v2656_v25, %v2616_v27  ;;  %3034 = vmatmul.bf16.gmra.mxu0 %v7296_v32 }
 0x2bc   : > { %3075 = vmatmul.bf16.gmra.mxu1 %v7298_v33 }
 0x2bd   : > { %v2704_v29 = vrot.slane %v2657_v10, 3  ;;  %3116 = vmatmul.bf16.gmra.mxu2 %v7300_v34  ;;  %4109 = vmatpush.bf16.msrb.mxu3 %v6870_v31 }
 0x2be   : > { %3157 = vmatmul.bf16.gmra.mxu3 %v7302_v35 }
 0x2bf   : > { %v2705_v55 = vsel %vm2688_vm2, %v2702_v17, %v2704_v29 }
 0x2c0   : > { %v8110_v61 = vadd.f32 %v2705_v55, %v7946_v26  ;;  %v2618_v60 = vpop.f32.mrf.mxu2  ;;  %v2538_v9 = vpop.f32.mrf.mxu0 }
 0x2c1   : > { %v2659_v47 = vpop.f32.mrf.mxu3  ;;  %v2619_v41 = vadd.f32 %v2618_v60, %v2578_v54  ;;  %v2579_v0 = vpop.f32.mrf.mxu1  ;;  %v6854_v54 = vld [vmem:[%s8547_s1 + $0x768] sm:$0xff] }
 0x2c2   : > { %v2580_v49 = vadd.f32 %v2579_v0, %v2538_v9  ;;  %4027 = vmatpush.bf16.msrb.mxu1 %v6854_v54 }
 0x2c3   : > { %v2660_v63 = vadd.f32 %v2659_v47, %v2619_v41  ;;  %v6861_v41 = vld [vmem:[%s8547_s1 + $0x7a0] sm:$0xff] }
 0x2c5   : > { %v2706_v16 = vrot.slane %v2660_v63, 3  ;;  %v6869_v63 = vld [vmem:[%s8547_s1 + $0x7e0] sm:$0xff] }
 0x2c6   : > { %4110 = vmatpush.bf16.msrb.mxu3 %v6869_v63 }
 0x2c7   : > { %v2707_v8 = vsel %vm2688_vm2, %v2704_v29, %v2706_v16 }
 0x2c8   : > { %v8114_v1 = vadd.f32 %v2707_v8, %v7950_v50  ;;  %v2620_v17 = vpop.f32.mrf.mxu2  ;;  %v2541_v25 = vpop.f32.mrf.mxu0  ;;  %v6862_v50 = vld [vmem:[%s8547_s1 + $0x7a8] sm:$0xff]  ;;  %v6853_v8 = vld [vmem:[%s8547_s1 + $0x760] sm:$0xff] }
 0x2c9   : > { %v2661_v2 = vpop.f32.mrf.mxu3  ;;  %v2621_v18 = vadd.f32 %v2620_v17, %v2580_v49  ;;  %v2582_v26 = vpop.f32.mrf.mxu1  ;;  %4068 = vmatpush.bf16.msrb.mxu2 %v6862_v50  ;;  %4028 = vmatpush.bf16.msrb.mxu1 %v6853_v8 }
 0x2cb   : > { %v2662_v27 = vadd.f32 %v2661_v2, %v2621_v18  ;;  %3499 = vmatmul.bf16.vlgmr.msra.gmra.mxu0 %v7074_v42 }
 0x2cc   : > { %3540 = vmatmul.bf16.vlgmr.msra.gmra.mxu1 %v7076_v43 }
 0x2cd   : > { %v2708_v40 = vrot.slane %v2662_v27, 3  ;;  %3581 = vmatmul.bf16.vlgmr.msra.gmra.mxu2 %v7078_v44  ;;  %v6860_v27 = vld [vmem:[%s8547_s1 + $0x798] sm:$0xff] }
 0x2ce   : > { %3622 = vmatmul.bf16.vlgmr.msra.gmra.mxu3 %v7080_v45  ;;  %4069 = vmatpush.bf16.msrb.mxu2 %v6861_v41 }
 0x2cf   : > { %v2709_v10 = vsel %vm2688_vm2, %v2706_v16, %v2708_v40  ;;  %v6845_v16 = vld [vmem:[%s8547_s1 + $0x720] sm:$0xff]  ;;  %v6868_v40 = vld [vmem:[%s8547_s1 + $0x7d8] sm:$0xff] }
 0x2d0   : > { %v8134_v29 = vadd.f32 %v2709_v10, %v7970_v30  ;;  %v2623_v51 = vpop.f32.mrf.mxu2  ;;  %v2542_v28 = vpop.f32.mrf.mxu0  ;;  %3987 = vmatpush.bf16.msrb.mxu0 %v6845_v16  ;;  %4111 = vmatpush.bf16.msrb.mxu3 %v6868_v40 }
 0x2d1   : > { %v2664_v52 = vpop.f32.mrf.mxu3  ;;  %v2583_v55 = vpop.f32.mrf.mxu1  ;;  %v6844_v28 = vld [vmem:[%s8547_s1 + $0x718] sm:$0xff] }
 0x2d2   : > { %4070 = vmatpush.bf16.msrb.mxu2 %v6860_v27  ;;  %v6852_v55 = vld [vmem:[%s8547_s1 + $0x758] sm:$0xff] }
 0x2d3   : > { %4029 = vmatpush.bf16.msrb.mxu1 %v6852_v55 }
 0x2d4   : > { %3988 = vmatpush.bf16.msrb.mxu0 %v6844_v28 }
 0x2d8   : > { %v2624_v60 = vpop.f32.mrf.mxu2  ;;  %v3006_v9 = vpop.f32.mrf.mxu0 }
 0x2d9   : > { %v2665_v47 = vpop.f32.mrf.mxu3  ;;  %v3047_v0 = vpop.f32.mrf.mxu1 }
 0x2db   : > { %3502 = vmatmul.bf16.gmra.mxu0 %v7136_v4 }
 0x2dc   : > { %3543 = vmatmul.bf16.gmra.mxu1 %v7138_v5 }
 0x2dd   : > { %3584 = vmatmul.bf16.gmra.mxu2 %v7140_v6 }
 0x2de   : > { %3625 = vmatmul.bf16.gmra.mxu3 %v7142_v7 }
 0x2e0   : > { %v3088_v30 = vpop.f32.mrf.mxu2  ;;  %v3007_v17 = vpop.f32.mrf.mxu0 }
 0x2e1   : > { %v3129_v49 = vpop.f32.mrf.mxu3  ;;  %v3048_v2 = vpop.f32.mrf.mxu1 }
 0x2e2   : > { %v3049_v18 = vadd.f32 %v3048_v2, %v3007_v17  ;;  %v6859_v2 = vld [vmem:[%s8547_s1 + $0x790] sm:$0xff] }
 0x2e3   : > { %4071 = vmatpush.bf16.msrb.mxu2 %v6859_v2 }
 0x2e8   : > { %v3089_v25 = vpop.f32.mrf.mxu2  ;;  %v3010_v31 = vpop.f32.mrf.mxu0 }
 0x2e9   : > { %v3130_v26 = vpop.f32.mrf.mxu3  ;;  %v3090_v50 = vadd.f32 %v3089_v25, %v3049_v18  ;;  %v3051_v48 = vpop.f32.mrf.mxu1  ;;  %v6867_v18 = vld [vmem:[%s8547_s1 + $0x7d0] sm:$0xff] }
 0x2ea   : > { %v3052_v54 = vadd.f32 %v3051_v48, %v3010_v31  ;;  %v6843_v25 = vld [vmem:[%s8547_s1 + $0x710] sm:$0xff]  ;;  %4112 = vmatpush.bf16.msrb.mxu3 %v6867_v18 }
 0x2eb   : > { %v3131_v10 = vadd.f32 %v3130_v26, %v3090_v50  ;;  %3507 = vmatmul.bf16.gmra.mxu0 %v7168_v20 }
 0x2ec   : > { %3548 = vmatmul.bf16.gmra.mxu1 %v7170_v21  ;;  %3989 = vmatpush.bf16.msrb.mxu0 %v6843_v25 }
 0x2ed   : > { %3589 = vmatmul.bf16.gmra.mxu2 %v7172_v22  ;;  %v3183_v30 = vrot.slane %v3131_v10, 4 }
 0x2ee   : > { %3630 = vmatmul.bf16.gmra.mxu3 %v7174_v23 }
 0x2f0   : > { %v3092_v51 = vpop.f32.mrf.mxu2  ;;  %v3012_v47 = vpop.f32.mrf.mxu0 }
 0x2f1   : > { %v3133_v52 = vpop.f32.mrf.mxu3  ;;  %v3093_v60 = vadd.f32 %v3092_v51, %v3052_v54  ;;  %v3053_v41 = vpop.f32.mrf.mxu1 }
 0x2f2   : > { %v3054_v9 = vadd.f32 %v3053_v41, %v3012_v47 }
 0x2f3   : > { %v3134_v0 = vadd.f32 %v3133_v52, %v3093_v60 }
 0x2f5   : > { %v3184_v49 = vrot.slane %v3134_v0, 4 }
 0x2f7   : > { %v3185_v63 = vsel %vm3182_vm3, %v3183_v30, %v3184_v49 }
 0x2f8   : > { %v8170_v16 = vadd.f32 %v3185_v63, %v8006_v24  ;;  %v3094_v8 = vpop.f32.mrf.mxu2  ;;  %v3015_v27 = vpop.f32.mrf.mxu0  ;;  %v6851_v24 = vld [vmem:[%s8547_s1 + $0x750] sm:$0xff] }
 0x2f9   : > { %v3135_v17 = vpop.f32.mrf.mxu3  ;;  %v3095_v26 = vadd.f32 %v3094_v8, %v3054_v9  ;;  %v3056_v40 = vpop.f32.mrf.mxu1  ;;  %4030 = vmatpush.bf16.msrb.mxu1 %v6851_v24 }
 0x2fa   : > { %v3057_v50 = vadd.f32 %v3056_v40, %v3015_v27 }
 0x2fb   : > { %v3136_v31 = vadd.f32 %v3135_v17, %v3095_v26  ;;  %3512 = vmatmul.bf16.gmra.mxu0 %v7200_v36  ;;  %v6842_v17 = vld [vmem:[%s8547_s1 + $0x708] sm:$0xff] }
 0x2fc   : > { %3553 = vmatmul.bf16.gmra.mxu1 %v7202_v37  ;;  %3990 = vmatpush.bf16.msrb.mxu0 %v6842_v17 }
 0x2fd   : > { %v3186_v48 = vrot.slane %v3136_v31, 4  ;;  %3594 = vmatmul.bf16.gmra.mxu2 %v7204_v38 }
 0x2fe   : > { %3635 = vmatmul.bf16.gmra.mxu3 %v7206_v39 }
 0x2ff   : > { %v3187_v54 = vsel %vm3182_vm3, %v3184_v49, %v3186_v48  ;;  %v6866_v49 = vld [vmem:[%s8547_s1 + $0x7c8] sm:$0xff] }
 0x300   : > { %v8190_v10 = vadd.f32 %v3187_v54, %v8026_v3  ;;  %v3097_v51 = vpop.f32.mrf.mxu2  ;;  %v3017_v55 = vpop.f32.mrf.mxu0  ;;  %v6858_v3 = vld [vmem:[%s8547_s1 + $0x788] sm:$0xff]  ;;  %4113 = vmatpush.bf16.msrb.mxu3 %v6866_v49  ;;  %v6857_v54 = vld [vmem:[%s8547_s1 + $0x780] sm:$0xff] }
 0x301   : > { %v3138_v52 = vpop.f32.mrf.mxu3  ;;  %v3098_v28 = vadd.f32 %v3097_v51, %v3057_v50  ;;  %v3058_v60 = vpop.f32.mrf.mxu1  ;;  %4072 = vmatpush.bf16.msrb.mxu2 %v6858_v3  ;;  %v6849_v3 = vld [vmem:[%s8547_s1 + $0x740] sm:$0xff] }
 0x302   : > { %v3059_v47 = vadd.f32 %v3058_v60, %v3017_v55 }
 0x303   : > { %v3139_v41 = vadd.f32 %v3138_v52, %v3098_v28 }
 0x305   : > { %v3188_v9 = vrot.slane %v3139_v41, 4  ;;  %4073 = vmatpush.bf16.msrb.mxu2 %v6857_v54 }
 0x307   : > { %v3189_v0 = vsel %vm3182_vm3, %v3186_v48, %v3188_v9 }
 0x308   : > { %v8194_v30 = vadd.f32 %v3189_v0, %v8030_v62  ;;  %v3099_v63 = vpop.f32.mrf.mxu2  ;;  %v3020_v18 = vpop.f32.mrf.mxu0  ;;  %v6850_v62 = vld [vmem:[%s8547_s1 + $0x748] sm:$0xff] }
 0x309   : > { %v3140_v8 = vpop.f32.mrf.mxu3  ;;  %v3100_v2 = vadd.f32 %v3099_v63, %v3059_v47  ;;  %v3061_v25 = vpop.f32.mrf.mxu1  ;;  %4031 = vmatpush.bf16.msrb.mxu1 %v6850_v62  ;;  %v6865_v63 = vld [vmem:[%s8547_s1 + $0x7c0] sm:$0xff] }
 0x30a   : > { %v3062_v26 = vadd.f32 %v3061_v25, %v3020_v18  ;;  %4114 = vmatpush.bf16.msrb.mxu3 %v6865_v63 }
 0x30b   : > { %v3141_v27 = vadd.f32 %v3140_v8, %v3100_v2  ;;  %3517 = vmatmul.bf16.gmra.mxu0 %v7232_v56  ;;  %v6841_v8 = vld [vmem:[%s8547_s1 + $0x700] sm:$0xff] }
 0x30c   : > { %3558 = vmatmul.bf16.gmra.mxu1 %v7234_v57  ;;  %3991 = vmatpush.bf16.msrb.mxu0 %v6841_v8 }
 0x30d   : > { %v3190_v40 = vrot.slane %v3141_v27, 4  ;;  %3599 = vmatmul.bf16.gmra.mxu2 %v7236_v58  ;;  %4032 = vmatpush.bf16.msrb.mxu1 %v6849_v3 }
 0x30e   : > { %3640 = vmatmul.bf16.gmra.mxu3 %v7238_v59 }
 0x30f   : > { %v3191_v24 = vsel %vm3182_vm3, %v3188_v9, %v3190_v40 }
 0x310   : > { %v8214_v50 = vadd.f32 %v3191_v24, %v8050_v53  ;;  %v3102_v31 = vpop.f32.mrf.mxu2  ;;  %v3022_v52 = vpop.f32.mrf.mxu0  ;;  %v6896_v24 = vld [vmem:[%s8547_s1 + $0x8b8] sm:$0xff] }
 0x311   : > { %v3143_v48 = vpop.f32.mrf.mxu3  ;;  %v3103_v51 = vadd.f32 %v3102_v31, %v3062_v26  ;;  %v3063_v28 = vpop.f32.mrf.mxu1  ;;  %v6904_v31 = vld [vmem:[%s8547_s1 + $0x8f8] sm:$0xff]  ;;  %4560 = vmatpush.bf16.msra.mxu2 %v6896_v24 }
 0x312   : > { %v3064_v55 = vadd.f32 %v3063_v28, %v3022_v52  ;;  %4601 = vmatpush.bf16.msra.mxu3 %v6904_v31 }
 0x313   : > { %v3144_v60 = vadd.f32 %v3143_v48, %v3103_v51  ;;  %v6880_v48 = vld [vmem:[%s8547_s1 + $0x838] sm:$0xff] }
 0x314   : > { %4478 = vmatpush.bf16.msra.mxu0 %v6880_v48 }
 0x315   : > { %v3192_v47 = vrot.slane %v3144_v60, 4 }
 0x317   : > { %v3193_v41 = vsel %vm3182_vm3, %v3190_v40, %v3192_v47 }
 0x318   : > { %v8221_v9 = vadd.f32 %v3193_v41, %v8057_v46  ;;  %v3104_v53 = vpop.f32.mrf.mxu2  ;;  %v3025_v17 = vpop.f32.mrf.mxu0 }
 0x319   : > { %v3145_v0 = vpop.f32.mrf.mxu3  ;;  %v3105_v49 = vadd.f32 %v3104_v53, %v3064_v55  ;;  %v3066_v2 = vpop.f32.mrf.mxu1 }
 0x31a   : > { %v3067_v18 = vadd.f32 %v3066_v2, %v3025_v17 }
 0x31b   : > { %v3146_v46 = vadd.f32 %v3145_v0, %v3105_v49  ;;  %3522 = vmatmul.bf16.gmra.mxu0 %v7264_v12  ;;  %v6895_v49 = vld [vmem:[%s8547_s1 + $0x8b0] sm:$0xff] }
 0x31c   : > { %3563 = vmatmul.bf16.gmra.mxu1 %v7266_v13  ;;  %4561 = vmatpush.bf16.msra.mxu2 %v6895_v49  ;;  %v6878_v49 = vld [vmem:[%s8547_s1 + $0x828] sm:$0xff] }
 0x31d   : > { %v3194_v25 = vrot.slane %v3146_v46, 4  ;;  %3604 = vmatmul.bf16.gmra.mxu2 %v7268_v14  ;;  %v6879_v46 = vld [vmem:[%s8547_s1 + $0x830] sm:$0xff] }
 0x31e   : > { %3645 = vmatmul.bf16.gmra.mxu3 %v7270_v15  ;;  %4479 = vmatpush.bf16.msra.mxu0 %v6879_v46 }
 0x31f   : > { %v3195_v62 = vsel %vm3182_vm3, %v3192_v47, %v3194_v25 }
 0x320   : > { %v8238_v26 = vadd.f32 %v3195_v62, %v8074_v19  ;;  %v3107_v27 = vpop.f32.mrf.mxu2  ;;  %v3027_v51 = vpop.f32.mrf.mxu0  ;;  %v6888_v19 = vld [vmem:[%s8547_s1 + $0x878] sm:$0xff] }
 0x321   : > { %v3148_v40 = vpop.f32.mrf.mxu3  ;;  %v3108_v54 = vadd.f32 %v3107_v27, %v3067_v18  ;;  %v3068_v52 = vpop.f32.mrf.mxu1  ;;  %4519 = vmatpush.bf16.msra.mxu1 %v6888_v19 }
 0x322   : > { %v3069_v28 = vadd.f32 %v3068_v52, %v3027_v51  ;;  %4480 = vmatpush.bf16.msra.mxu0 %v6878_v49 }
 0x323   : > { %v3149_v55 = vadd.f32 %v3148_v40, %v3108_v54 }
 0x325   : > { %v3196_v60 = vrot.slane %v3149_v55, 4 }
 0x327   : > { %v3197_v47 = vsel %vm3182_vm3, %v3194_v25, %v3196_v60  ;;  %v6887_v25 = vld [vmem:[%s8547_s1 + $0x870] sm:$0xff] }
 0x328   : > { %v8254_v41 = vadd.f32 %v3197_v47, %v8090_v11  ;;  %v3109_v53 = vpop.f32.mrf.mxu2  ;;  %v3030_v8 = vpop.f32.mrf.mxu0  ;;  %v6903_v11 = vld [vmem:[%s8547_s1 + $0x8f0] sm:$0xff]  ;;  %4520 = vmatpush.bf16.msra.mxu1 %v6887_v25 }
 0x329   : > { %v3150_v0 = vpop.f32.mrf.mxu3  ;;  %v3110_v63 = vadd.f32 %v3109_v53, %v3069_v28  ;;  %v3071_v3 = vpop.f32.mrf.mxu1  ;;  %4602 = vmatpush.bf16.msra.mxu3 %v6903_v11 }
 0x32a   : > { %v3072_v17 = vadd.f32 %v3071_v3, %v3030_v8  ;;  %v6902_v8 = vld [vmem:[%s8547_s1 + $0x8e8] sm:$0xff] }
 0x32b   : > { %v3151_v2 = vadd.f32 %v3150_v0, %v3110_v63  ;;  %3527 = vmatmul.bf16.gmra.mxu0 %v7296_v32 }
 0x32c   : > { %3568 = vmatmul.bf16.gmra.mxu1 %v7298_v33 }
 0x32d   : > { %v3198_v18 = vrot.slane %v3151_v2, 4  ;;  %3609 = vmatmul.bf16.gmra.mxu2 %v7300_v34  ;;  %4603 = vmatpush.bf16.msra.mxu3 %v6902_v8 }
 0x32e   : > { %3650 = vmatmul.bf16.gmra.mxu3 %v7302_v35 }
 0x32f   : > { %v3199_v62 = vsel %vm3182_vm3, %v3196_v60, %v3198_v18 }
 0x330   : > { %v8274_v27 = vadd.f32 %v3199_v62, %v8110_v61  ;;  %v3112_v40 = vpop.f32.mrf.mxu2  ;;  %v3032_v48 = vpop.f32.mrf.mxu0  ;;  %v6894_v61 = vld [vmem:[%s8547_s1 + $0x8a8] sm:$0xff] }
 0x331   : > { %v3153_v24 = vpop.f32.mrf.mxu3  ;;  %v3113_v31 = vadd.f32 %v3112_v40, %v3072_v17  ;;  %v3073_v54 = vpop.f32.mrf.mxu1  ;;  %4562 = vmatpush.bf16.msra.mxu2 %v6894_v61  ;;  %v6886_v17 = vld [vmem:[%s8547_s1 + $0x868] sm:$0xff]  ;;  %v6893_v40 = vld [vmem:[%s8547_s1 + $0x8a0] sm:$0xff] }
 0x332   : > { %v3074_v51 = vadd.f32 %v3073_v54, %v3032_v48  ;;  %4521 = vmatpush.bf16.msra.mxu1 %v6886_v17 }
 0x333   : > { %v3154_v52 = vadd.f32 %v3153_v24, %v3113_v31 }
 0x335   : > { %v3200_v19 = vrot.slane %v3154_v52, 4  ;;  %4563 = vmatpush.bf16.msra.mxu2 %v6893_v40  ;;  %v6901_v52 = vld [vmem:[%s8547_s1 + $0x8e0] sm:$0xff] }
 0x336   : > { %4604 = vmatpush.bf16.msra.mxu3 %v6901_v52 }
 0x337   : > { %v3201_v28 = vsel %vm3182_vm3, %v3198_v18, %v3200_v19 }
 0x338   : > { %v8278_v55 = vadd.f32 %v3201_v28, %v8114_v1  ;;  %v3114_v60 = vpop.f32.mrf.mxu2  ;;  %v3035_v0 = vpop.f32.mrf.mxu0  ;;  %v6885_v28 = vld [vmem:[%s8547_s1 + $0x860] sm:$0xff] }
 0x339   : > { %v3155_v47 = vpop.f32.mrf.mxu3  ;;  %v3115_v53 = vadd.f32 %v3114_v60, %v3074_v51  ;;  %v3076_v63 = vpop.f32.mrf.mxu1  ;;  %4522 = vmatpush.bf16.msra.mxu1 %v6885_v28  ;;  %v6892_v0 = vld [vmem:[%s8547_s1 + $0x898] sm:$0xff] }
 0x33a   : > { %v6900_v63 = vld [vmem:[%s8547_s1 + $0x8d8] sm:$0xff]  ;;  %4564 = vmatpush.bf16.msra.mxu2 %v6892_v0 }
 0x33b   : > { %v3156_v3 = vadd.f32 %v3155_v47, %v3115_v53  ;;  %3992 = vmatmul.bf16.vlgmr.msrb.gmra.mxu0 %v7074_v42  ;;  %4605 = vmatpush.bf16.msra.mxu3 %v6900_v63 }
 0x33c   : > { %4033 = vmatmul.bf16.vlgmr.msrb.gmra.mxu1 %v7076_v43 }
 0x33d   : > { %v3202_v1 = vrot.slane %v3156_v3, 4  ;;  %4074 = vmatmul.bf16.vlgmr.msrb.gmra.mxu2 %v7078_v44 }
 0x33e   : > { %4115 = vmatmul.bf16.vlgmr.msrb.gmra.mxu3 %v7080_v45 }
 0x33f   : > { %v3203_v2 = vsel %vm3182_vm3, %v3200_v19, %v3202_v1  ;;  %v6877_v19 = vld [vmem:[%s8547_s1 + $0x820] sm:$0xff] }
 0x340   : > { %v8298_v18 = vadd.f32 %v3203_v2, %v8134_v29  ;;  %v3117_v11 = vpop.f32.mrf.mxu2  ;;  %v3036_v25 = vpop.f32.mrf.mxu0  ;;  %4481 = vmatpush.bf16.msra.mxu0 %v6877_v19  ;;  %v6876_v2 = vld [vmem:[%s8547_s1 + $0x818] sm:$0xff] }
 0x341   : > { %v3158_v46 = vpop.f32.mrf.mxu3  ;;  %v3077_v62 = vpop.f32.mrf.mxu1  ;;  %v6884_v11 = vld [vmem:[%s8547_s1 + $0x858] sm:$0xff] }
 0x342   : > { %4523 = vmatpush.bf16.msra.mxu1 %v6884_v11 }
 0x344   : > { %4482 = vmatpush.bf16.msra.mxu0 %v6876_v2 }
 0x348   : > { %v3118_v24 = vpop.f32.mrf.mxu2  ;;  %v3500_v48 = vpop.f32.mrf.mxu0 }
 0x349   : > { %v3159_v31 = vpop.f32.mrf.mxu3  ;;  %v3541_v54 = vpop.f32.mrf.mxu1 }
 0x34a   : > { %v6891_v54 = vld [vmem:[%s8547_s1 + $0x890] sm:$0xff] }
 0x34b   : > { %3995 = vmatmul.bf16.gmra.mxu0 %v7136_v4  ;;  %4565 = vmatpush.bf16.msra.mxu2 %v6891_v54  ;;  %v6874_v54 = vld [vmem:[%s8547_s1 + $0x808] sm:$0xff] }
 0x34c   : > { %4036 = vmatmul.bf16.gmra.mxu1 %v7138_v5 }
 0x34d   : > { %4077 = vmatmul.bf16.gmra.mxu2 %v7140_v6 }
 0x34e   : > { %4118 = vmatmul.bf16.gmra.mxu3 %v7142_v7 }
 0x350   : > { %v3582_v29 = vpop.f32.mrf.mxu2  ;;  %v3501_v60 = vpop.f32.mrf.mxu0 }
 0x351   : > { %v3623_v51 = vpop.f32.mrf.mxu3  ;;  %v3542_v47 = vpop.f32.mrf.mxu1  ;;  %v6899_v29 = vld [vmem:[%s8547_s1 + $0x8d0] sm:$0xff] }
 0x352   : > { %v6875_v51 = vld [vmem:[%s8547_s1 + $0x810] sm:$0xff]  ;;  %4606 = vmatpush.bf16.msra.mxu3 %v6899_v29 }
 0x353   : > { %v6883_v60 = vld [vmem:[%s8547_s1 + $0x850] sm:$0xff]  ;;  %4483 = vmatpush.bf16.msra.mxu0 %v6875_v51 }
 0x354   : > { %4524 = vmatpush.bf16.msra.mxu1 %v6883_v60 }
 0x357   : > { %4484 = vmatpush.bf16.msra.mxu0 %v6874_v54 }
 0x358   : > { %v3583_v61 = vpop.f32.mrf.mxu2  ;;  %v3503_v8 = vpop.f32.mrf.mxu0 }
 0x359   : > { %v3624_v53 = vpop.f32.mrf.mxu3  ;;  %v3544_v3 = vpop.f32.mrf.mxu1 }
 0x35a   : > { %v3545_v1 = vadd.f32 %v3544_v3, %v3503_v8 }
 0x35b   : > { %4000 = vmatmul.bf16.gmra.mxu0 %v7168_v20 }
 0x35c   : > { %4041 = vmatmul.bf16.gmra.mxu1 %v7170_v21 }
 0x35d   : > { %4082 = vmatmul.bf16.gmra.mxu2 %v7172_v22 }
 0x35e   : > { %4123 = vmatmul.bf16.gmra.mxu3 %v7174_v23 }
 0x360   : > { %v3585_v49 = vpop.f32.mrf.mxu2  ;;  %v3505_v25 = vpop.f32.mrf.mxu0 }
 0x361   : > { %v3626_v17 = vpop.f32.mrf.mxu3  ;;  %v3586_v46 = vadd.f32 %v3585_v49, %v3545_v1  ;;  %v3546_v62 = vpop.f32.mrf.mxu1 }
 0x362   : > { %v3547_v40 = vadd.f32 %v3546_v62, %v3505_v25 }
 0x363   : > { %v3627_v24 = vadd.f32 %v3626_v17, %v3586_v46 }
 0x365   : > { %v3676_v53 = vrot.slane %v3627_v24, 4 }
 0x368   : > { %v3587_v31 = vpop.f32.mrf.mxu2  ;;  %v3508_v19 = vpop.f32.mrf.mxu0 }
 0x369   : > { %v3628_v48 = vpop.f32.mrf.mxu3  ;;  %v3588_v52 = vadd.f32 %v3587_v31, %v3547_v40  ;;  %v3549_v28 = vpop.f32.mrf.mxu1 }
 0x36a   : > { %v3550_v47 = vadd.f32 %v3549_v28, %v3508_v19 }
 0x36b   : > { %v3629_v61 = vadd.f32 %v3628_v48, %v3588_v52  ;;  %4005 = vmatmul.bf16.gmra.mxu0 %v7200_v36  ;;  %v6898_v48 = vld [vmem:[%s8547_s1 + $0x8c8] sm:$0xff] }
 0x36c   : > { %4046 = vmatmul.bf16.gmra.mxu1 %v7202_v37  ;;  %4607 = vmatpush.bf16.msra.mxu3 %v6898_v48 }
 0x36d   : > { %v3677_v0 = vrot.slane %v3629_v61, 4  ;;  %4087 = vmatmul.bf16.gmra.mxu2 %v7204_v38 }
 0x36e   : > { %4128 = vmatmul.bf16.gmra.mxu3 %v7206_v39 }
 0x36f   : > { %v3678_v63 = vsel %vm3182_vm3, %v3676_v53, %v3677_v0 }
 0x370   : > { %v8350_v8 = vadd.f32 %v3678_v63, %v8170_v16  ;;  %v3590_v3 = vpop.f32.mrf.mxu2  ;;  %v3510_v17 = vpop.f32.mrf.mxu0  ;;  %v6890_v16 = vld [vmem:[%s8547_s1 + $0x888] sm:$0xff]  ;;  %v6889_v63 = vld [vmem:[%s8547_s1 + $0x880] sm:$0xff] }
 0x371   : > { %v3631_v1 = vpop.f32.mrf.mxu3  ;;  %v3591_v49 = vadd.f32 %v3590_v3, %v3550_v47  ;;  %v3551_v2 = vpop.f32.mrf.mxu1  ;;  %4566 = vmatpush.bf16.msra.mxu2 %v6890_v16  ;;  %v6881_v16 = vld [vmem:[%s8547_s1 + $0x840] sm:$0xff] }
 0x372   : > { %v3552_v11 = vadd.f32 %v3551_v2, %v3510_v17 }
 0x373   : > { %v3632_v46 = vadd.f32 %v3631_v1, %v3591_v49 }
 0x375   : > { %v3679_v25 = vrot.slane %v3632_v46, 4  ;;  %4567 = vmatpush.bf16.msra.mxu2 %v6889_v63 }
 0x377   : > { %v3680_v62 = vsel %vm3182_vm3, %v3677_v0, %v3679_v25 }
 0x378   : > { %v8354_v40 = vadd.f32 %v3680_v62, %v8190_v10  ;;  %v3592_v24 = vpop.f32.mrf.mxu2  ;;  %v3513_v51 = vpop.f32.mrf.mxu0  ;;  %v6882_v10 = vld [vmem:[%s8547_s1 + $0x848] sm:$0xff] }
 0x379   : > { %v3633_v31 = vpop.f32.mrf.mxu3  ;;  %v3593_v29 = vadd.f32 %v3592_v24, %v3552_v11  ;;  %v3554_v52 = vpop.f32.mrf.mxu1  ;;  %4525 = vmatpush.bf16.msra.mxu1 %v6882_v10  ;;  %v6897_v24 = vld [vmem:[%s8547_s1 + $0x8c0] sm:$0xff] }
 0x37a   : > { %v3555_v19 = vadd.f32 %v3554_v52, %v3513_v51  ;;  %4608 = vmatpush.bf16.msra.mxu3 %v6897_v24 }
 0x37b   : > { %v3634_v28 = vadd.f32 %v3633_v31, %v3593_v29  ;;  %4010 = vmatmul.bf16.gmra.mxu0 %v7232_v56  ;;  %v6873_v31 = vld [vmem:[%s8547_s1 + $0x800] sm:$0xff] }
 0x37c   : > { %4051 = vmatmul.bf16.gmra.mxu1 %v7234_v57  ;;  %4485 = vmatpush.bf16.msra.mxu0 %v6873_v31 }
 0x37d   : > { %v3681_v60 = vrot.slane %v3634_v28, 4  ;;  %4092 = vmatmul.bf16.gmra.mxu2 %v7236_v58  ;;  %4526 = vmatpush.bf16.msra.mxu1 %v6881_v16 }
 0x37e   : > { %4133 = vmatmul.bf16.gmra.mxu3 %v7238_v59 }
 0x37f   : > { %v3682_v47 = vsel %vm3182_vm3, %v3679_v25, %v3681_v60 }
 0x380   : > { %v8374_v61 = vadd.f32 %v3682_v47, %v8194_v30  ;;  %v3595_v53 = vpop.f32.mrf.mxu2  ;;  %v3515_v1 = vpop.f32.mrf.mxu0 }
 0x381   : > { %v3636_v0 = vpop.f32.mrf.mxu3  ;;  %v3596_v3 = vadd.f32 %v3595_v53, %v3555_v19  ;;  %v3556_v49 = vpop.f32.mrf.mxu1 }
 0x382   : > { %v3557_v17 = vadd.f32 %v3556_v49, %v3515_v1 }
 0x383   : > { %v3637_v2 = vadd.f32 %v3636_v0, %v3596_v3 }
 0x385   : > { %v3683_v11 = vrot.slane %v3637_v2, 4 }
 0x387   : > { %v3684_v46 = vsel %vm3182_vm3, %v3681_v60, %v3683_v11 }
 0x388   : > { %v8381_v25 = vadd.f32 %v3684_v46, %v8214_v50  ;;  %v3597_v30 = vpop.f32.mrf.mxu2  ;;  %v3518_v54 = vpop.f32.mrf.mxu0 }
 0x389   : > { %v3638_v62 = vpop.f32.mrf.mxu3  ;;  %v3598_v48 = vadd.f32 %v3597_v30, %v3557_v17  ;;  %v3559_v29 = vpop.f32.mrf.mxu1 }
 0x38a   : > { %v3560_v51 = vadd.f32 %v3559_v29, %v3518_v54 }
 0x38b   : > { %v3639_v50 = vadd.f32 %v3638_v62, %v3598_v48  ;;  %4015 = vmatmul.bf16.gmra.mxu0 %v7264_v12 }
 0x38c   : > { %4056 = vmatmul.bf16.gmra.mxu1 %v7266_v13 }
 0x38d   : > { %v3685_v52 = vrot.slane %v3639_v50, 4  ;;  %4097 = vmatmul.bf16.gmra.mxu2 %v7268_v14 }
 0x38e   : > { %4138 = vmatmul.bf16.gmra.mxu3 %v7270_v15 }
 0x38f   : > { %v3686_v10 = vsel %vm3182_vm3, %v3683_v11, %v3685_v52 }
 0x390   : > { %v8398_v19 = vadd.f32 %v3686_v10, %v8221_v9  ;;  %v3600_v28 = vpop.f32.mrf.mxu2  ;;  %v3520_v53 = vpop.f32.mrf.mxu0 }
 0x391   : > { %v3641_v60 = vpop.f32.mrf.mxu3  ;;  %v3601_v47 = vadd.f32 %v3600_v28, %v3560_v51  ;;  %v3561_v0 = vpop.f32.mrf.mxu1 }
 0x392   : > { %v3562_v63 = vadd.f32 %v3561_v0, %v3520_v53 }
 0x393   : > { %v3642_v3 = vadd.f32 %v3641_v60, %v3601_v47 }
 0x395   : > { %v3687_v1 = vrot.slane %v3642_v3, 4 }
 0x397   : > { %v3688_v49 = vsel %vm3182_vm3, %v3685_v52, %v3687_v1 }
 0x398   : > { %v8402_v17 = vadd.f32 %v3688_v49, %v8238_v26  ;;  %v3602_v2 = vpop.f32.mrf.mxu2  ;;  %v3523_v11 = vpop.f32.mrf.mxu0 }
 0x399   : > { %v3643_v46 = vpop.f32.mrf.mxu3  ;;  %v3603_v30 = vadd.f32 %v3602_v2, %v3562_v63  ;;  %v3564_v62 = vpop.f32.mrf.mxu1 }
 0x39a   : > { %v3565_v9 = vadd.f32 %v3564_v62, %v3523_v11 }
 0x39b   : > { %v3644_v24 = vadd.f32 %v3643_v46, %v3603_v30  ;;  %4020 = vmatmul.bf16.gmra.mxu0 %v7296_v32 }
 0x39c   : > { %4061 = vmatmul.bf16.gmra.mxu1 %v7298_v33 }
 0x39d   : > { %v3689_v31 = vrot.slane %v3644_v24, 4  ;;  %4102 = vmatmul.bf16.gmra.mxu2 %v7300_v34 }
 0x39e   : > { %4143 = vmatmul.bf16.gmra.mxu3 %v7302_v35 }
 0x39f   : > { %v3690_v16 = vsel %vm3182_vm3, %v3687_v1, %v3689_v31 }
 0x3a0   : > { %v8410_v26 = vadd.f32 %v3690_v16, %v8254_v41  ;;  %v3605_v48 = vpop.f32.mrf.mxu2  ;;  %v3525_v51 = vpop.f32.mrf.mxu0 }
 0x3a1   : > { %v3646_v54 = vpop.f32.mrf.mxu3  ;;  %v3606_v29 = vadd.f32 %v3605_v48, %v3565_v9  ;;  %v3566_v50 = vpop.f32.mrf.mxu1 }
 0x3a2   : > { %v3567_v52 = vadd.f32 %v3566_v50, %v3525_v51 }
 0x3a3   : > { %v3647_v10 = vadd.f32 %v3646_v54, %v3606_v29 }
 0x3a5   : > { %v3691_v28 = vrot.slane %v3647_v10, 4 }
 0x3a7   : > { %v3692_v60 = vsel %vm3182_vm3, %v3689_v31, %v3691_v28 }
 0x3a8   : > { %v8414_v47 = vadd.f32 %v3692_v60, %v8274_v27  ;;  %v3607_v53 = vpop.f32.mrf.mxu2  ;;  %v3528_v3 = vpop.f32.mrf.mxu0 }
 0x3a9   : > { %v3648_v0 = vpop.f32.mrf.mxu3  ;;  %v3608_v63 = vadd.f32 %v3607_v53, %v3567_v52  ;;  %v3569_v1 = vpop.f32.mrf.mxu1 }
 0x3aa   : > { %v3570_v41 = vadd.f32 %v3569_v1, %v3528_v3 }
 0x3ab   : > { %v3649_v49 = vadd.f32 %v3648_v0, %v3608_v63  ;;  %4486 = vmatmul.bf16.vlgmr.msra.gmra.mxu0 %v7074_v42 }
 0x3ac   : > { %4527 = vmatmul.bf16.vlgmr.msra.gmra.mxu1 %v7076_v43 }
 0x3ad   : > { %v3693_v2 = vrot.slane %v3649_v49, 4  ;;  %4568 = vmatmul.bf16.vlgmr.msra.gmra.mxu2 %v7078_v44 }
 0x3ae   : > { %4609 = vmatmul.bf16.vlgmr.msra.gmra.mxu3 %v7080_v45 }
 0x3af   : > { %v3694_v46 = vsel %vm3182_vm3, %v3691_v28, %v3693_v2 }
 0x3b0   : > { %v8422_v27 = vadd.f32 %v3694_v46, %v8278_v55  ;;  %v3610_v30 = vpop.f32.mrf.mxu2  ;;  %v3530_v9 = vpop.f32.mrf.mxu0 }
 0x3b1   : > { %v3651_v11 = vpop.f32.mrf.mxu3  ;;  %v3611_v62 = vadd.f32 %v3610_v30, %v3570_v41  ;;  %v3571_v24 = vpop.f32.mrf.mxu1 }
 0x3b3   : > { %v3652_v31 = vadd.f32 %v3651_v11, %v3611_v62 }
 0x3b5   : > { %v3695_v16 = vrot.slane %v3652_v31, 4 }
 0x3b7   : > { %v3696_v42 = vsel %vm3182_vm3, %v3693_v2, %v3695_v16 }
 0x3b8   : > { %v8426_v43 = vadd.f32 %v3696_v42, %v8298_v18  ;;  %v3612_v44 = vpop.f32.mrf.mxu2  ;;  %v3993_v45 = vpop.f32.mrf.mxu0 }
 0x3b9   : > { %v3653_v48 = vpop.f32.mrf.mxu3  ;;  %v4034_v54 = vpop.f32.mrf.mxu1 }
 0x3bb   : > { %4489 = vmatmul.bf16.gmra.mxu0 %v7136_v4 }
 0x3bc   : > { %4530 = vmatmul.bf16.gmra.mxu1 %v7138_v5 }
 0x3bd   : > { %4571 = vmatmul.bf16.gmra.mxu2 %v7140_v6 }
 0x3be   : > { %4612 = vmatmul.bf16.gmra.mxu3 %v7142_v7 }
 0x3c0   : > { %v4075_v55 = vpop.f32.mrf.mxu2  ;;  %v3994_v51 = vpop.f32.mrf.mxu0 }
 0x3c1   : > { %v4116_v29 = vpop.f32.mrf.mxu3  ;;  %v4035_v50 = vpop.f32.mrf.mxu1 }
 0x3c8   : > { %v4076_v52 = vpop.f32.mrf.mxu2  ;;  %v3996_v18 = vpop.f32.mrf.mxu0 }
 0x3c9   : > { %v4117_v10 = vpop.f32.mrf.mxu3  ;;  %v4037_v28 = vpop.f32.mrf.mxu1 }
 0x3ca   : > { %v4038_v60 = vadd.f32 %v4037_v28, %v3996_v18 }
 0x3cb   : > { %4494 = vmatmul.bf16.gmra.mxu0 %v7168_v20 }
 0x3cc   : > { %4535 = vmatmul.bf16.gmra.mxu1 %v7170_v21 }
 0x3cd   : > { %4576 = vmatmul.bf16.gmra.mxu2 %v7172_v22 }
 0x3ce   : > { %4617 = vmatmul.bf16.gmra.mxu3 %v7174_v23 }
 0x3d0   : > { %v4078_v4 = vpop.f32.mrf.mxu2  ;;  %v3998_v7 = vpop.f32.mrf.mxu0 }
 0x3d1   : > { %v4119_v5 = vpop.f32.mrf.mxu3  ;;  %v4079_v6 = vadd.f32 %v4078_v4, %v4038_v60  ;;  %v4039_v53 = vpop.f32.mrf.mxu1 }
 0x3d2   : > { %v4040_v0 = vadd.f32 %v4039_v53, %v3998_v7 }
 0x3d3   : > { %v4120_v63 = vadd.f32 %v4119_v5, %v4079_v6 }
 0x3d5   : > { %v4170_v21 = vrot.slane %v4120_v63, 5 }
 0x3d8   : > { %v4080_v3 = vpop.f32.mrf.mxu2  ;;  %v4001_v49 = vpop.f32.mrf.mxu0 }
 0x3d9   : > { %v4121_v1 = vpop.f32.mrf.mxu3  ;;  %v4081_v41 = vadd.f32 %v4080_v3, %v4040_v0  ;;  %v4042_v2 = vpop.f32.mrf.mxu1 }
 0x3da   : > { %v4043_v46 = vadd.f32 %v4042_v2, %v4001_v49 }
 0x3db   : > { %v4122_v20 = vadd.f32 %v4121_v1, %v4081_v41  ;;  %4499 = vmatmul.bf16.gmra.mxu0 %v7200_v36 }
 0x3dc   : > { %4540 = vmatmul.bf16.gmra.mxu1 %v7202_v37 }
 0x3dd   : > { %v4171_v22 = vrot.slane %v4122_v20, 5  ;;  %4581 = vmatmul.bf16.gmra.mxu2 %v7204_v38 }
 0x3de   : > { %4622 = vmatmul.bf16.gmra.mxu3 %v7206_v39 }
 0x3df   : > { %v4172_v23 = vsel %vm4169_vm4, %v4170_v21, %v4171_v22 }
 0x3e0   : > { %v8442_v30 = vadd.f32 %v4172_v23, %v8350_v8  ;;  %v4083_v11 = vpop.f32.mrf.mxu2  ;;  %v4003_v24 = vpop.f32.mrf.mxu0 }
 0x3e1   : > { %v4124_v62 = vpop.f32.mrf.mxu3  ;;  %v4084_v9 = vadd.f32 %v4083_v11, %v4043_v46  ;;  %v4044_v31 = vpop.f32.mrf.mxu1 }
 0x3e2   : > { %v4045_v16 = vadd.f32 %v4044_v31, %v4003_v24 }
 0x3e3   : > { %v4125_v36 = vadd.f32 %v4124_v62, %v4084_v9 }
 0x3e5   : > { %v4173_v42 = vrot.slane %v4125_v36, 5 }
 0x3e7   : > { %v4174_v37 = vsel %vm4169_vm4, %v4171_v22, %v4173_v42 }
 0x3e8   : > { %v8446_v44 = vadd.f32 %v4174_v37, %v8354_v40  ;;  %v4085_v38 = vpop.f32.mrf.mxu2  ;;  %v4006_v45 = vpop.f32.mrf.mxu0 }
 0x3e9   : > { %v4126_v39 = vpop.f32.mrf.mxu3  ;;  %v4086_v48 = vadd.f32 %v4085_v38, %v4045_v16  ;;  %v4047_v54 = vpop.f32.mrf.mxu1 }
 0x3ea   : > { %v4048_v8 = vadd.f32 %v4047_v54, %v4006_v45 }
 0x3eb   : > { %v4127_v55 = vadd.f32 %v4126_v39, %v4086_v48  ;;  %4504 = vmatmul.bf16.gmra.mxu0 %v7232_v56 }
 0x3ec   : > { %4545 = vmatmul.bf16.gmra.mxu1 %v7234_v57 }
 0x3ed   : > { %v4175_v29 = vrot.slane %v4127_v55, 5  ;;  %4586 = vmatmul.bf16.gmra.mxu2 %v7236_v58 }
 0x3ee   : > { %4627 = vmatmul.bf16.gmra.mxu3 %v7238_v59 }
 0x3ef   : > { %v4176_v51 = vsel %vm4169_vm4, %v4173_v42, %v4175_v29 }
 0x3f0   : > { %v8454_v40 = vadd.f32 %v4176_v51, %v8374_v61  ;;  %v4088_v50 = vpop.f32.mrf.mxu2  ;;  %v4008_v18 = vpop.f32.mrf.mxu0 }
 0x3f1   : > { %v4129_v52 = vpop.f32.mrf.mxu3  ;;  %v4089_v10 = vadd.f32 %v4088_v50, %v4048_v8  ;;  %v4049_v28 = vpop.f32.mrf.mxu1 }
 0x3f2   : > { %v4050_v60 = vadd.f32 %v4049_v28, %v4008_v18 }
 0x3f3   : > { %v4130_v4 = vadd.f32 %v4129_v52, %v4089_v10 }
 0x3f5   : > { %v4177_v56 = vrot.slane %v4130_v4, 5 }
 0x3f7   : > { %v4178_v57 = vsel %vm4169_vm4, %v4175_v29, %v4177_v56 }
 0x3f8   : > { %v8458_v5 = vadd.f32 %v4178_v57, %v8381_v25  ;;  %v4090_v58 = vpop.f32.mrf.mxu2  ;;  %v4011_v7 = vpop.f32.mrf.mxu0 }
 0x3f9   : > { %v4131_v59 = vpop.f32.mrf.mxu3  ;;  %v4091_v6 = vadd.f32 %v4090_v58, %v4050_v60  ;;  %v4052_v53 = vpop.f32.mrf.mxu1 }
 0x3fa   : > { %v4053_v61 = vadd.f32 %v4052_v53, %v4011_v7 }
 0x3fb   : > { %v4132_v0 = vadd.f32 %v4131_v59, %v4091_v6  ;;  %4509 = vmatmul.bf16.gmra.mxu0 %v7264_v12 }
 0x3fc   : > { %4550 = vmatmul.bf16.gmra.mxu1 %v7266_v13 }
 0x3fd   : > { %v4179_v63 = vrot.slane %v4132_v0, 5  ;;  %4591 = vmatmul.bf16.gmra.mxu2 %v7268_v14 }
 0x3fe   : > { %4632 = vmatmul.bf16.gmra.mxu3 %v7270_v15 }
 0x3ff   : > { %v4180_v3 = vsel %vm4169_vm4, %v4177_v56, %v4179_v63 }
 0x400   : > { %v8466_v25 = vadd.f32 %v4180_v3, %v8398_v19  ;;  %v4093_v1 = vpop.f32.mrf.mxu2  ;;  %v4013_v2 = vpop.f32.mrf.mxu0 }
 0x401   : > { %v4134_v41 = vpop.f32.mrf.mxu3  ;;  %v4094_v49 = vadd.f32 %v4093_v1, %v4053_v61  ;;  %v4054_v46 = vpop.f32.mrf.mxu1 }
 0x402   : > { %v4055_v20 = vadd.f32 %v4054_v46, %v4013_v2 }
 0x403   : > { %v4135_v21 = vadd.f32 %v4134_v41, %v4094_v49 }
 0x405   : > { %v4181_v12 = vrot.slane %v4135_v21, 5 }
 0x407   : > { %v4182_v13 = vsel %vm4169_vm4, %v4179_v63, %v4181_v12 }
 0x408   : > { %v8470_v22 = vadd.f32 %v4182_v13, %v8402_v17  ;;  %v4095_v14 = vpop.f32.mrf.mxu2  ;;  %v4016_v11 = vpop.f32.mrf.mxu0 }
 0x409   : > { %v4136_v15 = vpop.f32.mrf.mxu3  ;;  %v4096_v23 = vadd.f32 %v4095_v14, %v4055_v20  ;;  %v4057_v62 = vpop.f32.mrf.mxu1 }
 0x40a   : > { %v4058_v19 = vadd.f32 %v4057_v62, %v4016_v11 }
 0x40b   : > { %v4137_v9 = vadd.f32 %v4136_v15, %v4096_v23  ;;  %4514 = vmatmul.bf16.gmra.mxu0 %v7296_v32 }
 0x40c   : > { %4555 = vmatmul.bf16.gmra.mxu1 %v7298_v33 }
 0x40d   : > { %v4183_v24 = vrot.slane %v4137_v9, 5  ;;  %4596 = vmatmul.bf16.gmra.mxu2 %v7300_v34 }
 0x40e   : > { %4637 = vmatmul.bf16.gmra.mxu3 %v7302_v35 }
 0x40f   : > { %v4184_v31 = vsel %vm4169_vm4, %v4181_v12, %v4183_v24 }
 0x410   : > { %v8478_v17 = vadd.f32 %v4184_v31, %v8410_v26  ;;  %v4098_v16 = vpop.f32.mrf.mxu2  ;;  %v4018_v37 = vpop.f32.mrf.mxu0 }
 0x411   : > { %v4139_v36 = vpop.f32.mrf.mxu3  ;;  %v4099_v42 = vadd.f32 %v4098_v16, %v4058_v19  ;;  %v4059_v38 = vpop.f32.mrf.mxu1 }
 0x412   : > { %v4060_v39 = vadd.f32 %v4059_v38, %v4018_v37 }
 0x413   : > { %v4140_v48 = vadd.f32 %v4139_v36, %v4099_v42  ;;  %v8496_v36 = vld [vmem:[%s8548_s2] ss:$0 sm:$0xff] }
 0x415   : > { %v4185_v32 = vrot.slane %v4140_v48, 5 }
 0x417   : > { %v4186_v33 = vsel %vm4169_vm4, %v4183_v24, %v4185_v32 }
 0x418   : > { %v8482_v45 = vadd.f32 %v4186_v33, %v8414_v47  ;;  %v4100_v34 = vpop.f32.mrf.mxu2  ;;  %v4021_v8 = vpop.f32.mrf.mxu0 }
 0x419   : > { %v4141_v35 = vpop.f32.mrf.mxu3  ;;  %v4101_v54 = vadd.f32 %v4100_v34, %v4060_v39  ;;  %v4062_v55 = vpop.f32.mrf.mxu1 }
 0x41a   : > { %v4063_v26 = vadd.f32 %v4062_v55, %v4021_v8 }
 0x41b   : > { %v4142_v29 = vadd.f32 %v4141_v35, %v4101_v54 }
 0x41d   : > { %v4187_v51 = vrot.slane %v4142_v29, 5 }
 0x41f   : > { %v4188_v50 = vsel %vm4169_vm4, %v4185_v32, %v4187_v51 }
 0x420   : > { %v8486_v52 = vadd.f32 %v4188_v50, %v8422_v27  ;;  %v4103_v10 = vpop.f32.mrf.mxu2  ;;  %v4023_v60 = vpop.f32.mrf.mxu0 }
 0x421   : > { %v4144_v18 = vpop.f32.mrf.mxu3  ;;  %v4104_v28 = vadd.f32 %v4103_v10, %v4063_v26  ;;  %v4064_v4 = vpop.f32.mrf.mxu1 }
 0x423   : > { %v4145_v47 = vadd.f32 %v4144_v18, %v4104_v28 }
 0x425   : > { %v4189_v56 = vrot.slane %v4145_v47, 5 }
 0x427   : > { %v4190_v57 = vsel %vm4169_vm4, %v4187_v51, %v4189_v56 }
 0x428   : > { %v8490_v58 = vadd.f32 %v4190_v57, %v8426_v43  ;;  %v4105_v59 = vpop.f32.mrf.mxu2  ;;  %v4487_v7 = vpop.f32.mrf.mxu0 }
 0x429   : > { %v4146_v6 = vpop.f32.mrf.mxu3  ;;  %v4528_v53 = vpop.f32.mrf.mxu1 }
 0x430   : > { %v4569_v61 = vpop.f32.mrf.mxu2  ;;  %v4488_v27 = vpop.f32.mrf.mxu0 }
 0x431   : > { %v4610_v0 = vpop.f32.mrf.mxu3  ;;  %v4529_v63 = vpop.f32.mrf.mxu1 }
 0x438   : > { %v4570_v3 = vpop.f32.mrf.mxu2  ;;  %v4490_v41 = vpop.f32.mrf.mxu0 }
 0x439   : > { %v4611_v1 = vpop.f32.mrf.mxu3  ;;  %v4531_v49 = vpop.f32.mrf.mxu1 }
 0x43a   : > { %v4532_v20 = vadd.f32 %v4531_v49, %v4490_v41 }
 0x440   : > { %v4572_v2 = vpop.f32.mrf.mxu2  ;;  %v4492_v21 = vpop.f32.mrf.mxu0 }
 0x441   : > { %v4613_v46 = vpop.f32.mrf.mxu3  ;;  %v4533_v12 = vpop.f32.mrf.mxu1  ;;  %v4573_v43 = vadd.f32 %v4572_v2, %v4532_v20 }
 0x442   : > { %v4534_v13 = vadd.f32 %v4533_v12, %v4492_v21 }
 0x443   : > { %v4614_v23 = vadd.f32 %v4613_v46, %v4573_v43 }
 0x445   : > { %v4664_v24 = vrot.slane %v4614_v23, 6 }
 0x448   : > { %v4574_v14 = vpop.f32.mrf.mxu2  ;;  %v4495_v62 = vpop.f32.mrf.mxu0 }
 0x449   : > { %v4615_v15 = vpop.f32.mrf.mxu3  ;;  %v4575_v11 = vadd.f32 %v4574_v14, %v4534_v13  ;;  %v4536_v19 = vpop.f32.mrf.mxu1 }
 0x44a   : > { %v4537_v16 = vadd.f32 %v4536_v19, %v4495_v62 }
 0x44b   : > { %v4616_v9 = vadd.f32 %v4615_v15, %v4575_v11 }
 0x44d   : > { %v4665_v31 = vrot.slane %v4616_v9, 6 }
 0x44f   : > { %v4666_v42 = vsel %vm4663_vm5, %v4664_v24, %v4665_v31 }
 0x450   : > { %v4695_v37 = vadd.f32 %v4666_v42, %v8442_v30  ;;  %v4577_v38 = vpop.f32.mrf.mxu2  ;;  %v4497_v32 = vpop.f32.mrf.mxu0 }
 0x451   : > { %v4618_v39 = vpop.f32.mrf.mxu3  ;;  %v4578_v48 = vadd.f32 %v4577_v38, %v4537_v16  ;;  %v4538_v33 = vpop.f32.mrf.mxu1 }
 0x452   : > { %v4729_v34 = vadd.f32 %v8496_v36, %v4695_v37  ;;  %v4539_v30 = vadd.f32 %v4538_v33, %v4497_v32 }
 0x453   : > { %v4619_v35 = vadd.f32 %v4618_v39, %v4578_v48 }
 0x454   : > { %4739 = vst [vmem:[%s8503_s27] sm:$0xff] %v4729_v34 }
 0x455   : > { %v4667_v54 = vrot.slane %v4619_v35, 6 }
 0x457   : > { %v4668_v8 = vsel %vm4663_vm5, %v4665_v31, %v4667_v54 }
 0x458   : > { %v4696_v55 = vadd.f32 %v4668_v8, %v8446_v44  ;;  %v4579_v26 = vpop.f32.mrf.mxu2  ;;  %v4500_v50 = vpop.f32.mrf.mxu0 }
 0x459   : > { %v4620_v29 = vpop.f32.mrf.mxu3  ;;  %v4580_v51 = vadd.f32 %v4579_v26, %v4539_v30  ;;  %v4541_v10 = vpop.f32.mrf.mxu1 }
 0x45a   : > { %v4730_v18 = vadd.f32 %v8496_v36, %v4696_v55  ;;  %v4542_v4 = vadd.f32 %v4541_v10, %v4500_v50 }
 0x45b   : > { %v4621_v28 = vadd.f32 %v4620_v29, %v4580_v51 }
 0x45c   : > { %4740 = vst [vmem:[%s8503_s27 + $0x8] sm:$0xff] %v4730_v18 }
 0x45d   : > { %v4669_v60 = vrot.slane %v4621_v28, 6 }
 0x45f   : > { %v4670_v47 = vsel %vm4663_vm5, %v4667_v54, %v4669_v60 }
 0x460   : > { %v4697_v56 = vadd.f32 %v4670_v47, %v8454_v40  ;;  %v4582_v57 = vpop.f32.mrf.mxu2  ;;  %v4502_v44 = vpop.f32.mrf.mxu0 }
 0x461   : > { %v4623_v59 = vpop.f32.mrf.mxu3  ;;  %v4583_v6 = vadd.f32 %v4582_v57, %v4542_v4  ;;  %v4543_v7 = vpop.f32.mrf.mxu1 }
 0x462   : > { %v4731_v53 = vadd.f32 %v8496_v36, %v4697_v56  ;;  %v4544_v63 = vadd.f32 %v4543_v7, %v4502_v44 }
 0x463   : > { %v4624_v61 = vadd.f32 %v4623_v59, %v4583_v6 }
 0x464   : > { %4741 = vst [vmem:[%s8503_s27 + $0x10] sm:$0xff] %v4731_v53 }
 0x465   : > { %v4671_v0 = vrot.slane %v4624_v61, 6 }
 0x467   : > { %v4672_v27 = vsel %vm4663_vm5, %v4669_v60, %v4671_v0 }
 0x468   : > { %v4698_v3 = vadd.f32 %v4672_v27, %v8458_v5  ;;  %v4584_v1 = vpop.f32.mrf.mxu2  ;;  %v4505_v40 = vpop.f32.mrf.mxu0 }
 0x469   : > { %v4625_v41 = vpop.f32.mrf.mxu3  ;;  %v4585_v49 = vadd.f32 %v4584_v1, %v4544_v63  ;;  %v4546_v2 = vpop.f32.mrf.mxu1 }
 0x46a   : > { %v4732_v46 = vadd.f32 %v8496_v36, %v4698_v3  ;;  %v4547_v12 = vadd.f32 %v4546_v2, %v4505_v40 }
 0x46b   : > { %v4626_v20 = vadd.f32 %v4625_v41, %v4585_v49 }
 0x46c   : > { %4742 = vst [vmem:[%s8503_s27 + $0x18] sm:$0xff] %v4732_v46 }
 0x46d   : > { %v4673_v21 = vrot.slane %v4626_v20, 6 }
 0x46f   : > { %v4674_v43 = vsel %vm4663_vm5, %v4671_v0, %v4673_v21 }
 0x470   : > { %v4699_v13 = vadd.f32 %v4674_v43, %v8466_v25  ;;  %v4587_v14 = vpop.f32.mrf.mxu2  ;;  %v4507_v5 = vpop.f32.mrf.mxu0 }
 0x471   : > { %v4628_v15 = vpop.f32.mrf.mxu3  ;;  %v4588_v23 = vadd.f32 %v4587_v14, %v4547_v12  ;;  %v4548_v11 = vpop.f32.mrf.mxu1 }
 0x472   : > { %v4733_v62 = vadd.f32 %v8496_v36, %v4699_v13  ;;  %v4549_v31 = vadd.f32 %v4548_v11, %v4507_v5 }
 0x473   : > { %v4629_v19 = vadd.f32 %v4628_v15, %v4588_v23 }
 0x474   : > { %4743 = vst [vmem:[%s8503_s27 + $0x20] sm:$0xff] %v4733_v62 }
 0x475   : > { %v4675_v9 = vrot.slane %v4629_v19, 6 }
 0x477   : > { %v4676_v24 = vsel %vm4663_vm5, %v4673_v21, %v4675_v9 }
 0x478   : > { %v4700_v16 = vadd.f32 %v4676_v24, %v8470_v22  ;;  %v4589_v42 = vpop.f32.mrf.mxu2  ;;  %v4510_v25 = vpop.f32.mrf.mxu0 }
 0x479   : > { %v4630_v37 = vpop.f32.mrf.mxu3  ;;  %v4590_v38 = vadd.f32 %v4589_v42, %v4549_v31  ;;  %v4551_v39 = vpop.f32.mrf.mxu1 }
 0x47a   : > { %v4734_v48 = vadd.f32 %v8496_v36, %v4700_v16  ;;  %v4552_v34 = vadd.f32 %v4551_v39, %v4510_v25 }
 0x47b   : > { %v4631_v32 = vadd.f32 %v4630_v37, %v4590_v38 }
 0x47c   : > { %4744 = vst [vmem:[%s8503_s27 + $0x28] sm:$0xff] %v4734_v48 }
 0x47d   : > { %v4677_v33 = vrot.slane %v4631_v32, 6 }
 0x47f   : > { %v4678_v35 = vsel %vm4663_vm5, %v4675_v9, %v4677_v33 }
 0x480   : > { %v4701_v54 = vadd.f32 %v4678_v35, %v8478_v17  ;;  %v4592_v8 = vpop.f32.mrf.mxu2  ;;  %v4512_v22 = vpop.f32.mrf.mxu0 }
 0x481   : > { %v4633_v30 = vpop.f32.mrf.mxu3  ;;  %v4593_v55 = vadd.f32 %v4592_v8, %v4552_v34  ;;  %v4553_v26 = vpop.f32.mrf.mxu1 }
 0x482   : > { %v4735_v29 = vadd.f32 %v8496_v36, %v4701_v54  ;;  %v4554_v18 = vadd.f32 %v4553_v26, %v4512_v22 }
 0x483   : > { %v4634_v51 = vadd.f32 %v4633_v30, %v4593_v55 }
 0x484   : > { %4745 = vst [vmem:[%s8503_s27 + $0x30] sm:$0xff] %v4735_v29 }
 0x485   : > { %v4679_v50 = vrot.slane %v4634_v51, 6 }
 0x487   : > { %v4680_v10 = vsel %vm4663_vm5, %v4677_v33, %v4679_v50 }
 0x488   : > { %v4702_v28 = vadd.f32 %v4680_v10, %v8482_v45  ;;  %v4594_v60 = vpop.f32.mrf.mxu2  ;;  %v4515_v17 = vpop.f32.mrf.mxu0 }
 0x489   : > { %v4635_v4 = vpop.f32.mrf.mxu3  ;;  %v4595_v47 = vadd.f32 %v4594_v60, %v4554_v18  ;;  %v4556_v56 = vpop.f32.mrf.mxu1 }
 0x48a   : > { %v4736_v57 = vadd.f32 %v8496_v36, %v4702_v28  ;;  %v4557_v44 = vadd.f32 %v4556_v56, %v4515_v17 }
 0x48b   : > { %v4636_v59 = vadd.f32 %v4635_v4, %v4595_v47 }
 0x48c   : > { %4746 = vst [vmem:[%s8503_s27 + $0x38] sm:$0xff] %v4736_v57 }
 0x48d   : > { %v4681_v6 = vrot.slane %v4636_v59, 6 }
 0x48f   : > { %v4682_v7 = vsel %vm4663_vm5, %v4679_v50, %v4681_v6 }
 0x490   : > { %v4703_v53 = vadd.f32 %v4682_v7, %v8486_v52  ;;  %v4597_v61 = vpop.f32.mrf.mxu2  ;;  %v4517_v27 = vpop.f32.mrf.mxu0 }
 0x491   : > { %v4638_v0 = vpop.f32.mrf.mxu3  ;;  %v4598_v45 = vadd.f32 %v4597_v61, %v4557_v44  ;;  %v4558_v63 = vpop.f32.mrf.mxu1 }
 0x492   : > { %v4737_v3 = vadd.f32 %v8496_v36, %v4703_v53 }
 0x493   : > { %v4639_v1 = vadd.f32 %v4638_v0, %v4598_v45 }
 0x494   : > { %4747 = vst [vmem:[%s8503_s27 + $0x40] sm:$0xff] %v4737_v3 }
 0x495   : > { %v4683_v41 = vrot.slane %v4639_v1, 6 }
 0x497   : > { %v4684_v49 = vsel %vm4663_vm5, %v4681_v6, %v4683_v41 }
 0x498   : > { %v4704_v40 = vadd.f32 %v4684_v49, %v8490_v58  ;;  %v4599_v2 = vpop.f32.mrf.mxu2 }
 0x499   : > { %v4640_v46 = vpop.f32.mrf.mxu3 }
 0x49a   : > { %v4738_v20 = vadd.f32 %v8496_v36, %v4704_v40 }
 0x49c   : > { %4748 = vst [vmem:[%s8503_s27 + $0x48] sm:$0xff] %v4738_v20 }
 0x49d PF: > { %s13_s12 = sadd.s32 1, %s6922_s12  }
 0x49e   : > { %p10_p4 = scmp.ge.s32.totalorder %s13_s12, 4  }
 0x4a0   :  { %12 = sbr.rel (!%p10_p4) target bundleno = 1 (0x1), region = 70 }

// kernel: _lambda_.9
= control target key start
LH: loop header
LB: loop body
LE: loop exit
PB: predicated region body
PF: predicated region fallthrough
CT: control target
= control target key end

     0   :  { %s2832_s12 = smov 0   ;;  %s3347_s0 = inlined_call_operand.vmem [shape: bf16[2,20,256], index: 0, kind: input, shape index: {}]   ;;  %s3348_s1 = inlined_call_operand.vmem [shape: bf16[9,256,128], index: 1, kind: input, shape index: {}]   ;;  %s3349_s2 = inlined_call_operand.vmem [shape: f32[1,128], index: 2, kind: input, shape index: {}]   ;;  %s3350_s3 = inlined_call_operand.vmem [shape: f32[2,8,128], index: 3, kind: output, shape index: {}]  }
   0x1 LB: > { %s1783_s13 = sadd.s32 4294967295, %s2810_s12   ;;  %p1787_p0 = scmp.ge.s32.totalorder %s2810_s12, 1  ;;  %s2810_s12 = sphi %s2832_s12, %s13_s12  }
   0x2   : > { %p137_p1 = scmp.lt.s32.totalorder %s2810_s12, 3 }
   0x4   : > { %p138_p2 = pnand %p1787_p0, %p137_p1 }
   0x5   : > { %p160_p3 = scmp.lt.s32.totalorder (!%p138_p2), %s1783_s13, 1 }
   0x6   : > { %141 = sbr.rel (%p138_p2) target bundleno = 316 (0x13c), region = 32 }
   0xb   : > { %v2641_v0 = vld [vmem:[%s3348_s1 + $0x38] sm:$0xff]  ;;  %v2640_v4 = vld [vmem:[%s3348_s1 + $0x30] sm:$0xff]  ;;  %v2639_v8 = vld [vmem:[%s3348_s1 + $0x28] sm:$0xff]  ;;  %s3352_s13 = smov (!%p160_p3, %s1783_s13), 1  ;;  %vm516_vm0 = vcmask 1046528   ;;  %vm689_vm1 = vcmask 1045504  }
   0xc   : > { %v2649_v1 = vld [vmem:[%s3348_s1 + $0x78] sm:$0xff]  ;;  %317 = vmatpush.bf16.msra.mxu0 %v2641_v0  ;;  %v2648_v5 = vld [vmem:[%s3348_s1 + $0x70] sm:$0xff]  ;;  %v2647_v9 = vld [vmem:[%s3348_s1 + $0x68] sm:$0xff]  ;;  %s2794_s6 = smul.u32 24, %s3352_s13  ;;  %vm862_vm2 = vcmask 1043456   ;;  %vm1035_vm3 = vcmask 1042432  }
   0xd   : > { %v2657_v2 = vld [vmem:[%s3348_s1 + $0xb8] sm:$0xff]  ;;  %333 = vmatpush.bf16.msra.mxu1 %v2649_v1  ;;  %v2656_v6 = vld [vmem:[%s3348_s1 + $0xb0] sm:$0xff]  ;;  %v2655_v10 = vld [vmem:[%s3348_s1 + $0xa8] sm:$0xff]  ;;  %vm1208_vm4 = vcmask 1041408   ;;  %s1789_s5 = sshll.u32 %s3352_s13, 3 }
   0xe   : > { %v2665_v3 = vld [vmem:[%s3348_s1 + $0xf8] sm:$0xff]  ;;  %479 = vmatpush.bf16.msra.mxu2 %v2657_v2  ;;  %v2664_v7 = vld [vmem:[%s3348_s1 + $0xf0] sm:$0xff]  ;;  %v2663_v11 = vld [vmem:[%s3348_s1 + $0xe8] sm:$0xff]  ;;  %s2928_s19 = scalar_lea.vmem %s3347_s0, %s2794_s6  ;;  %s168_s9 = scalar_lea.vmem %s3350_s3, %s1789_s5 }
   0xf   : > { %496 = vmatpush.bf16.msra.mxu3 %v2665_v3  ;;  %v2638_v12 = vld [vmem:[%s3348_s1 + $0x20] sm:$0xff]  ;;  %v2637_v16 = vld [vmem:[%s3348_s1 + $0x18] sm:$0xff]  ;;  %v2636_v20 = vld [vmem:[%s3348_s1 + $0x10] sm:$0xff] }
  0x10   : > { %318 = vmatpush.bf16.msra.mxu0 %v2640_v4  ;;  %v2646_v13 = vld [vmem:[%s3348_s1 + $0x60] sm:$0xff]  ;;  %v2645_v17 = vld [vmem:[%s3348_s1 + $0x58] sm:$0xff]  ;;  %v2644_v21 = vld [vmem:[%s3348_s1 + $0x50] sm:$0xff] }
  0x11   : > { %334 = vmatpush.bf16.msra.mxu1 %v2648_v5  ;;  %v2654_v14 = vld [vmem:[%s3348_s1 + $0xa0] sm:$0xff]  ;;  %v2653_v18 = vld [vmem:[%s3348_s1 + $0x98] sm:$0xff]  ;;  %v2652_v22 = vld [vmem:[%s3348_s1 + $0x90] sm:$0xff] }
  0x12   : > { %480 = vmatpush.bf16.msra.mxu2 %v2656_v6  ;;  %v2662_v15 = vld [vmem:[%s3348_s1 + $0xe0] sm:$0xff]  ;;  %v2661_v19 = vld [vmem:[%s3348_s1 + $0xd8] sm:$0xff]  ;;  %v2660_v23 = vld [vmem:[%s3348_s1 + $0xd0] sm:$0xff] }
  0x13   : > { %497 = vmatpush.bf16.msra.mxu3 %v2664_v7  ;;  %v2635_v24 = vld [vmem:[%s3348_s1 + $0x8] sm:$0xff]  ;;  %v2634_v28 = vld [vmem:[%s3348_s1] sm:$0xff]  ;;  %v2673_v36 = vld [vmem:[%s3348_s1 + $0x138] sm:$0xff] }
  0x14   : > { %319 = vmatpush.bf16.msra.mxu0 %v2639_v8  ;;  %v2643_v25 = vld [vmem:[%s3348_s1 + $0x48] sm:$0xff]  ;;  %v2642_v29 = vld [vmem:[%s3348_s1 + $0x40] sm:$0xff]  ;;  %v2681_v37 = vld [vmem:[%s3348_s1 + $0x178] sm:$0xff] }
  0x15   : > { %335 = vmatpush.bf16.msra.mxu1 %v2647_v9  ;;  %v2651_v26 = vld [vmem:[%s3348_s1 + $0x88] sm:$0xff]  ;;  %v1792_v30 = vld [vmem:[%s2928_s19] sm:$0xf]  ;;  %v2632_v32 = vld [vmem:[%s2928_s19 + $0x4] sm:$0xf] }
  0x16   : > { %481 = vmatpush.bf16.msra.mxu2 %v2655_v10  ;;  %v2659_v27 = vld [vmem:[%s3348_s1 + $0xc8] sm:$0xff]  ;;  %v2650_v34 = vld [vmem:[%s3348_s1 + $0x80] sm:$0xff]  ;;  %v2689_v40 = vld [vmem:[%s3348_s1 + $0x1b8] sm:$0xff] }
  0x17   : > { %498 = vmatpush.bf16.msra.mxu3 %v2663_v11  ;;  %v2633_v31 = vld [vmem:[%s2928_s19 + $0x4] sm:$0xf0]  ;;  %v1794_v33 = vld [vmem:[%s2928_s19 + $0x8] sm:$0xf0]  ;;  %v2658_v35 = vld [vmem:[%s3348_s1 + $0xc0] sm:$0xff] }
  0x18   : > { %320 = vmatpush.bf16.msra.mxu0 %v2638_v12  ;;  %v2958_v38 = vor.u32 %v2633_v31, %v1792_v30  ;;  %v2960_v39 = vor.u32 %v2632_v32, %v1794_v33  ;;  %v2697_v41 = vld [vmem:[%s3348_s1 + $0x1f8] sm:$0xff]  ;;  %v2672_v42 = vld [vmem:[%s3348_s1 + $0x130] sm:$0xff]  ;;  %v2671_v46 = vld [vmem:[%s3348_s1 + $0x128] sm:$0xff] }
  0x19   : > { %336 = vmatpush.bf16.msra.mxu1 %v2646_v13  ;;  %v2680_v43 = vld [vmem:[%s3348_s1 + $0x170] sm:$0xff]  ;;  %v2679_v47 = vld [vmem:[%s3348_s1 + $0x168] sm:$0xff]  ;;  %v2670_v51 = vld [vmem:[%s3348_s1 + $0x120] sm:$0xff] }
  0x1a   : > { %482 = vmatpush.bf16.msra.mxu2 %v2654_v14  ;;  %v2688_v44 = vld [vmem:[%s3348_s1 + $0x1b0] sm:$0xff]  ;;  %v2687_v49 = vld [vmem:[%s3348_s1 + $0x1a8] sm:$0xff]  ;;  %v2678_v52 = vld [vmem:[%s3348_s1 + $0x160] sm:$0xff] }
  0x1b   : > { %499 = vmatpush.bf16.msra.mxu3 %v2662_v15  ;;  %v2696_v45 = vld [vmem:[%s3348_s1 + $0x1f0] sm:$0xff]  ;;  %v2695_v50 = vld [vmem:[%s3348_s1 + $0x1e8] sm:$0xff]  ;;  %v2686_v55 = vld [vmem:[%s3348_s1 + $0x1a0] sm:$0xff] }
  0x1c   : > { %321 = vmatpush.bf16.msra.mxu0 %v2637_v16  ;;  %v171_v48 = vld [vmem:[%s2928_s19 + $0x10] sm:$0x33]  ;;  %v2694_v56 = vld [vmem:[%s3348_s1 + $0x1e0] sm:$0xff]  ;;  %v2669_v57 = vld [vmem:[%s3348_s1 + $0x118] sm:$0xff] }
  0x1d   : > { %337 = vmatpush.bf16.msra.mxu1 %v2645_v17  ;;  %v211_v53 = vunpack.c.l.b16 %v171_v48  ;;  %v212_v54 = vunpack.c.h.b16 %v171_v48  ;;  %v2677_v58 = vld [vmem:[%s3348_s1 + $0x158] sm:$0xff]  ;;  %v2668_v63 = vld [vmem:[%s3348_s1 + $0x110] sm:$0xff]  ;;  %v2667_v3 = vld [vmem:[%s3348_s1 + $0x108] sm:$0xff] }
  0x1e   : > { %483 = vmatpush.bf16.msra.mxu2 %v2653_v18  ;;  %v2685_v61 = vld [vmem:[%s3348_s1 + $0x198] sm:$0xff]  ;;  %v2676_v0 = vld [vmem:[%s3348_s1 + $0x150] sm:$0xff]  ;;  %v2675_v4 = vld [vmem:[%s3348_s1 + $0x148] sm:$0xff] }
  0x1f   : > { %500 = vmatpush.bf16.msra.mxu3 %v2661_v19  ;;  %v3015_v59 = vpack.c.b16 %v211_v53, %v211_v53  ;;  %v3017_v60 = vpack.c.b16 %v212_v54, %v212_v54  ;;  %v2693_v62 = vld [vmem:[%s3348_s1 + $0x1d8] sm:$0xff]  ;;  %v2684_v1 = vld [vmem:[%s3348_s1 + $0x190] sm:$0xff]  ;;  %v2683_v5 = vld [vmem:[%s3348_s1 + $0x188] sm:$0xff] }
  0x20   : > { %322 = vmatpush.bf16.msra.mxu0 %v2636_v20  ;;  %v2692_v2 = vld [vmem:[%s3348_s1 + $0x1d0] sm:$0xff]  ;;  %v2691_v6 = vld [vmem:[%s3348_s1 + $0x1c8] sm:$0xff]  ;;  %v2666_v7 = vld [vmem:[%s3348_s1 + $0x100] sm:$0xff] }
  0x21   : > { %338 = vmatpush.bf16.msra.mxu1 %v2644_v21  ;;  %v2674_v8 = vld [vmem:[%s3348_s1 + $0x140] sm:$0xff]  ;;  %v2705_v9 = vld [vmem:[%s3348_s1 + $0x238] sm:$0xff]  ;;  %v2704_v15 = vld [vmem:[%s3348_s1 + $0x230] sm:$0xff] }
  0x22   : > { %484 = vmatpush.bf16.msra.mxu2 %v2652_v22  ;;  %v2713_v10 = vld [vmem:[%s3348_s1 + $0x278] sm:$0xff]  ;;  %v2682_v11 = vld [vmem:[%s3348_s1 + $0x180] sm:$0xff]  ;;  %v2712_v16 = vld [vmem:[%s3348_s1 + $0x270] sm:$0xff] }
  0x23   : > { %501 = vmatpush.bf16.msra.mxu3 %v2660_v23  ;;  %v2690_v12 = vld [vmem:[%s3348_s1 + $0x1c0] sm:$0xff]  ;;  %v2721_v13 = vld [vmem:[%s3348_s1 + $0x2b8] sm:$0xff]  ;;  %v2720_v17 = vld [vmem:[%s3348_s1 + $0x2b0] sm:$0xff] }
  0x24   : > { %323 = vmatpush.bf16.msra.mxu0 %v2635_v24  ;;  %v2729_v14 = vld [vmem:[%s3348_s1 + $0x2f8] sm:$0xff]  ;;  %v2728_v18 = vld [vmem:[%s3348_s1 + $0x2f0] sm:$0xff]  ;;  %v2703_v19 = vld [vmem:[%s3348_s1 + $0x228] sm:$0xff] }
  0x25   : > { %339 = vmatpush.bf16.msra.mxu1 %v2643_v25  ;;  %v2711_v20 = vld [vmem:[%s3348_s1 + $0x268] sm:$0xff]  ;;  %v2702_v23 = vld [vmem:[%s3348_s1 + $0x220] sm:$0xff]  ;;  %v2725_v30 = vld [vmem:[%s3348_s1 + $0x2d8] sm:$0xff] }
  0x26   : > { %485 = vmatpush.bf16.msra.mxu2 %v2651_v26  ;;  %v2719_v21 = vld [vmem:[%s3348_s1 + $0x2a8] sm:$0xff]  ;;  %v2710_v24 = vld [vmem:[%s3348_s1 + $0x260] sm:$0xff]  ;;  %v2700_v31 = vld [vmem:[%s3348_s1 + $0x210] sm:$0xff] }
  0x27   : > { %502 = vmatpush.bf16.msra.mxu3 %v2659_v27  ;;  %v2727_v22 = vld [vmem:[%s3348_s1 + $0x2e8] sm:$0xff]  ;;  %v2718_v25 = vld [vmem:[%s3348_s1 + $0x2a0] sm:$0xff]  ;;  %v2701_v27 = vld [vmem:[%s3348_s1 + $0x218] sm:$0xff] }
  0x28   : > { %324 = vmatpush.bf16.msra.mxu0 %v2634_v28  ;;  %v2726_v26 = vld [vmem:[%s3348_s1 + $0x2e0] sm:$0xff]  ;;  %v2709_v28 = vld [vmem:[%s3348_s1 + $0x258] sm:$0xff]  ;;  %v2708_v32 = vld [vmem:[%s3348_s1 + $0x250] sm:$0xff] }
  0x29   : > { %340 = vmatpush.bf16.msra.mxu1 %v2642_v29  ;;  %v2717_v29 = vld [vmem:[%s3348_s1 + $0x298] sm:$0xff]  ;;  %v2716_v33 = vld [vmem:[%s3348_s1 + $0x290] sm:$0xff]  ;;  %v2735_v53 = vld [vmem:[%s3348_s1 + $0x328] sm:$0xff] }
  0x2a   : > { %486 = vmatpush.bf16.msra.mxu2 %v2650_v34  ;;  %v2724_v34 = vld [vmem:[%s3348_s1 + $0x2d0] sm:$0xff]  ;;  %v2761_v48 = vld [vmem:[%s3348_s1 + $0x3f8] sm:$0xff]  ;;  %v2743_v54 = vld [vmem:[%s3348_s1 + $0x368] sm:$0xff] }
  0x2b   : > { %503 = vmatpush.bf16.msra.mxu3 %v2658_v35  ;;  %325 = vmatmul.bf16.vlgmr.msra.gmra.mxu0 %v2958_v38  ;;  %v2699_v35 = vld [vmem:[%s3348_s1 + $0x208] sm:$0xff] }
  0x2c   : > { %652 = vmatpush.bf16.msrb.mxu0 %v2673_v36  ;;  %341 = vmatmul.bf16.vlgmr.msra.gmra.mxu1 %v2960_v39  ;;  %v2707_v36 = vld [vmem:[%s3348_s1 + $0x248] sm:$0xff] }
  0x2d   : > { %669 = vmatpush.bf16.msrb.mxu1 %v2681_v37  ;;  %487 = vmatmul.bf16.vlgmr.msra.gmra.mxu2 %v2958_v38  ;;  %v2715_v37 = vld [vmem:[%s3348_s1 + $0x288] sm:$0xff] }
  0x2e   : > { %504 = vmatmul.bf16.vlgmr.msra.gmra.mxu3 %v2960_v39  ;;  %825 = vmatpush.bf16.msrb.mxu2 %v2689_v40  ;;  %v2723_v40 = vld [vmem:[%s3348_s1 + $0x2c8] sm:$0xff] }
  0x2f   : > { %842 = vmatpush.bf16.msrb.mxu3 %v2697_v41  ;;  %v2698_v41 = vld [vmem:[%s3348_s1 + $0x200] sm:$0xff] }
  0x30   : > { %653 = vmatpush.bf16.msrb.mxu0 %v2672_v42  ;;  %v2706_v42 = vld [vmem:[%s3348_s1 + $0x240] sm:$0xff] }
  0x31   : > { %670 = vmatpush.bf16.msrb.mxu1 %v2680_v43  ;;  %v2714_v43 = vld [vmem:[%s3348_s1 + $0x280] sm:$0xff] }
  0x32   : > { %826 = vmatpush.bf16.msrb.mxu2 %v2688_v44  ;;  %v2722_v44 = vld [vmem:[%s3348_s1 + $0x2c0] sm:$0xff] }
  0x33   : > { %843 = vmatpush.bf16.msrb.mxu3 %v2696_v45  ;;  %v2737_v45 = vld [vmem:[%s3348_s1 + $0x338] sm:$0xff] }
  0x34   : > { %654 = vmatpush.bf16.msrb.mxu0 %v2671_v46  ;;  %v2745_v46 = vld [vmem:[%s3348_s1 + $0x378] sm:$0xff] }
  0x35   : > { %671 = vmatpush.bf16.msrb.mxu1 %v2679_v47  ;;  %v2753_v47 = vld [vmem:[%s3348_s1 + $0x3b8] sm:$0xff] }
  0x36   : > { %827 = vmatpush.bf16.msrb.mxu2 %v2687_v49  ;;  %v2736_v49 = vld [vmem:[%s3348_s1 + $0x330] sm:$0xff] }
  0x37   : > { %844 = vmatpush.bf16.msrb.mxu3 %v2695_v50  ;;  %v2744_v50 = vld [vmem:[%s3348_s1 + $0x370] sm:$0xff] }
  0x38   : > { %655 = vmatpush.bf16.msrb.mxu0 %v2670_v51  ;;  %v2752_v51 = vld [vmem:[%s3348_s1 + $0x3b0] sm:$0xff] }
  0x39   : > { %672 = vmatpush.bf16.msrb.mxu1 %v2678_v52  ;;  %v2760_v52 = vld [vmem:[%s3348_s1 + $0x3f0] sm:$0xff] }
  0x3a   : > { %828 = vmatpush.bf16.msrb.mxu2 %v2686_v55  ;;  %v2751_v55 = vld [vmem:[%s3348_s1 + $0x3a8] sm:$0xff] }
  0x3b   : > { %845 = vmatpush.bf16.msrb.mxu3 %v2694_v56  ;;  %329 = vmatmul.bf16.gmra.mxu0 %v3015_v59  ;;  %v2759_v56 = vld [vmem:[%s3348_s1 + $0x3e8] sm:$0xff] }
  0x3c   : > { %656 = vmatpush.bf16.msrb.mxu0 %v2669_v57  ;;  %345 = vmatmul.bf16.gmra.mxu1 %v3017_v60  ;;  %v2734_v57 = vld [vmem:[%s3348_s1 + $0x320] sm:$0xff] }
  0x3d   : > { %673 = vmatpush.bf16.msrb.mxu1 %v2677_v58  ;;  %492 = vmatmul.bf16.gmra.mxu2 %v3015_v59  ;;  %v2742_v58 = vld [vmem:[%s3348_s1 + $0x360] sm:$0xff] }
  0x3e   : > { %509 = vmatmul.bf16.gmra.mxu3 %v3017_v60  ;;  %829 = vmatpush.bf16.msrb.mxu2 %v2685_v61  ;;  %v2750_v61 = vld [vmem:[%s3348_s1 + $0x3a0] sm:$0xff] }
  0x3f   : > { %846 = vmatpush.bf16.msrb.mxu3 %v2693_v62  ;;  %v2758_v62 = vld [vmem:[%s3348_s1 + $0x3e0] sm:$0xff] }
  0x40   : > { %657 = vmatpush.bf16.msrb.mxu0 %v2668_v63  ;;  %v2733_v63 = vld [vmem:[%s3348_s1 + $0x318] sm:$0xff] }
  0x41   : > { %674 = vmatpush.bf16.msrb.mxu1 %v2676_v0  ;;  %v2741_v0 = vld [vmem:[%s3348_s1 + $0x358] sm:$0xff] }
  0x42   : > { %830 = vmatpush.bf16.msrb.mxu2 %v2684_v1  ;;  %v2749_v1 = vld [vmem:[%s3348_s1 + $0x398] sm:$0xff] }
  0x43   : > { %847 = vmatpush.bf16.msrb.mxu3 %v2692_v2  ;;  %v2757_v2 = vld [vmem:[%s3348_s1 + $0x3d8] sm:$0xff] }
  0x44   : > { %658 = vmatpush.bf16.msrb.mxu0 %v2667_v3  ;;  %v2732_v3 = vld [vmem:[%s3348_s1 + $0x310] sm:$0xff] }
  0x45   : > { %675 = vmatpush.bf16.msrb.mxu1 %v2675_v4  ;;  %v2740_v4 = vld [vmem:[%s3348_s1 + $0x350] sm:$0xff] }
  0x46   : > { %831 = vmatpush.bf16.msrb.mxu2 %v2683_v5  ;;  %v2748_v5 = vld [vmem:[%s3348_s1 + $0x390] sm:$0xff] }
  0x47   : > { %848 = vmatpush.bf16.msrb.mxu3 %v2691_v6  ;;  %v2756_v6 = vld [vmem:[%s3348_s1 + $0x3d0] sm:$0xff] }
  0x48   : > { %659 = vmatpush.bf16.msrb.mxu0 %v2666_v7  ;;  %v2731_v7 = vld [vmem:[%s3348_s1 + $0x308] sm:$0xff] }
  0x49   : > { %676 = vmatpush.bf16.msrb.mxu1 %v2674_v8  ;;  %v2739_v8 = vld [vmem:[%s3348_s1 + $0x348] sm:$0xff] }
  0x4a   : > { %832 = vmatpush.bf16.msrb.mxu2 %v2682_v11  ;;  %v2730_v11 = vld [vmem:[%s3348_s1 + $0x300] sm:$0xff] }
  0x4b   : > { %849 = vmatpush.bf16.msrb.mxu3 %v2690_v12  ;;  %660 = vmatmul.bf16.vlgmr.msrb.gmra.mxu0 %v2958_v38  ;;  %v2738_v12 = vld [vmem:[%s3348_s1 + $0x340] sm:$0xff] }
  0x4c   : > { %998 = vmatpush.bf16.msra.mxu0 %v2705_v9  ;;  %677 = vmatmul.bf16.vlgmr.msrb.gmra.mxu1 %v2960_v39  ;;  %v2747_v9 = vld [vmem:[%s3348_s1 + $0x388] sm:$0xff] }
  0x4d   : > { %1015 = vmatpush.bf16.msra.mxu1 %v2713_v10  ;;  %833 = vmatmul.bf16.vlgmr.msrb.gmra.mxu2 %v2958_v38  ;;  %v2755_v10 = vld [vmem:[%s3348_s1 + $0x3c8] sm:$0xff] }
  0x4e   : > { %1171 = vmatpush.bf16.msra.mxu2 %v2721_v13  ;;  %850 = vmatmul.bf16.vlgmr.msrb.gmra.mxu3 %v2960_v39  ;;  %v2746_v13 = vld [vmem:[%s3348_s1 + $0x380] sm:$0xff] }
  0x4f   : > { %1188 = vmatpush.bf16.msra.mxu3 %v2729_v14  ;;  %v2754_v14 = vld [vmem:[%s3348_s1 + $0x3c0] sm:$0xff] }
  0x50   : > { %999 = vmatpush.bf16.msra.mxu0 %v2704_v15  ;;  %v2769_v15 = vld [vmem:[%s3348_s1 + $0x438] sm:$0xff] }
  0x51   : > { %1016 = vmatpush.bf16.msra.mxu1 %v2712_v16  ;;  %v2777_v16 = vld [vmem:[%s3348_s1 + $0x478] sm:$0xff] }
  0x52   : > { %1172 = vmatpush.bf16.msra.mxu2 %v2720_v17  ;;  %v2768_v17 = vld [vmem:[%s3348_s1 + $0x430] sm:$0xff] }
  0x53   : > { %1189 = vmatpush.bf16.msra.mxu3 %v2728_v18  ;;  %v2776_v18 = vld [vmem:[%s3348_s1 + $0x470] sm:$0xff] }
  0x54   : > { %1000 = vmatpush.bf16.msra.mxu0 %v2703_v19  ;;  %v2767_v19 = vld [vmem:[%s3348_s1 + $0x428] sm:$0xff] }
  0x55   : > { %1017 = vmatpush.bf16.msra.mxu1 %v2711_v20  ;;  %v2775_v20 = vld [vmem:[%s3348_s1 + $0x468] sm:$0xff] }
  0x56   : > { %1173 = vmatpush.bf16.msra.mxu2 %v2719_v21  ;;  %v2766_v21 = vld [vmem:[%s3348_s1 + $0x420] sm:$0xff] }
  0x57   : > { %1190 = vmatpush.bf16.msra.mxu3 %v2727_v22  ;;  %v2774_v22 = vld [vmem:[%s3348_s1 + $0x460] sm:$0xff] }
  0x58   : > { %1001 = vmatpush.bf16.msra.mxu0 %v2702_v23  ;;  %v2765_v23 = vld [vmem:[%s3348_s1 + $0x418] sm:$0xff] }
  0x59   : > { %1018 = vmatpush.bf16.msra.mxu1 %v2710_v24  ;;  %v2773_v24 = vld [vmem:[%s3348_s1 + $0x458] sm:$0xff] }
  0x5a   : > { %1174 = vmatpush.bf16.msra.mxu2 %v2718_v25  ;;  %v2764_v25 = vld [vmem:[%s3348_s1 + $0x410] sm:$0xff] }
  0x5b   : > { %1191 = vmatpush.bf16.msra.mxu3 %v2726_v26  ;;  %665 = vmatmul.bf16.gmra.mxu0 %v3015_v59  ;;  %v2772_v26 = vld [vmem:[%s3348_s1 + $0x450] sm:$0xff] }
  0x5c   : > { %1002 = vmatpush.bf16.msra.mxu0 %v2701_v27  ;;  %682 = vmatmul.bf16.gmra.mxu1 %v3017_v60  ;;  %v2763_v27 = vld [vmem:[%s3348_s1 + $0x408] sm:$0xff] }
  0x5d   : > { %1019 = vmatpush.bf16.msra.mxu1 %v2709_v28  ;;  %838 = vmatmul.bf16.gmra.mxu2 %v3015_v59  ;;  %v2771_v28 = vld [vmem:[%s3348_s1 + $0x448] sm:$0xff] }
  0x5e   : > { %1175 = vmatpush.bf16.msra.mxu2 %v2717_v29  ;;  %855 = vmatmul.bf16.gmra.mxu3 %v3017_v60  ;;  %v2762_v29 = vld [vmem:[%s3348_s1 + $0x400] sm:$0xff] }
  0x5f   : > { %1192 = vmatpush.bf16.msra.mxu3 %v2725_v30  ;;  %v2770_v30 = vld [vmem:[%s3348_s1 + $0x440] sm:$0xff] }
  0x60   : > { %1003 = vmatpush.bf16.msra.mxu0 %v2700_v31 }
  0x61   : > { %1020 = vmatpush.bf16.msra.mxu1 %v2708_v32 }
  0x62   : > { %1176 = vmatpush.bf16.msra.mxu2 %v2716_v33 }
  0x63   : > { %1193 = vmatpush.bf16.msra.mxu3 %v2724_v34 }
  0x64   : > { %1004 = vmatpush.bf16.msra.mxu0 %v2699_v35 }
  0x65   : > { %1021 = vmatpush.bf16.msra.mxu1 %v2707_v36 }
  0x66   : > { %1177 = vmatpush.bf16.msra.mxu2 %v2715_v37 }
  0x67   : > { %1194 = vmatpush.bf16.msra.mxu3 %v2723_v40 }
  0x68   : > { %1005 = vmatpush.bf16.msra.mxu0 %v2698_v41 }
  0x69   : > { %1022 = vmatpush.bf16.msra.mxu1 %v2706_v42 }
  0x6a   : > { %1178 = vmatpush.bf16.msra.mxu2 %v2714_v43 }
  0x6b   : > { %1195 = vmatpush.bf16.msra.mxu3 %v2722_v44  ;;  %1006 = vmatmul.bf16.vlgmr.msra.gmra.mxu0 %v2958_v38 }
  0x6c   : > { %1344 = vmatpush.bf16.msrb.mxu0 %v2737_v45  ;;  %1023 = vmatmul.bf16.vlgmr.msra.gmra.mxu1 %v2960_v39 }
  0x6d   : > { %1360 = vmatpush.bf16.msrb.mxu1 %v2745_v46  ;;  %1179 = vmatmul.bf16.vlgmr.msra.gmra.mxu2 %v2958_v38 }
  0x6e   : > { %1508 = vmatpush.bf16.msrb.mxu2 %v2753_v47  ;;  %1196 = vmatmul.bf16.vlgmr.msra.gmra.mxu3 %v2960_v39 }
  0x6f   : > { %1525 = vmatpush.bf16.msrb.mxu3 %v2761_v48 }
  0x70   : > { %1345 = vmatpush.bf16.msrb.mxu0 %v2736_v49 }
  0x71   : > { %1361 = vmatpush.bf16.msrb.mxu1 %v2744_v50 }
  0x72   : > { %1509 = vmatpush.bf16.msrb.mxu2 %v2752_v51 }
  0x73   : > { %1526 = vmatpush.bf16.msrb.mxu3 %v2760_v52 }
  0x74   : > { %1346 = vmatpush.bf16.msrb.mxu0 %v2735_v53 }
  0x75   : > { %1362 = vmatpush.bf16.msrb.mxu1 %v2743_v54 }
  0x76   : > { %1510 = vmatpush.bf16.msrb.mxu2 %v2751_v55 }
  0x77   : > { %1527 = vmatpush.bf16.msrb.mxu3 %v2759_v56 }
  0x78   : > { %1347 = vmatpush.bf16.msrb.mxu0 %v2734_v57 }
  0x79   : > { %1363 = vmatpush.bf16.msrb.mxu1 %v2742_v58 }
  0x7a   : > { %1511 = vmatpush.bf16.msrb.mxu2 %v2750_v61 }
  0x7b   : > { %1528 = vmatpush.bf16.msrb.mxu3 %v2758_v62  ;;  %1011 = vmatmul.bf16.gmra.mxu0 %v3015_v59 }
  0x7c   : > { %1348 = vmatpush.bf16.msrb.mxu0 %v2733_v63  ;;  %1028 = vmatmul.bf16.gmra.mxu1 %v3017_v60 }
  0x7d   : > { %1364 = vmatpush.bf16.msrb.mxu1 %v2741_v0  ;;  %1184 = vmatmul.bf16.gmra.mxu2 %v3015_v59 }
  0x7e   : > { %1512 = vmatpush.bf16.msrb.mxu2 %v2749_v1  ;;  %1201 = vmatmul.bf16.gmra.mxu3 %v3017_v60 }
  0x7f   : > { %1529 = vmatpush.bf16.msrb.mxu3 %v2757_v2 }
  0x80   : > { %1349 = vmatpush.bf16.msrb.mxu0 %v2732_v3 }
  0x81   : > { %1365 = vmatpush.bf16.msrb.mxu1 %v2740_v4 }
  0x82   : > { %1513 = vmatpush.bf16.msrb.mxu2 %v2748_v5 }
  0x83   : > { %1530 = vmatpush.bf16.msrb.mxu3 %v2756_v6 }
  0x84   : > { %1350 = vmatpush.bf16.msrb.mxu0 %v2731_v7 }
  0x85   : > { %1366 = vmatpush.bf16.msrb.mxu1 %v2739_v8 }
  0x86   : > { %1514 = vmatpush.bf16.msrb.mxu2 %v2747_v9 }
  0x87   : > { %1531 = vmatpush.bf16.msrb.mxu3 %v2755_v10 }
  0x88   : > { %1351 = vmatpush.bf16.msrb.mxu0 %v2730_v11 }
  0x89   : > { %1367 = vmatpush.bf16.msrb.mxu1 %v2738_v12 }
  0x8a   : > { %1515 = vmatpush.bf16.msrb.mxu2 %v2746_v13 }
  0x8b   : > { %1532 = vmatpush.bf16.msrb.mxu3 %v2754_v14  ;;  %1352 = vmatmul.bf16.vlgmr.msrb.gmra.mxu0 %v2958_v38 }
  0x8c   : > { %1680 = vmatpush.bf16.msra.mxu0 %v2769_v15  ;;  %1368 = vmatmul.bf16.vlgmr.msrb.gmra.mxu1 %v2960_v39 }
  0x8d   : > { %1697 = vmatpush.bf16.msra.mxu1 %v2777_v16  ;;  %1516 = vmatmul.bf16.vlgmr.msrb.gmra.mxu2 %v2958_v38 }
  0x8e   : > { %2778 = vmatpush.bf16.msra.mxu2 %v2769_v15  ;;  %1533 = vmatmul.bf16.vlgmr.msrb.gmra.mxu3 %v2960_v39 }
  0x8f   : > { %2786 = vmatpush.bf16.msra.mxu3 %v2777_v16 }
  0x90   : > { %1681 = vmatpush.bf16.msra.mxu0 %v2768_v17 }
  0x91   : > { %1698 = vmatpush.bf16.msra.mxu1 %v2776_v18 }
  0x92   : > { %2779 = vmatpush.bf16.msra.mxu2 %v2768_v17 }
  0x93   : > { %2787 = vmatpush.bf16.msra.mxu3 %v2776_v18 }
  0x94   : > { %1682 = vmatpush.bf16.msra.mxu0 %v2767_v19 }
  0x95   : > { %1699 = vmatpush.bf16.msra.mxu1 %v2775_v20 }
  0x96   : > { %2780 = vmatpush.bf16.msra.mxu2 %v2767_v19 }
  0x97   : > { %2788 = vmatpush.bf16.msra.mxu3 %v2775_v20 }
  0x98   : > { %1683 = vmatpush.bf16.msra.mxu0 %v2766_v21 }
  0x99   : > { %1700 = vmatpush.bf16.msra.mxu1 %v2774_v22 }
  0x9a   : > { %2781 = vmatpush.bf16.msra.mxu2 %v2766_v21 }
  0x9b   : > { %2789 = vmatpush.bf16.msra.mxu3 %v2774_v22  ;;  %1356 = vmatmul.bf16.gmra.mxu0 %v3015_v59 }
  0x9c   : > { %1684 = vmatpush.bf16.msra.mxu0 %v2765_v23  ;;  %1372 = vmatmul.bf16.gmra.mxu1 %v3017_v60 }
  0x9d   : > { %1701 = vmatpush.bf16.msra.mxu1 %v2773_v24  ;;  %1520 = vmatmul.bf16.gmra.mxu2 %v3015_v59 }
  0x9e   : > { %2782 = vmatpush.bf16.msra.mxu2 %v2765_v23  ;;  %1537 = vmatmul.bf16.gmra.mxu3 %v3017_v60 }
  0x9f   : > { %2790 = vmatpush.bf16.msra.mxu3 %v2773_v24 }
  0xa0   : > { %1685 = vmatpush.bf16.msra.mxu0 %v2764_v25 }
  0xa1   : > { %1702 = vmatpush.bf16.msra.mxu1 %v2772_v26 }
  0xa2   : > { %2783 = vmatpush.bf16.msra.mxu2 %v2764_v25 }
  0xa3   : > { %2791 = vmatpush.bf16.msra.mxu3 %v2772_v26 }
  0xa4   : > { %1686 = vmatpush.bf16.msra.mxu0 %v2763_v27 }
  0xa5   : > { %1703 = vmatpush.bf16.msra.mxu1 %v2771_v28 }
  0xa6   : > { %2784 = vmatpush.bf16.msra.mxu2 %v2763_v27 }
  0xa7   : > { %2792 = vmatpush.bf16.msra.mxu3 %v2771_v28 }
  0xa8   : > { %1687 = vmatpush.bf16.msra.mxu0 %v2762_v29  ;;  %v326_v31 = vpop.f32.mrf.mxu0 }
  0xa9   : > { %1704 = vmatpush.bf16.msra.mxu1 %v2770_v30  ;;  %v342_v32 = vpop.f32.mrf.mxu1 }
  0xaa   : > { %2785 = vmatpush.bf16.msra.mxu2 %v2762_v29  ;;  %v343_v33 = vadd.f32 %v342_v32, %v326_v31 }
  0xab   : > { %2793 = vmatpush.bf16.msra.mxu3 %v2770_v30  ;;  %1688 = vmatmul.bf16.vlgmr.msra.gmra.mxu0 %v2958_v38 }
  0xac   : > { %1705 = vmatmul.bf16.vlgmr.msra.gmra.mxu1 %v2960_v39 }
  0xad   : > { %1692 = vmatmul.bf16.vlgmr.msra.gmra.mxu2 %v3015_v59 }
  0xae   : > { %1709 = vmatmul.bf16.vlgmr.msra.gmra.mxu3 %v3017_v60 }
  0xb0   : > { %v488_v34 = vpop.f32.mrf.mxu2  ;;  %v328_v37 = vpop.f32.mrf.mxu0 }
  0xb1   : > { %v505_v35 = vpop.f32.mrf.mxu3  ;;  %v344_v40 = vpop.f32.mrf.mxu1 }
  0xb2   : > { %v506_v36 = vadd.f32 %v505_v35, %v488_v34 }
  0xb4   : > { %v517_v46 = vrot.slane %v506_v36, 1 }
  0xb8   : > { %v490_v41 = vpop.f32.mrf.mxu2  ;;  %v330_v44 = vpop.f32.mrf.mxu0 }
  0xb9   : > { %v507_v42 = vpop.f32.mrf.mxu3  ;;  %v346_v45 = vpop.f32.mrf.mxu1 }
  0xba   : > { %v508_v43 = vadd.f32 %v507_v42, %v490_v41 }
  0xbc   : > { %v518_v47 = vrot.slane %v508_v43, 1 }
  0xbe   : > { %v519_v38 = vsel %vm516_vm0, %v517_v46, %v518_v47 }
  0xbf   : > { %v521_v39 = vadd.f32 %v519_v38, %v343_v33 }
  0xc0   : > { %v493_v48 = vpop.f32.mrf.mxu2  ;;  %v331_v49 = vpop.f32.mrf.mxu0 }
  0xc1   : > { %v510_v59 = vpop.f32.mrf.mxu3  ;;  %v347_v60 = vpop.f32.mrf.mxu1 }
  0xc8   : > { %v494_v50 = vpop.f32.mrf.mxu2  ;;  %v661_v52 = vpop.f32.mrf.mxu0 }
  0xc9   : > { %v511_v51 = vpop.f32.mrf.mxu3  ;;  %v678_v53 = vpop.f32.mrf.mxu1 }
  0xca   : > { %v679_v54 = vadd.f32 %v678_v53, %v661_v52 }
  0xcc   : > { %v690_v63 = vrot.slane %v679_v54, 2 }
  0xd0   : > { %v834_v55 = vpop.f32.mrf.mxu2  ;;  %v663_v58 = vpop.f32.mrf.mxu0 }
  0xd1   : > { %v851_v56 = vpop.f32.mrf.mxu3  ;;  %v680_v61 = vpop.f32.mrf.mxu1 }
  0xd2   : > { %v852_v57 = vadd.f32 %v851_v56, %v834_v55  ;;  %v681_v62 = vadd.f32 %v680_v61, %v663_v58 }
  0xd4   : > { %v691_v0 = vrot.slane %v681_v62, 2  ;;  %v863_v8 = vrot.slane %v852_v57, 4 }
  0xd6   : > { %v692_v1 = vsel %vm689_vm1, %v690_v63, %v691_v0 }
  0xd7   : > { %v694_v2 = vadd.f32 %v692_v1, %v521_v39 }
  0xd8   : > { %v836_v3 = vpop.f32.mrf.mxu2  ;;  %v666_v6 = vpop.f32.mrf.mxu0 }
  0xd9   : > { %v853_v4 = vpop.f32.mrf.mxu3  ;;  %v683_v7 = vpop.f32.mrf.mxu1 }
  0xda   : > { %v854_v5 = vadd.f32 %v853_v4, %v836_v3 }
  0xdc   : > { %v864_v9 = vrot.slane %v854_v5, 4 }
  0xde   : > { %v865_v10 = vsel %vm862_vm2, %v863_v8, %v864_v9 }
  0xdf   : > { %v867_v11 = vadd.f32 %v865_v10, %v694_v2 }
  0xe0   : > { %v839_v12 = vpop.f32.mrf.mxu2  ;;  %v667_v14 = vpop.f32.mrf.mxu0 }
  0xe1   : > { %v856_v13 = vpop.f32.mrf.mxu3  ;;  %v684_v15 = vpop.f32.mrf.mxu1 }
  0xe8   : > { %v840_v16 = vpop.f32.mrf.mxu2  ;;  %v1007_v18 = vpop.f32.mrf.mxu0 }
  0xe9   : > { %v857_v17 = vpop.f32.mrf.mxu3  ;;  %v1024_v19 = vpop.f32.mrf.mxu1  ;;  %v2803_v16 = vld [vmem:[%s3349_s2] ss:$0 sm:$0xff] }
  0xea   : > { %v1025_v20 = vadd.f32 %v1024_v19, %v1007_v18 }
  0xec   : > { %v1036_v26 = vrot.slane %v1025_v20, 5 }
  0xf0   : > { %v1180_v21 = vpop.f32.mrf.mxu2  ;;  %v1009_v23 = vpop.f32.mrf.mxu0 }
  0xf1   : > { %v1197_v22 = vpop.f32.mrf.mxu3  ;;  %v1026_v24 = vpop.f32.mrf.mxu1 }
  0xf2   : > { %v1027_v25 = vadd.f32 %v1026_v24, %v1009_v23  ;;  %v1198_v53 = vadd.f32 %v1197_v22, %v1180_v21 }
  0xf4   : > { %v1037_v27 = vrot.slane %v1027_v25, 5  ;;  %v1209_v62 = vrot.slane %v1198_v53, 6 }
  0xf6   : > { %v1038_v28 = vsel %vm1035_vm3, %v1036_v26, %v1037_v27 }
  0xf7   : > { %v1040_v29 = vadd.f32 %v1038_v28, %v867_v11 }
  0xf8   : > { %v1182_v30 = vpop.f32.mrf.mxu2  ;;  %v1012_v32 = vpop.f32.mrf.mxu0 }
  0xf9   : > { %v1199_v31 = vpop.f32.mrf.mxu3  ;;  %v1029_v33 = vpop.f32.mrf.mxu1 }
  0xfa   : > { %v1200_v52 = vadd.f32 %v1199_v31, %v1182_v30 }
  0xfc   : > { %v1210_v58 = vrot.slane %v1200_v52, 6 }
  0xfe   : > { %v1211_v0 = vsel %vm1208_vm4, %v1209_v62, %v1210_v58 }
  0xff   : > { %v1213_v6 = vadd.f32 %v1211_v0, %v1040_v29 }
 0x100   : > { %v1185_v34 = vpop.f32.mrf.mxu2  ;;  %v1013_v36 = vpop.f32.mrf.mxu0 }
 0x101   : > { %v1202_v35 = vpop.f32.mrf.mxu3  ;;  %v1030_v37 = vpop.f32.mrf.mxu1 }
 0x108   : > { %v1186_v40 = vpop.f32.mrf.mxu2  ;;  %v1353_v42 = vpop.f32.mrf.mxu0 }
 0x109   : > { %v1203_v41 = vpop.f32.mrf.mxu3  ;;  %v1369_v43 = vpop.f32.mrf.mxu1 }
 0x110   : > { %v1517_v44 = vpop.f32.mrf.mxu2  ;;  %v1354_v46 = vpop.f32.mrf.mxu0 }
 0x111   : > { %v1534_v45 = vpop.f32.mrf.mxu3  ;;  %v1370_v47 = vpop.f32.mrf.mxu1 }
 0x112   : > { %v1371_v2 = vadd.f32 %v1370_v47, %v1354_v46 }
 0x114   : > { %v1377_v12 = vadd.f32 %v1371_v2, %v1213_v6 }
 0x118   : > { %v1518_v38 = vpop.f32.mrf.mxu2  ;;  %v1357_v48 = vpop.f32.mrf.mxu0 }
 0x119   : > { %v1535_v39 = vpop.f32.mrf.mxu3  ;;  %v1373_v59 = vpop.f32.mrf.mxu1 }
 0x11a   : > { %v1536_v63 = vadd.f32 %v1535_v39, %v1518_v38 }
 0x11c   : > { %v1545_v3 = vrot.slane %v1536_v63, 1 }
 0x120   : > { %v1521_v49 = vpop.f32.mrf.mxu2  ;;  %v1358_v50 = vpop.f32.mrf.mxu0 }
 0x121   : > { %v1538_v60 = vpop.f32.mrf.mxu3  ;;  %v1374_v51 = vpop.f32.mrf.mxu1 }
 0x122   : > { %v1539_v61 = vadd.f32 %v1538_v60, %v1521_v49 }
 0x124   : > { %v1546_v1 = vrot.slane %v1539_v61, 1 }
 0x126   : > { %v1547_v10 = vsel %vm516_vm0, %v1545_v3, %v1546_v1 }
 0x127   : > { %v1549_v15 = vadd.f32 %v1547_v10, %v1377_v12 }
 0x128   : > { %v1523_v54 = vpop.f32.mrf.mxu2  ;;  %v1689_v56 = vpop.f32.mrf.mxu0 }
 0x129   : > { %v1540_v55 = vpop.f32.mrf.mxu3  ;;  %v1706_v57 = vpop.f32.mrf.mxu1 }
 0x130   : > { %v1693_v4 = vpop.f32.mrf.mxu2  ;;  %v1690_v8 = vpop.f32.mrf.mxu0 }
 0x131   : > { %v1710_v5 = vpop.f32.mrf.mxu3  ;;  %v1707_v9 = vpop.f32.mrf.mxu1 }
 0x132   : > { %v1711_v7 = vadd.f32 %v1710_v5, %v1693_v4  ;;  %v1708_v11 = vadd.f32 %v1707_v9, %v1690_v8 }
 0x134   : > { %v1718_v13 = vrot.slane %v1711_v7, 2  ;;  %v1717_v14 = vrot.slane %v1708_v11, 2 }
 0x136   : > { %v1719_v17 = vsel %vm689_vm1, %v1717_v14, %v1718_v13 }
 0x137   : > { %v1721_v18 = vadd.f32 %v1719_v17, %v1549_v15 }
 0x138   : > { %v1695_v19 = vpop.f32.mrf.mxu2 }
 0x139   : > { %v1712_v20 = vpop.f32.mrf.mxu3  ;;  %v1728_v21 = vadd.f32 %v2803_v16, %v1721_v18 }
 0x13b   : > { %1729 = vst [vmem:[%s168_s9] sm:$0xff] %v1728_v21 }
 0x13c PF: > { %s13_s12 = sadd.s32 1, %s2810_s12  }
 0x13d   : > { %p10_p4 = scmp.ge.s32.totalorder %s13_s12, 4  }
 0x13f   :  { %12 = sbr.rel (!%p10_p4) target bundleno = 1 (0x1), region = 70 }

// kernel: _lambda_.8
= control target key start
LH: loop header
LB: loop body
LE: loop exit
PB: predicated region body
PF: predicated region fallthrough
CT: control target
= control target key end

     0   :  { %s5646_s12 = smov 0   ;;  %s6770_s0 = inlined_call_operand.vmem [shape: bf16[2,42,512], index: 0, kind: input, shape index: {}]   ;;  %s6771_s1 = inlined_call_operand.vmem [shape: bf16[9,512,128], index: 1, kind: input, shape index: {}]   ;;  %s6772_s2 = inlined_call_operand.vmem [shape: f32[1,128], index: 2, kind: input, shape index: {}]   ;;  %s6773_s3 = inlined_call_operand.vmem [shape: f32[2,24,128], index: 3, kind: output, shape index: {}]  }
   0x1 LB: > { %s3586_s13 = sadd.s32 4294967295, %s5624_s12   ;;  %p3590_p0 = scmp.ge.s32.totalorder %s5624_s12, 1  ;;  %s5624_s12 = sphi %s5646_s12, %s13_s12  }
   0x2   : > { %p137_p1 = scmp.lt.s32.totalorder %s5624_s12, 3 }
   0x4   : > { %p138_p2 = pnand %p3590_p0, %p137_p1 }
   0x5   : > { %p161_p3 = scmp.lt.s32.totalorder (!%p138_p2), %s3586_s13, 1 }
   0x6   : > { %141 = sbr.rel (%p138_p2) target bundleno = 605 (0x25d), region = 32 }
   0xb   : > { %v5326_v0 = vld [vmem:[%s6771_s1 + $0x38] sm:$0xff]  ;;  %v5325_v4 = vld [vmem:[%s6771_s1 + $0x30] sm:$0xff]  ;;  %v5324_v8 = vld [vmem:[%s6771_s1 + $0x28] sm:$0xff]  ;;  %s6775_s13 = smov (!%p161_p3, %s3586_s13), 1  ;;  %vm938_vm0 = vcmask 1046528   ;;  %vm1307_vm1 = vcmask 1045504  }
   0xc   : > { %v5334_v1 = vld [vmem:[%s6771_s1 + $0x78] sm:$0xff]  ;;  %499 = vmatpush.bf16.msra.mxu0 %v5326_v0  ;;  %v5333_v5 = vld [vmem:[%s6771_s1 + $0x70] sm:$0xff]  ;;  %v5332_v9 = vld [vmem:[%s6771_s1 + $0x68] sm:$0xff]  ;;  %s5607_s6 = smul.u32 96, %s6775_s13  ;;  %vm1676_vm2 = vcmask 1041408   ;;  %vm2045_vm3 = vcmask 1040384  }
   0xd   : > { %v5342_v2 = vld [vmem:[%s6771_s1 + $0xb8] sm:$0xff]  ;;  %520 = vmatpush.bf16.msra.mxu1 %v5334_v1  ;;  %v5341_v6 = vld [vmem:[%s6771_s1 + $0xb0] sm:$0xff]  ;;  %v5340_v10 = vld [vmem:[%s6771_s1 + $0xa8] sm:$0xff]  ;;  %vm2764_vm4 = vcmask 1043456   ;;  %vm3133_vm5 = vcmask 1042432   ;;  %s5608_s22 = smul.u32 24, %s6775_s13 }
   0xe   : > { %v5350_v3 = vld [vmem:[%s6771_s1 + $0xf8] sm:$0xff]  ;;  %541 = vmatpush.bf16.msra.mxu2 %v5342_v2  ;;  %v5349_v7 = vld [vmem:[%s6771_s1 + $0xf0] sm:$0xff]  ;;  %v5348_v11 = vld [vmem:[%s6771_s1 + $0xe8] sm:$0xff]  ;;  %s5742_s19 = scalar_lea.vmem %s6770_s0, %s5607_s6 }
   0xf   : > { %562 = vmatpush.bf16.msra.mxu3 %v5350_v3  ;;  %v5323_v12 = vld [vmem:[%s6771_s1 + $0x20] sm:$0xff]  ;;  %v5322_v16 = vld [vmem:[%s6771_s1 + $0x18] sm:$0xff]  ;;  %v5321_v20 = vld [vmem:[%s6771_s1 + $0x10] sm:$0xff]  ;;  %s6756_s27 = scalar_lea.vmem %s6773_s3, %s5608_s22 }
  0x10   : > { %500 = vmatpush.bf16.msra.mxu0 %v5325_v4  ;;  %v5331_v13 = vld [vmem:[%s6771_s1 + $0x60] sm:$0xff]  ;;  %v5330_v17 = vld [vmem:[%s6771_s1 + $0x58] sm:$0xff]  ;;  %v5329_v21 = vld [vmem:[%s6771_s1 + $0x50] sm:$0xff] }
  0x11   : > { %521 = vmatpush.bf16.msra.mxu1 %v5333_v5  ;;  %v5339_v14 = vld [vmem:[%s6771_s1 + $0xa0] sm:$0xff]  ;;  %v5338_v18 = vld [vmem:[%s6771_s1 + $0x98] sm:$0xff]  ;;  %v5337_v22 = vld [vmem:[%s6771_s1 + $0x90] sm:$0xff] }
  0x12   : > { %542 = vmatpush.bf16.msra.mxu2 %v5341_v6  ;;  %v5347_v15 = vld [vmem:[%s6771_s1 + $0xe0] sm:$0xff]  ;;  %v5346_v19 = vld [vmem:[%s6771_s1 + $0xd8] sm:$0xff]  ;;  %v5345_v23 = vld [vmem:[%s6771_s1 + $0xd0] sm:$0xff] }
  0x13   : > { %563 = vmatpush.bf16.msra.mxu3 %v5349_v7  ;;  %v5320_v24 = vld [vmem:[%s6771_s1 + $0x8] sm:$0xff]  ;;  %v5319_v28 = vld [vmem:[%s6771_s1] sm:$0xff]  ;;  %v5309_v33 = vld [vmem:[%s5742_s19 + $0xc] sm:$0xf0] }
  0x14   : > { %501 = vmatpush.bf16.msra.mxu0 %v5324_v8  ;;  %v5328_v25 = vld [vmem:[%s6771_s1 + $0x48] sm:$0xff]  ;;  %v5327_v29 = vld [vmem:[%s6771_s1 + $0x40] sm:$0xff]  ;;  %v3597_v35 = vld [vmem:[%s5742_s19 + $0x10] sm:$0xf0] }
  0x15   : > { %522 = vmatpush.bf16.msra.mxu1 %v5332_v9  ;;  %v5336_v26 = vld [vmem:[%s6771_s1 + $0x88] sm:$0xff]  ;;  %v5335_v30 = vld [vmem:[%s6771_s1 + $0x80] sm:$0xff]  ;;  %v5310_v37 = vld [vmem:[%s5742_s19 + $0x14] sm:$0xf0] }
  0x16   : > { %543 = vmatpush.bf16.msra.mxu2 %v5340_v10  ;;  %v5344_v27 = vld [vmem:[%s6771_s1 + $0xc8] sm:$0xff]  ;;  %v5343_v31 = vld [vmem:[%s6771_s1 + $0xc0] sm:$0xff]  ;;  %v3605_v39 = vld [vmem:[%s5742_s19 + $0x18] sm:$0xf0] }
  0x17   : > { %564 = vmatpush.bf16.msra.mxu3 %v5348_v11  ;;  %v3595_v32 = vld [vmem:[%s5742_s19] sm:$0xf]  ;;  %v5307_v34 = vld [vmem:[%s5742_s19 + $0x4] sm:$0xf]  ;;  %v3603_v36 = vld [vmem:[%s5742_s19 + $0x8] sm:$0xf] }
  0x18   : > { %502 = vmatpush.bf16.msra.mxu0 %v5323_v12  ;;  %v5308_v38 = vld [vmem:[%s5742_s19 + $0xc] sm:$0xf]  ;;  %v5374_v40 = vld [vmem:[%s6771_s1 + $0x1b8] sm:$0xff]  ;;  %v5776_v42 = vor.u32 %v5309_v33, %v3595_v32  ;;  %v5778_v43 = vor.u32 %v5307_v34, %v3597_v35  ;;  %v5780_v44 = vor.u32 %v5310_v37, %v3603_v36  ;;  %v5373_v48 = vld [vmem:[%s6771_s1 + $0x1b0] sm:$0xff] }
  0x19   : > { %523 = vmatpush.bf16.msra.mxu1 %v5331_v13  ;;  %v5382_v41 = vld [vmem:[%s6771_s1 + $0x1f8] sm:$0xff]  ;;  %v5782_v45 = vor.u32 %v5308_v38, %v3605_v39  ;;  %v5381_v49 = vld [vmem:[%s6771_s1 + $0x1f0] sm:$0xff]  ;;  %v5372_v52 = vld [vmem:[%s6771_s1 + $0x1a8] sm:$0xff] }
  0x1a   : > { %544 = vmatpush.bf16.msra.mxu2 %v5339_v14  ;;  %v5358_v46 = vld [vmem:[%s6771_s1 + $0x138] sm:$0xff]  ;;  %v5357_v50 = vld [vmem:[%s6771_s1 + $0x130] sm:$0xff]  ;;  %v5380_v53 = vld [vmem:[%s6771_s1 + $0x1e8] sm:$0xff] }
  0x1b   : > { %565 = vmatpush.bf16.msra.mxu3 %v5347_v15  ;;  %v5366_v47 = vld [vmem:[%s6771_s1 + $0x178] sm:$0xff]  ;;  %v5365_v51 = vld [vmem:[%s6771_s1 + $0x170] sm:$0xff]  ;;  %v5356_v54 = vld [vmem:[%s6771_s1 + $0x128] sm:$0xff] }
  0x1c   : > { %503 = vmatpush.bf16.msra.mxu0 %v5322_v16  ;;  %v5364_v55 = vld [vmem:[%s6771_s1 + $0x168] sm:$0xff]  ;;  %v3611_v56 = vld [vmem:[%s5742_s19 + $0x20] sm:$0xf]  ;;  %v5313_v59 = vld [vmem:[%s5742_s19 + $0x2c] sm:$0xf0] }
  0x1d   : > { %524 = vmatpush.bf16.msra.mxu1 %v5330_v17  ;;  %v5371_v57 = vld [vmem:[%s6771_s1 + $0x1a0] sm:$0xff]  ;;  %v3613_v61 = vld [vmem:[%s5742_s19 + $0x30] sm:$0xf0]  ;;  %v3619_v62 = vld [vmem:[%s5742_s19 + $0x28] sm:$0xf]  ;;  %v5844_v6 = vor.u32 %v5313_v59, %v3611_v56 }
  0x1e   : > { %545 = vmatpush.bf16.msra.mxu2 %v5338_v18  ;;  %v5379_v58 = vld [vmem:[%s6771_s1 + $0x1e0] sm:$0xff]  ;;  %v5314_v63 = vld [vmem:[%s5742_s19 + $0x34] sm:$0xf0]  ;;  %v5312_v0 = vld [vmem:[%s5742_s19 + $0x2c] sm:$0xf] }
  0x1f   : > { %566 = vmatpush.bf16.msra.mxu3 %v5346_v19  ;;  %v5311_v60 = vld [vmem:[%s5742_s19 + $0x24] sm:$0xf]  ;;  %v3621_v1 = vld [vmem:[%s5742_s19 + $0x38] sm:$0xf0]  ;;  %v5848_v8 = vor.u32 %v5314_v63, %v3619_v62  ;;  %v5369_v12 = vld [vmem:[%s6771_s1 + $0x190] sm:$0xff] }
  0x20   : > { %504 = vmatpush.bf16.msra.mxu0 %v5321_v20  ;;  %v5355_v2 = vld [vmem:[%s6771_s1 + $0x120] sm:$0xff]  ;;  %v5370_v4 = vld [vmem:[%s6771_s1 + $0x198] sm:$0xff]  ;;  %v5846_v7 = vor.u32 %v5311_v60, %v3613_v61  ;;  %v5850_v9 = vor.u32 %v5312_v0, %v3621_v1  ;;  %v5377_v13 = vld [vmem:[%s6771_s1 + $0x1d0] sm:$0xff] }
  0x21   : > { %525 = vmatpush.bf16.msra.mxu1 %v5329_v21  ;;  %v5363_v3 = vld [vmem:[%s6771_s1 + $0x160] sm:$0xff]  ;;  %v5378_v5 = vld [vmem:[%s6771_s1 + $0x1d8] sm:$0xff]  ;;  %v5353_v14 = vld [vmem:[%s6771_s1 + $0x110] sm:$0xff] }
  0x22   : > { %546 = vmatpush.bf16.msra.mxu2 %v5337_v22  ;;  %v5354_v10 = vld [vmem:[%s6771_s1 + $0x118] sm:$0xff]  ;;  %v5361_v15 = vld [vmem:[%s6771_s1 + $0x150] sm:$0xff]  ;;  %v5368_v16 = vld [vmem:[%s6771_s1 + $0x188] sm:$0xff] }
  0x23   : > { %567 = vmatpush.bf16.msra.mxu3 %v5345_v23  ;;  %v5362_v11 = vld [vmem:[%s6771_s1 + $0x158] sm:$0xff]  ;;  %v5376_v17 = vld [vmem:[%s6771_s1 + $0x1c8] sm:$0xff]  ;;  %v3627_v20 = vld [vmem:[%s5742_s19 + $0x40] sm:$0xf] }
  0x24   : > { %505 = vmatpush.bf16.msra.mxu0 %v5320_v24  ;;  %v5352_v18 = vld [vmem:[%s6771_s1 + $0x108] sm:$0xff]  ;;  %v5317_v21 = vld [vmem:[%s5742_s19 + $0x4c] sm:$0x10]  ;;  %v5315_v22 = vld [vmem:[%s5742_s19 + $0x44] sm:$0xf] }
  0x25   : > { %526 = vmatpush.bf16.msra.mxu1 %v5328_v25  ;;  %v5360_v19 = vld [vmem:[%s6771_s1 + $0x148] sm:$0xff]  ;;  %v5367_v23 = vld [vmem:[%s6771_s1 + $0x180] sm:$0xff]  ;;  %v3629_v25 = vld [vmem:[%s5742_s19 + $0x50] sm:$0x10]  ;;  %v5918_v36 = vor.u32 %v5317_v21, %v3627_v20 }
  0x26   : > { %547 = vmatpush.bf16.msra.mxu2 %v5336_v26  ;;  %v5375_v24 = vld [vmem:[%s6771_s1 + $0x1c0] sm:$0xff]  ;;  %v5406_v26 = vld [vmem:[%s6771_s1 + $0x2b8] sm:$0xff]  ;;  %v5920_v37 = vor.u32 %v5315_v22, %v3629_v25  ;;  %v5401_v60 = vld [vmem:[%s6771_s1 + $0x290] sm:$0xff] }
  0x27   : > { %568 = vmatpush.bf16.msra.mxu3 %v5344_v27  ;;  %v5414_v27 = vld [vmem:[%s6771_s1 + $0x2f8] sm:$0xff]  ;;  %v5351_v32 = vld [vmem:[%s6771_s1 + $0x100] sm:$0xff]  ;;  %v5409_v61 = vld [vmem:[%s6771_s1 + $0x2d0] sm:$0xff] }
  0x28   : > { %506 = vmatpush.bf16.msra.mxu0 %v5319_v28  ;;  %v3635_v28 = vld [vmem:[%s5742_s19 + $0x48] sm:$0xf]  ;;  %v5359_v33 = vld [vmem:[%s6771_s1 + $0x140] sm:$0xff]  ;;  %v5390_v34 = vld [vmem:[%s6771_s1 + $0x238] sm:$0xff] }
  0x29   : > { %527 = vmatpush.bf16.msra.mxu1 %v5327_v29  ;;  %v5318_v29 = vld [vmem:[%s5742_s19 + $0x54] sm:$0x10]  ;;  %v5385_v62 = vld [vmem:[%s6771_s1 + $0x210] sm:$0xff]  ;;  %v5400_v0 = vld [vmem:[%s6771_s1 + $0x288] sm:$0xff] }
  0x2a   : > { %548 = vmatpush.bf16.msra.mxu2 %v5335_v30  ;;  %v5316_v30 = vld [vmem:[%s5742_s19 + $0x4c] sm:$0xf]  ;;  %v5398_v35 = vld [vmem:[%s6771_s1 + $0x278] sm:$0xff]  ;;  %v5922_v38 = vor.u32 %v5318_v29, %v3635_v28  ;;  %v5393_v63 = vld [vmem:[%s6771_s1 + $0x250] sm:$0xff] }
  0x2b   : > { %569 = vmatpush.bf16.msra.mxu3 %v5343_v31  ;;  %507 = vmatmul.bf16.vlgmr.msra.gmra.mxu0 %v5776_v42  ;;  %v3637_v31 = vld [vmem:[%s5742_s19 + $0x58] sm:$0x10]  ;;  %v5408_v1 = vld [vmem:[%s6771_s1 + $0x2c8] sm:$0xff]  ;;  %v5443_v25 = vld [vmem:[%s6771_s1 + $0x3e0] sm:$0xff] }
  0x2c   : > { %528 = vmatmul.bf16.vlgmr.msra.gmra.mxu1 %v5778_v43  ;;  %843 = vmatpush.bf16.msrb.mxu0 %v5358_v46  ;;  %v5924_v39 = vor.u32 %v5316_v30, %v3637_v31  ;;  %v5389_v46 = vld [vmem:[%s6771_s1 + $0x230] sm:$0xff]  ;;  %v5402_v56 = vld [vmem:[%s6771_s1 + $0x298] sm:$0xff]  ;;  %v5436_v20 = vld [vmem:[%s6771_s1 + $0x3a8] sm:$0xff] }
  0x2d   : > { %549 = vmatmul.bf16.vlgmr.msra.gmra.mxu2 %v5780_v44  ;;  %865 = vmatpush.bf16.msrb.mxu1 %v5366_v47  ;;  %v5397_v47 = vld [vmem:[%s6771_s1 + $0x270] sm:$0xff]  ;;  %v5394_v59 = vld [vmem:[%s6771_s1 + $0x258] sm:$0xff]  ;;  %v5444_v21 = vld [vmem:[%s6771_s1 + $0x3e8] sm:$0xff] }
  0x2e   : > { %887 = vmatpush.bf16.msrb.mxu2 %v5374_v40  ;;  %570 = vmatmul.bf16.vlgmr.msra.gmra.mxu3 %v5782_v45  ;;  %v5405_v40 = vld [vmem:[%s6771_s1 + $0x2b0] sm:$0xff]  ;;  %v5420_v22 = vld [vmem:[%s6771_s1 + $0x328] sm:$0xff]  ;;  %v5434_v28 = vld [vmem:[%s6771_s1 + $0x398] sm:$0xff] }
  0x2f   : > { %909 = vmatpush.bf16.msrb.mxu3 %v5382_v41  ;;  %v5413_v41 = vld [vmem:[%s6771_s1 + $0x2f0] sm:$0xff]  ;;  %v5442_v29 = vld [vmem:[%s6771_s1 + $0x3d8] sm:$0xff] }
  0x30   : > { %844 = vmatpush.bf16.msrb.mxu0 %v5357_v50  ;;  %v5388_v50 = vld [vmem:[%s6771_s1 + $0x228] sm:$0xff]  ;;  %v5418_v30 = vld [vmem:[%s6771_s1 + $0x318] sm:$0xff] }
  0x31   : > { %866 = vmatpush.bf16.msrb.mxu1 %v5365_v51  ;;  %v5396_v51 = vld [vmem:[%s6771_s1 + $0x268] sm:$0xff]  ;;  %v5426_v31 = vld [vmem:[%s6771_s1 + $0x358] sm:$0xff] }
  0x32   : > { %888 = vmatpush.bf16.msrb.mxu2 %v5373_v48  ;;  %v5404_v48 = vld [vmem:[%s6771_s1 + $0x2a8] sm:$0xff] }
  0x33   : > { %910 = vmatpush.bf16.msrb.mxu3 %v5381_v49  ;;  %v5412_v49 = vld [vmem:[%s6771_s1 + $0x2e8] sm:$0xff] }
  0x34   : > { %845 = vmatpush.bf16.msrb.mxu0 %v5356_v54  ;;  %v5387_v54 = vld [vmem:[%s6771_s1 + $0x220] sm:$0xff] }
  0x35   : > { %867 = vmatpush.bf16.msrb.mxu1 %v5364_v55  ;;  %v5395_v55 = vld [vmem:[%s6771_s1 + $0x260] sm:$0xff] }
  0x36   : > { %889 = vmatpush.bf16.msrb.mxu2 %v5372_v52  ;;  %v5403_v52 = vld [vmem:[%s6771_s1 + $0x2a0] sm:$0xff] }
  0x37   : > { %911 = vmatpush.bf16.msrb.mxu3 %v5380_v53  ;;  %v5411_v53 = vld [vmem:[%s6771_s1 + $0x2e0] sm:$0xff] }
  0x38   : > { %846 = vmatpush.bf16.msrb.mxu0 %v5355_v2  ;;  %v5384_v2 = vld [vmem:[%s6771_s1 + $0x208] sm:$0xff] }
  0x39   : > { %868 = vmatpush.bf16.msrb.mxu1 %v5363_v3  ;;  %v5392_v3 = vld [vmem:[%s6771_s1 + $0x248] sm:$0xff] }
  0x3a   : > { %890 = vmatpush.bf16.msrb.mxu2 %v5371_v57  ;;  %v5410_v57 = vld [vmem:[%s6771_s1 + $0x2d8] sm:$0xff] }
  0x3b   : > { %912 = vmatpush.bf16.msrb.mxu3 %v5379_v58  ;;  %512 = vmatmul.bf16.gmra.mxu0 %v5844_v6  ;;  %v5386_v58 = vld [vmem:[%s6771_s1 + $0x218] sm:$0xff] }
  0x3c   : > { %533 = vmatmul.bf16.gmra.mxu1 %v5846_v7  ;;  %847 = vmatpush.bf16.msrb.mxu0 %v5354_v10  ;;  %v5383_v10 = vld [vmem:[%s6771_s1 + $0x200] sm:$0xff] }
  0x3d   : > { %554 = vmatmul.bf16.gmra.mxu2 %v5848_v8  ;;  %869 = vmatpush.bf16.msrb.mxu1 %v5362_v11  ;;  %v5391_v11 = vld [vmem:[%s6771_s1 + $0x240] sm:$0xff] }
  0x3e   : > { %891 = vmatpush.bf16.msrb.mxu2 %v5370_v4  ;;  %575 = vmatmul.bf16.gmra.mxu3 %v5850_v9  ;;  %v5399_v4 = vld [vmem:[%s6771_s1 + $0x280] sm:$0xff] }
  0x3f   : > { %913 = vmatpush.bf16.msrb.mxu3 %v5378_v5  ;;  %v5407_v5 = vld [vmem:[%s6771_s1 + $0x2c0] sm:$0xff] }
  0x40   : > { %848 = vmatpush.bf16.msrb.mxu0 %v5353_v14  ;;  %v5422_v14 = vld [vmem:[%s6771_s1 + $0x338] sm:$0xff] }
  0x41   : > { %870 = vmatpush.bf16.msrb.mxu1 %v5361_v15  ;;  %v5430_v15 = vld [vmem:[%s6771_s1 + $0x378] sm:$0xff] }
  0x42   : > { %892 = vmatpush.bf16.msrb.mxu2 %v5369_v12  ;;  %v5438_v12 = vld [vmem:[%s6771_s1 + $0x3b8] sm:$0xff] }
  0x43   : > { %914 = vmatpush.bf16.msrb.mxu3 %v5377_v13  ;;  %v5446_v13 = vld [vmem:[%s6771_s1 + $0x3f8] sm:$0xff] }
  0x44   : > { %849 = vmatpush.bf16.msrb.mxu0 %v5352_v18  ;;  %v5421_v18 = vld [vmem:[%s6771_s1 + $0x330] sm:$0xff] }
  0x45   : > { %871 = vmatpush.bf16.msrb.mxu1 %v5360_v19  ;;  %v5429_v19 = vld [vmem:[%s6771_s1 + $0x370] sm:$0xff] }
  0x46   : > { %893 = vmatpush.bf16.msrb.mxu2 %v5368_v16  ;;  %v5437_v16 = vld [vmem:[%s6771_s1 + $0x3b0] sm:$0xff] }
  0x47   : > { %915 = vmatpush.bf16.msrb.mxu3 %v5376_v17  ;;  %v5445_v17 = vld [vmem:[%s6771_s1 + $0x3f0] sm:$0xff] }
  0x48   : > { %850 = vmatpush.bf16.msrb.mxu0 %v5351_v32  ;;  %v5433_v32 = vld [vmem:[%s6771_s1 + $0x390] sm:$0xff] }
  0x49   : > { %872 = vmatpush.bf16.msrb.mxu1 %v5359_v33  ;;  %v5441_v33 = vld [vmem:[%s6771_s1 + $0x3d0] sm:$0xff] }
  0x4a   : > { %894 = vmatpush.bf16.msrb.mxu2 %v5367_v23  ;;  %v5428_v23 = vld [vmem:[%s6771_s1 + $0x368] sm:$0xff] }
  0x4b   : > { %916 = vmatpush.bf16.msrb.mxu3 %v5375_v24  ;;  %516 = vmatmul.bf16.gmra.mxu0 %v5918_v36  ;;  %v5435_v24 = vld [vmem:[%s6771_s1 + $0x3a0] sm:$0xff] }
  0x4c   : > { %1212 = vmatpush.bf16.msra.mxu0 %v5390_v34  ;;  %537 = vmatmul.bf16.gmra.mxu1 %v5920_v37  ;;  %v5417_v34 = vld [vmem:[%s6771_s1 + $0x310] sm:$0xff] }
  0x4d   : > { %1234 = vmatpush.bf16.msra.mxu1 %v5398_v35  ;;  %558 = vmatmul.bf16.gmra.mxu2 %v5922_v38  ;;  %v5425_v35 = vld [vmem:[%s6771_s1 + $0x350] sm:$0xff] }
  0x4e   : > { %1256 = vmatpush.bf16.msra.mxu2 %v5406_v26  ;;  %579 = vmatmul.bf16.gmra.mxu3 %v5924_v39  ;;  %v5419_v26 = vld [vmem:[%s6771_s1 + $0x320] sm:$0xff] }
  0x4f   : > { %1278 = vmatpush.bf16.msra.mxu3 %v5414_v27  ;;  %v5427_v27 = vld [vmem:[%s6771_s1 + $0x360] sm:$0xff] }
  0x50   : > { %1213 = vmatpush.bf16.msra.mxu0 %v5389_v46  ;;  %v5416_v46 = vld [vmem:[%s6771_s1 + $0x308] sm:$0xff] }
  0x51   : > { %1235 = vmatpush.bf16.msra.mxu1 %v5397_v47  ;;  %v5424_v47 = vld [vmem:[%s6771_s1 + $0x348] sm:$0xff] }
  0x52   : > { %1257 = vmatpush.bf16.msra.mxu2 %v5405_v40  ;;  %v5432_v40 = vld [vmem:[%s6771_s1 + $0x388] sm:$0xff] }
  0x53   : > { %1279 = vmatpush.bf16.msra.mxu3 %v5413_v41  ;;  %v5440_v41 = vld [vmem:[%s6771_s1 + $0x3c8] sm:$0xff] }
  0x54   : > { %1214 = vmatpush.bf16.msra.mxu0 %v5388_v50  ;;  %v5415_v50 = vld [vmem:[%s6771_s1 + $0x300] sm:$0xff] }
  0x55   : > { %1236 = vmatpush.bf16.msra.mxu1 %v5396_v51  ;;  %v5423_v51 = vld [vmem:[%s6771_s1 + $0x340] sm:$0xff] }
  0x56   : > { %1258 = vmatpush.bf16.msra.mxu2 %v5404_v48  ;;  %v5431_v48 = vld [vmem:[%s6771_s1 + $0x380] sm:$0xff] }
  0x57   : > { %1280 = vmatpush.bf16.msra.mxu3 %v5412_v49  ;;  %v5439_v49 = vld [vmem:[%s6771_s1 + $0x3c0] sm:$0xff] }
  0x58   : > { %1215 = vmatpush.bf16.msra.mxu0 %v5387_v54  ;;  %v5454_v54 = vld [vmem:[%s6771_s1 + $0x438] sm:$0xff] }
  0x59   : > { %1237 = vmatpush.bf16.msra.mxu1 %v5395_v55  ;;  %v5462_v55 = vld [vmem:[%s6771_s1 + $0x478] sm:$0xff] }
  0x5a   : > { %1259 = vmatpush.bf16.msra.mxu2 %v5403_v52  ;;  %v5470_v52 = vld [vmem:[%s6771_s1 + $0x4b8] sm:$0xff] }
  0x5b   : > { %1281 = vmatpush.bf16.msra.mxu3 %v5411_v53  ;;  %851 = vmatmul.bf16.vlgmr.msrb.gmra.mxu0 %v5776_v42  ;;  %v5478_v53 = vld [vmem:[%s6771_s1 + $0x4f8] sm:$0xff] }
  0x5c   : > { %1216 = vmatpush.bf16.msra.mxu0 %v5386_v58  ;;  %873 = vmatmul.bf16.vlgmr.msrb.gmra.mxu1 %v5778_v43  ;;  %v5453_v58 = vld [vmem:[%s6771_s1 + $0x430] sm:$0xff] }
  0x5d   : > { %1238 = vmatpush.bf16.msra.mxu1 %v5394_v59  ;;  %895 = vmatmul.bf16.vlgmr.msrb.gmra.mxu2 %v5780_v44  ;;  %v5461_v59 = vld [vmem:[%s6771_s1 + $0x470] sm:$0xff] }
  0x5e   : > { %1260 = vmatpush.bf16.msra.mxu2 %v5402_v56  ;;  %917 = vmatmul.bf16.vlgmr.msrb.gmra.mxu3 %v5782_v45  ;;  %v5469_v56 = vld [vmem:[%s6771_s1 + $0x4b0] sm:$0xff] }
  0x5f   : > { %1282 = vmatpush.bf16.msra.mxu3 %v5410_v57  ;;  %v5477_v57 = vld [vmem:[%s6771_s1 + $0x4f0] sm:$0xff] }
  0x60   : > { %1217 = vmatpush.bf16.msra.mxu0 %v5385_v62 }
  0x61   : > { %1239 = vmatpush.bf16.msra.mxu1 %v5393_v63  ;;  %v5476_v63 = vld [vmem:[%s6771_s1 + $0x4e8] sm:$0xff] }
  0x62   : > { %1261 = vmatpush.bf16.msra.mxu2 %v5401_v60  ;;  %v5468_v60 = vld [vmem:[%s6771_s1 + $0x4a8] sm:$0xff] }
  0x63   : > { %1283 = vmatpush.bf16.msra.mxu3 %v5409_v61 }
  0x64   : > { %1218 = vmatpush.bf16.msra.mxu0 %v5384_v2  ;;  %v5460_v2 = vld [vmem:[%s6771_s1 + $0x468] sm:$0xff] }
  0x65   : > { %1240 = vmatpush.bf16.msra.mxu1 %v5392_v3  ;;  %v5467_v3 = vld [vmem:[%s6771_s1 + $0x4a0] sm:$0xff] }
  0x66   : > { %1262 = vmatpush.bf16.msra.mxu2 %v5400_v0 }
  0x67   : > { %1284 = vmatpush.bf16.msra.mxu3 %v5408_v1  ;;  %v5452_v1 = vld [vmem:[%s6771_s1 + $0x428] sm:$0xff] }
  0x68   : > { %1219 = vmatpush.bf16.msra.mxu0 %v5383_v10  ;;  %v5475_v10 = vld [vmem:[%s6771_s1 + $0x4e0] sm:$0xff] }
  0x69   : > { %1241 = vmatpush.bf16.msra.mxu1 %v5391_v11 }
  0x6a   : > { %1263 = vmatpush.bf16.msra.mxu2 %v5399_v4 }
  0x6b   : > { %1285 = vmatpush.bf16.msra.mxu3 %v5407_v5  ;;  %856 = vmatmul.bf16.gmra.mxu0 %v5844_v6 }
  0x6c   : > { %878 = vmatmul.bf16.gmra.mxu1 %v5846_v7  ;;  %1581 = vmatpush.bf16.msrb.mxu0 %v5422_v14  ;;  %v5451_v14 = vld [vmem:[%s6771_s1 + $0x420] sm:$0xff] }
  0x6d   : > { %900 = vmatmul.bf16.gmra.mxu2 %v5848_v8  ;;  %1603 = vmatpush.bf16.msrb.mxu1 %v5430_v15  ;;  %v5459_v15 = vld [vmem:[%s6771_s1 + $0x460] sm:$0xff] }
  0x6e   : > { %922 = vmatmul.bf16.gmra.mxu3 %v5850_v9  ;;  %1625 = vmatpush.bf16.msrb.mxu2 %v5438_v12 }
  0x6f   : > { %1647 = vmatpush.bf16.msrb.mxu3 %v5446_v13 }
  0x70   : > { %1582 = vmatpush.bf16.msrb.mxu0 %v5421_v18  ;;  %v5474_v18 = vld [vmem:[%s6771_s1 + $0x4d8] sm:$0xff] }
  0x71   : > { %1604 = vmatpush.bf16.msrb.mxu1 %v5429_v19 }
  0x72   : > { %1626 = vmatpush.bf16.msrb.mxu2 %v5437_v16  ;;  %v5466_v16 = vld [vmem:[%s6771_s1 + $0x498] sm:$0xff] }
  0x73   : > { %1648 = vmatpush.bf16.msrb.mxu3 %v5445_v17 }
  0x74   : > { %1583 = vmatpush.bf16.msrb.mxu0 %v5420_v22  ;;  %v5450_v22 = vld [vmem:[%s6771_s1 + $0x418] sm:$0xff] }
  0x75   : > { %1605 = vmatpush.bf16.msrb.mxu1 %v5428_v23  ;;  %v5458_v23 = vld [vmem:[%s6771_s1 + $0x458] sm:$0xff] }
  0x76   : > { %1627 = vmatpush.bf16.msrb.mxu2 %v5436_v20 }
  0x77   : > { %1649 = vmatpush.bf16.msrb.mxu3 %v5444_v21 }
  0x78   : > { %1584 = vmatpush.bf16.msrb.mxu0 %v5419_v26 }
  0x79   : > { %1606 = vmatpush.bf16.msrb.mxu1 %v5427_v27 }
  0x7a   : > { %1628 = vmatpush.bf16.msrb.mxu2 %v5435_v24 }
  0x7b   : > { %861 = vmatmul.bf16.gmra.mxu0 %v5918_v36  ;;  %1650 = vmatpush.bf16.msrb.mxu3 %v5443_v25 }
  0x7c   : > { %883 = vmatmul.bf16.gmra.mxu1 %v5920_v37  ;;  %1585 = vmatpush.bf16.msrb.mxu0 %v5418_v30  ;;  %v5473_v30 = vld [vmem:[%s6771_s1 + $0x4d0] sm:$0xff] }
  0x7d   : > { %905 = vmatmul.bf16.gmra.mxu2 %v5922_v38  ;;  %1607 = vmatpush.bf16.msrb.mxu1 %v5426_v31  ;;  %v5449_v31 = vld [vmem:[%s6771_s1 + $0x410] sm:$0xff] }
  0x7e   : > { %927 = vmatmul.bf16.gmra.mxu3 %v5924_v39  ;;  %1629 = vmatpush.bf16.msrb.mxu2 %v5434_v28  ;;  %v5465_v28 = vld [vmem:[%s6771_s1 + $0x490] sm:$0xff] }
  0x7f   : > { %1651 = vmatpush.bf16.msrb.mxu3 %v5442_v29 }
  0x80   : > { %1586 = vmatpush.bf16.msrb.mxu0 %v5417_v34 }
  0x81   : > { %1608 = vmatpush.bf16.msrb.mxu1 %v5425_v35 }
  0x82   : > { %1630 = vmatpush.bf16.msrb.mxu2 %v5433_v32  ;;  %v5457_v32 = vld [vmem:[%s6771_s1 + $0x450] sm:$0xff] }
  0x83   : > { %1652 = vmatpush.bf16.msrb.mxu3 %v5441_v33 }
  0x84   : > { %1587 = vmatpush.bf16.msrb.mxu0 %v5416_v46 }
  0x85   : > { %1609 = vmatpush.bf16.msrb.mxu1 %v5424_v47  ;;  %v5464_v47 = vld [vmem:[%s6771_s1 + $0x488] sm:$0xff] }
  0x86   : > { %1631 = vmatpush.bf16.msrb.mxu2 %v5432_v40 }
  0x87   : > { %1653 = vmatpush.bf16.msrb.mxu3 %v5440_v41 }
  0x88   : > { %1588 = vmatpush.bf16.msrb.mxu0 %v5415_v50  ;;  %v5456_v50 = vld [vmem:[%s6771_s1 + $0x448] sm:$0xff] }
  0x89   : > { %1610 = vmatpush.bf16.msrb.mxu1 %v5423_v51  ;;  %v5463_v51 = vld [vmem:[%s6771_s1 + $0x480] sm:$0xff] }
  0x8a   : > { %1632 = vmatpush.bf16.msrb.mxu2 %v5431_v48  ;;  %v5472_v48 = vld [vmem:[%s6771_s1 + $0x4c8] sm:$0xff] }
  0x8b   : > { %1220 = vmatmul.bf16.vlgmr.msra.gmra.mxu0 %v5776_v42  ;;  %1654 = vmatpush.bf16.msrb.mxu3 %v5439_v49  ;;  %v5448_v49 = vld [vmem:[%s6771_s1 + $0x408] sm:$0xff] }
  0x8c   : > { %1242 = vmatmul.bf16.vlgmr.msra.gmra.mxu1 %v5778_v43  ;;  %1950 = vmatpush.bf16.msra.mxu0 %v5454_v54  ;;  %v5471_v54 = vld [vmem:[%s6771_s1 + $0x4c0] sm:$0xff] }
  0x8d   : > { %1264 = vmatmul.bf16.vlgmr.msra.gmra.mxu2 %v5780_v44  ;;  %1972 = vmatpush.bf16.msra.mxu1 %v5462_v55  ;;  %v5447_v55 = vld [vmem:[%s6771_s1 + $0x400] sm:$0xff] }
  0x8e   : > { %1286 = vmatmul.bf16.vlgmr.msra.gmra.mxu3 %v5782_v45  ;;  %1994 = vmatpush.bf16.msra.mxu2 %v5470_v52 }
  0x8f   : > { %2016 = vmatpush.bf16.msra.mxu3 %v5478_v53 }
  0x90   : > { %1951 = vmatpush.bf16.msra.mxu0 %v5453_v58 }
  0x91   : > { %1973 = vmatpush.bf16.msra.mxu1 %v5461_v59 }
  0x92   : > { %1995 = vmatpush.bf16.msra.mxu2 %v5469_v56  ;;  %v5455_v56 = vld [vmem:[%s6771_s1 + $0x440] sm:$0xff] }
  0x93   : > { %2017 = vmatpush.bf16.msra.mxu3 %v5477_v57 }
  0x94   : > { %1952 = vmatpush.bf16.msra.mxu0 %v5452_v1 }
  0x95   : > { %1974 = vmatpush.bf16.msra.mxu1 %v5460_v2 }
  0x96   : > { %1996 = vmatpush.bf16.msra.mxu2 %v5468_v60 }
  0x97   : > { %2018 = vmatpush.bf16.msra.mxu3 %v5476_v63 }
  0x98   : > { %1953 = vmatpush.bf16.msra.mxu0 %v5451_v14  ;;  %v5485_v14 = vld [vmem:[%s6771_s1 + $0x530] sm:$0xff] }
  0x99   : > { %1975 = vmatpush.bf16.msra.mxu1 %v5459_v15  ;;  %v5493_v15 = vld [vmem:[%s6771_s1 + $0x570] sm:$0xff] }
  0x9a   : > { %1997 = vmatpush.bf16.msra.mxu2 %v5467_v3  ;;  %v5486_v3 = vld [vmem:[%s6771_s1 + $0x538] sm:$0xff] }
  0x9b   : > { %1225 = vmatmul.bf16.gmra.mxu0 %v5844_v6  ;;  %2019 = vmatpush.bf16.msra.mxu3 %v5475_v10 }
  0x9c   : > { %1247 = vmatmul.bf16.gmra.mxu1 %v5846_v7  ;;  %1954 = vmatpush.bf16.msra.mxu0 %v5450_v22 }
  0x9d   : > { %1269 = vmatmul.bf16.gmra.mxu2 %v5848_v8  ;;  %1976 = vmatpush.bf16.msra.mxu1 %v5458_v23 }
  0x9e   : > { %1291 = vmatmul.bf16.gmra.mxu3 %v5850_v9  ;;  %1998 = vmatpush.bf16.msra.mxu2 %v5466_v16 }
  0x9f   : > { %2020 = vmatpush.bf16.msra.mxu3 %v5474_v18  ;;  %v5500_v18 = vld [vmem:[%s6771_s1 + $0x5a8] sm:$0xff] }
  0xa0   : > { %1955 = vmatpush.bf16.msra.mxu0 %v5449_v31  ;;  %v5483_v31 = vld [vmem:[%s6771_s1 + $0x520] sm:$0xff] }
  0xa1   : > { %1977 = vmatpush.bf16.msra.mxu1 %v5457_v32  ;;  %v5491_v32 = vld [vmem:[%s6771_s1 + $0x560] sm:$0xff] }
  0xa2   : > { %1999 = vmatpush.bf16.msra.mxu2 %v5465_v28  ;;  %v5507_v28 = vld [vmem:[%s6771_s1 + $0x5e0] sm:$0xff] }
  0xa3   : > { %2021 = vmatpush.bf16.msra.mxu3 %v5473_v30 }
  0xa4   : > { %1956 = vmatpush.bf16.msra.mxu0 %v5448_v49 }
  0xa5   : > { %1978 = vmatpush.bf16.msra.mxu1 %v5456_v50 }
  0xa6   : > { %2000 = vmatpush.bf16.msra.mxu2 %v5464_v47  ;;  %v5490_v47 = vld [vmem:[%s6771_s1 + $0x558] sm:$0xff] }
  0xa7   : > { %2022 = vmatpush.bf16.msra.mxu3 %v5472_v48 }
  0xa8   : > { %v508_v61 = vpop.f32.mrf.mxu0  ;;  %1957 = vmatpush.bf16.msra.mxu0 %v5447_v55 }
  0xa9   : > { %v529_v62 = vpop.f32.mrf.mxu1  ;;  %1979 = vmatpush.bf16.msra.mxu1 %v5455_v56  ;;  %v5505_v56 = vld [vmem:[%s6771_s1 + $0x5d0] sm:$0xff] }
  0xaa   : > { %v530_v0 = vadd.f32 %v529_v62, %v508_v61  ;;  %2001 = vmatpush.bf16.msra.mxu2 %v5463_v51  ;;  %v5502_v61 = vld [vmem:[%s6771_s1 + $0x5b8] sm:$0xff] }
  0xab   : > { %1230 = vmatmul.bf16.gmra.mxu0 %v5918_v36  ;;  %2023 = vmatpush.bf16.msra.mxu3 %v5471_v54  ;;  %v5510_v62 = vld [vmem:[%s6771_s1 + $0x5f8] sm:$0xff] }
  0xac   : > { %1252 = vmatmul.bf16.gmra.mxu1 %v5920_v37 }
  0xad   : > { %1274 = vmatmul.bf16.gmra.mxu2 %v5922_v38 }
  0xae   : > { %1296 = vmatmul.bf16.gmra.mxu3 %v5924_v39 }
  0xb0   : > { %v550_v4 = vpop.f32.mrf.mxu2  ;;  %v510_v12 = vpop.f32.mrf.mxu0 }
  0xb1   : > { %v571_v5 = vpop.f32.mrf.mxu3  ;;  %v551_v11 = vadd.f32 %v550_v4, %v530_v0  ;;  %v531_v13 = vpop.f32.mrf.mxu1  ;;  %v5494_v4 = vld [vmem:[%s6771_s1 + $0x578] sm:$0xff] }
  0xb2   : > { %v532_v17 = vadd.f32 %v531_v13, %v510_v12  ;;  %v5509_v12 = vld [vmem:[%s6771_s1 + $0x5f0] sm:$0xff] }
  0xb3   : > { %v6188_v19 = vadd.f32 %v571_v5, %v551_v11  ;;  %v5501_v5 = vld [vmem:[%s6771_s1 + $0x5b0] sm:$0xff] }
  0xb8   : > { %v552_v20 = vpop.f32.mrf.mxu2  ;;  %v513_v25 = vpop.f32.mrf.mxu0 }
  0xb9   : > { %v573_v21 = vpop.f32.mrf.mxu3  ;;  %v553_v24 = vadd.f32 %v552_v20, %v532_v17  ;;  %v534_v26 = vpop.f32.mrf.mxu1  ;;  %v5508_v20 = vld [vmem:[%s6771_s1 + $0x5e8] sm:$0xff] }
  0xba   : > { %v535_v27 = vadd.f32 %v534_v26, %v513_v25  ;;  %v5492_v25 = vld [vmem:[%s6771_s1 + $0x568] sm:$0xff] }
  0xbb   : > { %v6199_v29 = vadd.f32 %v573_v21, %v553_v24  ;;  %1589 = vmatmul.bf16.vlgmr.msrb.gmra.mxu0 %v5776_v42  ;;  %v5484_v21 = vld [vmem:[%s6771_s1 + $0x528] sm:$0xff] }
  0xbc   : > { %1611 = vmatmul.bf16.vlgmr.msrb.gmra.mxu1 %v5778_v43  ;;  %2319 = vmatpush.bf16.msrb.mxu0 %v5486_v3 }
  0xbd   : > { %1633 = vmatmul.bf16.vlgmr.msrb.gmra.mxu2 %v5780_v44  ;;  %2340 = vmatpush.bf16.msrb.mxu1 %v5494_v4  ;;  %v5496_v4 = vld [vmem:[%s6771_s1 + $0x588] sm:$0xff] }
  0xbe   : > { %1655 = vmatmul.bf16.vlgmr.msrb.gmra.mxu3 %v5782_v45  ;;  %2361 = vmatpush.bf16.msrb.mxu2 %v5502_v61 }
  0xbf   : > { %2382 = vmatpush.bf16.msrb.mxu3 %v5510_v62 }
  0xc0   : > { %v555_v33 = vpop.f32.mrf.mxu2  ;;  %v515_v40 = vpop.f32.mrf.mxu0  ;;  %2320 = vmatpush.bf16.msrb.mxu0 %v5485_v14 }
  0xc1   : > { %v576_v34 = vpop.f32.mrf.mxu3  ;;  %v556_v35 = vadd.f32 %v555_v33, %v535_v27  ;;  %v536_v41 = vpop.f32.mrf.mxu1  ;;  %2341 = vmatpush.bf16.msrb.mxu1 %v5493_v15  ;;  %v5499_v27 = vld [vmem:[%s6771_s1 + $0x5a0] sm:$0xff]  ;;  %v5498_v33 = vld [vmem:[%s6771_s1 + $0x598] sm:$0xff] }
  0xc2   : > { %2362 = vmatpush.bf16.msrb.mxu2 %v5501_v5  ;;  %v5482_v41 = vld [vmem:[%s6771_s1 + $0x518] sm:$0xff]  ;;  %v5504_v5 = vld [vmem:[%s6771_s1 + $0x5c8] sm:$0xff] }
  0xc3   : > { %v6214_v46 = vadd.f32 %v576_v34, %v556_v35  ;;  %2383 = vmatpush.bf16.msrb.mxu3 %v5509_v12  ;;  %v5506_v34 = vld [vmem:[%s6771_s1 + $0x5d8] sm:$0xff]  ;;  %v5495_v12 = vld [vmem:[%s6771_s1 + $0x580] sm:$0xff] }
  0xc4   : > { %2321 = vmatpush.bf16.msrb.mxu0 %v5484_v21 }
  0xc5   : > { %2342 = vmatpush.bf16.msrb.mxu1 %v5492_v25 }
  0xc6   : > { %2363 = vmatpush.bf16.msrb.mxu2 %v5500_v18  ;;  %v5479_v18 = vld [vmem:[%s6771_s1 + $0x500] sm:$0xff] }
  0xc7   : > { %2384 = vmatpush.bf16.msrb.mxu3 %v5508_v20  ;;  %v5487_v20 = vld [vmem:[%s6771_s1 + $0x540] sm:$0xff] }
  0xc8   : > { %v557_v52 = vpop.f32.mrf.mxu2  ;;  %v517_v57 = vpop.f32.mrf.mxu0  ;;  %2322 = vmatpush.bf16.msrb.mxu0 %v5483_v31  ;;  %v5542_v31 = vld [vmem:[%s6771_s1 + $0x6f8] sm:$0xff] }
  0xc9   : > { %v578_v53 = vpop.f32.mrf.mxu3  ;;  %v538_v58 = vpop.f32.mrf.mxu1  ;;  %2343 = vmatpush.bf16.msrb.mxu1 %v5491_v32  ;;  %v5497_v52 = vld [vmem:[%s6771_s1 + $0x590] sm:$0xff] }
  0xca   : > { %2364 = vmatpush.bf16.msrb.mxu2 %v5499_v27  ;;  %v5481_v57 = vld [vmem:[%s6771_s1 + $0x510] sm:$0xff] }
  0xcb   : > { %1594 = vmatmul.bf16.gmra.mxu0 %v5844_v6  ;;  %2385 = vmatpush.bf16.msrb.mxu3 %v5507_v28  ;;  %v5489_v58 = vld [vmem:[%s6771_s1 + $0x550] sm:$0xff] }
  0xcc   : > { %1616 = vmatmul.bf16.gmra.mxu1 %v5846_v7  ;;  %2323 = vmatpush.bf16.msrb.mxu0 %v5482_v41  ;;  %v5533_v41 = vld [vmem:[%s6771_s1 + $0x6b0] sm:$0xff] }
  0xcd   : > { %1638 = vmatmul.bf16.gmra.mxu2 %v5848_v8  ;;  %2344 = vmatpush.bf16.msrb.mxu1 %v5490_v47 }
  0xce   : > { %1660 = vmatmul.bf16.gmra.mxu3 %v5850_v9  ;;  %2365 = vmatpush.bf16.msrb.mxu2 %v5498_v33 }
  0xcf   : > { %2386 = vmatpush.bf16.msrb.mxu3 %v5506_v34 }
  0xd0   : > { %v559_v59 = vpop.f32.mrf.mxu2  ;;  %v518_v63 = vpop.f32.mrf.mxu0  ;;  %2324 = vmatpush.bf16.msrb.mxu0 %v5481_v57  ;;  %v5516_v57 = vld [vmem:[%s6771_s1 + $0x628] sm:$0xff] }
  0xd1   : > { %v580_v60 = vpop.f32.mrf.mxu3  ;;  %v539_v0 = vpop.f32.mrf.mxu1  ;;  %2345 = vmatpush.bf16.msrb.mxu1 %v5489_v58 }
  0xd2   : > { %2366 = vmatpush.bf16.msrb.mxu2 %v5497_v52  ;;  %v5525_v52 = vld [vmem:[%s6771_s1 + $0x670] sm:$0xff] }
  0xd3   : > { %2387 = vmatpush.bf16.msrb.mxu3 %v5505_v56  ;;  %v5540_v56 = vld [vmem:[%s6771_s1 + $0x6e8] sm:$0xff] }
  0xd6   : > { %2367 = vmatpush.bf16.msrb.mxu2 %v5496_v4  ;;  %v5523_v4 = vld [vmem:[%s6771_s1 + $0x660] sm:$0xff] }
  0xd7   : > { %2388 = vmatpush.bf16.msrb.mxu3 %v5504_v5  ;;  %v5530_v5 = vld [vmem:[%s6771_s1 + $0x698] sm:$0xff] }
  0xd8   : > { %v560_v1 = vpop.f32.mrf.mxu2  ;;  %v852_v10 = vpop.f32.mrf.mxu0 }
  0xd9   : > { %v581_v2 = vpop.f32.mrf.mxu3  ;;  %v874_v11 = vpop.f32.mrf.mxu1 }
  0xda   : > { %v875_v13 = vadd.f32 %v874_v11, %v852_v10  ;;  %v5488_v11 = vld [vmem:[%s6771_s1 + $0x548] sm:$0xff]  ;;  %2368 = vmatpush.bf16.msrb.mxu2 %v5495_v12  ;;  %v5514_v12 = vld [vmem:[%s6771_s1 + $0x618] sm:$0xff] }
  0xdb   : > { %1599 = vmatmul.bf16.gmra.mxu0 %v5918_v36  ;;  %2346 = vmatpush.bf16.msrb.mxu1 %v5488_v11 }
  0xdc   : > { %1621 = vmatmul.bf16.gmra.mxu1 %v5920_v37 }
  0xdd   : > { %1643 = vmatmul.bf16.gmra.mxu2 %v5922_v38 }
  0xde   : > { %1665 = vmatmul.bf16.gmra.mxu3 %v5924_v39 }
  0xdf   : > { %2347 = vmatpush.bf16.msrb.mxu1 %v5487_v20  ;;  %v5529_v20 = vld [vmem:[%s6771_s1 + $0x690] sm:$0xff] }
  0xe0   : > { %v896_v16 = vpop.f32.mrf.mxu2  ;;  %v854_v23 = vpop.f32.mrf.mxu0 }
  0xe1   : > { %v918_v17 = vpop.f32.mrf.mxu3  ;;  %v897_v22 = vadd.f32 %v896_v16, %v875_v13  ;;  %v876_v24 = vpop.f32.mrf.mxu1 }
  0xe2   : > { %v877_v26 = vadd.f32 %v876_v24, %v854_v23 }
  0xe3   : > { %v919_v30 = vadd.f32 %v918_v17, %v897_v22  ;;  %v5503_v17 = vld [vmem:[%s6771_s1 + $0x5c0] sm:$0xff] }
  0xe4   : > { %2389 = vmatpush.bf16.msrb.mxu3 %v5503_v17 }
  0xe5   : > { %v939_v54 = vrot.slane %v919_v30, 1  ;;  %v5534_v30 = vld [vmem:[%s6771_s1 + $0x6b8] sm:$0xff] }
  0xe8   : > { %v898_v35 = vpop.f32.mrf.mxu2  ;;  %v857_v49 = vpop.f32.mrf.mxu0 }
  0xe9   : > { %v920_v40 = vpop.f32.mrf.mxu3  ;;  %v899_v48 = vadd.f32 %v898_v35, %v877_v26  ;;  %v879_v50 = vpop.f32.mrf.mxu1 }
  0xea   : > { %v880_v51 = vadd.f32 %v879_v50, %v857_v49  ;;  %v5541_v49 = vld [vmem:[%s6771_s1 + $0x6f0] sm:$0xff] }
  0xeb   : > { %v921_v53 = vadd.f32 %v920_v40, %v899_v48  ;;  %1958 = vmatmul.bf16.vlgmr.msra.gmra.mxu0 %v5776_v42  ;;  %v5526_v40 = vld [vmem:[%s6771_s1 + $0x678] sm:$0xff] }
  0xec   : > { %1980 = vmatmul.bf16.vlgmr.msra.gmra.mxu1 %v5778_v43 }
  0xed   : > { %v940_v55 = vrot.slane %v921_v53, 1  ;;  %2002 = vmatmul.bf16.vlgmr.msra.gmra.mxu2 %v5780_v44  ;;  %2691 = vmatpush.bf16.msra.mxu1 %v5526_v40  ;;  %v5528_v40 = vld [vmem:[%s6771_s1 + $0x688] sm:$0xff] }
  0xee   : > { %2024 = vmatmul.bf16.vlgmr.msra.gmra.mxu3 %v5782_v45  ;;  %2713 = vmatpush.bf16.msra.mxu2 %v5534_v30 }
  0xef   : > { %v941_v59 = vsel %vm938_vm0, %v939_v54, %v940_v55  ;;  %2735 = vmatpush.bf16.msra.mxu3 %v5542_v31 }
  0xf0   : > { %v6326_v60 = vadd.f32 %v941_v59, %v6188_v19  ;;  %v901_v61 = vpop.f32.mrf.mxu2  ;;  %v859_v0 = vpop.f32.mrf.mxu0  ;;  %v5480_v19 = vld [vmem:[%s6771_s1 + $0x508] sm:$0xff] }
  0xf1   : > { %v923_v62 = vpop.f32.mrf.mxu3  ;;  %v902_v63 = vadd.f32 %v901_v61, %v880_v51  ;;  %v881_v1 = vpop.f32.mrf.mxu1  ;;  %2325 = vmatpush.bf16.msrb.mxu0 %v5480_v19  ;;  %v5517_v51 = vld [vmem:[%s6771_s1 + $0x630] sm:$0xff]  ;;  %2692 = vmatpush.bf16.msra.mxu1 %v5525_v52  ;;  %v5538_v19 = vld [vmem:[%s6771_s1 + $0x6d8] sm:$0xff] }
  0xf2   : > { %v882_v2 = vadd.f32 %v881_v1, %v859_v0  ;;  %2714 = vmatpush.bf16.msra.mxu2 %v5533_v41  ;;  %v5531_v0 = vld [vmem:[%s6771_s1 + $0x6a0] sm:$0xff]  ;;  %v5536_v41 = vld [vmem:[%s6771_s1 + $0x6c8] sm:$0xff] }
  0xf3   : > { %v924_v3 = vadd.f32 %v923_v62, %v902_v63  ;;  %2736 = vmatpush.bf16.msra.mxu3 %v5541_v49  ;;  %v5524_v62 = vld [vmem:[%s6771_s1 + $0x668] sm:$0xff]  ;;  %v5539_v1 = vld [vmem:[%s6771_s1 + $0x6e0] sm:$0xff] }
  0xf4   : > { %v5527_v49 = vld [vmem:[%s6771_s1 + $0x680] sm:$0xff] }
  0xf5   : > { %v942_v10 = vrot.slane %v924_v3, 1  ;;  %2326 = vmatpush.bf16.msrb.mxu0 %v5479_v18  ;;  %2693 = vmatpush.bf16.msra.mxu1 %v5524_v62  ;;  %v5515_v3 = vld [vmem:[%s6771_s1 + $0x620] sm:$0xff] }
  0xf7   : > { %v943_v13 = vsel %vm938_vm0, %v940_v55, %v942_v10  ;;  %v5532_v55 = vld [vmem:[%s6771_s1 + $0x6a8] sm:$0xff]  ;;  %2737 = vmatpush.bf16.msra.mxu3 %v5540_v56  ;;  %v5519_v56 = vld [vmem:[%s6771_s1 + $0x640] sm:$0xff] }
  0xf8   : > { %v6345_v14 = vadd.f32 %v943_v13, %v6199_v29  ;;  %v903_v15 = vpop.f32.mrf.mxu2  ;;  %v862_v22 = vpop.f32.mrf.mxu0  ;;  %2715 = vmatpush.bf16.msra.mxu2 %v5532_v55  ;;  %v5522_v13 = vld [vmem:[%s6771_s1 + $0x658] sm:$0xff]  ;;  %v5511_v55 = vld [vmem:[%s6771_s1 + $0x600] sm:$0xff] }
  0xf9   : > { %v925_v16 = vpop.f32.mrf.mxu3  ;;  %v904_v21 = vadd.f32 %v903_v15, %v882_v2  ;;  %v884_v23 = vpop.f32.mrf.mxu1  ;;  %2694 = vmatpush.bf16.msra.mxu1 %v5523_v4 }
  0xfb   : > { %v926_v29 = vadd.f32 %v925_v16, %v904_v21  ;;  %1963 = vmatmul.bf16.gmra.mxu0 %v5844_v6  ;;  %2738 = vmatpush.bf16.msra.mxu3 %v5539_v1 }
  0xfc   : > { %1985 = vmatmul.bf16.gmra.mxu1 %v5846_v7  ;;  %2716 = vmatpush.bf16.msra.mxu2 %v5531_v0  ;;  %v5574_v0 = vld [vmem:[%s6771_s1 + $0x7f8] sm:$0xff] }
  0xfd   : > { %v944_v24 = vrot.slane %v926_v29, 1  ;;  %2007 = vmatmul.bf16.gmra.mxu2 %v5848_v8  ;;  %2695 = vmatpush.bf16.msra.mxu1 %v5522_v13  ;;  %v5537_v29 = vld [vmem:[%s6771_s1 + $0x6d0] sm:$0xff] }
  0xfe   : > { %2029 = vmatmul.bf16.gmra.mxu3 %v5850_v9  ;;  %v5573_v13 = vld [vmem:[%s6771_s1 + $0x7f0] sm:$0xff] }
  0xff   : > { %v945_v25 = vsel %vm938_vm0, %v942_v10, %v944_v24  ;;  %2739 = vmatpush.bf16.msra.mxu3 %v5538_v19  ;;  %v5513_v24 = vld [vmem:[%s6771_s1 + $0x610] sm:$0xff]  ;;  %v5550_v19 = vld [vmem:[%s6771_s1 + $0x738] sm:$0xff] }
 0x100   : > { %v6362_v26 = vadd.f32 %v945_v25, %v6214_v46  ;;  %v906_v27 = vpop.f32.mrf.mxu2  ;;  %v863_v32 = vpop.f32.mrf.mxu0  ;;  %v5518_v46 = vld [vmem:[%s6771_s1 + $0x638] sm:$0xff]  ;;  %2717 = vmatpush.bf16.msra.mxu2 %v5530_v5  ;;  %v5521_v25 = vld [vmem:[%s6771_s1 + $0x650] sm:$0xff] }
 0x101   : > { %v928_v28 = vpop.f32.mrf.mxu3  ;;  %v885_v33 = vpop.f32.mrf.mxu1  ;;  %2669 = vmatpush.bf16.msra.mxu0 %v5518_v46  ;;  %2696 = vmatpush.bf16.msra.mxu1 %v5521_v25  ;;  %v5556_v25 = vld [vmem:[%s6771_s1 + $0x768] sm:$0xff] }
 0x103   : > { %2740 = vmatpush.bf16.msra.mxu3 %v5537_v29 }
 0x104   : > { %2718 = vmatpush.bf16.msra.mxu2 %v5529_v20  ;;  %v5557_v20 = vld [vmem:[%s6771_s1 + $0x770] sm:$0xff] }
 0x105   : > { %2670 = vmatpush.bf16.msra.mxu0 %v5517_v51 }
 0x107   : > { %2741 = vmatpush.bf16.msra.mxu3 %v5536_v41  ;;  %v5562_v41 = vld [vmem:[%s6771_s1 + $0x798] sm:$0xff] }
 0x108   : > { %v907_v34 = vpop.f32.mrf.mxu2  ;;  %v1221_v47 = vpop.f32.mrf.mxu0  ;;  %2719 = vmatpush.bf16.msra.mxu2 %v5528_v40 }
 0x109   : > { %v929_v35 = vpop.f32.mrf.mxu3  ;;  %v1243_v48 = vpop.f32.mrf.mxu1  ;;  %2671 = vmatpush.bf16.msra.mxu0 %v5516_v57 }
 0x10a   : > { %v1244_v50 = vadd.f32 %v1243_v48, %v1221_v47  ;;  %v5520_v48 = vld [vmem:[%s6771_s1 + $0x648] sm:$0xff] }
 0x10b   : > { %1968 = vmatmul.bf16.gmra.mxu0 %v5918_v36  ;;  %2697 = vmatpush.bf16.msra.mxu1 %v5520_v48 }
 0x10c   : > { %1990 = vmatmul.bf16.gmra.mxu1 %v5920_v37  ;;  %2720 = vmatpush.bf16.msra.mxu2 %v5527_v49  ;;  %v5546_v49 = vld [vmem:[%s6771_s1 + $0x718] sm:$0xff] }
 0x10d   : > { %2012 = vmatmul.bf16.gmra.mxu2 %v5922_v38  ;;  %2672 = vmatpush.bf16.msra.mxu0 %v5515_v3 }
 0x10e   : > { %2034 = vmatmul.bf16.gmra.mxu3 %v5924_v39 }
 0x10f   : > { %2698 = vmatpush.bf16.msra.mxu1 %v5519_v56  ;;  %v5561_v56 = vld [vmem:[%s6771_s1 + $0x790] sm:$0xff] }
 0x110   : > { %v1265_v53 = vpop.f32.mrf.mxu2  ;;  %v1223_v59 = vpop.f32.mrf.mxu0 }
 0x111   : > { %v1287_v54 = vpop.f32.mrf.mxu3  ;;  %v1266_v58 = vadd.f32 %v1265_v53, %v1244_v50  ;;  %v1245_v61 = vpop.f32.mrf.mxu1  ;;  %2673 = vmatpush.bf16.msra.mxu0 %v5514_v12 }
 0x112   : > { %v1246_v63 = vadd.f32 %v1245_v61, %v1223_v59 }
 0x113   : > { %v1288_v2 = vadd.f32 %v1287_v54, %v1266_v58  ;;  %v5535_v54 = vld [vmem:[%s6771_s1 + $0x6c0] sm:$0xff] }
 0x114   : > { %2742 = vmatpush.bf16.msra.mxu3 %v5535_v54 }
 0x115   : > { %v1308_v22 = vrot.slane %v1288_v2, 2  ;;  %2674 = vmatpush.bf16.msra.mxu0 %v5513_v24 }
 0x118   : > { %v1267_v10 = vpop.f32.mrf.mxu2  ;;  %v1226_v16 = vpop.f32.mrf.mxu0 }
 0x119   : > { %v1289_v11 = vpop.f32.mrf.mxu3  ;;  %v1268_v15 = vadd.f32 %v1267_v10, %v1246_v63  ;;  %v1248_v17 = vpop.f32.mrf.mxu1  ;;  %v5566_v63 = vld [vmem:[%s6771_s1 + $0x7b8] sm:$0xff] }
 0x11a   : > { %v1249_v18 = vadd.f32 %v1248_v17, %v1226_v16  ;;  %v5558_v10 = vld [vmem:[%s6771_s1 + $0x778] sm:$0xff] }
 0x11b   : > { %v1290_v21 = vadd.f32 %v1289_v11, %v1268_v15  ;;  %2327 = vmatmul.bf16.vlgmr.msrb.gmra.mxu0 %v5776_v42  ;;  %v5565_v11 = vld [vmem:[%s6771_s1 + $0x7b0] sm:$0xff] }
 0x11c   : > { %2348 = vmatmul.bf16.vlgmr.msrb.gmra.mxu1 %v5778_v43 }
 0x11d   : > { %v1309_v23 = vrot.slane %v1290_v21, 2  ;;  %2369 = vmatmul.bf16.vlgmr.msrb.gmra.mxu2 %v5780_v44  ;;  %3060 = vmatpush.bf16.msrb.mxu1 %v5558_v10  ;;  %v5564_v21 = vld [vmem:[%s6771_s1 + $0x7a8] sm:$0xff] }
 0x11e   : > { %2390 = vmatmul.bf16.vlgmr.msrb.gmra.mxu3 %v5782_v45  ;;  %3082 = vmatpush.bf16.msrb.mxu2 %v5566_v63 }
 0x11f   : > { %v1310_v27 = vsel %vm1307_vm1, %v1308_v22, %v1309_v23  ;;  %3104 = vmatpush.bf16.msrb.mxu3 %v5574_v0  ;;  %v5572_v22 = vld [vmem:[%s6771_s1 + $0x7e8] sm:$0xff] }
 0x120   : > { %v6446_v28 = vadd.f32 %v1310_v27, %v6326_v60  ;;  %v1270_v30 = vpop.f32.mrf.mxu2  ;;  %v1228_v33 = vpop.f32.mrf.mxu0  ;;  %v5512_v60 = vld [vmem:[%s6771_s1 + $0x608] sm:$0xff] }
 0x121   : > { %v1292_v31 = vpop.f32.mrf.mxu3  ;;  %v1271_v32 = vadd.f32 %v1270_v30, %v1249_v18  ;;  %v1250_v34 = vpop.f32.mrf.mxu1  ;;  %2675 = vmatpush.bf16.msra.mxu0 %v5512_v60  ;;  %v5549_v18 = vld [vmem:[%s6771_s1 + $0x730] sm:$0xff]  ;;  %3061 = vmatpush.bf16.msrb.mxu1 %v5557_v20  ;;  %v5570_v60 = vld [vmem:[%s6771_s1 + $0x7d8] sm:$0xff] }
 0x122   : > { %v1251_v35 = vadd.f32 %v1250_v34, %v1228_v33  ;;  %3083 = vmatpush.bf16.msrb.mxu2 %v5565_v11  ;;  %v5571_v33 = vld [vmem:[%s6771_s1 + $0x7e0] sm:$0xff] }
 0x123   : > { %v1293_v46 = vadd.f32 %v1292_v31, %v1271_v32  ;;  %3105 = vmatpush.bf16.msrb.mxu3 %v5573_v13  ;;  %v5563_v32 = vld [vmem:[%s6771_s1 + $0x7a0] sm:$0xff]  ;;  %v5544_v13 = vld [vmem:[%s6771_s1 + $0x708] sm:$0xff] }
 0x125   : > { %v1311_v47 = vrot.slane %v1293_v46, 2  ;;  %2676 = vmatpush.bf16.msra.mxu0 %v5511_v55  ;;  %3062 = vmatpush.bf16.msrb.mxu1 %v5556_v25  ;;  %v5555_v46 = vld [vmem:[%s6771_s1 + $0x760] sm:$0xff] }
 0x126   : > { %3084 = vmatpush.bf16.msrb.mxu2 %v5564_v21  ;;  %v5567_v21 = vld [vmem:[%s6771_s1 + $0x7c0] sm:$0xff] }
 0x127   : > { %v1312_v50 = vsel %vm1307_vm1, %v1309_v23, %v1311_v47  ;;  %v5548_v23 = vld [vmem:[%s6771_s1 + $0x728] sm:$0xff]  ;;  %3106 = vmatpush.bf16.msrb.mxu3 %v5572_v22  ;;  %v5543_v22 = vld [vmem:[%s6771_s1 + $0x700] sm:$0xff] }
 0x128   : > { %v6465_v51 = vadd.f32 %v1312_v50, %v6345_v14  ;;  %v1272_v52 = vpop.f32.mrf.mxu2  ;;  %v1231_v58 = vpop.f32.mrf.mxu0  ;;  %v5554_v50 = vld [vmem:[%s6771_s1 + $0x758] sm:$0xff] }
 0x129   : > { %v1294_v53 = vpop.f32.mrf.mxu3  ;;  %v1273_v57 = vadd.f32 %v1272_v52, %v1251_v35  ;;  %v1253_v59 = vpop.f32.mrf.mxu1  ;;  %3038 = vmatpush.bf16.msrb.mxu0 %v5550_v19  ;;  %v5547_v35 = vld [vmem:[%s6771_s1 + $0x720] sm:$0xff]  ;;  %3063 = vmatpush.bf16.msrb.mxu1 %v5555_v46 }
 0x12a   : > { %3085 = vmatpush.bf16.msrb.mxu2 %v5563_v32  ;;  %v5606_v32 = vld [vmem:[%s6771_s1 + $0x8f8] sm:$0xff] }
 0x12b   : > { %v1295_v14 = vadd.f32 %v1294_v53, %v1273_v57  ;;  %2331 = vmatmul.bf16.gmra.mxu0 %v5844_v6  ;;  %3107 = vmatpush.bf16.msrb.mxu3 %v5571_v33 }
 0x12c   : > { %2352 = vmatmul.bf16.gmra.mxu1 %v5846_v7 }
 0x12d   : > { %v1313_v61 = vrot.slane %v1295_v14, 2  ;;  %2373 = vmatmul.bf16.gmra.mxu2 %v5848_v8  ;;  %3039 = vmatpush.bf16.msrb.mxu0 %v5549_v18  ;;  %v5569_v14 = vld [vmem:[%s6771_s1 + $0x7d0] sm:$0xff] }
 0x12e   : > { %2394 = vmatmul.bf16.gmra.mxu3 %v5850_v9  ;;  %3086 = vmatpush.bf16.msrb.mxu2 %v5562_v41 }
 0x12f   : > { %v1314_v62 = vsel %vm1307_vm1, %v1311_v47, %v1313_v61  ;;  %3108 = vmatpush.bf16.msrb.mxu3 %v5570_v60  ;;  %3064 = vmatpush.bf16.msrb.mxu1 %v5554_v50  ;;  %v5545_v61 = vld [vmem:[%s6771_s1 + $0x710] sm:$0xff]  ;;  %v5582_v60 = vld [vmem:[%s6771_s1 + $0x838] sm:$0xff] }
 0x130   : > { %v6488_v1 = vadd.f32 %v1314_v62, %v6362_v26  ;;  %v1275_v2 = vpop.f32.mrf.mxu2  ;;  %v1232_v4 = vpop.f32.mrf.mxu0  ;;  %v5553_v62 = vld [vmem:[%s6771_s1 + $0x750] sm:$0xff] }
 0x131   : > { %v1297_v3 = vpop.f32.mrf.mxu3  ;;  %v1254_v5 = vpop.f32.mrf.mxu1  ;;  %3040 = vmatpush.bf16.msrb.mxu0 %v5548_v23  ;;  %v5551_v23 = vld [vmem:[%s6771_s1 + $0x740] sm:$0xff]  ;;  %v5589_v50 = vld [vmem:[%s6771_s1 + $0x870] sm:$0xff] }
 0x132   : > { %3087 = vmatpush.bf16.msrb.mxu2 %v5561_v56 }
 0x133   : > { %3109 = vmatpush.bf16.msrb.mxu3 %v5569_v14  ;;  %3065 = vmatpush.bf16.msrb.mxu1 %v5553_v62  ;;  %v5588_v14 = vld [vmem:[%s6771_s1 + $0x868] sm:$0xff] }
 0x135   : > { %3041 = vmatpush.bf16.msrb.mxu0 %v5547_v35 }
 0x138   : > { %v1276_v26 = vpop.f32.mrf.mxu2  ;;  %v1590_v15 = vpop.f32.mrf.mxu0 }
 0x139   : > { %v1298_v12 = vpop.f32.mrf.mxu3  ;;  %v1612_v16 = vpop.f32.mrf.mxu1  ;;  %3042 = vmatpush.bf16.msrb.mxu0 %v5546_v49  ;;  %v5560_v26 = vld [vmem:[%s6771_s1 + $0x788] sm:$0xff]  ;;  %v5605_v49 = vld [vmem:[%s6771_s1 + $0x8f0] sm:$0xff] }
 0x13a   : > { %v1613_v17 = vadd.f32 %v1612_v16, %v1590_v15  ;;  %v5568_v12 = vld [vmem:[%s6771_s1 + $0x7c8] sm:$0xff]  ;;  %3088 = vmatpush.bf16.msrb.mxu2 %v5560_v26  ;;  %v5559_v16 = vld [vmem:[%s6771_s1 + $0x780] sm:$0xff] }
 0x13b   : > { %2336 = vmatmul.bf16.gmra.mxu0 %v5918_v36  ;;  %3110 = vmatpush.bf16.msrb.mxu3 %v5568_v12  ;;  %v5594_v12 = vld [vmem:[%s6771_s1 + $0x898] sm:$0xff] }
 0x13c   : > { %2357 = vmatmul.bf16.gmra.mxu1 %v5920_v37 }
 0x13d   : > { %2378 = vmatmul.bf16.gmra.mxu2 %v5922_v38  ;;  %3043 = vmatpush.bf16.msrb.mxu0 %v5545_v61  ;;  %v5595_v61 = vld [vmem:[%s6771_s1 + $0x8a0] sm:$0xff] }
 0x13e   : > { %2399 = vmatmul.bf16.gmra.mxu3 %v5924_v39  ;;  %3089 = vmatpush.bf16.msrb.mxu2 %v5559_v16  ;;  %v5578_v16 = vld [vmem:[%s6771_s1 + $0x818] sm:$0xff] }
 0x13f   : > { %3111 = vmatpush.bf16.msrb.mxu3 %v5567_v21 }
 0x140   : > { %v1634_v29 = vpop.f32.mrf.mxu2  ;;  %v1592_v30 = vpop.f32.mrf.mxu0 }
 0x141   : > { %v1656_v24 = vpop.f32.mrf.mxu3  ;;  %v1635_v27 = vadd.f32 %v1634_v29, %v1613_v17  ;;  %v1614_v31 = vpop.f32.mrf.mxu1  ;;  %3044 = vmatpush.bf16.msrb.mxu0 %v5544_v13  ;;  %v5602_v13 = vld [vmem:[%s6771_s1 + $0x8d8] sm:$0xff] }
 0x142   : > { %v1615_v34 = vadd.f32 %v1614_v31, %v1592_v30 }
 0x143   : > { %v1657_v40 = vadd.f32 %v1656_v24, %v1635_v27 }
 0x145   : > { %v1677_v58 = vrot.slane %v1657_v40, 6  ;;  %3045 = vmatpush.bf16.msrb.mxu0 %v5543_v22  ;;  %v5593_v22 = vld [vmem:[%s6771_s1 + $0x890] sm:$0xff] }
 0x148   : > { %v1636_v47 = vpop.f32.mrf.mxu2  ;;  %v1595_v53 = vpop.f32.mrf.mxu0 }
 0x149   : > { %v1658_v48 = vpop.f32.mrf.mxu3  ;;  %v1637_v52 = vadd.f32 %v1636_v47, %v1615_v34  ;;  %v1617_v54 = vpop.f32.mrf.mxu1  ;;  %v5590_v47 = vld [vmem:[%s6771_s1 + $0x878] sm:$0xff] }
 0x14a   : > { %v1618_v55 = vadd.f32 %v1617_v54, %v1595_v53 }
 0x14b   : > { %v1659_v57 = vadd.f32 %v1658_v48, %v1637_v52  ;;  %2677 = vmatmul.bf16.vlgmr.msra.gmra.mxu0 %v5776_v42  ;;  %v5597_v48 = vld [vmem:[%s6771_s1 + $0x8b0] sm:$0xff] }
 0x14c   : > { %2699 = vmatmul.bf16.vlgmr.msra.gmra.mxu1 %v5778_v43  ;;  %3407 = vmatpush.bf16.msra.mxu0 %v5582_v60 }
 0x14d   : > { %v1678_v59 = vrot.slane %v1659_v57, 6  ;;  %2721 = vmatmul.bf16.vlgmr.msra.gmra.mxu2 %v5780_v44  ;;  %v5596_v57 = vld [vmem:[%s6771_s1 + $0x8a8] sm:$0xff] }
 0x14e   : > { %2743 = vmatmul.bf16.vlgmr.msra.gmra.mxu3 %v5782_v45 }
 0x14f   : > { %v1679_v63 = vsel %vm1676_vm2, %v1677_v58, %v1678_v59  ;;  %3473 = vmatpush.bf16.msra.mxu3 %v5606_v32  ;;  %v5604_v58 = vld [vmem:[%s6771_s1 + $0x8e8] sm:$0xff] }
 0x150   : > { %v1639_v0 = vpop.f32.mrf.mxu2  ;;  %v6566_v3 = vadd.f32 %v1679_v63, %v6446_v28  ;;  %v1597_v5 = vpop.f32.mrf.mxu0  ;;  %v5552_v28 = vld [vmem:[%s6771_s1 + $0x748] sm:$0xff] }
 0x151   : > { %v1661_v2 = vpop.f32.mrf.mxu3  ;;  %v1640_v4 = vadd.f32 %v1639_v0, %v1618_v55  ;;  %v1619_v19 = vpop.f32.mrf.mxu1  ;;  %3066 = vmatpush.bf16.msrb.mxu1 %v5552_v28  ;;  %v5603_v0 = vld [vmem:[%s6771_s1 + $0x8e0] sm:$0xff] }
 0x152   : > { %v1620_v10 = vadd.f32 %v1619_v19, %v1597_v5  ;;  %v5579_v19 = vld [vmem:[%s6771_s1 + $0x820] sm:$0xff] }
 0x153   : > { %v1662_v11 = vadd.f32 %v1661_v2, %v1640_v4  ;;  %3474 = vmatpush.bf16.msra.mxu3 %v5605_v49  ;;  %v5600_v49 = vld [vmem:[%s6771_s1 + $0x8c8] sm:$0xff] }
 0x155   : > { %v1680_v15 = vrot.slane %v1662_v11, 6  ;;  %3067 = vmatpush.bf16.msrb.mxu1 %v5551_v23 }
 0x157   : > { %v1681_v17 = vsel %vm1676_vm2, %v1678_v59, %v1680_v15  ;;  %v5580_v59 = vld [vmem:[%s6771_s1 + $0x828] sm:$0xff]  ;;  %3475 = vmatpush.bf16.msra.mxu3 %v5604_v58  ;;  %v5575_v58 = vld [vmem:[%s6771_s1 + $0x800] sm:$0xff] }
 0x158   : > { %v1641_v18 = vpop.f32.mrf.mxu2  ;;  %v6594_v29 = vadd.f32 %v1681_v17, %v6465_v51  ;;  %v1600_v25 = vpop.f32.mrf.mxu0  ;;  %v5598_v51 = vld [vmem:[%s6771_s1 + $0x8b8] sm:$0xff] }
 0x159   : > { %v1663_v20 = vpop.f32.mrf.mxu3  ;;  %v1642_v24 = vadd.f32 %v1641_v18, %v1620_v10  ;;  %v1622_v27 = vpop.f32.mrf.mxu1  ;;  %3451 = vmatpush.bf16.msra.mxu2 %v5598_v51  ;;  %3429 = vmatpush.bf16.msra.mxu1 %v5590_v47  ;;  %v5587_v10 = vld [vmem:[%s6771_s1 + $0x860] sm:$0xff]  ;;  %v5586_v17 = vld [vmem:[%s6771_s1 + $0x858] sm:$0xff]  ;;  %v5585_v51 = vld [vmem:[%s6771_s1 + $0x850] sm:$0xff] }
 0x15b   : > { %v1664_v30 = vadd.f32 %v1663_v20, %v1642_v24  ;;  %2681 = vmatmul.bf16.gmra.mxu0 %v5844_v6  ;;  %3476 = vmatpush.bf16.msra.mxu3 %v5603_v0 }
 0x15c   : > { %2703 = vmatmul.bf16.gmra.mxu1 %v5846_v7 }
 0x15d   : > { %v1682_v31 = vrot.slane %v1664_v30, 6  ;;  %2725 = vmatmul.bf16.gmra.mxu2 %v5848_v8  ;;  %3430 = vmatpush.bf16.msra.mxu1 %v5589_v50  ;;  %v5601_v30 = vld [vmem:[%s6771_s1 + $0x8d0] sm:$0xff]  ;;  %v5584_v50 = vld [vmem:[%s6771_s1 + $0x848] sm:$0xff] }
 0x15e   : > { %2747 = vmatmul.bf16.gmra.mxu3 %v5850_v9  ;;  %3452 = vmatpush.bf16.msra.mxu2 %v5597_v48 }
 0x15f   : > { %v1683_v33 = vsel %vm1676_vm2, %v1680_v15, %v1682_v31  ;;  %3477 = vmatpush.bf16.msra.mxu3 %v5602_v13  ;;  %v5577_v31 = vld [vmem:[%s6771_s1 + $0x810] sm:$0xff] }
 0x160   : > { %v1644_v34 = vpop.f32.mrf.mxu2  ;;  %v6608_v46 = vadd.f32 %v1683_v33, %v6488_v1  ;;  %v1601_v40 = vpop.f32.mrf.mxu0  ;;  %v5581_v1 = vld [vmem:[%s6771_s1 + $0x830] sm:$0xff] }
 0x161   : > { %v1666_v35 = vpop.f32.mrf.mxu3  ;;  %v1623_v41 = vpop.f32.mrf.mxu1  ;;  %3408 = vmatpush.bf16.msra.mxu0 %v5581_v1  ;;  %3431 = vmatpush.bf16.msra.mxu1 %v5588_v14  ;;  %v5576_v1 = vld [vmem:[%s6771_s1 + $0x808] sm:$0xff] }
 0x162   : > { %3453 = vmatpush.bf16.msra.mxu2 %v5596_v57  ;;  %v5592_v35 = vld [vmem:[%s6771_s1 + $0x888] sm:$0xff]  ;;  %v5599_v57 = vld [vmem:[%s6771_s1 + $0x8c0] sm:$0xff] }
 0x163   : > { %3478 = vmatpush.bf16.msra.mxu3 %v5601_v30 }
 0x165   : > { %3409 = vmatpush.bf16.msra.mxu0 %v5580_v59  ;;  %3432 = vmatpush.bf16.msra.mxu1 %v5587_v10  ;;  %v5583_v59 = vld [vmem:[%s6771_s1 + $0x840] sm:$0xff] }
 0x166   : > { %3454 = vmatpush.bf16.msra.mxu2 %v5595_v61 }
 0x167   : > { %3479 = vmatpush.bf16.msra.mxu3 %v5600_v49 }
 0x168   : > { %v1645_v52 = vpop.f32.mrf.mxu2  ;;  %v1959_v54 = vpop.f32.mrf.mxu0 }
 0x169   : > { %v1667_v53 = vpop.f32.mrf.mxu3  ;;  %v1981_v55 = vpop.f32.mrf.mxu1  ;;  %3410 = vmatpush.bf16.msra.mxu0 %v5579_v19  ;;  %3433 = vmatpush.bf16.msra.mxu1 %v5586_v17 }
 0x16a   : > { %v1982_v56 = vadd.f32 %v1981_v55, %v1959_v54  ;;  %3455 = vmatpush.bf16.msra.mxu2 %v5594_v12 }
 0x16b   : > { %2686 = vmatmul.bf16.gmra.mxu0 %v5918_v36  ;;  %3480 = vmatpush.bf16.msra.mxu3 %v5599_v57 }
 0x16c   : > { %2708 = vmatmul.bf16.gmra.mxu1 %v5920_v37 }
 0x16d   : > { %2730 = vmatmul.bf16.gmra.mxu2 %v5922_v38  ;;  %3411 = vmatpush.bf16.msra.mxu0 %v5578_v16 }
 0x16e   : > { %2752 = vmatmul.bf16.gmra.mxu3 %v5924_v39  ;;  %3456 = vmatpush.bf16.msra.mxu2 %v5593_v22 }
 0x16f   : > { %3434 = vmatpush.bf16.msra.mxu1 %v5585_v51 }
 0x170   : > { %v2003_v62 = vpop.f32.mrf.mxu2  ;;  %v1961_v4 = vpop.f32.mrf.mxu0 }
 0x171   : > { %v2025_v63 = vpop.f32.mrf.mxu3  ;;  %v2004_v2 = vadd.f32 %v2003_v62, %v1982_v56  ;;  %v1983_v5 = vpop.f32.mrf.mxu1  ;;  %3412 = vmatpush.bf16.msra.mxu0 %v5577_v31 }
 0x172   : > { %v1984_v11 = vadd.f32 %v1983_v5, %v1961_v4  ;;  %3457 = vmatpush.bf16.msra.mxu2 %v5592_v35 }
 0x173   : > { %v2026_v26 = vadd.f32 %v2025_v63, %v2004_v2  ;;  %3435 = vmatpush.bf16.msra.mxu1 %v5584_v50 }
 0x175   : > { %v2046_v25 = vrot.slane %v2026_v26, 7  ;;  %3413 = vmatpush.bf16.msra.mxu0 %v5576_v1 }
 0x177   : > { %3436 = vmatpush.bf16.msra.mxu1 %v5583_v59 }
 0x178   : > { %v2005_v15 = vpop.f32.mrf.mxu2  ;;  %v1964_v20 = vpop.f32.mrf.mxu0 }
 0x179   : > { %v2027_v28 = vpop.f32.mrf.mxu3  ;;  %v2006_v18 = vadd.f32 %v2005_v15, %v1984_v11  ;;  %v1986_v21 = vpop.f32.mrf.mxu1  ;;  %3414 = vmatpush.bf16.msra.mxu0 %v5575_v58 }
 0x17a   : > { %v1987_v23 = vadd.f32 %v1986_v21, %v1964_v20 }
 0x17b   : > { %v2028_v24 = vadd.f32 %v2027_v28, %v2006_v18  ;;  %3046 = vmatmul.bf16.vlgmr.msrb.gmra.mxu0 %v5776_v42 }
 0x17c   : > { %3068 = vmatmul.bf16.vlgmr.msrb.gmra.mxu1 %v5778_v43 }
 0x17d   : > { %v2047_v27 = vrot.slane %v2028_v24, 7  ;;  %3090 = vmatmul.bf16.vlgmr.msrb.gmra.mxu2 %v5780_v44 }
 0x17e   : > { %3112 = vmatmul.bf16.vlgmr.msrb.gmra.mxu3 %v5782_v45 }
 0x17f   : > { %v2048_v32 = vsel %vm2045_vm3, %v2046_v25, %v2047_v27 }
 0x180   : > { %v2008_v33 = vpop.f32.mrf.mxu2  ;;  %v6689_v40 = vadd.f32 %v2048_v32, %v6566_v3  ;;  %v1966_v60 = vpop.f32.mrf.mxu0  ;;  %v5591_v3 = vld [vmem:[%s6771_s1 + $0x880] sm:$0xff] }
 0x181   : > { %v2030_v34 = vpop.f32.mrf.mxu3  ;;  %v2009_v41 = vadd.f32 %v2008_v33, %v1987_v23  ;;  %v1988_v47 = vpop.f32.mrf.mxu1  ;;  %3458 = vmatpush.bf16.msra.mxu2 %v5591_v3 }
 0x182   : > { %v1989_v48 = vadd.f32 %v1988_v47, %v1966_v60 }
 0x183   : > { %v2031_v52 = vadd.f32 %v2030_v34, %v2009_v41 }
 0x185   : > { %v2049_v53 = vrot.slane %v2031_v52, 7 }
 0x187   : > { %v2050_v54 = vsel %vm2045_vm3, %v2047_v27, %v2049_v53 }
 0x188   : > { %v2010_v55 = vpop.f32.mrf.mxu2  ;;  %v2057_v14 = vadd.f32 %v2050_v54, %v6594_v29  ;;  %v1969_v62 = vpop.f32.mrf.mxu0 }
 0x189   : > { %v2032_v56 = vpop.f32.mrf.mxu3  ;;  %v2011_v61 = vadd.f32 %v2010_v55, %v1989_v48  ;;  %v1991_v63 = vpop.f32.mrf.mxu1 }
 0x18b   : > { %v2033_v0 = vadd.f32 %v2032_v56, %v2011_v61  ;;  %3050 = vmatmul.bf16.gmra.mxu0 %v5844_v6 }
 0x18c   : > { %3072 = vmatmul.bf16.gmra.mxu1 %v5846_v7 }
 0x18d   : > { %v2051_v2 = vrot.slane %v2033_v0, 7  ;;  %3094 = vmatmul.bf16.gmra.mxu2 %v5848_v8 }
 0x18e   : > { %3116 = vmatmul.bf16.gmra.mxu3 %v5850_v9 }
 0x18f   : > { %v2052_v4 = vsel %vm2045_vm3, %v2049_v53, %v2051_v2 }
 0x190   : > { %v2013_v5 = vpop.f32.mrf.mxu2  ;;  %v2058_v19 = vadd.f32 %v2052_v4, %v6608_v46  ;;  %v1970_v10 = vpop.f32.mrf.mxu0 }
 0x191   : > { %v2035_v29 = vpop.f32.mrf.mxu3  ;;  %v1992_v11 = vpop.f32.mrf.mxu1 }
 0x198   : > { %v2014_v26 = vpop.f32.mrf.mxu2  ;;  %v2328_v13 = vpop.f32.mrf.mxu0 }
 0x199   : > { %v2036_v12 = vpop.f32.mrf.mxu3  ;;  %v2349_v15 = vpop.f32.mrf.mxu1 }
 0x19b   : > { %3055 = vmatmul.bf16.gmra.mxu0 %v5918_v36 }
 0x19c   : > { %3077 = vmatmul.bf16.gmra.mxu1 %v5920_v37 }
 0x19d   : > { %3099 = vmatmul.bf16.gmra.mxu2 %v5922_v38 }
 0x19e   : > { %3121 = vmatmul.bf16.gmra.mxu3 %v5924_v39 }
 0x1a0   : > { %v2370_v28 = vpop.f32.mrf.mxu2  ;;  %v2329_v17 = vpop.f32.mrf.mxu0 }
 0x1a1   : > { %v2391_v16 = vpop.f32.mrf.mxu3  ;;  %v2350_v18 = vpop.f32.mrf.mxu1 }
 0x1a2   : > { %v2351_v20 = vadd.f32 %v2350_v18, %v2329_v17 }
 0x1a8   : > { %v2371_v46 = vpop.f32.mrf.mxu2  ;;  %v2332_v23 = vpop.f32.mrf.mxu0 }
 0x1a9   : > { %v2392_v21 = vpop.f32.mrf.mxu3  ;;  %v2372_v22 = vadd.f32 %v2371_v46, %v2351_v20  ;;  %v2353_v24 = vpop.f32.mrf.mxu1 }
 0x1aa   : > { %v2354_v25 = vadd.f32 %v2353_v24, %v2332_v23 }
 0x1ab   : > { %v2393_v27 = vadd.f32 %v2392_v21, %v2372_v22  ;;  %3415 = vmatmul.bf16.vlgmr.msra.gmra.mxu0 %v5776_v42 }
 0x1ac   : > { %3437 = vmatmul.bf16.vlgmr.msra.gmra.mxu1 %v5778_v43 }
 0x1ad   : > { %v2406_v30 = vadd.f32 %v2393_v27, %v6689_v40  ;;  %3459 = vmatmul.bf16.vlgmr.msra.gmra.mxu2 %v5780_v44 }
 0x1ae   : > { %3481 = vmatmul.bf16.vlgmr.msra.gmra.mxu3 %v5782_v45 }
 0x1b0   : > { %v2374_v31 = vpop.f32.mrf.mxu2  ;;  %v2334_v33 = vpop.f32.mrf.mxu0 }
 0x1b1   : > { %v2395_v51 = vpop.f32.mrf.mxu3  ;;  %v2375_v32 = vadd.f32 %v2374_v31, %v2354_v25  ;;  %v2355_v34 = vpop.f32.mrf.mxu1 }
 0x1b2   : > { %v2356_v35 = vadd.f32 %v2355_v34, %v2334_v33 }
 0x1b3   : > { %v2396_v41 = vadd.f32 %v2395_v51, %v2375_v32 }
 0x1b5   : > { %v2407_v60 = vadd.f32 %v2396_v41, %v2057_v14 }
 0x1b8   : > { %v2376_v47 = vpop.f32.mrf.mxu2  ;;  %v2337_v42 = vpop.f32.mrf.mxu0 }
 0x1b9   : > { %v2397_v48 = vpop.f32.mrf.mxu3  ;;  %v2377_v49 = vadd.f32 %v2376_v47, %v2356_v35  ;;  %v2358_v1 = vpop.f32.mrf.mxu1 }
 0x1bb   : > { %v2398_v43 = vadd.f32 %v2397_v48, %v2377_v49  ;;  %3419 = vmatmul.bf16.gmra.mxu0 %v5844_v6 }
 0x1bc   : > { %3441 = vmatmul.bf16.gmra.mxu1 %v5846_v7 }
 0x1bd   : > { %v2408_v44 = vadd.f32 %v2398_v43, %v2058_v19  ;;  %3463 = vmatmul.bf16.gmra.mxu2 %v5848_v8 }
 0x1be   : > { %3485 = vmatmul.bf16.gmra.mxu3 %v5850_v9 }
 0x1c0   : > { %v2379_v45 = vpop.f32.mrf.mxu2  ;;  %v2338_v50 = vpop.f32.mrf.mxu0 }
 0x1c1   : > { %v2400_v40 = vpop.f32.mrf.mxu3  ;;  %v2359_v52 = vpop.f32.mrf.mxu1 }
 0x1c8   : > { %v2380_v3 = vpop.f32.mrf.mxu2  ;;  %v2678_v54 = vpop.f32.mrf.mxu0 }
 0x1c9   : > { %v2401_v53 = vpop.f32.mrf.mxu3  ;;  %v2700_v55 = vpop.f32.mrf.mxu1 }
 0x1cb   : > { %3424 = vmatmul.bf16.gmra.mxu0 %v5918_v36 }
 0x1cc   : > { %3446 = vmatmul.bf16.gmra.mxu1 %v5920_v37 }
 0x1cd   : > { %3468 = vmatmul.bf16.gmra.mxu2 %v5922_v38 }
 0x1ce   : > { %3490 = vmatmul.bf16.gmra.mxu3 %v5924_v39 }
 0x1d0   : > { %v2722_v6 = vpop.f32.mrf.mxu2  ;;  %v2679_v8 = vpop.f32.mrf.mxu0 }
 0x1d1   : > { %v2744_v7 = vpop.f32.mrf.mxu3  ;;  %v2701_v9 = vpop.f32.mrf.mxu1 }
 0x1d2   : > { %v2702_v56 = vadd.f32 %v2701_v9, %v2679_v8 }
 0x1d8   : > { %v2723_v57 = vpop.f32.mrf.mxu2  ;;  %v2682_v14 = vpop.f32.mrf.mxu0 }
 0x1d9   : > { %v2745_v58 = vpop.f32.mrf.mxu3  ;;  %v2724_v59 = vadd.f32 %v2723_v57, %v2702_v56  ;;  %v2704_v61 = vpop.f32.mrf.mxu1 }
 0x1da   : > { %v2705_v62 = vadd.f32 %v2704_v61, %v2682_v14 }
 0x1db   : > { %v2746_v63 = vadd.f32 %v2745_v58, %v2724_v59 }
 0x1dd   : > { %v2765_v39 = vrot.slane %v2746_v63, 4 }
 0x1e0   : > { %v2726_v0 = vpop.f32.mrf.mxu2  ;;  %v2684_v37 = vpop.f32.mrf.mxu0 }
 0x1e1   : > { %v2748_v36 = vpop.f32.mrf.mxu3  ;;  %v2727_v2 = vadd.f32 %v2726_v0, %v2705_v62  ;;  %v2706_v4 = vpop.f32.mrf.mxu1 }
 0x1e2   : > { %v2707_v38 = vadd.f32 %v2706_v4, %v2684_v37 }
 0x1e3   : > { %v2749_v5 = vadd.f32 %v2748_v36, %v2727_v2 }
 0x1e5   : > { %v2766_v29 = vrot.slane %v2749_v5, 4 }
 0x1e7   : > { %v2767_v19 = vsel %vm2764_vm4, %v2765_v39, %v2766_v29 }
 0x1e8   : > { %v6738_v10 = vadd.f32 %v2767_v19, %v2406_v30  ;;  %v2728_v11 = vpop.f32.mrf.mxu2  ;;  %v2687_v13 = vpop.f32.mrf.mxu0 }
 0x1e9   : > { %v2750_v26 = vpop.f32.mrf.mxu3  ;;  %v2729_v12 = vadd.f32 %v2728_v11, %v2707_v38  ;;  %v2709_v15 = vpop.f32.mrf.mxu1 }
 0x1ea   : > { %v2710_v28 = vadd.f32 %v2709_v15, %v2687_v13 }
 0x1eb   : > { %v2751_v16 = vadd.f32 %v2750_v26, %v2729_v12 }
 0x1ed   : > { %v2768_v17 = vrot.slane %v2751_v16, 4 }
 0x1ef   : > { %v2769_v18 = vsel %vm2764_vm4, %v2766_v29, %v2768_v17 }
 0x1f0   : > { %v6741_v20 = vadd.f32 %v2769_v18, %v2407_v60  ;;  %v2731_v46 = vpop.f32.mrf.mxu2  ;;  %v2689_v23 = vpop.f32.mrf.mxu0 }
 0x1f1   : > { %v2753_v21 = vpop.f32.mrf.mxu3  ;;  %v2732_v22 = vadd.f32 %v2731_v46, %v2710_v28  ;;  %v2711_v24 = vpop.f32.mrf.mxu1 }
 0x1f3   : > { %v2754_v25 = vadd.f32 %v2753_v21, %v2732_v22 }
 0x1f5   : > { %v2770_v27 = vrot.slane %v2754_v25, 4 }
 0x1f7   : > { %v2771_v30 = vsel %vm2764_vm4, %v2768_v17, %v2770_v27 }
 0x1f8   : > { %v6744_v31 = vadd.f32 %v2771_v30, %v2408_v44  ;;  %v2733_v51 = vpop.f32.mrf.mxu2  ;;  %v3047_v33 = vpop.f32.mrf.mxu0 }
 0x1f9   : > { %v2755_v32 = vpop.f32.mrf.mxu3  ;;  %v3069_v34 = vpop.f32.mrf.mxu1 }
 0x1fa   : > { %v5617_v32 = vld [vmem:[%s6772_s2] ss:$0 sm:$0xff] }
 0x200   : > { %v3091_v35 = vpop.f32.mrf.mxu2  ;;  %v3048_v47 = vpop.f32.mrf.mxu0 }
 0x201   : > { %v3113_v41 = vpop.f32.mrf.mxu3  ;;  %v3070_v60 = vpop.f32.mrf.mxu1 }
 0x202   : > { %v3071_v63 = vadd.f32 %v3070_v60, %v3048_v47 }
 0x208   : > { %v3092_v48 = vpop.f32.mrf.mxu2  ;;  %v3051_v42 = vpop.f32.mrf.mxu0 }
 0x209   : > { %v3114_v49 = vpop.f32.mrf.mxu3  ;;  %v3073_v1 = vpop.f32.mrf.mxu1  ;;  %v3093_v37 = vadd.f32 %v3092_v48, %v3071_v63 }
 0x20a   : > { %v3074_v62 = vadd.f32 %v3073_v1, %v3051_v42 }
 0x20b   : > { %v3115_v29 = vadd.f32 %v3114_v49, %v3093_v37 }
 0x20d   : > { %v3134_v16 = vrot.slane %v3115_v29, 5 }
 0x210   : > { %v3095_v43 = vpop.f32.mrf.mxu2  ;;  %v3053_v40 = vpop.f32.mrf.mxu0 }
 0x211   : > { %v3117_v45 = vpop.f32.mrf.mxu3  ;;  %v3075_v50 = vpop.f32.mrf.mxu1  ;;  %v3096_v0 = vadd.f32 %v3095_v43, %v3074_v62 }
 0x212   : > { %v3076_v19 = vadd.f32 %v3075_v50, %v3053_v40 }
 0x213   : > { %v3118_v5 = vadd.f32 %v3117_v45, %v3096_v0 }
 0x215   : > { %v3135_v12 = vrot.slane %v3118_v5, 5 }
 0x217   : > { %v3136_v22 = vsel %vm3133_vm5, %v3134_v16, %v3135_v12 }
 0x218   : > { %v3097_v52 = vpop.f32.mrf.mxu2  ;;  %v3056_v44 = vpop.f32.mrf.mxu0  ;;  %v3144_v51 = vadd.f32 %v3136_v22, %v6738_v10 }
 0x219   : > { %v3119_v3 = vpop.f32.mrf.mxu3  ;;  %v3078_v53 = vpop.f32.mrf.mxu1  ;;  %v3098_v13 = vadd.f32 %v3097_v52, %v3076_v19 }
 0x21a   : > { %v3079_v24 = vadd.f32 %v3078_v53, %v3056_v44 }
 0x21b   : > { %v3120_v23 = vadd.f32 %v3119_v3, %v3098_v13 }
 0x21d   : > { %v3137_v33 = vrot.slane %v3120_v23, 5 }
 0x21f   : > { %v3138_v43 = vsel %vm3133_vm5, %v3135_v12, %v3137_v33 }
 0x220   : > { %v3100_v54 = vpop.f32.mrf.mxu2  ;;  %v3058_v6 = vpop.f32.mrf.mxu0  ;;  %v3145_v3 = vadd.f32 %v3138_v43, %v6741_v20 }
 0x221   : > { %v3122_v55 = vpop.f32.mrf.mxu3  ;;  %v3080_v7 = vpop.f32.mrf.mxu1  ;;  %v3101_v34 = vadd.f32 %v3100_v54, %v3079_v24 }
 0x223   : > { %v3123_v45 = vadd.f32 %v3122_v55, %v3101_v34 }
 0x225   : > { %v3139_v44 = vrot.slane %v3123_v45, 5 }
 0x227   : > { %v3140_v55 = vsel %vm3133_vm5, %v3137_v33, %v3139_v44 }
 0x228   : > { %v3102_v8 = vpop.f32.mrf.mxu2  ;;  %v3416_v56 = vpop.f32.mrf.mxu0 }
 0x229   : > { %v3124_v9 = vpop.f32.mrf.mxu3  ;;  %v3438_v57 = vpop.f32.mrf.mxu1 }
 0x230   : > { %v3460_v58 = vpop.f32.mrf.mxu2  ;;  %v3417_v14 = vpop.f32.mrf.mxu0 }
 0x231   : > { %v3482_v59 = vpop.f32.mrf.mxu3  ;;  %v3439_v61 = vpop.f32.mrf.mxu1 }
 0x232   : > { %v3440_v39 = vadd.f32 %v3439_v61, %v3417_v14  ;;  %v3146_v14 = vadd.f32 %v3140_v55, %v6744_v31 }
 0x238   : > { %v3461_v36 = vpop.f32.mrf.mxu2  ;;  %v3420_v4 = vpop.f32.mrf.mxu0 }
 0x239   : > { %v3483_v2 = vpop.f32.mrf.mxu3  ;;  %v3442_v38 = vpop.f32.mrf.mxu1  ;;  %v3462_v11 = vadd.f32 %v3461_v36, %v3440_v39 }
 0x23a   : > { %v3443_v26 = vadd.f32 %v3442_v38, %v3420_v4 }
 0x23b   : > { %v3484_v17 = vadd.f32 %v3483_v2, %v3462_v11 }
 0x23d   : > { %v3502_v27 = vrot.slane %v3484_v17, 6 }
 0x240   : > { %v3464_v15 = vpop.f32.mrf.mxu2  ;;  %v3422_v46 = vpop.f32.mrf.mxu0 }
 0x241   : > { %v3486_v28 = vpop.f32.mrf.mxu3  ;;  %v3465_v18 = vadd.f32 %v3464_v15, %v3443_v26  ;;  %v3444_v21 = vpop.f32.mrf.mxu1 }
 0x242   : > { %v3445_v41 = vadd.f32 %v3444_v21, %v3422_v46 }
 0x243   : > { %v3487_v25 = vadd.f32 %v3486_v28, %v3465_v18 }
 0x245   : > { %v3503_v30 = vrot.slane %v3487_v25, 6 }
 0x247   : > { %v3504_v35 = vsel %vm1676_vm2, %v3502_v27, %v3503_v30 }
 0x248   : > { %v3512_v47 = vadd.f32 %v3504_v35, %v3144_v51  ;;  %v3466_v60 = vpop.f32.mrf.mxu2  ;;  %v3425_v10 = vpop.f32.mrf.mxu0 }
 0x249   : > { %v3488_v48 = vpop.f32.mrf.mxu3  ;;  %v3467_v49 = vadd.f32 %v3466_v60, %v3445_v41  ;;  %v3447_v42 = vpop.f32.mrf.mxu1 }
 0x24a   : > { %v3525_v1 = vadd.f32 %v5617_v32, %v3512_v47  ;;  %v3448_v52 = vadd.f32 %v3447_v42, %v3425_v10 }
 0x24b   : > { %v3489_v40 = vadd.f32 %v3488_v48, %v3467_v49 }
 0x24c   : > { %3528 = vst [vmem:[%s6756_s27] sm:$0xff] %v3525_v1 }
 0x24d   : > { %v3505_v50 = vrot.slane %v3489_v40, 6 }
 0x24f   : > { %v3506_v53 = vsel %vm1676_vm2, %v3503_v30, %v3505_v50 }
 0x250   : > { %v3513_v54 = vadd.f32 %v3506_v53, %v3145_v3  ;;  %v3469_v6 = vpop.f32.mrf.mxu2  ;;  %v3427_v9 = vpop.f32.mrf.mxu0 }
 0x251   : > { %v3491_v7 = vpop.f32.mrf.mxu3  ;;  %v3470_v8 = vadd.f32 %v3469_v6, %v3448_v52  ;;  %v3449_v56 = vpop.f32.mrf.mxu1 }
 0x252   : > { %v3526_v57 = vadd.f32 %v5617_v32, %v3513_v54 }
 0x253   : > { %v3492_v58 = vadd.f32 %v3491_v7, %v3470_v8 }
 0x254   : > { %3529 = vst [vmem:[%s6756_s27 + $0x8] sm:$0xff] %v3526_v57 }
 0x255   : > { %v3507_v59 = vrot.slane %v3492_v58, 6 }
 0x257   : > { %v3508_v20 = vsel %vm1676_vm2, %v3505_v50, %v3507_v59 }
 0x258   : > { %v3514_v61 = vadd.f32 %v3508_v20, %v3146_v14  ;;  %v3471_v62 = vpop.f32.mrf.mxu2 }
 0x259   : > { %v3493_v63 = vpop.f32.mrf.mxu3 }
 0x25a   : > { %v3527_v0 = vadd.f32 %v5617_v32, %v3514_v61 }
 0x25c   : > { %3530 = vst [vmem:[%s6756_s27 + $0x10] sm:$0xff] %v3527_v0 }
 0x25d PF: > { %s13_s12 = sadd.s32 1, %s5624_s12  }
 0x25e   : > { %p10_p4 = scmp.ge.s32.totalorder %s13_s12, 4  }
 0x260   :  { %12 = sbr.rel (!%p10_p4) target bundleno = 1 (0x1), region = 70 }

// kernel: _lambda_.11
= control target key start
LH: loop header
LB: loop body
LE: loop exit
PB: predicated region body
PF: predicated region fallthrough
CT: control target
= control target key end

     0   :  { %s2727_s12 = smov 0   ;;  %s3209_s0 = inlined_call_operand.vmem [shape: bf16[2,12,256], index: 0, kind: input, shape index: {}]   ;;  %s3210_s1 = inlined_call_operand.vmem [shape: bf16[9,256,128], index: 1, kind: input, shape index: {}]   ;;  %s3211_s2 = inlined_call_operand.vmem [shape: f32[1,128], index: 2, kind: input, shape index: {}]   ;;  %s3212_s3 = inlined_call_operand.vmem [shape: f32[2,3,128], index: 3, kind: output, shape index: {}]  }
   0x1 LB: > { %s1693_s13 = sadd.s32 4294967295, %s2705_s12   ;;  %p1697_p0 = scmp.ge.s32.totalorder %s2705_s12, 1  ;;  %s2705_s12 = sphi %s2727_s12, %s13_s12  }
   0x2   : > { %p137_p1 = scmp.lt.s32.totalorder %s2705_s12, 3 }
   0x4   : > { %p138_p2 = pnand %p1697_p0, %p137_p1 }
   0x5   : > { %p160_p3 = scmp.lt.s32.totalorder (!%p138_p2), %s1693_s13, 1 }
   0x6   : > { %141 = sbr.rel (%p138_p2) target bundleno = 321 (0x141), region = 32 }
   0xb   : > { %v2553_v0 = vld [vmem:[%s3210_s1 + $0x38] sm:$0xff]  ;;  %v2552_v4 = vld [vmem:[%s3210_s1 + $0x30] sm:$0xff]  ;;  %v2551_v8 = vld [vmem:[%s3210_s1 + $0x28] sm:$0xff]  ;;  %s3214_s13 = smov (!%p160_p3, %s1693_s13), 1  ;;  %vm1301_vm0 = vcmask 1041408   ;;  %vm1468_vm1 = vcmask 1040384  }
   0xc   : > { %v2561_v1 = vld [vmem:[%s3210_s1 + $0x78] sm:$0xff]  ;;  %309 = vmatpush.bf16.msra.mxu0 %v2553_v0  ;;  %v2560_v5 = vld [vmem:[%s3210_s1 + $0x70] sm:$0xff]  ;;  %v2559_v9 = vld [vmem:[%s3210_s1 + $0x68] sm:$0xff]  ;;  %s2543_s10 = sshll.u32 %s3214_s13, 4  ;;  %s1700_s4 = sshll.u32 %s3214_s13, 2 }
   0xd   : > { %v2569_v2 = vld [vmem:[%s3210_s1 + $0xb8] sm:$0xff]  ;;  %322 = vmatpush.bf16.msra.mxu1 %v2561_v1  ;;  %v2568_v6 = vld [vmem:[%s3210_s1 + $0xb0] sm:$0xff]  ;;  %v2567_v10 = vld [vmem:[%s3210_s1 + $0xa8] sm:$0xff]  ;;  %s164_s23 = scalar_lea.vmem %s3209_s0, %s2543_s10  ;;  %s168_s9 = scalar_lea.vmem %s3212_s3, %s1700_s4 }
   0xe   : > { %v2577_v3 = vld [vmem:[%s3210_s1 + $0xf8] sm:$0xff]  ;;  %465 = vmatpush.bf16.msra.mxu2 %v2569_v2  ;;  %v2576_v7 = vld [vmem:[%s3210_s1 + $0xf0] sm:$0xff]  ;;  %v2575_v11 = vld [vmem:[%s3210_s1 + $0xe8] sm:$0xff] }
   0xf   : > { %478 = vmatpush.bf16.msra.mxu3 %v2577_v3  ;;  %v2550_v12 = vld [vmem:[%s3210_s1 + $0x20] sm:$0xff]  ;;  %v2549_v16 = vld [vmem:[%s3210_s1 + $0x18] sm:$0xff]  ;;  %v2548_v20 = vld [vmem:[%s3210_s1 + $0x10] sm:$0xff] }
  0x10   : > { %310 = vmatpush.bf16.msra.mxu0 %v2552_v4  ;;  %v2558_v13 = vld [vmem:[%s3210_s1 + $0x60] sm:$0xff]  ;;  %v2557_v17 = vld [vmem:[%s3210_s1 + $0x58] sm:$0xff]  ;;  %v2556_v21 = vld [vmem:[%s3210_s1 + $0x50] sm:$0xff] }
  0x11   : > { %323 = vmatpush.bf16.msra.mxu1 %v2560_v5  ;;  %v2566_v14 = vld [vmem:[%s3210_s1 + $0xa0] sm:$0xff]  ;;  %v2565_v18 = vld [vmem:[%s3210_s1 + $0x98] sm:$0xff]  ;;  %v2564_v22 = vld [vmem:[%s3210_s1 + $0x90] sm:$0xff] }
  0x12   : > { %466 = vmatpush.bf16.msra.mxu2 %v2568_v6  ;;  %v2574_v15 = vld [vmem:[%s3210_s1 + $0xe0] sm:$0xff]  ;;  %v2573_v19 = vld [vmem:[%s3210_s1 + $0xd8] sm:$0xff]  ;;  %v2572_v23 = vld [vmem:[%s3210_s1 + $0xd0] sm:$0xff] }
  0x13   : > { %479 = vmatpush.bf16.msra.mxu3 %v2576_v7  ;;  %v2547_v24 = vld [vmem:[%s3210_s1 + $0x8] sm:$0xff]  ;;  %v2546_v28 = vld [vmem:[%s3210_s1] sm:$0xff]  ;;  %v2585_v30 = vld [vmem:[%s3210_s1 + $0x138] sm:$0xff] }
  0x14   : > { %311 = vmatpush.bf16.msra.mxu0 %v2551_v8  ;;  %v2555_v25 = vld [vmem:[%s3210_s1 + $0x48] sm:$0xff]  ;;  %v2554_v29 = vld [vmem:[%s3210_s1 + $0x40] sm:$0xff]  ;;  %v2593_v31 = vld [vmem:[%s3210_s1 + $0x178] sm:$0xff] }
  0x15   : > { %324 = vmatpush.bf16.msra.mxu1 %v2559_v9  ;;  %v2563_v26 = vld [vmem:[%s3210_s1 + $0x88] sm:$0xff]  ;;  %v1703_v32 = vld [vmem:[%s164_s23] sm:$0xf]  ;;  %v2544_v34 = vld [vmem:[%s164_s23 + $0x4] sm:$0xf] }
  0x16   : > { %467 = vmatpush.bf16.msra.mxu2 %v2567_v10  ;;  %v2571_v27 = vld [vmem:[%s3210_s1 + $0xc8] sm:$0xff]  ;;  %v2562_v36 = vld [vmem:[%s3210_s1 + $0x80] sm:$0xff]  ;;  %v2601_v38 = vld [vmem:[%s3210_s1 + $0x1b8] sm:$0xff] }
  0x17   : > { %480 = vmatpush.bf16.msra.mxu3 %v2575_v11  ;;  %v2545_v33 = vld [vmem:[%s164_s23 + $0x4] sm:$0x30]  ;;  %v1705_v35 = vld [vmem:[%s164_s23 + $0x8] sm:$0x30]  ;;  %v2570_v37 = vld [vmem:[%s3210_s1 + $0xc0] sm:$0xff] }
  0x18   : > { %312 = vmatpush.bf16.msra.mxu0 %v2550_v12  ;;  %v2609_v39 = vld [vmem:[%s3210_s1 + $0x1f8] sm:$0xff]  ;;  %v2853_v40 = vor.u32 %v2545_v33, %v1703_v32  ;;  %v2855_v41 = vor.u32 %v2544_v34, %v1705_v35  ;;  %v2584_v42 = vld [vmem:[%s3210_s1 + $0x130] sm:$0xff]  ;;  %v2583_v46 = vld [vmem:[%s3210_s1 + $0x128] sm:$0xff] }
  0x19   : > { %325 = vmatpush.bf16.msra.mxu1 %v2558_v13  ;;  %v2592_v43 = vld [vmem:[%s3210_s1 + $0x170] sm:$0xff]  ;;  %v2591_v47 = vld [vmem:[%s3210_s1 + $0x168] sm:$0xff]  ;;  %v2582_v50 = vld [vmem:[%s3210_s1 + $0x120] sm:$0xff] }
  0x1a   : > { %468 = vmatpush.bf16.msra.mxu2 %v2566_v14  ;;  %v2600_v44 = vld [vmem:[%s3210_s1 + $0x1b0] sm:$0xff]  ;;  %v2599_v48 = vld [vmem:[%s3210_s1 + $0x1a8] sm:$0xff]  ;;  %v2590_v51 = vld [vmem:[%s3210_s1 + $0x160] sm:$0xff] }
  0x1b   : > { %481 = vmatpush.bf16.msra.mxu3 %v2574_v15  ;;  %v2608_v45 = vld [vmem:[%s3210_s1 + $0x1f0] sm:$0xff]  ;;  %v2607_v49 = vld [vmem:[%s3210_s1 + $0x1e8] sm:$0xff]  ;;  %v2598_v52 = vld [vmem:[%s3210_s1 + $0x1a0] sm:$0xff] }
  0x1c   : > { %313 = vmatpush.bf16.msra.mxu0 %v2549_v16  ;;  %v2606_v53 = vld [vmem:[%s3210_s1 + $0x1e0] sm:$0xff]  ;;  %v2581_v54 = vld [vmem:[%s3210_s1 + $0x118] sm:$0xff]  ;;  %v2580_v58 = vld [vmem:[%s3210_s1 + $0x110] sm:$0xff] }
  0x1d   : > { %326 = vmatpush.bf16.msra.mxu1 %v2557_v17  ;;  %v2589_v55 = vld [vmem:[%s3210_s1 + $0x158] sm:$0xff]  ;;  %v2588_v59 = vld [vmem:[%s3210_s1 + $0x150] sm:$0xff]  ;;  %v2579_v62 = vld [vmem:[%s3210_s1 + $0x108] sm:$0xff] }
  0x1e   : > { %469 = vmatpush.bf16.msra.mxu2 %v2565_v18  ;;  %v2597_v56 = vld [vmem:[%s3210_s1 + $0x198] sm:$0xff]  ;;  %v2596_v60 = vld [vmem:[%s3210_s1 + $0x190] sm:$0xff]  ;;  %v2587_v63 = vld [vmem:[%s3210_s1 + $0x148] sm:$0xff] }
  0x1f   : > { %482 = vmatpush.bf16.msra.mxu3 %v2573_v19  ;;  %v2605_v57 = vld [vmem:[%s3210_s1 + $0x1d8] sm:$0xff]  ;;  %v2604_v61 = vld [vmem:[%s3210_s1 + $0x1d0] sm:$0xff]  ;;  %v2595_v0 = vld [vmem:[%s3210_s1 + $0x188] sm:$0xff] }
  0x20   : > { %314 = vmatpush.bf16.msra.mxu0 %v2548_v20  ;;  %v2603_v1 = vld [vmem:[%s3210_s1 + $0x1c8] sm:$0xff]  ;;  %v2578_v2 = vld [vmem:[%s3210_s1 + $0x100] sm:$0xff]  ;;  %v2617_v4 = vld [vmem:[%s3210_s1 + $0x238] sm:$0xff] }
  0x21   : > { %327 = vmatpush.bf16.msra.mxu1 %v2556_v21  ;;  %v2586_v3 = vld [vmem:[%s3210_s1 + $0x140] sm:$0xff]  ;;  %v2625_v5 = vld [vmem:[%s3210_s1 + $0x278] sm:$0xff]  ;;  %v2616_v10 = vld [vmem:[%s3210_s1 + $0x230] sm:$0xff] }
  0x22   : > { %470 = vmatpush.bf16.msra.mxu2 %v2564_v22  ;;  %v2594_v6 = vld [vmem:[%s3210_s1 + $0x180] sm:$0xff]  ;;  %v2633_v8 = vld [vmem:[%s3210_s1 + $0x2b8] sm:$0xff]  ;;  %v2624_v11 = vld [vmem:[%s3210_s1 + $0x270] sm:$0xff] }
  0x23   : > { %483 = vmatpush.bf16.msra.mxu3 %v2572_v23  ;;  %v2602_v7 = vld [vmem:[%s3210_s1 + $0x1c0] sm:$0xff]  ;;  %v2641_v9 = vld [vmem:[%s3210_s1 + $0x2f8] sm:$0xff]  ;;  %v2632_v12 = vld [vmem:[%s3210_s1 + $0x2b0] sm:$0xff] }
  0x24   : > { %315 = vmatpush.bf16.msra.mxu0 %v2547_v24  ;;  %v2640_v13 = vld [vmem:[%s3210_s1 + $0x2f0] sm:$0xff]  ;;  %v2615_v14 = vld [vmem:[%s3210_s1 + $0x228] sm:$0xff]  ;;  %v2614_v18 = vld [vmem:[%s3210_s1 + $0x220] sm:$0xff] }
  0x25   : > { %328 = vmatpush.bf16.msra.mxu1 %v2555_v25  ;;  %v2623_v15 = vld [vmem:[%s3210_s1 + $0x268] sm:$0xff]  ;;  %v2622_v19 = vld [vmem:[%s3210_s1 + $0x260] sm:$0xff]  ;;  %v2613_v22 = vld [vmem:[%s3210_s1 + $0x218] sm:$0xff] }
  0x26   : > { %471 = vmatpush.bf16.msra.mxu2 %v2563_v26  ;;  %v2631_v16 = vld [vmem:[%s3210_s1 + $0x2a8] sm:$0xff]  ;;  %v2630_v20 = vld [vmem:[%s3210_s1 + $0x2a0] sm:$0xff]  ;;  %v2621_v23 = vld [vmem:[%s3210_s1 + $0x258] sm:$0xff] }
  0x27   : > { %484 = vmatpush.bf16.msra.mxu3 %v2571_v27  ;;  %v2639_v17 = vld [vmem:[%s3210_s1 + $0x2e8] sm:$0xff]  ;;  %v2638_v21 = vld [vmem:[%s3210_s1 + $0x2e0] sm:$0xff]  ;;  %v2629_v24 = vld [vmem:[%s3210_s1 + $0x298] sm:$0xff] }
  0x28   : > { %316 = vmatpush.bf16.msra.mxu0 %v2546_v28  ;;  %v2637_v25 = vld [vmem:[%s3210_s1 + $0x2d8] sm:$0xff]  ;;  %v2612_v26 = vld [vmem:[%s3210_s1 + $0x210] sm:$0xff]  ;;  %v2627_v32 = vld [vmem:[%s3210_s1 + $0x288] sm:$0xff] }
  0x29   : > { %329 = vmatpush.bf16.msra.mxu1 %v2554_v29  ;;  %v2620_v27 = vld [vmem:[%s3210_s1 + $0x250] sm:$0xff]  ;;  %v2635_v33 = vld [vmem:[%s3210_s1 + $0x2c8] sm:$0xff]  ;;  %v2610_v34 = vld [vmem:[%s3210_s1 + $0x200] sm:$0xff] }
  0x2a   : > { %472 = vmatpush.bf16.msra.mxu2 %v2562_v36  ;;  %v2628_v28 = vld [vmem:[%s3210_s1 + $0x290] sm:$0xff]  ;;  %v2618_v35 = vld [vmem:[%s3210_s1 + $0x240] sm:$0xff]  ;;  %v2649_v36 = vld [vmem:[%s3210_s1 + $0x338] sm:$0xff] }
  0x2b   : > { %485 = vmatpush.bf16.msra.mxu3 %v2570_v37  ;;  %317 = vmatmul.bf16.vlgmr.msra.gmra.mxu0 %v2853_v40  ;;  %v2636_v29 = vld [vmem:[%s3210_s1 + $0x2d0] sm:$0xff]  ;;  %v2657_v37 = vld [vmem:[%s3210_s1 + $0x378] sm:$0xff] }
  0x2c   : > { %626 = vmatpush.bf16.msrb.mxu0 %v2585_v30  ;;  %330 = vmatmul.bf16.vlgmr.msra.gmra.mxu1 %v2855_v41  ;;  %v2611_v30 = vld [vmem:[%s3210_s1 + $0x208] sm:$0xff] }
  0x2d   : > { %639 = vmatpush.bf16.msrb.mxu1 %v2593_v31  ;;  %473 = vmatmul.bf16.vlgmr.msra.gmra.mxu2 %v2853_v40  ;;  %v2619_v31 = vld [vmem:[%s3210_s1 + $0x248] sm:$0xff] }
  0x2e   : > { %787 = vmatpush.bf16.msrb.mxu2 %v2601_v38  ;;  %486 = vmatmul.bf16.vlgmr.msra.gmra.mxu3 %v2855_v41  ;;  %v2626_v38 = vld [vmem:[%s3210_s1 + $0x280] sm:$0xff] }
  0x2f   : > { %800 = vmatpush.bf16.msrb.mxu3 %v2609_v39  ;;  %v2634_v39 = vld [vmem:[%s3210_s1 + $0x2c0] sm:$0xff] }
  0x30   : > { %627 = vmatpush.bf16.msrb.mxu0 %v2584_v42  ;;  %v2665_v42 = vld [vmem:[%s3210_s1 + $0x3b8] sm:$0xff] }
  0x31   : > { %640 = vmatpush.bf16.msrb.mxu1 %v2592_v43  ;;  %v2673_v43 = vld [vmem:[%s3210_s1 + $0x3f8] sm:$0xff] }
  0x32   : > { %788 = vmatpush.bf16.msrb.mxu2 %v2600_v44  ;;  %v2648_v44 = vld [vmem:[%s3210_s1 + $0x330] sm:$0xff] }
  0x33   : > { %801 = vmatpush.bf16.msrb.mxu3 %v2608_v45  ;;  %v2656_v45 = vld [vmem:[%s3210_s1 + $0x370] sm:$0xff] }
  0x34   : > { %628 = vmatpush.bf16.msrb.mxu0 %v2583_v46  ;;  %v2664_v46 = vld [vmem:[%s3210_s1 + $0x3b0] sm:$0xff] }
  0x35   : > { %641 = vmatpush.bf16.msrb.mxu1 %v2591_v47  ;;  %v2672_v47 = vld [vmem:[%s3210_s1 + $0x3f0] sm:$0xff] }
  0x36   : > { %789 = vmatpush.bf16.msrb.mxu2 %v2599_v48  ;;  %v2647_v48 = vld [vmem:[%s3210_s1 + $0x328] sm:$0xff] }
  0x37   : > { %802 = vmatpush.bf16.msrb.mxu3 %v2607_v49  ;;  %v2655_v49 = vld [vmem:[%s3210_s1 + $0x368] sm:$0xff] }
  0x38   : > { %629 = vmatpush.bf16.msrb.mxu0 %v2582_v50  ;;  %v2663_v50 = vld [vmem:[%s3210_s1 + $0x3a8] sm:$0xff] }
  0x39   : > { %642 = vmatpush.bf16.msrb.mxu1 %v2590_v51  ;;  %v2671_v51 = vld [vmem:[%s3210_s1 + $0x3e8] sm:$0xff] }
  0x3a   : > { %790 = vmatpush.bf16.msrb.mxu2 %v2598_v52  ;;  %v2646_v52 = vld [vmem:[%s3210_s1 + $0x320] sm:$0xff] }
  0x3b   : > { %803 = vmatpush.bf16.msrb.mxu3 %v2606_v53  ;;  %v2654_v53 = vld [vmem:[%s3210_s1 + $0x360] sm:$0xff] }
  0x3c   : > { %630 = vmatpush.bf16.msrb.mxu0 %v2581_v54  ;;  %v2662_v54 = vld [vmem:[%s3210_s1 + $0x3a0] sm:$0xff] }
  0x3d   : > { %643 = vmatpush.bf16.msrb.mxu1 %v2589_v55  ;;  %v2670_v55 = vld [vmem:[%s3210_s1 + $0x3e0] sm:$0xff] }
  0x3e   : > { %791 = vmatpush.bf16.msrb.mxu2 %v2597_v56  ;;  %v2645_v56 = vld [vmem:[%s3210_s1 + $0x318] sm:$0xff] }
  0x3f   : > { %804 = vmatpush.bf16.msrb.mxu3 %v2605_v57  ;;  %v2653_v57 = vld [vmem:[%s3210_s1 + $0x358] sm:$0xff] }
  0x40   : > { %631 = vmatpush.bf16.msrb.mxu0 %v2580_v58  ;;  %v2661_v58 = vld [vmem:[%s3210_s1 + $0x398] sm:$0xff] }
  0x41   : > { %644 = vmatpush.bf16.msrb.mxu1 %v2588_v59  ;;  %v2669_v59 = vld [vmem:[%s3210_s1 + $0x3d8] sm:$0xff] }
  0x42   : > { %792 = vmatpush.bf16.msrb.mxu2 %v2596_v60  ;;  %v2644_v60 = vld [vmem:[%s3210_s1 + $0x310] sm:$0xff] }
  0x43   : > { %805 = vmatpush.bf16.msrb.mxu3 %v2604_v61  ;;  %v2652_v61 = vld [vmem:[%s3210_s1 + $0x350] sm:$0xff] }
  0x44   : > { %632 = vmatpush.bf16.msrb.mxu0 %v2579_v62  ;;  %v2660_v62 = vld [vmem:[%s3210_s1 + $0x390] sm:$0xff] }
  0x45   : > { %645 = vmatpush.bf16.msrb.mxu1 %v2587_v63  ;;  %v2668_v63 = vld [vmem:[%s3210_s1 + $0x3d0] sm:$0xff] }
  0x46   : > { %793 = vmatpush.bf16.msrb.mxu2 %v2595_v0  ;;  %v2643_v0 = vld [vmem:[%s3210_s1 + $0x308] sm:$0xff] }
  0x47   : > { %806 = vmatpush.bf16.msrb.mxu3 %v2603_v1  ;;  %v2651_v1 = vld [vmem:[%s3210_s1 + $0x348] sm:$0xff] }
  0x48   : > { %633 = vmatpush.bf16.msrb.mxu0 %v2578_v2  ;;  %v2659_v2 = vld [vmem:[%s3210_s1 + $0x388] sm:$0xff] }
  0x49   : > { %646 = vmatpush.bf16.msrb.mxu1 %v2586_v3  ;;  %v2667_v3 = vld [vmem:[%s3210_s1 + $0x3c8] sm:$0xff] }
  0x4a   : > { %794 = vmatpush.bf16.msrb.mxu2 %v2594_v6  ;;  %v2681_v6 = vld [vmem:[%s3210_s1 + $0x438] sm:$0xff] }
  0x4b   : > { %807 = vmatpush.bf16.msrb.mxu3 %v2602_v7  ;;  %634 = vmatmul.bf16.vlgmr.msrb.gmra.mxu0 %v2853_v40  ;;  %v2689_v7 = vld [vmem:[%s3210_s1 + $0x478] sm:$0xff] }
  0x4c   : > { %948 = vmatpush.bf16.msra.mxu0 %v2617_v4  ;;  %647 = vmatmul.bf16.vlgmr.msrb.gmra.mxu1 %v2855_v41  ;;  %v2642_v4 = vld [vmem:[%s3210_s1 + $0x300] sm:$0xff] }
  0x4d   : > { %961 = vmatpush.bf16.msra.mxu1 %v2625_v5  ;;  %795 = vmatmul.bf16.vlgmr.msrb.gmra.mxu2 %v2853_v40  ;;  %v2650_v5 = vld [vmem:[%s3210_s1 + $0x340] sm:$0xff] }
  0x4e   : > { %1109 = vmatpush.bf16.msra.mxu2 %v2633_v8  ;;  %808 = vmatmul.bf16.vlgmr.msrb.gmra.mxu3 %v2855_v41  ;;  %v2658_v8 = vld [vmem:[%s3210_s1 + $0x380] sm:$0xff] }
  0x4f   : > { %1122 = vmatpush.bf16.msra.mxu3 %v2641_v9  ;;  %v2666_v9 = vld [vmem:[%s3210_s1 + $0x3c0] sm:$0xff] }
  0x50   : > { %949 = vmatpush.bf16.msra.mxu0 %v2616_v10  ;;  %v2680_v10 = vld [vmem:[%s3210_s1 + $0x430] sm:$0xff] }
  0x51   : > { %962 = vmatpush.bf16.msra.mxu1 %v2624_v11  ;;  %v2688_v11 = vld [vmem:[%s3210_s1 + $0x470] sm:$0xff] }
  0x52   : > { %1110 = vmatpush.bf16.msra.mxu2 %v2632_v12  ;;  %v2679_v12 = vld [vmem:[%s3210_s1 + $0x428] sm:$0xff] }
  0x53   : > { %1123 = vmatpush.bf16.msra.mxu3 %v2640_v13  ;;  %v2687_v13 = vld [vmem:[%s3210_s1 + $0x468] sm:$0xff] }
  0x54   : > { %950 = vmatpush.bf16.msra.mxu0 %v2615_v14  ;;  %v2678_v14 = vld [vmem:[%s3210_s1 + $0x420] sm:$0xff] }
  0x55   : > { %963 = vmatpush.bf16.msra.mxu1 %v2623_v15  ;;  %v2686_v15 = vld [vmem:[%s3210_s1 + $0x460] sm:$0xff] }
  0x56   : > { %1111 = vmatpush.bf16.msra.mxu2 %v2631_v16  ;;  %v2677_v16 = vld [vmem:[%s3210_s1 + $0x418] sm:$0xff] }
  0x57   : > { %1124 = vmatpush.bf16.msra.mxu3 %v2639_v17  ;;  %v2685_v17 = vld [vmem:[%s3210_s1 + $0x458] sm:$0xff] }
  0x58   : > { %951 = vmatpush.bf16.msra.mxu0 %v2614_v18  ;;  %v2676_v18 = vld [vmem:[%s3210_s1 + $0x410] sm:$0xff] }
  0x59   : > { %964 = vmatpush.bf16.msra.mxu1 %v2622_v19  ;;  %v2684_v19 = vld [vmem:[%s3210_s1 + $0x450] sm:$0xff] }
  0x5a   : > { %1112 = vmatpush.bf16.msra.mxu2 %v2630_v20  ;;  %v2675_v20 = vld [vmem:[%s3210_s1 + $0x408] sm:$0xff] }
  0x5b   : > { %1125 = vmatpush.bf16.msra.mxu3 %v2638_v21  ;;  %v2683_v21 = vld [vmem:[%s3210_s1 + $0x448] sm:$0xff] }
  0x5c   : > { %952 = vmatpush.bf16.msra.mxu0 %v2613_v22  ;;  %v2674_v22 = vld [vmem:[%s3210_s1 + $0x400] sm:$0xff] }
  0x5d   : > { %965 = vmatpush.bf16.msra.mxu1 %v2621_v23  ;;  %v2682_v23 = vld [vmem:[%s3210_s1 + $0x440] sm:$0xff] }
  0x5e   : > { %1113 = vmatpush.bf16.msra.mxu2 %v2629_v24 }
  0x5f   : > { %1126 = vmatpush.bf16.msra.mxu3 %v2637_v25 }
  0x60   : > { %953 = vmatpush.bf16.msra.mxu0 %v2612_v26 }
  0x61   : > { %966 = vmatpush.bf16.msra.mxu1 %v2620_v27 }
  0x62   : > { %1114 = vmatpush.bf16.msra.mxu2 %v2628_v28 }
  0x63   : > { %1127 = vmatpush.bf16.msra.mxu3 %v2636_v29 }
  0x64   : > { %954 = vmatpush.bf16.msra.mxu0 %v2611_v30 }
  0x65   : > { %967 = vmatpush.bf16.msra.mxu1 %v2619_v31 }
  0x66   : > { %1115 = vmatpush.bf16.msra.mxu2 %v2627_v32 }
  0x67   : > { %1128 = vmatpush.bf16.msra.mxu3 %v2635_v33 }
  0x68   : > { %955 = vmatpush.bf16.msra.mxu0 %v2610_v34 }
  0x69   : > { %968 = vmatpush.bf16.msra.mxu1 %v2618_v35 }
  0x6a   : > { %1116 = vmatpush.bf16.msra.mxu2 %v2626_v38 }
  0x6b   : > { %1129 = vmatpush.bf16.msra.mxu3 %v2634_v39  ;;  %956 = vmatmul.bf16.vlgmr.msra.gmra.mxu0 %v2853_v40 }
  0x6c   : > { %1270 = vmatpush.bf16.msrb.mxu0 %v2649_v36  ;;  %969 = vmatmul.bf16.vlgmr.msra.gmra.mxu1 %v2855_v41 }
  0x6d   : > { %1284 = vmatpush.bf16.msrb.mxu1 %v2657_v37  ;;  %1117 = vmatmul.bf16.vlgmr.msra.gmra.mxu2 %v2853_v40 }
  0x6e   : > { %1437 = vmatpush.bf16.msrb.mxu2 %v2665_v42  ;;  %1130 = vmatmul.bf16.vlgmr.msra.gmra.mxu3 %v2855_v41 }
  0x6f   : > { %1451 = vmatpush.bf16.msrb.mxu3 %v2673_v43 }
  0x70   : > { %1271 = vmatpush.bf16.msrb.mxu0 %v2648_v44 }
  0x71   : > { %1285 = vmatpush.bf16.msrb.mxu1 %v2656_v45 }
  0x72   : > { %1438 = vmatpush.bf16.msrb.mxu2 %v2664_v46 }
  0x73   : > { %1452 = vmatpush.bf16.msrb.mxu3 %v2672_v47 }
  0x74   : > { %1272 = vmatpush.bf16.msrb.mxu0 %v2647_v48 }
  0x75   : > { %1286 = vmatpush.bf16.msrb.mxu1 %v2655_v49 }
  0x76   : > { %1439 = vmatpush.bf16.msrb.mxu2 %v2663_v50 }
  0x77   : > { %1453 = vmatpush.bf16.msrb.mxu3 %v2671_v51 }
  0x78   : > { %1273 = vmatpush.bf16.msrb.mxu0 %v2646_v52 }
  0x79   : > { %1287 = vmatpush.bf16.msrb.mxu1 %v2654_v53 }
  0x7a   : > { %1440 = vmatpush.bf16.msrb.mxu2 %v2662_v54 }
  0x7b   : > { %1454 = vmatpush.bf16.msrb.mxu3 %v2670_v55 }
  0x7c   : > { %1274 = vmatpush.bf16.msrb.mxu0 %v2645_v56 }
  0x7d   : > { %1288 = vmatpush.bf16.msrb.mxu1 %v2653_v57 }
  0x7e   : > { %1441 = vmatpush.bf16.msrb.mxu2 %v2661_v58 }
  0x7f   : > { %1455 = vmatpush.bf16.msrb.mxu3 %v2669_v59 }
  0x80   : > { %1275 = vmatpush.bf16.msrb.mxu0 %v2644_v60 }
  0x81   : > { %1289 = vmatpush.bf16.msrb.mxu1 %v2652_v61 }
  0x82   : > { %1442 = vmatpush.bf16.msrb.mxu2 %v2660_v62 }
  0x83   : > { %1456 = vmatpush.bf16.msrb.mxu3 %v2668_v63 }
  0x84   : > { %1276 = vmatpush.bf16.msrb.mxu0 %v2643_v0 }
  0x85   : > { %1290 = vmatpush.bf16.msrb.mxu1 %v2651_v1 }
  0x86   : > { %1443 = vmatpush.bf16.msrb.mxu2 %v2659_v2 }
  0x87   : > { %1457 = vmatpush.bf16.msrb.mxu3 %v2667_v3 }
  0x88   : > { %1277 = vmatpush.bf16.msrb.mxu0 %v2642_v4 }
  0x89   : > { %1291 = vmatpush.bf16.msrb.mxu1 %v2650_v5 }
  0x8a   : > { %1444 = vmatpush.bf16.msrb.mxu2 %v2658_v8 }
  0x8b   : > { %1458 = vmatpush.bf16.msrb.mxu3 %v2666_v9  ;;  %1278 = vmatmul.bf16.vlgmr.msrb.gmra.mxu0 %v2853_v40 }
  0x8c   : > { %1604 = vmatpush.bf16.msra.mxu0 %v2681_v6  ;;  %1292 = vmatmul.bf16.vlgmr.msrb.gmra.mxu1 %v2855_v41 }
  0x8d   : > { %1617 = vmatpush.bf16.msra.mxu1 %v2689_v7  ;;  %1445 = vmatmul.bf16.vlgmr.msrb.gmra.mxu2 %v2853_v40 }
  0x8e   : > { %1459 = vmatmul.bf16.vlgmr.msrb.gmra.mxu3 %v2855_v41 }
  0x90   : > { %1605 = vmatpush.bf16.msra.mxu0 %v2680_v10 }
  0x91   : > { %1618 = vmatpush.bf16.msra.mxu1 %v2688_v11 }
  0x94   : > { %1606 = vmatpush.bf16.msra.mxu0 %v2679_v12 }
  0x95   : > { %1619 = vmatpush.bf16.msra.mxu1 %v2687_v13 }
  0x98   : > { %1607 = vmatpush.bf16.msra.mxu0 %v2678_v14 }
  0x99   : > { %1620 = vmatpush.bf16.msra.mxu1 %v2686_v15 }
  0x9c   : > { %1608 = vmatpush.bf16.msra.mxu0 %v2677_v16 }
  0x9d   : > { %1621 = vmatpush.bf16.msra.mxu1 %v2685_v17 }
  0xa0   : > { %1609 = vmatpush.bf16.msra.mxu0 %v2676_v18 }
  0xa1   : > { %1622 = vmatpush.bf16.msra.mxu1 %v2684_v19 }
  0xa4   : > { %1610 = vmatpush.bf16.msra.mxu0 %v2675_v20 }
  0xa5   : > { %1623 = vmatpush.bf16.msra.mxu1 %v2683_v21 }
  0xa8   : > { %1611 = vmatpush.bf16.msra.mxu0 %v2674_v22  ;;  %v318_v24 = vpop.f32.mrf.mxu0 }
  0xa9   : > { %1624 = vmatpush.bf16.msra.mxu1 %v2682_v23  ;;  %v331_v25 = vpop.f32.mrf.mxu1 }
  0xaa   : > { %v332_v26 = vadd.f32 %v331_v25, %v318_v24 }
  0xab   : > { %1612 = vmatmul.bf16.vlgmr.msra.gmra.mxu0 %v2853_v40 }
  0xac   : > { %1625 = vmatmul.bf16.vlgmr.msra.gmra.mxu1 %v2855_v41  ;;  %335 = vst [vmem:[#allocation2] sm:$0x7] %v332_v26 }
  0xb0   : > { %v320_v27 = vpop.f32.mrf.mxu0  ;;  %v474_v29 = vpop.f32.mrf.mxu2 }
  0xb1   : > { %v333_v28 = vpop.f32.mrf.mxu1  ;;  %v487_v30 = vpop.f32.mrf.mxu3 }
  0xb2   : > { %v488_v31 = vadd.f32 %v487_v30, %v474_v29 }
  0xb3   : > { %v491_v32 = vld [vmem:[#allocation2] sm:$0x7] }
  0xb4   : > { %v493_v33 = vrot.slane %v488_v31, 1 }
  0xb6   : > { %v495_v34 = vadd.f32 %v493_v33, %v491_v32 }
  0xb8   : > { %496 = vst [vmem:[#allocation2] sm:$0x7] %v495_v34  ;;  %v476_v35 = vpop.f32.mrf.mxu2  ;;  %v2698_v34 = vld [vmem:[%s3211_s2] ss:$0 sm:$0xff] }
  0xb9   : > { %v489_v36 = vpop.f32.mrf.mxu3 }
  0xbf   : > { %v652_v39 = vld [vmem:[#allocation2] sm:$0x7] }
  0xc8   : > { %v635_v37 = vpop.f32.mrf.mxu0 }
  0xc9   : > { %v648_v38 = vpop.f32.mrf.mxu1 }
  0xca   : > { %v649_v40 = vadd.f32 %v648_v38, %v635_v37 }
  0xcc   : > { %v654_v41 = vrot.slane %v649_v40, 2 }
  0xce   : > { %v656_v42 = vadd.f32 %v654_v41, %v652_v39 }
  0xd0   : > { %657 = vst [vmem:[#allocation2] sm:$0x7] %v656_v42  ;;  %v796_v43 = vpop.f32.mrf.mxu2  ;;  %v637_v46 = vpop.f32.mrf.mxu0 }
  0xd1   : > { %v809_v44 = vpop.f32.mrf.mxu3  ;;  %v650_v47 = vpop.f32.mrf.mxu1 }
  0xd2   : > { %v810_v45 = vadd.f32 %v809_v44, %v796_v43 }
  0xd4   : > { %v815_v48 = vrot.slane %v810_v45, 3 }
  0xd7   : > { %v813_v49 = vld [vmem:[#allocation2] sm:$0x7] }
  0xd8   : > { %v817_v50 = vadd.f32 %v815_v48, %v813_v49  ;;  %v798_v51 = vpop.f32.mrf.mxu2 }
  0xd9   : > { %v811_v52 = vpop.f32.mrf.mxu3 }
  0xda   : > { %818 = vst [vmem:[#allocation2] sm:$0x7] %v817_v50 }
  0xe1   : > { %v974_v56 = vld [vmem:[#allocation2] sm:$0x7] }
  0xe8   : > { %v957_v53 = vpop.f32.mrf.mxu0 }
  0xe9   : > { %v970_v54 = vpop.f32.mrf.mxu1 }
  0xea   : > { %v971_v55 = vadd.f32 %v970_v54, %v957_v53 }
  0xec   : > { %v976_v57 = vrot.slane %v971_v55, 4 }
  0xee   : > { %v978_v58 = vadd.f32 %v976_v57, %v974_v56 }
  0xf0   : > { %979 = vst [vmem:[#allocation2] sm:$0x7] %v978_v58  ;;  %v1118_v59 = vpop.f32.mrf.mxu2  ;;  %v959_v62 = vpop.f32.mrf.mxu0 }
  0xf1   : > { %v1131_v60 = vpop.f32.mrf.mxu3  ;;  %v972_v63 = vpop.f32.mrf.mxu1 }
  0xf2   : > { %v1132_v61 = vadd.f32 %v1131_v60, %v1118_v59 }
  0xf4   : > { %v1137_v0 = vrot.slane %v1132_v61, 5 }
  0xf7   : > { %v1135_v1 = vld [vmem:[#allocation2] sm:$0x7] }
  0xf8   : > { %v1139_v2 = vadd.f32 %v1137_v0, %v1135_v1  ;;  %v1120_v3 = vpop.f32.mrf.mxu2 }
  0xf9   : > { %v1133_v4 = vpop.f32.mrf.mxu3 }
  0xfa   : > { %1140 = vst [vmem:[#allocation2] sm:$0x7] %v1139_v2 }
 0x101   : > { %v1298_v15 = vld [vmem:[#allocation2] sm:$0x7] }
 0x108   : > { %v1279_v5 = vpop.f32.mrf.mxu0 }
 0x109   : > { %v1293_v6 = vpop.f32.mrf.mxu1 }
 0x10a   : > { %v1294_v7 = vadd.f32 %v1293_v6, %v1279_v5 }
 0x10c   : > { %v1302_v13 = vrot.slane %v1294_v7, 6 }
 0x110   : > { %v1281_v8 = vpop.f32.mrf.mxu0  ;;  %v1446_v11 = vpop.f32.mrf.mxu2 }
 0x111   : > { %v1295_v9 = vpop.f32.mrf.mxu1  ;;  %v1460_v12 = vpop.f32.mrf.mxu3 }
 0x112   : > { %v1296_v10 = vadd.f32 %v1295_v9, %v1281_v8  ;;  %v1461_v18 = vadd.f32 %v1460_v12, %v1446_v11 }
 0x114   : > { %v1303_v14 = vrot.slane %v1296_v10, 6  ;;  %v1469_v22 = vrot.slane %v1461_v18, 7 }
 0x116   : > { %v1304_v16 = vsel %vm1301_vm0, %v1302_v13, %v1303_v14 }
 0x117   : > { %v1306_v17 = vadd.f32 %v1304_v16, %v1298_v15 }
 0x118   : > { %v1448_v19 = vpop.f32.mrf.mxu2 }
 0x119   : > { %1307 = vst [vmem:[#allocation2] sm:$0x7] %v1306_v17  ;;  %v1462_v20 = vpop.f32.mrf.mxu3 }
 0x11a   : > { %v1463_v21 = vadd.f32 %v1462_v20, %v1448_v19 }
 0x11c   : > { %v1470_v23 = vrot.slane %v1463_v21, 7 }
 0x11e   : > { %v1471_v25 = vsel %vm1468_vm1, %v1469_v22, %v1470_v23 }
 0x120   : > { %v1465_v24 = vld [vmem:[#allocation2] sm:$0x7] }
 0x121   : > { %v1473_v26 = vadd.f32 %v1471_v25, %v1465_v24 }
 0x123   : > { %1474 = vst [vmem:[#allocation2] sm:$0x7] %v1473_v26 }
 0x128   : > { %v1613_v27 = vpop.f32.mrf.mxu0 }
 0x129   : > { %v1626_v28 = vpop.f32.mrf.mxu1 }
 0x12a   : > { %v1630_v32 = vld [vmem:[#allocation2] sm:$0x7] }
 0x130   : > { %v1614_v29 = vpop.f32.mrf.mxu0 }
 0x131   : > { %v1627_v30 = vpop.f32.mrf.mxu1 }
 0x132   : > { %v1628_v31 = vadd.f32 %v1627_v30, %v1614_v29 }
 0x134   : > { %v1631_v33 = vadd.f32 %v1630_v32, %v1628_v31 }
 0x136   : > { %1632 = vst [vmem:[#allocation2] sm:$0x7] %v1631_v33 }
 0x13d   : > { %v1633_v35 = vld [vmem:[#allocation2] sm:$0x7] }
 0x13e   : > { %v1638_v36 = vadd.f32 %v2698_v34, %v1633_v35 }
 0x140   : > { %1639 = vst [vmem:[%s168_s9] sm:$0x7] %v1638_v36 }
 0x141 PF: > { %s13_s12 = sadd.s32 1, %s2705_s12  }
 0x142   : > { %p10_p4 = scmp.ge.s32.totalorder %s13_s12, 4  }
 0x144   :  { %12 = sbr.rel (!%p10_p4) target bundleno = 1 (0x1), region = 70 }

</bundles_post_ra>
